<compile_context>
chip_gen: v7x
topology: tpu7x:2x2x1
jax: 0.10.0
libtpu: 0.0.40
codegen_flags: <defaults>
</compile_context>

<pallas_src>
import math

import jax
import jax.numpy as jnp
from jax.experimental import pallas as pl
from jax.experimental.pallas import tpu as pltpu


# ------------------------------ RoPE helper ------------------------------- #
def _rope(v, cos2, sin2):
    """v*cos + pair_swap(v)*signed_sin, all in f32.

    pair_swap puts v[2i+1] at lane 2i and v[2i] at lane 2i+1 using two XLU
    rolls + a lane-parity select; sin2 carries the (-s, +s) sign pattern so no
    extra negation is needed.  Equivalent to complex rotation by (cos, sin).
    """
    d = v.shape[1]
    lane = jax.lax.broadcasted_iota(jnp.int32, v.shape, 1)
    swapped = jnp.where(lane % 2 == 0,
                        pltpu.roll(v, shift=d - 1, axis=1),   # v[i+1] at even lanes
                        pltpu.roll(v, shift=1, axis=1))       # v[i-1] at odd lanes
    return v * cos2 + swapped * sin2


# -------------------- kernel 1: projections + RoPE ------------------------ #
def mqa_proj_kernel(x_ref, wq_ref, wk_ref, wv_ref, cos_ref, sin_ref,
                    q_ref, kT_ref, v_ref):
    """Computes roped/scaled Q (per head), roped+transposed K, and V in bf16.

    Runs once per sequence tile (NOT per q tile), so the O(seq*hidden) work is
    never recomputed by the attention kernel.
    """
    n_kv_heads = q_ref.shape[1]
    n_rep = q_ref.shape[2]
    head_dim = q_ref.shape[4]
    scale = jnp.float32(1.0 / math.sqrt(head_dim))

    x = x_ref[0]                        # (blk, hidden) bf16
    cos = cos_ref[...]                  # (blk, head_dim) f32
    sin = sin_ref[...]                  # (blk, head_dim) f32 (sign-folded)

    qp = jnp.dot(x, wq_ref[...], preferred_element_type=jnp.float32)   # (blk, hidden)
    kp = jnp.dot(x, wk_ref[...], preferred_element_type=jnp.float32)   # (blk, kv_dim)
    vp = jnp.dot(x, wv_ref[...], preferred_element_type=jnp.float32)   # (blk, kv_dim)

    for g in range(n_kv_heads):
        k_g = _rope(kp[:, g * head_dim:(g + 1) * head_dim], cos, sin)  # (blk, hd) f32
        kT_ref[0, g] = k_g.T.astype(jnp.bfloat16)     # pre-transposed: (hd, blk)
        v_ref[0, g] = vp[:, g * head_dim:(g + 1) * head_dim].astype(jnp.bfloat16)
        for h in range(n_rep):
            hg = g * n_rep + h
            q_h = _rope(qp[:, hg * head_dim:(hg + 1) * head_dim], cos, sin) * scale
            q_ref[0, g, h] = q_h.astype(jnp.bfloat16)


# -------- kernel 2: flash attention (online softmax) + output proj -------- #
def mqa_attn_kernel(q_ref, kT_ref, v_ref, wo_ref, o_ref,
                    m_sc, l_sc, acc_sc, opack_sc):
    n_kv_heads = q_ref.shape[1]
    n_rep = q_ref.shape[2]
    q_block = q_ref.shape[3]
    head_dim = q_ref.shape[4]
    kv_block = kT_ref.shape[3]
    rows = n_rep * q_block

    qi = pl.program_id(1)
    ki = pl.program_id(2)
    q_start = qi * q_block
    kv_start = ki * kv_block

    @pl.when(ki == 0)
    def _init():
        m_sc[...] = jnp.full_like(m_sc, -jnp.inf)
        l_sc[...] = jnp.zeros_like(l_sc)
        acc_sc[...] = jnp.zeros_like(acc_sc)

    # Skip causal-dead KV tiles: kv_start beyond the last query position here.
    @pl.when(kv_start <= q_start + q_block - 1)
    def _compute():
        r_idx = jax.lax.broadcasted_iota(jnp.int32, (rows, kv_block), 0)
        c_idx = jax.lax.broadcasted_iota(jnp.int32, (rows, kv_block), 1)
        keep = (kv_start + c_idx) <= (q_start + r_idx % q_block)
        neg_big = jnp.float32(-1e30)    # finite: no NaN on partially-masked rows

        for g in range(n_kv_heads):
            # n_rep query heads of this KV group folded along the sublane axis:
            # one big QK^T / P@V per group instead of n_rep tiny matmuls.
            q_fold = q_ref[0, g].reshape(rows, head_dim)   # bf16, roped, pre-scaled
            kT_g = kT_ref[0, g]                            # (head_dim, kv_block) bf16
            v_g = v_ref[0, g]                              # (kv_block, head_dim) bf16

            s = jnp.dot(q_fold, kT_g, preferred_element_type=jnp.float32)
            s = jnp.where(keep, s, neg_big)

            m_prev = m_sc[g]                               # (rows, 1) f32
            m_new = jnp.maximum(m_prev, jnp.max(s, axis=-1, keepdims=True))
            alpha = jnp.exp(m_prev - m_new)
            p = jnp.exp(s - m_new)
            l_sc[g] = alpha * l_sc[g] + jnp.sum(p, axis=-1, keepdims=True)
            acc_sc[g] = alpha * acc_sc[g] + jnp.dot(
                p.astype(jnp.bfloat16), v_g, preferred_element_type=jnp.float32)
            m_sc[g] = m_new

    @pl.when(ki == pl.num_programs(2) - 1)
    def _finalize():
        # Lane-pack the per-head outputs into a (q_block, hidden) bf16 VMEM
        # scratch, then do one full-depth (K = hidden) output-projection matmul.
        for g in range(n_kv_heads):
            o_g = acc_sc[g] * pl.reciprocal(l_sc[g], approx=True)   # (rows, hd) f32
            for h in range(n_rep):
                hg = g * n_rep + h
                opack_sc[:, hg * head_dim:(hg + 1) * head_dim] = (
                    o_g[h * q_block:(h + 1) * q_block, :].astype(jnp.bfloat16))
        out = jnp.dot(opack_sc[...], wo_ref[...], preferred_element_type=jnp.float32)
        o_ref[0] = out.astype(o_ref.dtype)


# ------------------------------ host helpers ------------------------------ #
def rope_tables(head_dim, seq_len, theta=1e6):
    """cos duplicated per pair; sin duplicated with alternating (-, +) sign."""
    half = head_dim // 2
    freqs = 1.0 / (theta ** (jnp.arange(0, head_dim, 2)[:half].astype(jnp.float32)
                             / head_dim))
    ang = jnp.outer(jnp.arange(seq_len, dtype=jnp.float32), freqs)   # (seq, hd//2)
    cos = jnp.repeat(jnp.cos(ang), 2, axis=-1)                       # (seq, hd)
    sin = jnp.repeat(jnp.sin(ang), 2, axis=-1)
    sign = jnp.tile(jnp.array([-1.0, 1.0], jnp.float32), half)       # (-s,+s,...)
    return cos, sin * sign


def _pick_seq_block(seq_len, cap, lane_aligned):
    """Largest block <= cap dividing seq_len.  lane_aligned blocks (the lane dim
    of the pre-transposed K layout) must be a multiple of 128 or the full seq."""
    cands = (512, 384, 256, 128) if lane_aligned else (512, 256, 128, 64, 32, 16, 8)
    for c in cands:
        if c <= cap and seq_len % c == 0:
            return c
    return seq_len


def _clamp_vmem(est_bytes):
    # 2x headroom for compiler-internal scratch; stay below v7x's 64 MiB physical
    # VMEM unless the working set itself needs more (v5e/v6e have 128 MiB).
    return int(max(min(2 * est_bytes, 56 << 20), int(1.25 * est_bytes), 16 << 20))


def _invariant_spec(shape, single_buffer):
    index_map = lambda *_: tuple(0 for _ in shape)
    if single_buffer:
        return pl.BlockSpec(shape, index_map, pipeline_mode=pl.Buffered(1))
    return pl.BlockSpec(shape, index_map)


def _mqa_forward(x, wq, wk, wv, wo, *, n_heads, n_kv_heads,
                 q_block, kv_block, theta, single_buffer_invariants):
    bsz, seq, hidden = x.shape
    assert hidden % n_heads == 0 and n_heads % n_kv_heads == 0
    head_dim = hidden // n_heads
    assert head_dim % 2 == 0
    n_rep = n_heads // n_kv_heads
    kv_dim = n_kv_heads * head_dim

    # rows = n_rep * q_block bounded so folded-Q / acc working sets stay in VMEM.
    if q_block is None:
        q_block = _pick_seq_block(seq, max(8, 512 // n_rep), lane_aligned=False)
    # kv_block is the lane dim of the pre-transposed K blocks.
    if kv_block is None:
        kv_block = _pick_seq_block(seq, 256, lane_aligned=True)
    assert seq % q_block == 0 and seq % kv_block == 0
    assert q_block % 8 == 0 or q_block == seq
    assert kv_block % 128 == 0 or kv_block == seq
    n_q, n_kv = seq // q_block, seq // kv_block
    rows = n_rep * q_block

    # projection-kernel sequence tile (lane dim of its K^T output block).
    p_blk = _pick_seq_block(seq, 256, lane_aligned=True)
    n_p = seq // p_blk

    cos, sin_signed = rope_tables(head_dim, seq, theta)     # (seq, head_dim) f32

    # bf16 at the call boundary: half the HBM<->VMEM bytes, native MXU operands.
    x_b = x.astype(jnp.bfloat16)
    wq_b, wk_b, wv_b, wo_b = (w.astype(jnp.bfloat16) for w in (wq, wk, wv, wo))
    sb = single_buffer_invariants

    # ---------- phase 1: Q/K/V projection + RoPE (once per seq tile) ----------
    proj_vmem = (2 * (p_blk * hidden * 2                       # x tile (bf16, 2-buf)
                      + n_heads * p_blk * head_dim * 2         # q out
                      + 2 * kv_dim * p_blk * 2                 # kT + v out
                      + 2 * p_blk * head_dim * 4)              # cos / sin
                 + (hidden * hidden + 2 * hidden * kv_dim) * 2  # weights (1-buf)
                 + 4 * p_blk * (hidden + 2 * kv_dim) * 4)       # f32 intermediates
    q_f, kT, v = pl.pallas_call(
        mqa_proj_kernel,
        out_shape=(
            jax.ShapeDtypeStruct((bsz, n_kv_heads, n_rep, seq, head_dim), jnp.bfloat16),
            jax.ShapeDtypeStruct((bsz, n_kv_heads, head_dim, seq), jnp.bfloat16),
            jax.ShapeDtypeStruct((bsz, n_kv_heads, seq, head_dim), jnp.bfloat16),
        ),
        grid_spec=pltpu.PrefetchScalarGridSpec(
            num_scalar_prefetch=0,
            grid=(bsz, n_p),
            in_specs=[
                pl.BlockSpec((1, p_blk, hidden), lambda b, s: (b, s, 0)),
                _invariant_spec((hidden, hidden), sb),                # wq
                _invariant_spec((hidden, kv_dim), sb),                # wk
                _invariant_spec((hidden, kv_dim), sb),                # wv
                pl.BlockSpec((p_blk, head_dim), lambda b, s: (s, 0)),  # cos
                pl.BlockSpec((p_blk, head_dim), lambda b, s: (s, 0)),  # signed sin
            ],
            out_specs=[
                pl.BlockSpec((1, n_kv_heads, n_rep, p_blk, head_dim),
                             lambda b, s: (b, 0, 0, s, 0)),
                pl.BlockSpec((1, n_kv_heads, head_dim, p_blk),
                             lambda b, s: (b, 0, 0, s)),
                pl.BlockSpec((1, n_kv_heads, p_blk, head_dim),
                             lambda b, s: (b, 0, s, 0)),
            ],
        ),
        compiler_params=pltpu.CompilerParams(
            dimension_semantics=("parallel", "parallel"),
            vmem_limit_bytes=_clamp_vmem(proj_vmem),
        ),
    )(x_b, wq_b, wk_b, wv_b, cos, sin_signed)

    # -------- phase 2: flash attention over KV tiles + output projection ------
    attn_vmem = (2 * n_heads * q_block * head_dim * 2        # q blocks (2-buf)
                 + 2 * 2 * kv_dim * kv_block * 2             # kT + v blocks (2-buf)
                 + hidden * hidden * 2                        # wo (1-buf)
                 + 2 * q_block * hidden * 4                   # output blocks
                 + n_kv_heads * rows * (head_dim + 2) * 4     # m / l / acc scratch
                 + q_block * hidden * 2                       # lane-pack scratch
                 + 4 * rows * kv_block * 4)                   # s / p headroom
    out = pl.pallas_call(
        mqa_attn_kernel,
        out_shape=jax.ShapeDtypeStruct((bsz, seq, hidden), x.dtype),
        grid_spec=pltpu.PrefetchScalarGridSpec(
            num_scalar_prefetch=0,
            grid=(bsz, n_q, n_kv),
            in_specs=[
                pl.BlockSpec((1, n_kv_heads, n_rep, q_block, head_dim),
                             lambda b, qi, ki: (b, 0, 0, qi, 0)),
                pl.BlockSpec((1, n_kv_heads, head_dim, kv_block),
                             lambda b, qi, ki: (b, 0, 0, ki)),
                pl.BlockSpec((1, n_kv_heads, kv_block, head_dim),
                             lambda b, qi, ki: (b, 0, ki, 0)),
                _invariant_spec((hidden, hidden), sb),        # wo
            ],
            out_specs=pl.BlockSpec((1, q_block, hidden),
                                   lambda b, qi, ki: (b, qi, 0)),
            scratch_shapes=[
                pltpu.VMEM((n_kv_heads, rows, 1), jnp.float32),         # m
                pltpu.VMEM((n_kv_heads, rows, 1), jnp.float32),         # l
                pltpu.VMEM((n_kv_heads, rows, head_dim), jnp.float32),  # acc
                pltpu.VMEM((q_block, hidden), jnp.bfloat16),            # lane-pack
            ],
        ),
        compiler_params=pltpu.CompilerParams(
            dimension_semantics=("parallel", "parallel", "arbitrary"),
            vmem_limit_bytes=_clamp_vmem(attn_vmem),
        ),
    )(q_f, kT, v, wo_b)
    return out


def mqa_forward(x, wq, wk, wv, wo, *, n_heads, n_kv_heads,
                q_block=None, kv_block=None, theta=1e6):
    try:
        return _mqa_forward(x, wq, wk, wv, wo, n_heads=n_heads,
                            n_kv_heads=n_kv_heads, q_block=q_block,
                            kv_block=kv_block, theta=theta,
                            single_buffer_invariants=True)
    except Exception:
        # Fallback for jax versions that reject pl.Buffered(1) single-buffering
        # of grid-invariant operands; everything else is identical.
        return _mqa_forward(x, wq, wk, wv, wo, n_heads=n_heads,
                            n_kv_heads=n_kv_heads, q_block=q_block,
                            kv_block=kv_block, theta=theta,
                            single_buffer_invariants=False)


# ------------------------ pure-JAX reference (check) ----------------------- #
def mqa_reference(x, wq, wk, wv, wo, *, n_heads, n_kv_heads):
    bsz, seq, hidden = x.shape
    head_dim = hidden // n_heads
    n_rep = n_heads // n_kv_heads
    xq = (x @ wq).reshape(bsz, seq, n_heads, head_dim)
    xk = (x @ wk).reshape(bsz, seq, n_kv_heads, head_dim)
    xv = (x @ wv).reshape(bsz, seq, n_kv_heads, head_dim)

    freqs = 1.0 / (1e6 ** (jnp.arange(0, head_dim, 2)[: head_dim // 2]
                           .astype(jnp.float32) / head_dim))
    ang = jnp.outer(jnp.arange(seq, dtype=jnp.float32), freqs)
    cis = jnp.cos(ang) + 1j * jnp.sin(ang)

    def rope(t):
        tc = t.reshape(*t.shape[:-1], -1, 2)
        tc = tc[..., 0] + 1j * tc[..., 1]
        tc = tc * cis[None, :, None, :]
        return jnp.stack([tc.real, tc.imag], axis=-1).reshape(t.shape)

    xq, xk = rope(xq), rope(xk)
    xk = jnp.repeat(xk, n_rep, axis=2)
    xv = jnp.repeat(xv, n_rep, axis=2)
    q, k, v = (t.transpose(0, 2, 1, 3) for t in (xq, xk, xv))
    s = q @ k.transpose(0, 1, 3, 2) / math.sqrt(head_dim)
    s = s + jnp.triu(jnp.full((seq, seq), -jnp.inf, jnp.float32), 1)
    p = jax.nn.softmax(s, axis=-1)
    o = (p @ v).transpose(0, 2, 1, 3).reshape(bsz, seq, hidden)
    return o @ wo


# ---------------------------------- main ----------------------------------- #
if __name__ == "__main__":
    # Small, lane-aligned config consistent with the module (head_dim = hidden/n_heads).
    bsz, seq_len = 2, 256
    hidden_dim, n_heads, n_kv_heads = 256, 2, 1        # head_dim = 128, n_rep = 2
    head_dim = hidden_dim // n_heads
    kv_dim = n_kv_heads * head_dim

    key = jax.random.PRNGKey(0)
    kx, kq, kk, kv_, ko = jax.random.split(key, 5)
    bound = 1.0 / math.sqrt(hidden_dim)                # nn.Linear-style uniform init
    x  = jax.random.normal(kx, (bsz, seq_len, hidden_dim), jnp.float32)
    wq = jax.random.uniform(kq, (hidden_dim, hidden_dim), jnp.float32, -bound, bound)
    wk = jax.random.uniform(kk, (hidden_dim, kv_dim), jnp.float32, -bound, bound)
    wv = jax.random.uniform(kv_, (hidden_dim, kv_dim), jnp.float32, -bound, bound)
    wo = jax.random.uniform(ko, (hidden_dim, hidden_dim), jnp.float32, -bound, bound)

    # q_block = kv_block = 128 -> 2x2 (q, kv) tiles: exercises the online-softmax
    # accumulation across KV tiles and the causal-dead-tile skip.
    out = jax.block_until_ready(
        mqa_forward(x, wq, wk, wv, wo, n_heads=n_heads, n_kv_heads=n_kv_heads,
                    q_block=128, kv_block=128))

    ref = mqa_reference(x, wq, wk, wv, wo, n_heads=n_heads, n_kv_heads=n_kv_heads)
    assert out.shape == (bsz, seq_len, hidden_dim)
    err = float(jnp.max(jnp.abs(out - ref)))
    # bf16 MXU operands + approximate reciprocal -> looser tolerance than pure f32
    assert jnp.allclose(out, ref, rtol=3e-2, atol=3e-2), f"max abs err {err}"

    print("KERNEL_OK")
</pallas_src>

<mosaic_0001>
module attributes {stable_mosaic.version = 11 : i64} {
  func.func @mqa_proj_kernel(%arg0: i32, %arg1: i32, %arg2: memref<1x256x256xbf16, #tpu.memory_space<vmem>>, %arg3: memref<256x256xbf16, #tpu.memory_space<vmem>>, %arg4: memref<256x128xbf16, #tpu.memory_space<vmem>>, %arg5: memref<256x128xbf16, #tpu.memory_space<vmem>>, %arg6: memref<256x128xf32, #tpu.memory_space<vmem>>, %arg7: memref<256x128xf32, #tpu.memory_space<vmem>>, %arg8: memref<1x1x2x256x128xbf16, #tpu.memory_space<vmem>>, %arg9: memref<1x1x128x256xbf16, #tpu.memory_space<vmem>>, %arg10: memref<1x1x256x128xbf16, #tpu.memory_space<vmem>>) attributes {dimension_semantics = [#tpu.dimension_semantics<parallel>, #tpu.dimension_semantics<parallel>], iteration_bounds = array<i64: 2, 1>, scalar_prefetch = 0 : i64, scratch_operands = 0 : i64, tpu.core_type = #tpu.core_type<tc>, window_params = [{transform_indices = @transform_0, window_bounds = array<i64: 1, 256, 256>}, {pipeline_mode = #tpu.pipeline_mode<synchronous>, transform_indices = @transform_1, window_bounds = array<i64: 256, 256>}, {pipeline_mode = #tpu.pipeline_mode<synchronous>, transform_indices = @transform_2, window_bounds = array<i64: 256, 128>}, {pipeline_mode = #tpu.pipeline_mode<synchronous>, transform_indices = @transform_3, window_bounds = array<i64: 256, 128>}, {transform_indices = @transform_4, window_bounds = array<i64: 256, 128>}, {transform_indices = @transform_5, window_bounds = array<i64: 256, 128>}, {transform_indices = @transform_6, window_bounds = array<i64: 1, 1, 2, 256, 128>}, {transform_indices = @transform_7, window_bounds = array<i64: 1, 1, 128, 256>}, {transform_indices = @transform_8, window_bounds = array<i64: 1, 1, 256, 128>}]} {
    %c0 = arith.constant 0 : index
    %c0_0 = arith.constant 0 : index
    %c0_1 = arith.constant 0 : index
    %0 = vector.load %arg2[%c0, %c0_0, %c0_1] : memref<1x256x256xbf16, #tpu.memory_space<vmem>>, vector<1x256x256xbf16>
    %1 = vector.shape_cast %0 : vector<1x256x256xbf16> to vector<256x256xbf16>
    %c0_2 = arith.constant 0 : index
    %c0_3 = arith.constant 0 : index
    %2 = vector.load %arg6[%c0_2, %c0_3] : memref<256x128xf32, #tpu.memory_space<vmem>>, vector<256x128xf32>
    %c0_4 = arith.constant 0 : index
    %c0_5 = arith.constant 0 : index
    %3 = vector.load %arg7[%c0_4, %c0_5] : memref<256x128xf32, #tpu.memory_space<vmem>>, vector<256x128xf32>
    %c0_6 = arith.constant 0 : index
    %c0_7 = arith.constant 0 : index
    %4 = vector.load %arg3[%c0_6, %c0_7] : memref<256x256xbf16, #tpu.memory_space<vmem>>, vector<256x256xbf16>
    %cst = arith.constant dense<0.000000e+00> : vector<256x256xf32>
    %5 = tpu.matmul %1, %4, %cst {dimension_numbers = #tpu.dot_dimension_numbers<[1], [0], [0], [1], [0, 0, 1, 1], [], []>} : vector<256x256xbf16>, vector<256x256xbf16>, vector<256x256xf32> -> vector<256x256xf32>
    %c0_8 = arith.constant 0 : index
    %c0_9 = arith.constant 0 : index
    %6 = vector.load %arg4[%c0_8, %c0_9] : memref<256x128xbf16, #tpu.memory_space<vmem>>, vector<256x128xbf16>
    %cst_10 = arith.constant dense<0.000000e+00> : vector<256x128xf32>
    %7 = tpu.matmul %1, %6, %cst_10 {dimension_numbers = #tpu.dot_dimension_numbers<[1], [0], [0], [1], [0, 0, 1, 1], [], []>} : vector<256x256xbf16>, vector<256x128xbf16>, vector<256x128xf32> -> vector<256x128xf32>
    %c0_11 = arith.constant 0 : index
    %c0_12 = arith.constant 0 : index
    %8 = vector.load %arg5[%c0_11, %c0_12] : memref<256x128xbf16, #tpu.memory_space<vmem>>, vector<256x128xbf16>
    %cst_13 = arith.constant dense<0.000000e+00> : vector<256x128xf32>
    %9 = tpu.matmul %1, %8, %cst_13 {dimension_numbers = #tpu.dot_dimension_numbers<[1], [0], [0], [1], [0, 0, 1, 1], [], []>} : vector<256x256xbf16>, vector<256x128xbf16>, vector<256x128xf32> -> vector<256x128xf32>
    %10 = tpu.iota {dimensions = array<i32: 1>} : vector<256x128xi32>
    %c2_i32 = arith.constant 2 : i32
    %c0_i32 = arith.constant 0 : i32
    %11 = arith.cmpi eq, %c2_i32, %c0_i32 : i32
    %c1_i32 = arith.constant 1 : i32
    %12 = arith.select %11, %c1_i32, %c2_i32 : i32
    %13 = vector.broadcast %12 : i32 to vector<256x128xi32>
    %14 = arith.remsi %10, %13 : vector<256x128xi32>
    %c0_i32_14 = arith.constant 0 : i32
    %15 = vector.broadcast %c0_i32_14 : i32 to vector<256x128xi32>
    %16 = arith.cmpi ne, %14, %15 : vector<256x128xi32>
    %c0_i32_15 = arith.constant 0 : i32
    %17 = vector.broadcast %c0_i32_15 : i32 to vector<256x128xi32>
    %18 = arith.cmpi slt, %14, %17 : vector<256x128xi32>
    %c0_i32_16 = arith.constant 0 : i32
    %19 = arith.cmpi slt, %12, %c0_i32_16 : i32
    %20 = vector.broadcast %19 : i1 to vector<256x128xi1>
    %21 = vector.broadcast %20 : vector<256x128xi1> to vector<256x128xi1>
    %22 = arith.xori %18, %21 : vector<256x128xi1>
    %23 = arith.andi %22, %16 : vector<256x128xi1>
    %24 = vector.broadcast %12 : i32 to vector<256x128xi32>
    %25 = arith.addi %14, %24 : vector<256x128xi32>
    %26 = arith.select %23, %25, %14 : vector<256x128xi1>, vector<256x128xi32>
    %c0_i32_17 = arith.constant 0 : i32
    %27 = vector.broadcast %c0_i32_17 : i32 to vector<256x128xi32>
    %28 = arith.cmpi eq, %26, %27 : vector<256x128xi32>
    %c127_i32 = arith.constant 127 : i32
    %29 = tpu.dynamic_rotate %7 by %c127_i32 dim 1 : vector<256x128xf32>, i32 -> vector<256x128xf32>
    %c1_i32_18 = arith.constant 1 : i32
    %30 = tpu.dynamic_rotate %7 by %c1_i32_18 dim 1 : vector<256x128xf32>, i32 -> vector<256x128xf32>
    %31 = arith.select %28, %29, %30 : vector<256x128xi1>, vector<256x128xf32>
    %32 = arith.mulf %7, %2 : vector<256x128xf32>
    %33 = arith.mulf %31, %3 : vector<256x128xf32>
    %34 = arith.addf %32, %33 : vector<256x128xf32>
    %35 = tpu.transpose %34, [1, 0] : vector<256x128xf32> -> vector<128x256xf32>
    %36 = arith.truncf %35 : vector<128x256xf32> to vector<128x256xbf16>
    %c0_19 = arith.constant 0 : index
    %c0_20 = arith.constant 0 : index
    %c0_21 = arith.constant 0 : index
    %c0_22 = arith.constant 0 : index
    %37 = vector.load %arg9[%c0_19, %c0_20, %c0_21, %c0_22] : memref<1x1x128x256xbf16, #tpu.memory_space<vmem>>, vector<1x1x128x256xbf16>
    %38 = vector.shape_cast %37 : vector<1x1x128x256xbf16> to vector<128x256xbf16>
    %39 = vector.shape_cast %36 : vector<128x256xbf16> to vector<1x1x128x256xbf16>
    tpu.vector_store %arg9[%c0_19, %c0_20, %c0_21, %c0_22], %39 {strides = array<i32>} : memref<1x1x128x256xbf16, #tpu.memory_space<vmem>>, vector<1x1x128x256xbf16>,
    %40 = arith.truncf %9 : vector<256x128xf32> to vector<256x128xbf16>
    %c0_23 = arith.constant 0 : index
    %c0_24 = arith.constant 0 : index
    %c0_25 = arith.constant 0 : index
    %c0_26 = arith.constant 0 : index
    %41 = vector.load %arg10[%c0_23, %c0_24, %c0_25, %c0_26] : memref<1x1x256x128xbf16, #tpu.memory_space<vmem>>, vector<1x1x256x128xbf16>
    %42 = vector.shape_cast %41 : vector<1x1x256x128xbf16> to vector<256x128xbf16>
    %43 = vector.shape_cast %40 : vector<256x128xbf16> to vector<1x1x256x128xbf16>
    tpu.vector_store %arg10[%c0_23, %c0_24, %c0_25, %c0_26], %43 {strides = array<i32>} : memref<1x1x256x128xbf16, #tpu.memory_space<vmem>>, vector<1x1x256x128xbf16>,
    %44 = vector.extract_strided_slice %5 {offsets = [0, 0], sizes = [256, 128], strides = [1, 1]} : vector<256x256xf32> to vector<256x128xf32>
    %45 = tpu.iota {dimensions = array<i32: 1>} : vector<256x128xi32>
    %c2_i32_27 = arith.constant 2 : i32
    %c0_i32_28 = arith.constant 0 : i32
    %46 = arith.cmpi eq, %c2_i32_27, %c0_i32_28 : i32
    %c1_i32_29 = arith.constant 1 : i32
    %47 = arith.select %46, %c1_i32_29, %c2_i32_27 : i32
    %48 = vector.broadcast %47 : i32 to vector<256x128xi32>
    %49 = arith.remsi %45, %48 : vector<256x128xi32>
    %c0_i32_30 = arith.constant 0 : i32
    %50 = vector.broadcast %c0_i32_30 : i32 to vector<256x128xi32>
    %51 = arith.cmpi ne, %49, %50 : vector<256x128xi32>
    %c0_i32_31 = arith.constant 0 : i32
    %52 = vector.broadcast %c0_i32_31 : i32 to vector<256x128xi32>
    %53 = arith.cmpi slt, %49, %52 : vector<256x128xi32>
    %c0_i32_32 = arith.constant 0 : i32
    %54 = arith.cmpi slt, %47, %c0_i32_32 : i32
    %55 = vector.broadcast %54 : i1 to vector<256x128xi1>
    %56 = vector.broadcast %55 : vector<256x128xi1> to vector<256x128xi1>
    %57 = arith.xori %53, %56 : vector<256x128xi1>
    %58 = arith.andi %57, %51 : vector<256x128xi1>
    %59 = vector.broadcast %47 : i32 to vector<256x128xi32>
    %60 = arith.addi %49, %59 : vector<256x128xi32>
    %61 = arith.select %58, %60, %49 : vector<256x128xi1>, vector<256x128xi32>
    %c0_i32_33 = arith.constant 0 : i32
    %62 = vector.broadcast %c0_i32_33 : i32 to vector<256x128xi32>
    %63 = arith.cmpi eq, %61, %62 : vector<256x128xi32>
    %c127_i32_34 = arith.constant 127 : i32
    %64 = tpu.dynamic_rotate %44 by %c127_i32_34 dim 1 : vector<256x128xf32>, i32 -> vector<256x128xf32>
    %c1_i32_35 = arith.constant 1 : i32
    %65 = tpu.dynamic_rotate %44 by %c1_i32_35 dim 1 : vector<256x128xf32>, i32 -> vector<256x128xf32>
    %66 = arith.select %63, %64, %65 : vector<256x128xi1>, vector<256x128xf32>
    %67 = arith.mulf %44, %2 : vector<256x128xf32>
    %68 = arith.mulf %66, %3 : vector<256x128xf32>
    %69 = arith.addf %67, %68 : vector<256x128xf32>
    %cst_36 = arith.constant 0.0883883461 : f32
    %70 = vector.broadcast %cst_36 : f32 to vector<256x128xf32>
    %71 = arith.mulf %69, %70 : vector<256x128xf32>
    %72 = arith.truncf %71 : vector<256x128xf32> to vector<256x128xbf16>
    %c0_37 = arith.constant 0 : index
    %c0_38 = arith.constant 0 : index
    %c0_39 = arith.constant 0 : index
    %c0_40 = arith.constant 0 : index
    %c0_41 = arith.constant 0 : index
    %73 = vector.load %arg8[%c0_37, %c0_38, %c0_39, %c0_40, %c0_41] : memref<1x1x2x256x128xbf16, #tpu.memory_space<vmem>>, vector<1x1x1x256x128xbf16>
    %74 = vector.shape_cast %73 : vector<1x1x1x256x128xbf16> to vector<256x128xbf16>
    %75 = vector.shape_cast %72 : vector<256x128xbf16> to vector<1x1x1x256x128xbf16>
    tpu.vector_store %arg8[%c0_37, %c0_38, %c0_39, %c0_40, %c0_41], %75 {strides = array<i32>} : memref<1x1x2x256x128xbf16, #tpu.memory_space<vmem>>, vector<1x1x1x256x128xbf16>,
    %76 = vector.extract_strided_slice %5 {offsets = [0, 128], sizes = [256, 128], strides = [1, 1]} : vector<256x256xf32> to vector<256x128xf32>
    %77 = tpu.iota {dimensions = array<i32: 1>} : vector<256x128xi32>
    %c2_i32_42 = arith.constant 2 : i32
    %c0_i32_43 = arith.constant 0 : i32
    %78 = arith.cmpi eq, %c2_i32_42, %c0_i32_43 : i32
    %c1_i32_44 = arith.constant 1 : i32
    %79 = arith.select %78, %c1_i32_44, %c2_i32_42 : i32
    %80 = vector.broadcast %79 : i32 to vector<256x128xi32>
    %81 = arith.remsi %77, %80 : vector<256x128xi32>
    %c0_i32_45 = arith.constant 0 : i32
    %82 = vector.broadcast %c0_i32_45 : i32 to vector<256x128xi32>
    %83 = arith.cmpi ne, %81, %82 : vector<256x128xi32>
    %c0_i32_46 = arith.constant 0 : i32
    %84 = vector.broadcast %c0_i32_46 : i32 to vector<256x128xi32>
    %85 = arith.cmpi slt, %81, %84 : vector<256x128xi32>
    %c0_i32_47 = arith.constant 0 : i32
    %86 = arith.cmpi slt, %79, %c0_i32_47 : i32
    %87 = vector.broadcast %86 : i1 to vector<256x128xi1>
    %88 = vector.broadcast %87 : vector<256x128xi1> to vector<256x128xi1>
    %89 = arith.xori %85, %88 : vector<256x128xi1>
    %90 = arith.andi %89, %83 : vector<256x128xi1>
    %91 = vector.broadcast %79 : i32 to vector<256x128xi32>
    %92 = arith.addi %81, %91 : vector<256x128xi32>
    %93 = arith.select %90, %92, %81 : vector<256x128xi1>, vector<256x128xi32>
    %c0_i32_48 = arith.constant 0 : i32
    %94 = vector.broadcast %c0_i32_48 : i32 to vector<256x128xi32>
    %95 = arith.cmpi eq, %93, %94 : vector<256x128xi32>
    %c127_i32_49 = arith.constant 127 : i32
    %96 = tpu.dynamic_rotate %76 by %c127_i32_49 dim 1 : vector<256x128xf32>, i32 -> vector<256x128xf32>
    %c1_i32_50 = arith.constant 1 : i32
    %97 = tpu.dynamic_rotate %76 by %c1_i32_50 dim 1 : vector<256x128xf32>, i32 -> vector<256x128xf32>
    %98 = arith.select %95, %96, %97 : vector<256x128xi1>, vector<256x128xf32>
    %99 = arith.mulf %76, %2 : vector<256x128xf32>
    %100 = arith.mulf %98, %3 : vector<256x128xf32>
    %101 = arith.addf %99, %100 : vector<256x128xf32>
    %cst_51 = arith.constant 0.0883883461 : f32
    %102 = vector.broadcast %cst_51 : f32 to vector<256x128xf32>
    %103 = arith.mulf %101, %102 : vector<256x128xf32>
    %104 = arith.truncf %103 : vector<256x128xf32> to vector<256x128xbf16>
    %c0_52 = arith.constant 0 : index
    %c0_53 = arith.constant 0 : index
    %c1 = arith.constant 1 : index
    %c0_54 = arith.constant 0 : index
    %c0_55 = arith.constant 0 : index
    %105 = vector.load %arg8[%c0_52, %c0_53, %c1, %c0_54, %c0_55] : memref<1x1x2x256x128xbf16, #tpu.memory_space<vmem>>, vector<1x1x1x256x128xbf16>
    %106 = vector.shape_cast %105 : vector<1x1x1x256x128xbf16> to vector<256x128xbf16>
    %107 = vector.shape_cast %104 : vector<256x128xbf16> to vector<1x1x1x256x128xbf16>
    tpu.vector_store %arg8[%c0_52, %c0_53, %c1, %c0_54, %c0_55], %107 {strides = array<i32>} : memref<1x1x2x256x128xbf16, #tpu.memory_space<vmem>>, vector<1x1x1x256x128xbf16>,
    return
  }
  func.func @transform_0(%arg0: i32, %arg1: i32) -> (i32, i32, i32) {
    %c0_i32 = arith.constant 0 : i32
    %c0_i32_0 = arith.constant 0 : i32
    return %arg0, %arg1, %c0_i32 : i32, i32, i32
  }
  func.func @transform_1(%arg0: i32, %arg1: i32) -> (i32, i32) {
    %c0_i32 = arith.constant 0 : i32
    %c0_i32_0 = arith.constant 0 : i32
    %c0_i32_1 = arith.constant 0 : i32
    return %c0_i32, %c0_i32_0 : i32, i32
  }
  func.func @transform_2(%arg0: i32, %arg1: i32) -> (i32, i32) {
    %c0_i32 = arith.constant 0 : i32
    %c0_i32_0 = arith.constant 0 : i32
    %c0_i32_1 = arith.constant 0 : i32
    return %c0_i32, %c0_i32_0 : i32, i32
  }
  func.func @transform_3(%arg0: i32, %arg1: i32) -> (i32, i32) {
    %c0_i32 = arith.constant 0 : i32
    %c0_i32_0 = arith.constant 0 : i32
    %c0_i32_1 = arith.constant 0 : i32
    return %c0_i32, %c0_i32_0 : i32, i32
  }
  func.func @transform_4(%arg0: i32, %arg1: i32) -> (i32, i32) {
    %c0_i32 = arith.constant 0 : i32
    %c0_i32_0 = arith.constant 0 : i32
    return %arg1, %c0_i32 : i32, i32
  }
  func.func @transform_5(%arg0: i32, %arg1: i32) -> (i32, i32) {
    %c0_i32 = arith.constant 0 : i32
    %c0_i32_0 = arith.constant 0 : i32
    return %arg1, %c0_i32 : i32, i32
  }
  func.func @transform_6(%arg0: i32, %arg1: i32) -> (i32, i32, i32, i32, i32) {
    %c0_i32 = arith.constant 0 : i32
    %c0_i32_0 = arith.constant 0 : i32
    %c0_i32_1 = arith.constant 0 : i32
    %c0_i32_2 = arith.constant 0 : i32
    return %arg0, %c0_i32, %c0_i32_0, %arg1, %c0_i32_1 : i32, i32, i32, i32, i32
  }
  func.func @transform_7(%arg0: i32, %arg1: i32) -> (i32, i32, i32, i32) {
    %c0_i32 = arith.constant 0 : i32
    %c0_i32_0 = arith.constant 0 : i32
    %c0_i32_1 = arith.constant 0 : i32
    return %arg0, %c0_i32, %c0_i32_0, %arg1 : i32, i32, i32, i32
  }
  func.func @transform_8(%arg0: i32, %arg1: i32) -> (i32, i32, i32, i32) {
    %c0_i32 = arith.constant 0 : i32
    %c0_i32_0 = arith.constant 0 : i32
    %c0_i32_1 = arith.constant 0 : i32
    return %arg0, %c0_i32, %arg1, %c0_i32_0 : i32, i32, i32, i32
  }
}

module attributes {stable_mosaic.version = 11 : i64} {
  func.func @mqa_proj_kernel(%arg0: i32, %arg1: i32, %arg2: memref<1x256x256xbf16, #tpu.memory_space<vmem>>, %arg3: memref<256x256xbf16, #tpu.memory_space<vmem>>, %arg4: memref<256x128xbf16, #tpu.memory_space<vmem>>, %arg5: memref<256x128xbf16, #tpu.memory_space<vmem>>, %arg6: memref<256x128xf32, #tpu.memory_space<vmem>>, %arg7: memref<256x128xf32, #tpu.memory_space<vmem>>, %arg8: memref<1x1x2x256x128xbf16, #tpu.memory_space<vmem>>, %arg9: memref<1x1x128x256xbf16, #tpu.memory_space<vmem>>, %arg10: memref<1x1x256x128xbf16, #tpu.memory_space<vmem>>) attributes {dimension_semantics = [#tpu.dimension_semantics<parallel>, #tpu.dimension_semantics<parallel>], iteration_bounds = array<i64: 2, 1>, scalar_prefetch = 0 : i64, scratch_operands = 0 : i64, tpu.core_type = #tpu.core_type<tc>, window_params = [{transform_indices = @transform_0, window_bounds = array<i64: 1, 256, 256>}, {pipeline_mode = #tpu.pipeline_mode<synchronous>, transform_indices = @transform_1, window_bounds = array<i64: 256, 256>}, {pipeline_mode = #tpu.pipeline_mode<synchronous>, transform_indices = @transform_2, window_bounds = array<i64: 256, 128>}, {pipeline_mode = #tpu.pipeline_mode<synchronous>, transform_indices = @transform_3, window_bounds = array<i64: 256, 128>}, {transform_indices = @transform_4, window_bounds = array<i64: 256, 128>}, {transform_indices = @transform_5, window_bounds = array<i64: 256, 128>}, {transform_indices = @transform_6, window_bounds = array<i64: 1, 1, 2, 256, 128>}, {transform_indices = @transform_7, window_bounds = array<i64: 1, 1, 128, 256>}, {transform_indices = @transform_8, window_bounds = array<i64: 1, 1, 256, 128>}]} {
    %c0 = arith.constant 0 : index
    %c0_0 = arith.constant 0 : index
    %c0_1 = arith.constant 0 : index
    %0 = vector.load %arg2[%c0, %c0_0, %c0_1] : memref<1x256x256xbf16, #tpu.memory_space<vmem>>, vector<1x256x256xbf16>
    %1 = vector.shape_cast %0 : vector<1x256x256xbf16> to vector<256x256xbf16>
    %c0_2 = arith.constant 0 : index
    %c0_3 = arith.constant 0 : index
    %2 = vector.load %arg6[%c0_2, %c0_3] : memref<256x128xf32, #tpu.memory_space<vmem>>, vector<256x128xf32>
    %c0_4 = arith.constant 0 : index
    %c0_5 = arith.constant 0 : index
    %3 = vector.load %arg7[%c0_4, %c0_5] : memref<256x128xf32, #tpu.memory_space<vmem>>, vector<256x128xf32>
    %c0_6 = arith.constant 0 : index
    %c0_7 = arith.constant 0 : index
    %4 = vector.load %arg3[%c0_6, %c0_7] : memref<256x256xbf16, #tpu.memory_space<vmem>>, vector<256x256xbf16>
    %cst = arith.constant dense<0.000000e+00> : vector<256x256xf32>
    %5 = tpu.matmul %1, %4, %cst {dimension_numbers = #tpu.dot_dimension_numbers<[1], [0], [0], [1], [0, 0, 1, 1], [], []>} : vector<256x256xbf16>, vector<256x256xbf16>, vector<256x256xf32> -> vector<256x256xf32>
    %c0_8 = arith.constant 0 : index
    %c0_9 = arith.constant 0 : index
    %6 = vector.load %arg4[%c0_8, %c0_9] : memref<256x128xbf16, #tpu.memory_space<vmem>>, vector<256x128xbf16>
    %cst_10 = arith.constant dense<0.000000e+00> : vector<256x128xf32>
    %7 = tpu.matmul %1, %6, %cst_10 {dimension_numbers = #tpu.dot_dimension_numbers<[1], [0], [0], [1], [0, 0, 1, 1], [], []>} : vector<256x256xbf16>, vector<256x128xbf16>, vector<256x128xf32> -> vector<256x128xf32>
    %c0_11 = arith.constant 0 : index
    %c0_12 = arith.constant 0 : index
    %8 = vector.load %arg5[%c0_11, %c0_12] : memref<256x128xbf16, #tpu.memory_space<vmem>>, vector<256x128xbf16>
    %cst_13 = arith.constant dense<0.000000e+00> : vector<256x128xf32>
    %9 = tpu.matmul %1, %8, %cst_13 {dimension_numbers = #tpu.dot_dimension_numbers<[1], [0], [0], [1], [0, 0, 1, 1], [], []>} : vector<256x256xbf16>, vector<256x128xbf16>, vector<256x128xf32> -> vector<256x128xf32>
    %10 = tpu.iota {dimensions = array<i32: 1>} : vector<256x128xi32>
    %c2_i32 = arith.constant 2 : i32
    %c0_i32 = arith.constant 0 : i32
    %11 = arith.cmpi eq, %c2_i32, %c0_i32 : i32
    %c1_i32 = arith.constant 1 : i32
    %12 = arith.select %11, %c1_i32, %c2_i32 : i32
    %13 = vector.broadcast %12 : i32 to vector<256x128xi32>
    %14 = arith.remsi %10, %13 : vector<256x128xi32>
    %c0_i32_14 = arith.constant 0 : i32
    %15 = vector.broadcast %c0_i32_14 : i32 to vector<256x128xi32>
    %16 = arith.cmpi ne, %14, %15 : vector<256x128xi32>
    %c0_i32_15 = arith.constant 0 : i32
    %17 = vector.broadcast %c0_i32_15 : i32 to vector<256x128xi32>
    %18 = arith.cmpi slt, %14, %17 : vector<256x128xi32>
    %c0_i32_16 = arith.constant 0 : i32
    %19 = arith.cmpi slt, %12, %c0_i32_16 : i32
    %20 = vector.broadcast %19 : i1 to vector<256x128xi1>
    %21 = vector.broadcast %20 : vector<256x128xi1> to vector<256x128xi1>
    %22 = arith.xori %18, %21 : vector<256x128xi1>
    %23 = arith.andi %22, %16 : vector<256x128xi1>
    %24 = vector.broadcast %12 : i32 to vector<256x128xi32>
    %25 = arith.addi %14, %24 : vector<256x128xi32>
    %26 = arith.select %23, %25, %14 : vector<256x128xi1>, vector<256x128xi32>
    %c0_i32_17 = arith.constant 0 : i32
    %27 = vector.broadcast %c0_i32_17 : i32 to vector<256x128xi32>
    %28 = arith.cmpi eq, %26, %27 : vector<256x128xi32>
    %c127_i32 = arith.constant 127 : i32
    %29 = tpu.dynamic_rotate %7 by %c127_i32 dim 1 : vector<256x128xf32>, i32 -> vector<256x128xf32>
    %c1_i32_18 = arith.constant 1 : i32
    %30 = tpu.dynamic_rotate %7 by %c1_i32_18 dim 1 : vector<256x128xf32>, i32 -> vector<256x128xf32>
    %31 = arith.select %28, %29, %30 : vector<256x128xi1>, vector<256x128xf32>
    %32 = arith.mulf %7, %2 : vector<256x128xf32>
    %33 = arith.mulf %31, %3 : vector<256x128xf32>
    %34 = arith.addf %32, %33 : vector<256x128xf32>
    %35 = tpu.transpose %34, [1, 0] : vector<256x128xf32> -> vector<128x256xf32>
    %36 = arith.truncf %35 : vector<128x256xf32> to vector<128x256xbf16>
    %c0_19 = arith.constant 0 : index
    %c0_20 = arith.constant 0 : index
    %c0_21 = arith.constant 0 : index
    %c0_22 = arith.constant 0 : index
    %37 = vector.load %arg9[%c0_19, %c0_20, %c0_21, %c0_22] : memref<1x1x128x256xbf16, #tpu.memory_space<vmem>>, vector<1x1x128x256xbf16>
    %38 = vector.shape_cast %37 : vector<1x1x128x256xbf16> to vector<128x256xbf16>
    %39 = vector.shape_cast %36 : vector<128x256xbf16> to vector<1x1x128x256xbf16>
    tpu.vector_store %arg9[%c0_19, %c0_20, %c0_21, %c0_22], %39 {strides = array<i32>} : memref<1x1x128x256xbf16, #tpu.memory_space<vmem>>, vector<1x1x128x256xbf16>,
    %40 = arith.truncf %9 : vector<256x128xf32> to vector<256x128xbf16>
    %c0_23 = arith.constant 0 : index
    %c0_24 = arith.constant 0 : index
    %c0_25 = arith.constant 0 : index
    %c0_26 = arith.constant 0 : index
    %41 = vector.load %arg10[%c0_23, %c0_24, %c0_25, %c0_26] : memref<1x1x256x128xbf16, #tpu.memory_space<vmem>>, vector<1x1x256x128xbf16>
    %42 = vector.shape_cast %41 : vector<1x1x256x128xbf16> to vector<256x128xbf16>
    %43 = vector.shape_cast %40 : vector<256x128xbf16> to vector<1x1x256x128xbf16>
    tpu.vector_store %arg10[%c0_23, %c0_24, %c0_25, %c0_26], %43 {strides = array<i32>} : memref<1x1x256x128xbf16, #tpu.memory_space<vmem>>, vector<1x1x256x128xbf16>,
    %44 = vector.extract_strided_slice %5 {offsets = [0, 0], sizes = [256, 128], strides = [1, 1]} : vector<256x256xf32> to vector<256x128xf32>
    %45 = tpu.iota {dimensions = array<i32: 1>} : vector<256x128xi32>
    %c2_i32_27 = arith.constant 2 : i32
    %c0_i32_28 = arith.constant 0 : i32
    %46 = arith.cmpi eq, %c2_i32_27, %c0_i32_28 : i32
    %c1_i32_29 = arith.constant 1 : i32
    %47 = arith.select %46, %c1_i32_29, %c2_i32_27 : i32
    %48 = vector.broadcast %47 : i32 to vector<256x128xi32>
    %49 = arith.remsi %45, %48 : vector<256x128xi32>
    %c0_i32_30 = arith.constant 0 : i32
    %50 = vector.broadcast %c0_i32_30 : i32 to vector<256x128xi32>
    %51 = arith.cmpi ne, %49, %50 : vector<256x128xi32>
    %c0_i32_31 = arith.constant 0 : i32
    %52 = vector.broadcast %c0_i32_31 : i32 to vector<256x128xi32>
    %53 = arith.cmpi slt, %49, %52 : vector<256x128xi32>
    %c0_i32_32 = arith.constant 0 : i32
    %54 = arith.cmpi slt, %47, %c0_i32_32 : i32
    %55 = vector.broadcast %54 : i1 to vector<256x128xi1>
    %56 = vector.broadcast %55 : vector<256x128xi1> to vector<256x128xi1>
    %57 = arith.xori %53, %56 : vector<256x128xi1>
    %58 = arith.andi %57, %51 : vector<256x128xi1>
    %59 = vector.broadcast %47 : i32 to vector<256x128xi32>
    %60 = arith.addi %49, %59 : vector<256x128xi32>
    %61 = arith.select %58, %60, %49 : vector<256x128xi1>, vector<256x128xi32>
    %c0_i32_33 = arith.constant 0 : i32
    %62 = vector.broadcast %c0_i32_33 : i32 to vector<256x128xi32>
    %63 = arith.cmpi eq, %61, %62 : vector<256x128xi32>
    %c127_i32_34 = arith.constant 127 : i32
    %64 = tpu.dynamic_rotate %44 by %c127_i32_34 dim 1 : vector<256x128xf32>, i32 -> vector<256x128xf32>
    %c1_i32_35 = arith.constant 1 : i32
    %65 = tpu.dynamic_rotate %44 by %c1_i32_35 dim 1 : vector<256x128xf32>, i32 -> vector<256x128xf32>
    %66 = arith.select %63, %64, %65 : vector<256x128xi1>, vector<256x128xf32>
    %67 = arith.mulf %44, %2 : vector<256x128xf32>
    %68 = arith.mulf %66, %3 : vector<256x128xf32>
    %69 = arith.addf %67, %68 : vector<256x128xf32>
    %cst_36 = arith.constant 0.0883883461 : f32
    %70 = vector.broadcast %cst_36 : f32 to vector<256x128xf32>
    %71 = arith.mulf %69, %70 : vector<256x128xf32>
    %72 = arith.truncf %71 : vector<256x128xf32> to vector<256x128xbf16>
    %c0_37 = arith.constant 0 : index
    %c0_38 = arith.constant 0 : index
    %c0_39 = arith.constant 0 : index
    %c0_40 = arith.constant 0 : index
    %c0_41 = arith.constant 0 : index
    %73 = vector.load %arg8[%c0_37, %c0_38, %c0_39, %c0_40, %c0_41] : memref<1x1x2x256x128xbf16, #tpu.memory_space<vmem>>, vector<1x1x1x256x128xbf16>
    %74 = vector.shape_cast %73 : vector<1x1x1x256x128xbf16> to vector<256x128xbf16>
    %75 = vector.shape_cast %72 : vector<256x128xbf16> to vector<1x1x1x256x128xbf16>
    tpu.vector_store %arg8[%c0_37, %c0_38, %c0_39, %c0_40, %c0_41], %75 {strides = array<i32>} : memref<1x1x2x256x128xbf16, #tpu.memory_space<vmem>>, vector<1x1x1x256x128xbf16>,
    %76 = vector.extract_strided_slice %5 {offsets = [0, 128], sizes = [256, 128], strides = [1, 1]} : vector<256x256xf32> to vector<256x128xf32>
    %77 = tpu.iota {dimensions = array<i32: 1>} : vector<256x128xi32>
    %c2_i32_42 = arith.constant 2 : i32
    %c0_i32_43 = arith.constant 0 : i32
    %78 = arith.cmpi eq, %c2_i32_42, %c0_i32_43 : i32
    %c1_i32_44 = arith.constant 1 : i32
    %79 = arith.select %78, %c1_i32_44, %c2_i32_42 : i32
    %80 = vector.broadcast %79 : i32 to vector<256x128xi32>
    %81 = arith.remsi %77, %80 : vector<256x128xi32>
    %c0_i32_45 = arith.constant 0 : i32
    %82 = vector.broadcast %c0_i32_45 : i32 to vector<256x128xi32>
    %83 = arith.cmpi ne, %81, %82 : vector<256x128xi32>
    %c0_i32_46 = arith.constant 0 : i32
    %84 = vector.broadcast %c0_i32_46 : i32 to vector<256x128xi32>
    %85 = arith.cmpi slt, %81, %84 : vector<256x128xi32>
    %c0_i32_47 = arith.constant 0 : i32
    %86 = arith.cmpi slt, %79, %c0_i32_47 : i32
    %87 = vector.broadcast %86 : i1 to vector<256x128xi1>
    %88 = vector.broadcast %87 : vector<256x128xi1> to vector<256x128xi1>
    %89 = arith.xori %85, %88 : vector<256x128xi1>
    %90 = arith.andi %89, %83 : vector<256x128xi1>
    %91 = vector.broadcast %79 : i32 to vector<256x128xi32>
    %92 = arith.addi %81, %91 : vector<256x128xi32>
    %93 = arith.select %90, %92, %81 : vector<256x128xi1>, vector<256x128xi32>
    %c0_i32_48 = arith.constant 0 : i32
    %94 = vector.broadcast %c0_i32_48 : i32 to vector<256x128xi32>
    %95 = arith.cmpi eq, %93, %94 : vector<256x128xi32>
    %c127_i32_49 = arith.constant 127 : i32
    %96 = tpu.dynamic_rotate %76 by %c127_i32_49 dim 1 : vector<256x128xf32>, i32 -> vector<256x128xf32>
    %c1_i32_50 = arith.constant 1 : i32
    %97 = tpu.dynamic_rotate %76 by %c1_i32_50 dim 1 : vector<256x128xf32>, i32 -> vector<256x128xf32>
    %98 = arith.select %95, %96, %97 : vector<256x128xi1>, vector<256x128xf32>
    %99 = arith.mulf %76, %2 : vector<256x128xf32>
    %100 = arith.mulf %98, %3 : vector<256x128xf32>
    %101 = arith.addf %99, %100 : vector<256x128xf32>
    %cst_51 = arith.constant 0.0883883461 : f32
    %102 = vector.broadcast %cst_51 : f32 to vector<256x128xf32>
    %103 = arith.mulf %101, %102 : vector<256x128xf32>
    %104 = arith.truncf %103 : vector<256x128xf32> to vector<256x128xbf16>
    %c0_52 = arith.constant 0 : index
    %c0_53 = arith.constant 0 : index
    %c1 = arith.constant 1 : index
    %c0_54 = arith.constant 0 : index
    %c0_55 = arith.constant 0 : index
    %105 = vector.load %arg8[%c0_52, %c0_53, %c1, %c0_54, %c0_55] : memref<1x1x2x256x128xbf16, #tpu.memory_space<vmem>>, vector<1x1x1x256x128xbf16>
    %106 = vector.shape_cast %105 : vector<1x1x1x256x128xbf16> to vector<256x128xbf16>
    %107 = vector.shape_cast %104 : vector<256x128xbf16> to vector<1x1x1x256x128xbf16>
    tpu.vector_store %arg8[%c0_52, %c0_53, %c1, %c0_54, %c0_55], %107 {strides = array<i32>} : memref<1x1x2x256x128xbf16, #tpu.memory_space<vmem>>, vector<1x1x1x256x128xbf16>,
    return
  }
  func.func @transform_0(%arg0: i32, %arg1: i32) -> (i32, i32, i32) {
    %c0_i32 = arith.constant 0 : i32
    %c0_i32_0 = arith.constant 0 : i32
    return %arg0, %arg1, %c0_i32 : i32, i32, i32
  }
  func.func @transform_1(%arg0: i32, %arg1: i32) -> (i32, i32) {
    %c0_i32 = arith.constant 0 : i32
    %c0_i32_0 = arith.constant 0 : i32
    %c0_i32_1 = arith.constant 0 : i32
    return %c0_i32, %c0_i32_0 : i32, i32
  }
  func.func @transform_2(%arg0: i32, %arg1: i32) -> (i32, i32) {
    %c0_i32 = arith.constant 0 : i32
    %c0_i32_0 = arith.constant 0 : i32
    %c0_i32_1 = arith.constant 0 : i32
    return %c0_i32, %c0_i32_0 : i32, i32
  }
  func.func @transform_3(%arg0: i32, %arg1: i32) -> (i32, i32) {
    %c0_i32 = arith.constant 0 : i32
    %c0_i32_0 = arith.constant 0 : i32
    %c0_i32_1 = arith.constant 0 : i32
    return %c0_i32, %c0_i32_0 : i32, i32
  }
  func.func @transform_4(%arg0: i32, %arg1: i32) -> (i32, i32) {
    %c0_i32 = arith.constant 0 : i32
    %c0_i32_0 = arith.constant 0 : i32
    return %arg1, %c0_i32 : i32, i32
  }
  func.func @transform_5(%arg0: i32, %arg1: i32) -> (i32, i32) {
    %c0_i32 = arith.constant 0 : i32
    %c0_i32_0 = arith.constant 0 : i32
    return %arg1, %c0_i32 : i32, i32
  }
  func.func @transform_6(%arg0: i32, %arg1: i32) -> (i32, i32, i32, i32, i32) {
    %c0_i32 = arith.constant 0 : i32
    %c0_i32_0 = arith.constant 0 : i32
    %c0_i32_1 = arith.constant 0 : i32
    %c0_i32_2 = arith.constant 0 : i32
    return %arg0, %c0_i32, %c0_i32_0, %arg1, %c0_i32_1 : i32, i32, i32, i32, i32
  }
  func.func @transform_7(%arg0: i32, %arg1: i32) -> (i32, i32, i32, i32) {
    %c0_i32 = arith.constant 0 : i32
    %c0_i32_0 = arith.constant 0 : i32
    %c0_i32_1 = arith.constant 0 : i32
    return %arg0, %c0_i32, %c0_i32_0, %arg1 : i32, i32, i32, i32
  }
  func.func @transform_8(%arg0: i32, %arg1: i32) -> (i32, i32, i32, i32) {
    %c0_i32 = arith.constant 0 : i32
    %c0_i32_0 = arith.constant 0 : i32
    %c0_i32_1 = arith.constant 0 : i32
    return %arg0, %c0_i32, %arg1, %c0_i32_0 : i32, i32, i32, i32
  }
}

</mosaic_0001>

<bundles_post_ra>
// kernel: tpu_custom_call.1
= control target key start
LH: loop header
LB: loop body
LE: loop exit
PB: predicated region body
PF: predicated region fallthrough
CT: control target
= control target key end

     0   :  { %s7361_s0 = inlined_call_operand.hbm [shape: bf16[2,256,256], index: 0, kind: input, shape index: {}]   ;;  %s7362_s1 = inlined_call_operand.hbm [shape: bf16[256,256], index: 1, kind: input, shape index: {}]   ;;  %s7363_s2 = inlined_call_operand.hbm [shape: bf16[256,128], index: 2, kind: input, shape index: {}]   ;;  %s7364_s3 = inlined_call_operand.hbm [shape: bf16[256,128], index: 3, kind: input, shape index: {}]   ;;  %s7365_s4 = inlined_call_operand.hbm [shape: f32[256,128], index: 4, kind: input, shape index: {}]   ;;  %s7366_s5 = inlined_call_operand.hbm [shape: f32[256,128], index: 5, kind: input, shape index: {}]   ;;  %s7367_s6 = inlined_call_operand.hbm [shape: bf16[2,1,2,256,128], index: 6, kind: output, shape index: {0}]   ;;  %s7368_s7 = inlined_call_operand.hbm [shape: bf16[2,1,128,256], index: 7, kind: output, shape index: {1}]   ;;  %s7369_s8 = inlined_call_operand.hbm [shape: bf16[2,1,256,128], index: 8, kind: output, shape index: {2}]  }
   0x1   :  { %7488 = sst [smem:[#allocation146_spill]] %s7361_s0 }
   0x2   :  { %7489 = sst [smem:[#allocation147_spill]] %s7362_s1 }
   0x3   :  { %7490 = sst [smem:[#allocation148_spill]] %s7363_s2 }
   0x4   :  { %7491 = sst [smem:[#allocation149_spill]] %s7367_s6 }
   0x5   :  { %7492 = sst [smem:[#allocation150_spill]] %s7368_s7 }
   0x6   :  { %7493 = sst [smem:[#allocation151_spill]] %s7369_s8 }
   0x7   :  { %14 = vsyncpa [#allocation3], 0 }
   0x8   :  { %16 = vsyncpa [#allocation3 + $0x1], 0 }
   0x9   :  { %17 = vsyncpa [#allocation6], 0 }
   0xa   :  { %18 = vsyncpa [#allocation9], 0 }
   0xb   :  { %19 = vsyncpa [#allocation12], 0 }
   0xc   :  { %20 = vsyncpa [#allocation4], 0 }
   0xd   :  { %22 = vsyncpa [#allocation4 + $0x1], 0 }
   0xe   :  { %23 = vsyncpa [#allocation15], 0 }
   0xf   :  { %25 = vsyncpa [#allocation15 + $0x1], 0  ;;  %s5205_s27 = smov 0   ;;  %s5207_s28 = smov 0  }
  0x10   :  { %s5209_s29 = smov 0   ;;  %s5211_s30 = smov 0  }
  0x11   :  { %s5213_s9 = smov 0   ;;  %s5215_s10 = smov 0  }
  0x12 LB: > { %s5236_s11 = sadd.s32 4294967295, %s5139_s10   ;;  %p3454_p0 = scmp.ge.s32.totalorder %s5139_s10, 1  ;;  %s5139_s10 = sphi %s5215_s10, %s31_s10   ;;  %s5135_s9 = sphi %s5213_s9, %s7850_s9   ;;  %s5131_s30 = sphi %s5211_s30, %s7849_s30   ;;  %s5127_s29 = sphi %s5209_s29, %s7848_s29   ;;  %s5123_s28 = sphi %s5207_s28, %s7847_s28   ;;  %s5119_s27 = sphi %s5205_s27, %s7846_s27  }
  0x13   : > { %p7370_p1 = scmp.eq.s32.totalorder %s5236_s11, 0  ;;  %p275_p2 = scmp.lt.s32.totalorder %s5139_s10, 3 }
  0x14   : > { %s5141_s13 = smov [#allocation5]   ;;  %s5142_s16 = smov [#allocation8]  }
  0x15   : > { %p5241_p3 = pnand %p3454_p0, %p275_p2  ;;  %s287_s14 = sshll.u32 %s5141_s13, 4  ;;  %s288_s14 = int_to_ptr.vmem [resolvable:$true] %s287_s14 }
  0x16   : > { %s313_s17 = sshll.u32 %s5142_s16, 4  ;;  %s7496_s1 = sld [smem:[#allocation147_spill]]  ;;  %s314_s17 = int_to_ptr.vmem [resolvable:$true] %s313_s17 }
  0x17   : > { %s7494_s12 = scalar_select %p5241_p3, 1, 0 }
  0x18   : > { %p4395_p4 = pneg %p5241_p3 }
  0x1a   : > { %p5250_p6 = pnand %p4395_p4, %p7370_p1 }
  0x1c   : > { %s4815_s20 = scalar_lea.hbm %s7496_s1, 4096  ;;  %p5262_p8 = pneg %p5250_p6 }
  0x1d   : > { %p4816_p7 = scmp.ne.s32.totalorder %s7496_s1, %s4815_s20  ;;  %p4822_p11 = scmp.lt.u32.totalorder %s4815_s20, %s7496_s1 }
  0x1f   : > { %p4818_p9 = pnand %p5262_p8, %p4816_p7 }
  0x21   : > { %p4819_p10 = pneg %p4818_p9 }
  0x23   : > { %p4824_p12 = pnand %p4822_p11, %p4819_p10 }
  0x25   : > { %4827 = shalt.err (!%p4824_p12)
}
  0x26   : > { %s4828_s26 = scalar_lea.vmem %s288_s14, 4096  ;;  %p4836_p4 = scmp.lt.s32.totalorder %s288_s14, %s288_s14 }
  0x27   : > { %p4829_p13 = scmp.ne.s32.totalorder %s288_s14, %s4828_s26  ;;  %p4837_p5 = scmp.lt.s32.totalorder %s4828_s26, %s4828_s26 }
  0x29   : > { %p4831_p0 = pnand %p4829_p13, %p5262_p8  ;;  %p4838_p1 = por %p4837_p5, %p4836_p4 }
  0x2b   : > { %p4832_p2 = pneg %p4831_p0 }
  0x2d   : > { %p4839_p3 = pnand %p4838_p1, %p4832_p2 }
  0x2f   : > { %4842 = shalt.err (!%p4839_p3)
}
  0x30   : > { %s7375_s13 = smov 128   ;;  %s7377_s16 = smov 8  }
  0x31   : > { %4398 = dma.hbm_to_vmem [thread:$0]  (!%p5250_p6), %s7496_s1, 4096, %s288_s14, [#allocation6], %s7375_s13, %s7375_s13, %s7377_s16  }
  0x32   : > { %s5145_s20 = smov [#allocation7]   ;;  %s4843_s25 = scalar_lea.hbm %s7364_s3, 2048 }
  0x33   : > { %s300_s21 = sshll.u32 %s5145_s20, 4  ;;  %p4844_p1 = scmp.ne.s32.totalorder %s7364_s3, %s4843_s25  ;;  %s301_s21 = int_to_ptr.vmem [resolvable:$true] %s300_s21 }
  0x34   : > { %p4850_p7 = scmp.lt.u32.totalorder %s4843_s25, %s7364_s3 }
  0x35   : > { %p4846_p3 = pnand %p4844_p1, %p5262_p8 }
  0x37   : > { %p4847_p5 = pneg %p4846_p3 }
  0x39   : > { %p4852_p9 = pnand %p4850_p7, %p4847_p5 }
  0x3b   : > { %4855 = shalt.err (!%p4852_p9)
}
  0x3c   : > { %s4856_s14 = scalar_lea.vmem %s314_s17, 2048  ;;  %p4864_p13 = scmp.lt.s32.totalorder %s314_s17, %s314_s17 }
  0x3d   : > { %p4857_p10 = scmp.ne.s32.totalorder %s314_s17, %s4856_s14  ;;  %p4865_p0 = scmp.lt.s32.totalorder %s4856_s14, %s4856_s14 }
  0x3f   : > { %p4859_p11 = pnand %p4857_p10, %p5262_p8  ;;  %p4866_p2 = por %p4865_p0, %p4864_p13 }
  0x41   : > { %p4860_p12 = pneg %p4859_p11 }
  0x43   : > { %p4867_p4 = pnand %p4866_p2, %p4860_p12 }
  0x45   : > { %4870 = shalt.err (!%p4867_p4)
}
  0x46   : > { %s5146_s6 = smov 64   ;;  %s5147_s18 = smov 4  }
  0x47   : > { %4404 = dma.hbm_to_vmem [thread:$0]  (!%p5250_p6), %s7364_s3, 2048, %s314_s17, [#allocation9], %s5146_s6, %s5146_s6, %s5147_s18  }
  0x48   : > { %s7498_s2 = sld [smem:[#allocation148_spill]] }
  0x4e   : > { %s4871_s22 = scalar_lea.hbm %s7498_s2, 2048 }
  0x4f   : > { %p4872_p1 = scmp.ne.s32.totalorder %s7498_s2, %s4871_s22  ;;  %p4878_p7 = scmp.lt.u32.totalorder %s4871_s22, %s7498_s2 }
  0x51   : > { %p4874_p3 = pnand %p4872_p1, %p5262_p8 }
  0x53   : > { %p4875_p5 = pneg %p4874_p3 }
  0x55   : > { %p4880_p9 = pnand %p4878_p7, %p4875_p5 }
  0x57   : > { %4883 = shalt.err (!%p4880_p9)
}
  0x58   : > { %s4884_s7 = scalar_lea.vmem %s301_s21, 2048  ;;  %p4892_p13 = scmp.lt.s32.totalorder %s301_s21, %s301_s21 }
  0x59   : > { %p4885_p10 = scmp.ne.s32.totalorder %s301_s21, %s4884_s7  ;;  %p4893_p0 = scmp.lt.s32.totalorder %s4884_s7, %s4884_s7 }
  0x5b   : > { %p4887_p11 = pnand %p4885_p10, %p5262_p8  ;;  %p4894_p2 = por %p4893_p0, %p4892_p13 }
  0x5d   : > { %p4888_p12 = pneg %p4887_p11 }
  0x5f   : > { %p4895_p4 = pnand %p4894_p2, %p4888_p12 }
  0x61   : > { %4898 = shalt.err (!%p4895_p4)
}
  0x62   : > { %4401 = dma.hbm_to_vmem [thread:$0]  (!%p5250_p6), %s7498_s2, 2048, %s301_s21, [#allocation6], %s5146_s6, %s5146_s6, %s5147_s18  }
  0x63   : > { %s5148_s19 = smov [#allocation10]   ;;  %s5149_s22 = smov [#allocation11]  }
  0x64   : > { %s329_s20 = sshll.u32 %s5148_s19, 4  ;;  %s345_s24 = sshll.u32 %s5149_s22, 4  ;;  %s330_s20 = int_to_ptr.vmem [resolvable:$true] %s329_s20  ;;  %s346_s24 = int_to_ptr.vmem [resolvable:$true] %s345_s24 }
  0x65   : > { %s4899_s14 = scalar_lea.hbm %s7365_s4, 4096 }
  0x66   : > { %p4900_p1 = scmp.ne.s32.totalorder %s7365_s4, %s4899_s14  ;;  %p4906_p7 = scmp.lt.u32.totalorder %s4899_s14, %s7365_s4 }
  0x68   : > { %p4902_p3 = pnand %p4900_p1, %p5262_p8 }
  0x6a   : > { %p4903_p5 = pneg %p4902_p3 }
  0x6c   : > { %p4908_p9 = pnand %p4906_p7, %p4903_p5 }
  0x6e   : > { %4911 = shalt.err (!%p4908_p9)
}
  0x6f   : > { %s4912_s21 = scalar_lea.vmem %s330_s20, 4096  ;;  %p4920_p13 = scmp.lt.s32.totalorder %s330_s20, %s330_s20 }
  0x70   : > { %p4913_p10 = scmp.ne.s32.totalorder %s330_s20, %s4912_s21  ;;  %p4921_p0 = scmp.lt.s32.totalorder %s4912_s21, %s4912_s21 }
  0x72   : > { %p4915_p11 = pnand %p4913_p10, %p5262_p8  ;;  %p4922_p2 = por %p4921_p0, %p4920_p13 }
  0x74   : > { %p4916_p12 = pneg %p4915_p11 }
  0x76   : > { %p4923_p4 = pnand %p4922_p2, %p4916_p12 }
  0x78   : > { %4926 = shalt.err (!%p4923_p4)
}
  0x79   : > { %s7499_s13 = smov 8   ;;  %s7500_s6 = smov 128  }
  0x7a   : > { %4407 = dma.hbm_to_vmem [thread:$0]  (!%p5250_p6), %s7365_s4, 4096, %s330_s20, [#allocation9], %s7500_s6, %s7500_s6, %s7499_s13  }
  0x7b   : > { %s4927_s22 = scalar_lea.hbm %s7366_s5, 4096 }
  0x7c   : > { %p4928_p1 = scmp.ne.s32.totalorder %s7366_s5, %s4927_s22  ;;  %p4934_p7 = scmp.lt.u32.totalorder %s4927_s22, %s7366_s5 }
  0x7e   : > { %p4930_p3 = pnand %p4928_p1, %p5262_p8 }
  0x80   : > { %p4931_p5 = pneg %p4930_p3 }
  0x82   : > { %p4936_p9 = pnand %p4934_p7, %p4931_p5 }
  0x84   : > { %4939 = shalt.err (!%p4936_p9)
}
  0x85   : > { %s4940_s17 = scalar_lea.vmem %s346_s24, 4096  ;;  %p4948_p13 = scmp.lt.s32.totalorder %s346_s24, %s346_s24 }
  0x86   : > { %p4941_p10 = scmp.ne.s32.totalorder %s346_s24, %s4940_s17  ;;  %p4949_p0 = scmp.lt.s32.totalorder %s4940_s17, %s4940_s17 }
  0x88   : > { %p4943_p11 = pnand %p4941_p10, %p5262_p8  ;;  %p4950_p2 = por %p4949_p0, %p4948_p13 }
  0x8a   : > { %p4944_p12 = pneg %p4943_p11 }
  0x8c   : > { %p4951_p4 = pnand %p4950_p2, %p4944_p12 }
  0x8e   : > { %4954 = shalt.err (!%p4951_p4)
}
  0x8f   : > { %4410 = dma.hbm_to_vmem [thread:$0]  (!%p5250_p6), %s7366_s5, 4096, %s346_s24, [#allocation12], %s7500_s6, %s7500_s6, %s7499_s13  }
  0x90   : > { %s7379_s15 = sadd.s32 4294967294, %s5139_s10   ;;  %s43_s23 = sadd.s32 1, %s5135_s9 }
  0x91   : > { %s52_s16 = sadd.s32 1, %s5127_s29  ;;  %p45_p8 = scmp.ge.s32.totalorder %s43_s23, 2 }
  0x92   : > { %p59_p1 = scmp.ne.s32.totalorder %s5127_s29, %s5123_s28  ;;  %p60_p3 = scmp.eq.s32.totalorder %s5139_s10, 0 }
  0x93   : > { %p65_p5 = scmp.ne.s32.totalorder %s5123_s28, %s5119_s27  ;;  %s7852_s23 = smov (%p45_p8, %s43_s23), 0 }
  0x94   : > { %p5369_p7 = por %p60_p3, %p59_p1  ;;  %p7502_p9 = scmp.eq.s32.totalorder %s5236_s11, 0 }
  0x95   : > { %s47_s8 = ssub.s32 %s5135_s9, %s7852_s23  ;;  %p206_p10 = scmp.eq.s32.totalorder %s5236_s11, 1 }
  0x96   : > { %p5375_p6 = por %p7502_p9, %p65_p5  ;;  %p50_p11 = scmp.eq.s32.totalorder %s47_s8, 0 }
  0x97   : > { %p212_p12 = scmp.eq.s32.totalorder %s7379_s15, 1  ;;  %p5384_p13 = por %p206_p10, %p59_p1 }
  0x98   : > { %p4430_p0 = scmp.lt.s32.totalorder %s5139_s10, 2  ;;  %s359_s26 = sand.u32 1, %s5127_s29  }
  0x99   : > { %s7504_s19 = scalar_select %p5384_p13, 1, 0 }
  0x9a   : > { %s5390_s22 = scalar_select %p50_p11, %s5127_s29, %s52_s16  }
  0x9b   : > { %p5392_p2 = por %p212_p12, %p65_p5  ;;  %s3461_s14 = sshll.u32 %s359_s26, 8 }
  0x9c   : > { %s3725_s7 = sshll.u32 %s5135_s9, 12  ;;  %s7506_s0 = sld [smem:[#allocation146_spill]] }
  0x9d   : > { %s7505_s25 = scalar_select %p5392_p2, 1, 0 }
  0x9e   : > { %s363_s8 = scalar_lea.vmem [#allocation2], %s3461_s14  ;;  %p5407_p4 = pnand %p4430_p0, %p5369_p7 }
  0x9f   : > { %s373_s15 = sshll.u32 %s363_s8, 4  ;;  %s5411_s1 = scalar_lea.sflag [#allocation3], %s359_s26  ;;  %s5403_s15 = int_to_ptr.vmem [resolvable:$true] %s373_s15 }
  0xa0   : > { %p4957_p1 = pneg %p5407_p4 }
  0xa2   : > { %s5401_s21 = scalar_lea.hbm %s7506_s0, %s3725_s7  ;;  %s4960_s18 = scalar_lea.hbm %s7506_s0, 8192 }
  0xa3   : > { %s4955_s17 = scalar_lea.hbm %s5401_s21, 4096  ;;  %p4961_p7 = scmp.lt.u32.totalorder %s5401_s21, %s7506_s0 }
  0xa4   : > { %p4956_p8 = scmp.ne.s32.totalorder %s5401_s21, %s4955_s17  ;;  %p4962_p9 = scmp.lt.u32.totalorder %s4960_s18, %s4955_s17 }
  0xa5   : > { %p4964_p11 = scmp.lt.u32.totalorder %s4955_s17, %s5401_s21 }
  0xa6   : > { %p4958_p3 = pnand %p4957_p1, %p4956_p8  ;;  %p4963_p10 = por %p4962_p9, %p4961_p7 }
  0xa8   : > { %p4959_p5 = pneg %p4958_p3  ;;  %p4965_p12 = por %p4964_p11, %p4963_p10 }
  0xaa   : > { %p4966_p0 = pnand %p4965_p12, %p4959_p5 }
  0xac   : > { %4969 = shalt.err (!%p4966_p0)
}
  0xad   : > { %s4970_s26 = scalar_lea.vmem %s5403_s15, 4096  ;;  %s5150_s14 = smov [#allocation2]  }
  0xae   : > { %p4971_p8 = scmp.ne.s32.totalorder %s5403_s15, %s4970_s26  ;;  %s4975_s7 = sshll.u32 %s5150_s14, 4  ;;  %s4976_s7 = int_to_ptr.vmem [resolvable:$false] %s4975_s7 }
  0xaf   : > { %s4977_s20 = scalar_lea.vmem %s4976_s7, 8192  ;;  %p4978_p13 = scmp.lt.s32.totalorder %s5403_s15, %s4976_s7 }
  0xb0   : > { %p4973_p3 = pnand %p4971_p8, %p4957_p1  ;;  %p4979_p7 = scmp.lt.s32.totalorder %s4977_s20, %s4970_s26 }
  0xb2   : > { %p4974_p2 = pneg %p4973_p3  ;;  %p4980_p9 = por %p4979_p7, %p4978_p13 }
  0xb4   : > { %p4981_p10 = pnand %p4980_p9, %p4974_p2 }
  0xb6   : > { %4984 = shalt.err (!%p4981_p10)
}
  0xb7   : > { %4414 = dma.hbm_to_vmem [thread:$0]  (!%p5407_p4), %s5401_s21, 4096, %s5403_s15, %s5411_s1, %s7500_s6, %s7500_s6, %s7499_s13  }
  0xb8   : > { %p7508_p1 = scmp.ne.s32.totalorder %s7494_s12, 0 }
  0xba   : > { %385 = sbr.rel (%p7508_p1) target bundleno = 1164 (0x48c), region = 44 }
  0xc1   : > { %s5445_s17 = sand.u32 1, %s5123_s28  }
  0xc2   : > { %s3465_s18 = sshll.u32 %s5445_s17, 8  ;;  %s388_s8 = scalar_lea.sflag [#allocation3], %s5445_s17 }
  0xc3   : > { %s5451_s16 = scalar_lea.vmem [#allocation2], %s3465_s18 }
  0xc4   : > { %5094 = dma.done.wait (%p5375_p6), %s388_s8, 4096  }
  0xc5   : > { %5096 = vsyncadd (%p5375_p6), %s388_s8, 4294963200  ;;  %p7509_p13 = scmp.eq.s32.totalorder %s5236_s11, 0 }
  0xc7   : > { %5098 = dma.done.wait (%p7509_p13), [#allocation6], 6144   ;;  %p7510_p2 = pmov %p7509_p13 }
  0xc9   : > { %5100 = vsyncadd (%p7510_p2), [#allocation6], 4294961152  ;;  %p7511_p4 = pmov %p7510_p2 }
  0xca   : > { %p7512_p5 = pmov %p7510_p2 }
  0xcb   : > { %5102 = dma.done.wait (%p7511_p4), [#allocation9], 6144  }
  0xcc   : > { %5104 = vsyncadd (%p7512_p5), [#allocation9], 4294961152  ;;  %p7513_p11 = pmov %p7510_p2 }
  0xcd   : > { %p7514_p12 = pmov %p7510_p2 }
  0xce   : > { %5106 = dma.done.wait (%p7513_p11), [#allocation12], 4096  }
  0xcf   : > { %5108 = vsyncadd (%p7514_p12), [#allocation12], 4294963200  ;;  %v5469_v0 = vld [vmem:[#allocation7 + $0x40] sm:$0xff]   ;;  %v5475_v4 = vld [vmem:[#allocation7 + $0x48] sm:$0xff]   ;;  %s5151_s1 = smov 127   ;;  %s5152_s12 = smov 1  }
  0xd0   : > { %v5471_v1 = vld [vmem:[#allocation7] sm:$0xff]   ;;  %4351 = vmatprep.subr.bf16.mxu1 %v5469_v0  ;;  %v5477_v5 = vld [vmem:[#allocation7 + $0x8] sm:$0xff]   ;;  %v4619_v6 = vld [vmem:[#allocation5 + $0x14] ss:$8 sps:$4 sm:$0xff]   ;;  %s6056_s13 = scalar_lea.vmem [#allocation13], %s3465_s18  ;;  %s3472_s6 = sshll.u32 %s5445_s17, 7 }
  0xd1   : > { %v4614_v2 = vld [vmem:[#allocation5 + $0x4] ss:$8 sps:$4 sm:$0xff]   ;;  %4359 = vmatpush3.bf16.msra.mxu1 %v5471_v1  ;;  %v4616_v3 = vld [vmem:[#allocation5] ss:$8 sps:$4 sm:$0xff]   ;;  %v4621_v7 = vld [vmem:[#allocation5 + $0x10] ss:$8 sps:$4 sm:$0xff]  }
  0xd2   : > { %909 = vmatprep.subr.bf16.mxu0 %v4614_v2  ;;  %4352 = vmatprep.subr.bf16.mxu1 %v5475_v4  ;;  %v5481_v8 = vld [vmem:[#allocation7 + $0x50] sm:$0xff]   ;;  %v4624_v10 = vld [vmem:[#allocation5 + $0x24] ss:$8 sps:$4 sm:$0xff]   ;;  %v4626_v11 = vld [vmem:[#allocation5 + $0x20] ss:$8 sps:$4 sm:$0xff]   ;;  %s6786_s15 = scalar_lea.vmem [#allocation16], %s3472_s6 }
  0xd3   : > { %910 = vmatpush1.bf16.msra.mxu0 %v4616_v3  ;;  %v5483_v9 = vld [vmem:[#allocation7 + $0x10] sm:$0xff]   ;;  %v5486_v12 = vld [vmem:[#allocation7 + $0x58] sm:$0xff]   ;;  %v5492_v16 = vld [vmem:[#allocation7 + $0x60] sm:$0xff]   ;;  %s7209_s24 = scalar_lea.vmem [#allocation14], %s3472_s6  ;;  %s3189_s21 = sand.u32 1, %s5236_s11  }
  0xd4   : > { %911 = vmatprep.subr.bf16.mxu0 %v4619_v6  ;;  %v5489_v13 = vld [vmem:[#allocation7 + $0x18] sm:$0xff]   ;;  %v5495_v17 = vld [vmem:[#allocation7 + $0x20] sm:$0xff]   ;;  %v5498_v20 = vld [vmem:[#allocation7 + $0x68] sm:$0xff]   ;;  %s3839_s26 = sshll.u32 %s5131_s30, 11  ;;  %s3228_s14 = sshll.u32 %s7209_s24, 4  ;;  %s7235_s14 = int_to_ptr.vmem [resolvable:$true] %s3228_s14 }
  0xd5   : > { %4360 = vmatpush3.bf16.msra.mxu1 %v5477_v5  ;;  %v4629_v14 = vld [vmem:[#allocation5 + $0x34] ss:$8 sps:$4 sm:$0xff]   ;;  %v4631_v15 = vld [vmem:[#allocation5 + $0x30] ss:$8 sps:$4 sm:$0xff]   ;;  %v4634_v18 = vld [vmem:[#allocation5 + $0x44] ss:$8 sps:$4 sm:$0xff]  }
  0xd6   : > { %4353 = vmatprep.subr.bf16.mxu1 %v5481_v8  ;;  %v4636_v19 = vld [vmem:[#allocation5 + $0x40] ss:$8 sps:$4 sm:$0xff]   ;;  %v4639_v22 = vld [vmem:[#allocation5 + $0x54] ss:$8 sps:$4 sm:$0xff]   ;;  %v4641_v24 = vld [vmem:[#allocation5 + $0x50] ss:$8 sps:$4 sm:$0xff]  }
  0xd7   : > { %912 = vmatpush1.bf16.msra.mxu0 %v4621_v7  ;;  %v5501_v21 = vld [vmem:[#allocation7 + $0x28] sm:$0xff]   ;;  %v5504_v23 = vld [vmem:[#allocation7 + $0x70] sm:$0xff]   ;;  %v5510_v27 = vld [vmem:[#allocation7 + $0x78] sm:$0xff]   ;;  %s7838_s18 = sld [smem:[#allocation150_spill]]  ;;  %s7245_s7 = scalar_lea.sflag [#allocation15], %s3189_s21 }
  0xd8   : > { %913 = vmatprep.subr.bf16.mxu0 %v4624_v10  ;;  %v4644_v25 = vld [vmem:[#allocation5 + $0x64] ss:$8 sps:$4 sm:$0xff]   ;;  %v5507_v26 = vld [vmem:[#allocation7 + $0x30] sm:$0xff]   ;;  %v4646_v28 = vld [vmem:[#allocation5 + $0x60] ss:$8 sps:$4 sm:$0xff]   ;;  %s4985_s20 = scalar_lea.vmem %s7235_s14, 2048 }
  0xd9   : > { %4361 = vmatpush3.bf16.msra.mxu1 %v5483_v9  ;;  %v4649_v29 = vld [vmem:[#allocation5 + $0x74] ss:$8 sps:$4 sm:$0xff]   ;;  %v5516_v31 = vld [vmem:[%s5451_s16 + $0x64] ss:$8 sps:$4 sm:$0xff]   ;;  %v4651_v32 = vld [vmem:[#allocation5 + $0x70] ss:$8 sps:$4 sm:$0xff]   ;;  %p4986_p6 = scmp.ne.s32.totalorder %s7235_s14, %s4985_s20 }
  0xda   : > { %4354 = vmatprep.subr.bf16.mxu1 %v5486_v12  ;;  %v5513_v30 = vld [vmem:[#allocation7 + $0x38] sm:$0xff]   ;;  %1310 = vmatprep.mubr.bf16.mxu1 %v5516_v31  ;;  %v5521_v33 = vld [vmem:[%s5451_s16 + $0x60] ss:$8 sps:$4 sm:$0xff]   ;;  %v4655_v34 = vld [vmem:[#allocation5 + $0x84] ss:$8 sps:$4 sm:$0xff]   ;;  %p7840_p0 = scmp.ne.s32.totalorder %s7504_s19, 0 }
  0xdb   : > { %914 = vmatpush1.bf16.msra.mxu0 %v4626_v11  ;;  %v5525_v35 = vld [vmem:[%s5451_s16 + $0x74] ss:$8 sps:$4 sm:$0xff]   ;;  %v4657_v36 = vld [vmem:[#allocation5 + $0x80] ss:$8 sps:$4 sm:$0xff]   ;;  %v4660_v38 = vld [vmem:[#allocation5 + $0x90] ss:$8 sps:$4 sm:$0xff]  }
  0xdc   : > { %915 = vmatprep.subr.bf16.mxu0 %v4629_v14  ;;  %v4658_v37 = vld [vmem:[#allocation5 + $0x94] ss:$8 sps:$4 sm:$0xff]   ;;  %v5530_v39 = vld [vmem:[%s5451_s16 + $0x70] ss:$8 sps:$4 sm:$0xff]   ;;  %v4664_v40 = vld [vmem:[#allocation5 + $0xa4] ss:$8 sps:$4 sm:$0xff]   ;;  %p4987_p8 = pnand %p4986_p6, %p7840_p0 }
  0xdd   : > { %4362 = vmatpush3.bf16.msra.mxu1 %v5489_v13  ;;  %v5533_v41 = vld [vmem:[%s5451_s16 + $0x84] ss:$8 sps:$4 sm:$0xff]   ;;  %v4666_v42 = vld [vmem:[#allocation5 + $0xa0] ss:$8 sps:$4 sm:$0xff]   ;;  %v4667_v43 = vld [vmem:[#allocation5 + $0xb4] ss:$8 sps:$4 sm:$0xff]   ;;  %s7231_s8 = scalar_lea.hbm %s7838_s18, %s3839_s26 }
  0xde   : > { %4355 = vmatprep.subr.bf16.mxu1 %v5492_v16  ;;  %v5538_v44 = vld [vmem:[%s5451_s16 + $0x4] ss:$8 sps:$4 sm:$0xff]   ;;  %v4669_v45 = vld [vmem:[#allocation5 + $0xb0] ss:$8 sps:$4 sm:$0xff]   ;;  %v5542_v46 = vld [vmem:[%s5451_s16 + $0x80] ss:$8 sps:$4 sm:$0xff]   ;;  %p4988_p3 = pneg %p4987_p8 }
  0xdf   : > { %916 = vmatpush1.bf16.msra.mxu0 %v4631_v15  ;;  %941 = vmatprep.mubr.bf16.mxu0 %v5538_v44  ;;  %v4673_v47 = vld [vmem:[#allocation5 + $0xc4] ss:$8 sps:$4 sm:$0xff]   ;;  %v5545_v48 = vld [vmem:[%s5451_s16 + $0x94] ss:$8 sps:$4 sm:$0xff]   ;;  %v4675_v49 = vld [vmem:[#allocation5 + $0xc0] ss:$8 sps:$4 sm:$0xff]  }
  0xe0   : > { %917 = vmatprep.subr.bf16.mxu0 %v4634_v18  ;;  %v4676_v50 = vld [vmem:[#allocation5 + $0xd4] ss:$8 sps:$4 sm:$0xff]   ;;  %v4678_v51 = vld [vmem:[#allocation5 + $0xd0] ss:$8 sps:$4 sm:$0xff]   ;;  %v4682_v53 = vld [vmem:[#allocation5 + $0xe4] ss:$8 sps:$4 sm:$0xff]  }
  0xe1   : > { %4363 = vmatpush3.bf16.msra.mxu1 %v5495_v17  ;;  %v5550_v52 = vld [vmem:[%s5451_s16 + $0x90] ss:$8 sps:$4 sm:$0xff]   ;;  %v5553_v54 = vld [vmem:[%s5451_s16 + $0xa4] ss:$8 sps:$4 sm:$0xff]   ;;  %v4684_v55 = vld [vmem:[#allocation5 + $0xe0] ss:$8 sps:$4 sm:$0xff]  }
  0xe2   : > { %4356 = vmatprep.subr.bf16.mxu1 %v5498_v20  ;;  %v4685_v56 = vld [vmem:[#allocation5 + $0xf4] ss:$8 sps:$4 sm:$0xff]   ;;  %v4687_v57 = vld [vmem:[#allocation5 + $0xf0] ss:$8 sps:$4 sm:$0xff]   ;;  %v5558_v58 = vld [vmem:[%s5451_s16 + $0xa0] ss:$8 sps:$4 sm:$0xff]  }
  0xe3   : > { %918 = vmatpush1.bf16.msra.mxu0 %v4636_v19  ;;  %v5561_v59 = vld [vmem:[%s5451_s16 + $0xb4] ss:$8 sps:$4 sm:$0xff]   ;;  %v5564_v60 = vld [vmem:[%s5451_s16] ss:$8 sps:$4 sm:$0xff]   ;;  %v4699_v62 = vld [vmem:[%s5451_s16 + $0xb0] ss:$8 sps:$4 sm:$0xff]  }
  0xe4   : > { %919 = vmatprep.subr.bf16.mxu0 %v4639_v22  ;;  %v5567_v61 = vld [vmem:[%s5451_s16 + $0x14] ss:$8 sps:$4 sm:$0xff]   ;;  %v4703_v63 = vld [vmem:[%s5451_s16 + $0xc4] ss:$8 sps:$4 sm:$0xff]   ;;  %v5579_v2 = vld [vmem:[%s5451_s16 + $0x10] ss:$8 sps:$4 sm:$0xff]  }
  0xe5   : > { %4364 = vmatpush3.bf16.msra.mxu1 %v5501_v21  ;;  %v5582_v3 = vld [vmem:[%s5451_s16 + $0x24] ss:$8 sps:$4 sm:$0xff]   ;;  %v4711_v6 = vld [vmem:[%s5451_s16 + $0xd0] ss:$8 sps:$4 sm:$0xff]   ;;  %v4717_v10 = vld [vmem:[%s5451_s16 + $0xe0] ss:$8 sps:$4 sm:$0xff]  }
  0xe6   : > { %4357 = vmatprep.subr.bf16.mxu1 %v5504_v23  ;;  %v4715_v7 = vld [vmem:[%s5451_s16 + $0xe4] ss:$8 sps:$4 sm:$0xff]   ;;  %v4721_v11 = vld [vmem:[%s5451_s16 + $0xf4] ss:$8 sps:$4 sm:$0xff]   ;;  %v4723_v14 = vld [vmem:[%s5451_s16 + $0xf0] ss:$8 sps:$4 sm:$0xff]  }
  0xe7   : > { %920 = vmatpush1.bf16.msra.mxu0 %v4641_v24  ;;  %v4720_v15 = vld [vmem:[%s5451_s16 + $0x50] ss:$8 sps:$4 sm:$0xff]  }
  0xe8   : > { %921 = vmatprep.subr.bf16.mxu0 %v4644_v25 }
  0xe9   : > { %4365 = vmatpush3.bf16.msra.mxu1 %v5507_v26 }
  0xea   : > { %4358 = vmatprep.subr.bf16.mxu1 %v5510_v27 }
  0xeb   : > { %922 = vmatpush1.bf16.msra.mxu0 %v4646_v28 }
  0xec   : > { %923 = vmatprep.subr.bf16.mxu0 %v4649_v29 }
  0xed   : > { %4366 = vmatpush3.bf16.msra.mxu1 %v5513_v30 }
  0xef   : > { %924 = vmatpush1.bf16.msra.mxu0 %v4651_v32 }
  0xf0   : > { %1311 = vmatmul.mubr.bf16.vlgmr.msra.gmra.mrb[0].mxu1 %v5521_v33  ;;  %925 = vmatprep.subr.bf16.mxu0 %v4655_v34 }
  0xf1   : > { %1318 = vmatprep.mubr.bf16.mxu1 %v5525_v35 }
  0xf3   : > { %926 = vmatpush1.bf16.msra.mxu0 %v4657_v36 }
  0xf4   : > { %927 = vmatprep.subr.bf16.mxu0 %v4658_v37 }
  0xf7   : > { %928 = vmatpush1.bf16.msra.mxu0 %v4660_v38 }
  0xf8   : > { %1319 = vmatmul.mubr.bf16.gmra.mrb[4].mxu1 %v5530_v39  ;;  %929 = vmatprep.subr.bf16.mxu0 %v4664_v40 }
  0xf9   : > { %1326 = vmatprep.mubr.bf16.mxu1 %v5533_v41 }
  0xfb   : > { %930 = vmatpush1.bf16.msra.mxu0 %v4666_v42 }
  0xfc   : > { %931 = vmatprep.subr.bf16.mxu0 %v4667_v43 }
  0xff   : > { %932 = vmatpush1.bf16.msra.mxu0 %v4669_v45 }
 0x100   : > { %1327 = vmatmul.mubr.bf16.gmra.mrb[8].mxu1 %v5542_v46  ;;  %933 = vmatprep.subr.bf16.mxu0 %v4673_v47 }
 0x101   : > { %1334 = vmatprep.mubr.bf16.mxu1 %v5545_v48 }
 0x103   : > { %934 = vmatpush1.bf16.msra.mxu0 %v4675_v49 }
 0x104   : > { %935 = vmatprep.subr.bf16.mxu0 %v4676_v50 }
 0x107   : > { %936 = vmatpush1.bf16.msra.mxu0 %v4678_v51 }
 0x108   : > { %1335 = vmatmul.mubr.bf16.gmra.mrb[12].mxu1 %v5550_v52  ;;  %937 = vmatprep.subr.bf16.mxu0 %v4682_v53 }
 0x109   : > { %1342 = vmatprep.mubr.bf16.mxu1 %v5553_v54 }
 0x10b   : > { %938 = vmatpush1.bf16.msra.mxu0 %v4684_v55 }
 0x10c   : > { %939 = vmatprep.subr.bf16.mxu0 %v4685_v56 }
 0x10f   : > { %940 = vmatpush1.bf16.msra.mxu0 %v4687_v57 }
 0x110   : > { %1343 = vmatmul.mubr.bf16.gmra.mrb[16].mxu1 %v5558_v58  ;;  %4127 = vmatprep.subr.bf16.mxu0 %v5469_v0  ;;  %v4705_v0 = vld [vmem:[%s5451_s16 + $0xc0] ss:$8 sps:$4 sm:$0xff]  }
 0x111   : > { %1350 = vmatprep.mubr.bf16.mxu1 %v5561_v59 }
 0x112   : > { %942 = vmatmul.mubr.bf16.vlgmr.msra.gmra.mrb[0].mxu0 %v5564_v60 }
 0x113   : > { %951 = vmatprep.mubr.bf16.mxu0 %v5567_v61  ;;  %4128 = vmatpush3.bf16.msra.mxu0 %v5471_v1  ;;  %v4709_v1 = vld [vmem:[%s5451_s16 + $0xd4] ss:$8 sps:$4 sm:$0xff]  }
 0x114   : > { %4129 = vmatprep.subr.bf16.mxu0 %v5475_v4  ;;  %v5593_v4 = vld [vmem:[%s5451_s16 + $0x20] ss:$8 sps:$4 sm:$0xff]  }
 0x117   : > { %4130 = vmatpush3.bf16.msra.mxu0 %v5477_v5  ;;  %v5596_v5 = vld [vmem:[%s5451_s16 + $0x34] ss:$8 sps:$4 sm:$0xff]  }
 0x118   : > { %1351 = vmatmul.mubr.bf16.gmra.mrb[20].mxu1 %v4699_v62  ;;  %4131 = vmatprep.subr.bf16.mxu0 %v5481_v8  ;;  %v5607_v8 = vld [vmem:[%s5451_s16 + $0x30] ss:$8 sps:$4 sm:$0xff]  }
 0x119   : > { %1358 = vmatprep.mubr.bf16.mxu1 %v4703_v63 }
 0x11a   : > { %952 = vmatmul.mubr.bf16.gmra.mrb[4].mxu0 %v5579_v2 }
 0x11b   : > { %961 = vmatprep.mubr.bf16.mxu0 %v5582_v3  ;;  %4132 = vmatpush3.bf16.msra.mxu0 %v5483_v9  ;;  %v5610_v9 = vld [vmem:[%s5451_s16 + $0x44] ss:$8 sps:$4 sm:$0xff]  }
 0x11c   : > { %4133 = vmatprep.subr.bf16.mxu0 %v5486_v12  ;;  %v4714_v12 = vld [vmem:[%s5451_s16 + $0x40] ss:$8 sps:$4 sm:$0xff]  }
 0x11f   : > { %4134 = vmatpush3.bf16.msra.mxu0 %v5489_v13  ;;  %v4718_v13 = vld [vmem:[%s5451_s16 + $0x54] ss:$8 sps:$4 sm:$0xff]  }
 0x120   : > { %1359 = vmatmul.mubr.bf16.gmra.mrb[24].mxu1 %v4705_v0  ;;  %4135 = vmatprep.subr.bf16.mxu0 %v5492_v16 }
 0x121   : > { %1366 = vmatprep.mubr.bf16.mxu1 %v4709_v1 }
 0x122   : > { %962 = vmatmul.mubr.bf16.gmra.mrb[8].mxu0 %v5593_v4 }
 0x123   : > { %971 = vmatprep.mubr.bf16.mxu0 %v5596_v5  ;;  %4136 = vmatpush3.bf16.msra.mxu0 %v5495_v17 }
 0x124   : > { %4137 = vmatprep.subr.bf16.mxu0 %v5498_v20 }
 0x127   : > { %4138 = vmatpush3.bf16.msra.mxu0 %v5501_v21 }
 0x128   : > { %1367 = vmatmul.mubr.bf16.gmra.mrb[28].mxu1 %v4711_v6  ;;  %4139 = vmatprep.subr.bf16.mxu0 %v5504_v23 }
 0x129   : > { %1374 = vmatprep.mubr.bf16.mxu1 %v4715_v7 }
 0x12a   : > { %972 = vmatmul.mubr.bf16.gmra.mrb[12].mxu0 %v5607_v8 }
 0x12b   : > { %981 = vmatprep.mubr.bf16.mxu0 %v5610_v9  ;;  %4140 = vmatpush3.bf16.msra.mxu0 %v5507_v26 }
 0x12c   : > { %4141 = vmatprep.subr.bf16.mxu0 %v5510_v27 }
 0x12f   : > { %4142 = vmatpush3.bf16.msra.mxu0 %v5513_v30 }
 0x130   : > { %1375 = vmatmul.mubr.bf16.gmra.mrb[32].mxu1 %v4717_v10 }
 0x131   : > { %1382 = vmatprep.mubr.bf16.mxu1 %v4721_v11 }
 0x132   : > { %982 = vmatmul.mubr.bf16.gmra.mrb[16].mxu0 %v4714_v12 }
 0x133   : > { %991 = vmatprep.mubr.bf16.mxu0 %v4718_v13 }
 0x138   : > { %1383 = vmatmul.mubr.bf16.gmra.mrb[36].mxu1 %v4723_v14 }
 0x139   : > { %1551 = vmatprep.mubr.bf16.mxu1 %v5538_v44 }
 0x13a   : > { %992 = vmatmul.mubr.bf16.gmra.mrb[20].mxu0 %v4720_v15 }
 0x13b   : > { %1001 = vmatprep.mubr.bf16.mxu0 %v5516_v31 }
 0x142   : > { %1002 = vmatmul.mubr.bf16.gmra.mrb[24].mxu0 %v5521_v33 }
 0x143   : > { %1011 = vmatprep.mubr.bf16.mxu0 %v5525_v35 }
 0x14a   : > { %1012 = vmatmul.mubr.bf16.gmra.mrb[28].mxu0 %v5530_v39 }
 0x14b   : > { %1021 = vmatprep.mubr.bf16.mxu0 %v5533_v41 }
 0x152   : > { %1022 = vmatmul.mubr.bf16.gmra.mrb[32].mxu0 %v5542_v46 }
 0x153   : > { %1031 = vmatprep.mubr.bf16.mxu0 %v5545_v48 }
 0x15a   : > { %1032 = vmatmul.mubr.bf16.gmra.mrb[36].mxu0 %v5550_v52 }
 0x15b   : > { %1041 = vmatprep.mubr.bf16.mxu0 %v5553_v54 }
 0x162   : > { %1042 = vmatmul.mubr.bf16.gmra.mrb[40].mxu0 %v5558_v58 }
 0x163   : > { %1051 = vmatprep.mubr.bf16.mxu0 %v5561_v59 }
 0x16a   : > { %1052 = vmatmul.mubr.bf16.gmra.mrb[44].mxu0 %v4699_v62 }
 0x16b   : > { %1061 = vmatprep.mubr.bf16.mxu0 %v4703_v63 }
 0x172   : > { %1062 = vmatmul.mubr.bf16.gmra.mrb[48].mxu0 %v4705_v0 }
 0x173   : > { %1071 = vmatprep.mubr.bf16.mxu0 %v4709_v1 }
 0x17a   : > { %1072 = vmatmul.mubr.bf16.gmra.mrb[52].mxu0 %v4711_v6 }
 0x17b   : > { %1081 = vmatprep.mubr.bf16.mxu0 %v4715_v7 }
 0x182   : > { %1082 = vmatmul.mubr.bf16.gmra.mrb[56].mxu0 %v4717_v10 }
 0x183   : > { %1091 = vmatprep.mubr.bf16.mxu0 %v4721_v11 }
 0x18a   : > { %1092 = vmatmul.mubr.bf16.gmra.mrb[60].mxu0 %v4723_v14 }
 0x18b   : > { %1262 = vmatprep.mubr.bf16.mxu0 %v5538_v44 }
 0x192   : > { %1263 = vmatmul.mubr.bf16.vlgmr.msra.gmra.mrb[64].mxu0 %v5564_v60 }
 0x193   : > { %1270 = vmatprep.mubr.bf16.mxu0 %v5567_v61 }
 0x19a   : > { %1271 = vmatmul.mubr.bf16.gmra.mrb[68].mxu0 %v5579_v2 }
 0x19b   : > { %1278 = vmatprep.mubr.bf16.mxu0 %v5582_v3 }
 0x1a2   : > { %1279 = vmatmul.mubr.bf16.gmra.mrb[72].mxu0 %v5593_v4 }
 0x1a3   : > { %1286 = vmatprep.mubr.bf16.mxu0 %v5596_v5 }
 0x1aa   : > { %1287 = vmatmul.mubr.bf16.gmra.mrb[76].mxu0 %v5607_v8 }
 0x1ab   : > { %1294 = vmatprep.mubr.bf16.mxu0 %v5610_v9 }
 0x1b2   : > { %1295 = vmatmul.mubr.bf16.gmra.mrb[80].mxu0 %v4714_v12 }
 0x1b3   : > { %1302 = vmatprep.mubr.bf16.mxu0 %v4718_v13 }
 0x1ba   : > { %1303 = vmatmul.mubr.bf16.gmra.mrb[84].mxu0 %v4720_v15 }
 0x1c3   : > { %v4179_v16 = vpop.f32.mrb[0].mxu1 }
 0x1c4   : > { %v4180_v17 = vpop.f32.mrb[1].mxu1 }
 0x1c5   : > { %v5646_v18 = vadd.f32 %v4180_v17, %v4179_v16  ;;  %v4182_v19 = vpop.f32.mrb[2].mxu1 }
 0x1c6   : > { %v4183_v20 = vpop.f32.mrb[3].mxu1 }
 0x1c7   : > { %v5648_v21 = vadd.f32 %v4183_v20, %v4182_v19  ;;  %1719 = vrot.lane.b32.xlu0 %v5646_v18, %s5151_s1 }
 0x1c9   : > { %7515 = vst [vmem:[#allocation23_spill] sm:$0xff] %v5648_v21  ;;  %1721 = vrot.lane.b32.xlu1 %v5648_v21, %s5151_s1 }
 0x1cb   : > { %v4185_v22 = vpop.f32.mrb[4].mxu1  ;;  %1783 = vrot.lane.b32.xlu0 %v5646_v18, %s5152_s12 }
 0x1cc   : > { %v4186_v23 = vpop.f32.mrb[5].mxu1 }
 0x1cd   : > { %v5656_v24 = vadd.f32 %v4186_v23, %v4185_v22  ;;  %v4188_v25 = vpop.f32.mrb[6].mxu1  ;;  %1785 = vrot.lane.b32.xlu1 %v5648_v21, %s5152_s12 }
 0x1ce   : > { %v4189_v26 = vpop.f32.mrb[7].mxu1 }
 0x1cf   : > { %7516 = vst [vmem:[#allocation24_spill] sm:$0xff] %v5656_v24  ;;  %v5660_v27 = vadd.f32 %v4189_v26, %v4188_v25  ;;  %1723 = vrot.lane.b32.xlu0 %v5656_v24, %s5151_s1 }
 0x1d1   : > { %7517 = vst [vmem:[#allocation25_spill] sm:$0xff] %v5660_v27  ;;  %1725 = vrot.lane.b32.xlu1 %v5660_v27, %s5151_s1 }
 0x1d3   : > { %v4191_v28 = vpop.f32.mrb[8].mxu1  ;;  %1787 = vrot.lane.b32.xlu0 %v5656_v24, %s5152_s12 }
 0x1d4   : > { %v4192_v29 = vpop.f32.mrb[9].mxu1 }
 0x1d5   : > { %v5668_v30 = vadd.f32 %v4192_v29, %v4191_v28  ;;  %v4194_v31 = vpop.f32.mrb[10].mxu1  ;;  %1789 = vrot.lane.b32.xlu1 %v5660_v27, %s5152_s12 }
 0x1d6   : > { %v4195_v32 = vpop.f32.mrb[11].mxu1 }
 0x1d7   : > { %7518 = vst [vmem:[#allocation26_spill] sm:$0xff] %v5668_v30  ;;  %v5672_v33 = vadd.f32 %v4195_v32, %v4194_v31  ;;  %1727 = vrot.lane.b32.xlu0 %v5668_v30, %s5151_s1 }
 0x1d9   : > { %7519 = vst [vmem:[#allocation27_spill] sm:$0xff] %v5672_v33  ;;  %1729 = vrot.lane.b32.xlu1 %v5672_v33, %s5151_s1 }
 0x1db   : > { %v4197_v34 = vpop.f32.mrb[12].mxu1  ;;  %1791 = vrot.lane.b32.xlu0 %v5668_v30, %s5152_s12 }
 0x1dc   : > { %v4198_v35 = vpop.f32.mrb[13].mxu1 }
 0x1dd   : > { %v5680_v36 = vadd.f32 %v4198_v35, %v4197_v34  ;;  %v4200_v37 = vpop.f32.mrb[14].mxu1  ;;  %1793 = vrot.lane.b32.xlu1 %v5672_v33, %s5152_s12 }
 0x1de   : > { %v4201_v38 = vpop.f32.mrb[15].mxu1 }
 0x1df   : > { %7520 = vst [vmem:[#allocation28_spill] sm:$0xff] %v5680_v36  ;;  %v5684_v39 = vadd.f32 %v4201_v38, %v4200_v37  ;;  %1731 = vrot.lane.b32.xlu0 %v5680_v36, %s5151_s1 }
 0x1e1   : > { %7521 = vst [vmem:[#allocation29_spill] sm:$0xff] %v5684_v39  ;;  %1733 = vrot.lane.b32.xlu1 %v5684_v39, %s5151_s1 }
 0x1e3   : > { %1795 = vrot.lane.b32.xlu0 %v5680_v36, %s5152_s12  ;;  %v4203_v40 = vpop.f32.mrb[16].mxu1 }
 0x1e4   : > { %v4204_v41 = vpop.f32.mrb[17].mxu1 }
 0x1e5   : > { %1797 = vrot.lane.b32.xlu1 %v5684_v39, %s5152_s12  ;;  %v5694_v42 = vpop.f32.mrb[0].mxu0  ;;  %v5696_v43 = vadd.f32 %v4204_v41, %v4203_v40  ;;  %v4206_v44 = vpop.f32.mrb[18].mxu1 }
 0x1e6   : > { %v5698_v45 = vpop.f32.mrb[1].mxu0  ;;  %v4207_v46 = vpop.f32.mrb[19].mxu1 }
 0x1e7   : > { %7522 = vst [vmem:[#allocation30_spill] sm:$0xff] %v5696_v43  ;;  %7523 = vst [vmem:[#allocation31_spill] sm:$0xff] %v5698_v45  ;;  %2735 = vrot.lane.b32.xlu0 %v5698_v45, %s5151_s1  ;;  %v5702_v47 = vpop.f32.mrb[2].mxu0  ;;  %v5704_v48 = vadd.f32 %v4207_v46, %v4206_v44  ;;  %v4726_v45 = vld [vmem:[#allocation8 + $0x48] sm:$0xff]  }
 0x1e8   : > { %v5706_v49 = vpop.f32.mrb[3].mxu0 }
 0x1e9   : > { %7524 = vst [vmem:[#allocation32_spill] sm:$0xff] %v5704_v48  ;;  %7525 = vst [vmem:[#allocation33_spill] sm:$0xff] %v5706_v49  ;;  %2287 = vrot.lane.b32.xlu1 %v5694_v42, %s5151_s1 }
 0x1eb   : > { %1735 = vrot.lane.b32.xlu0 %v5696_v43, %s5151_s1  ;;  %v4209_v50 = vpop.f32.mrb[20].mxu1 }
 0x1ec   : > { %v4210_v51 = vpop.f32.mrb[21].mxu1 }
 0x1ed   : > { %2351 = vrot.lane.b32.xlu1 %v5694_v42, %s5152_s12  ;;  %v5714_v52 = vpop.f32.mrb[4].mxu0  ;;  %v5716_v53 = vadd.f32 %v4210_v51, %v4209_v50  ;;  %v4212_v54 = vpop.f32.mrb[22].mxu1 }
 0x1ee   : > { %v5718_v55 = vpop.f32.mrb[5].mxu0  ;;  %v4213_v56 = vpop.f32.mrb[23].mxu1 }
 0x1ef   : > { %7526 = vst [vmem:[#allocation34_spill] sm:$0xff] %v5716_v53  ;;  %7527 = vst [vmem:[#allocation35_spill] sm:$0xff] %v5718_v55  ;;  %1799 = vrot.lane.b32.xlu0 %v5696_v43, %s5152_s12  ;;  %v5722_v57 = vpop.f32.mrb[6].mxu0  ;;  %v5724_v58 = vadd.f32 %v4213_v56, %v4212_v54 }
 0x1f0   : > { %v5726_v59 = vpop.f32.mrb[7].mxu0 }
 0x1f1   : > { %7528 = vst [vmem:[#allocation36_spill] sm:$0xff] %v5724_v58  ;;  %7529 = vst [vmem:[#allocation37_spill] sm:$0xff] %v5726_v59  ;;  %2289 = vrot.lane.b32.xlu1 %v5702_v47, %s5151_s1 }
 0x1f3   : > { %2355 = vrot.lane.b32.xlu0 %v5714_v52, %s5152_s12  ;;  %v4215_v62 = vpop.f32.mrb[24].mxu1 }
 0x1f4   : > { %v4216_v63 = vpop.f32.mrb[25].mxu1 }
 0x1f5   : > { %2353 = vrot.lane.b32.xlu1 %v5702_v47, %s5152_s12  ;;  %v5734_v0 = vpop.f32.mrb[8].mxu0  ;;  %v5736_v1 = vadd.f32 %v4216_v63, %v4215_v62  ;;  %v4218_v6 = vpop.f32.mrb[26].mxu1 }
 0x1f6   : > { %v5738_v7 = vpop.f32.mrb[9].mxu0  ;;  %v4219_v10 = vpop.f32.mrb[27].mxu1 }
 0x1f7   : > { %7530 = vst [vmem:[#allocation38_spill] sm:$0xff] %v5736_v1  ;;  %7531 = vst [vmem:[#allocation39_spill] sm:$0xff] %v5738_v7  ;;  %2739 = vrot.lane.b32.xlu0 %v5718_v55, %s5151_s1  ;;  %v5742_v11 = vpop.f32.mrb[10].mxu0  ;;  %v5744_v12 = vadd.f32 %v4219_v10, %v4218_v6 }
 0x1f8   : > { %v5746_v13 = vpop.f32.mrb[11].mxu0 }
 0x1f9   : > { %7532 = vst [vmem:[#allocation40_spill] sm:$0xff] %v5744_v12  ;;  %7533 = vst [vmem:[#allocation41_spill] sm:$0xff] %v5746_v13  ;;  %2737 = vrot.lane.b32.xlu1 %v5706_v49, %s5151_s1 }
 0x1fb   : > { %1739 = vrot.lane.b32.xlu0 %v5716_v53, %s5151_s1  ;;  %v4221_v14 = vpop.f32.mrb[28].mxu1 }
 0x1fc   : > { %v4222_v15 = vpop.f32.mrb[29].mxu1 }
 0x1fd   : > { %1737 = vrot.lane.b32.xlu1 %v5704_v48, %s5151_s1  ;;  %v5754_v16 = vpop.f32.mrb[12].mxu0  ;;  %v5756_v17 = vadd.f32 %v4222_v15, %v4221_v14  ;;  %v4224_v19 = vpop.f32.mrb[30].mxu1 }
 0x1fe   : > { %v5758_v20 = vpop.f32.mrb[13].mxu0  ;;  %v4225_v22 = vpop.f32.mrb[31].mxu1 }
 0x1ff   : > { %7534 = vst [vmem:[#allocation42_spill] sm:$0xff] %v5756_v17  ;;  %7535 = vst [vmem:[#allocation43_spill] sm:$0xff] %v5758_v20  ;;  %1803 = vrot.lane.b32.xlu0 %v5716_v53, %s5152_s12  ;;  %v5762_v23 = vpop.f32.mrb[14].mxu0  ;;  %v5764_v25 = vadd.f32 %v4225_v22, %v4224_v19 }
 0x200   : > { %7536 = vst [vmem:[#allocation44_spill] sm:$0xff] %v5762_v23  ;;  %v5766_v26 = vpop.f32.mrb[15].mxu0 }
 0x201   : > { %7537 = vst [vmem:[#allocation45_spill] sm:$0xff] %v5764_v25  ;;  %7538 = vst [vmem:[#allocation46_spill] sm:$0xff] %v5766_v26  ;;  %1801 = vrot.lane.b32.xlu1 %v5704_v48, %s5152_s12 }
 0x203   : > { %2359 = vrot.lane.b32.xlu0 %v5734_v0, %s5152_s12  ;;  %v4227_v28 = vpop.f32.mrb[32].mxu1 }
 0x204   : > { %v4228_v29 = vpop.f32.mrb[33].mxu1 }
 0x205   : > { %2291 = vrot.lane.b32.xlu1 %v5714_v52, %s5151_s1  ;;  %v5774_v31 = vpop.f32.mrb[16].mxu0  ;;  %v5776_v32 = vadd.f32 %v4228_v29, %v4227_v28  ;;  %v4230_v34 = vpop.f32.mrb[34].mxu1 }
 0x206   : > { %7539 = vst [vmem:[#allocation47_spill] sm:$0xff] %v5774_v31  ;;  %v5778_v35 = vpop.f32.mrb[17].mxu0  ;;  %v4231_v37 = vpop.f32.mrb[35].mxu1 }
 0x207   : > { %7540 = vst [vmem:[#allocation48_spill] sm:$0xff] %v5778_v35  ;;  %2743 = vrot.lane.b32.xlu0 %v5738_v7, %s5151_s1  ;;  %v5782_v38 = vpop.f32.mrb[18].mxu0  ;;  %v5784_v40 = vadd.f32 %v4231_v37, %v4230_v34 }
 0x208   : > { %7541 = vst [vmem:[#allocation49_spill] sm:$0xff] %v5782_v38  ;;  %v5786_v41 = vpop.f32.mrb[19].mxu0 }
 0x209   : > { %7542 = vst [vmem:[#allocation50_spill] sm:$0xff] %v5784_v40  ;;  %7543 = vst [vmem:[#allocation51_spill] sm:$0xff] %v5786_v41  ;;  %2293 = vrot.lane.b32.xlu1 %v5722_v57, %s5151_s1 }
 0x20b   : > { %1743 = vrot.lane.b32.xlu0 %v5736_v1, %s5151_s1  ;;  %v4233_v44 = vpop.f32.mrb[36].mxu1 }
 0x20c   : > { %v4234_v46 = vpop.f32.mrb[37].mxu1 }
 0x20d   : > { %2357 = vrot.lane.b32.xlu1 %v5722_v57, %s5152_s12  ;;  %v5794_v50 = vpop.f32.mrb[20].mxu0  ;;  %v5796_v51 = vadd.f32 %v4234_v46, %v4233_v44  ;;  %v4236_v54 = vpop.f32.mrb[38].mxu1 }
 0x20e   : > { %7544 = vst [vmem:[#allocation52_spill] sm:$0xff] %v5794_v50  ;;  %v5798_v56 = vpop.f32.mrb[21].mxu0  ;;  %v4237_v62 = vpop.f32.mrb[39].mxu1 }
 0x20f   : > { %7545 = vst [vmem:[#allocation53_spill] sm:$0xff] %v5796_v51  ;;  %7546 = vst [vmem:[#allocation54_spill] sm:$0xff] %v5798_v56  ;;  %1807 = vrot.lane.b32.xlu0 %v5736_v1, %s5152_s12  ;;  %v5802_v63 = vpop.f32.mrb[22].mxu0  ;;  %v5804_v6 = vadd.f32 %v4237_v62, %v4236_v54 }
 0x210   : > { %v5806_v10 = vpop.f32.mrb[23].mxu0 }
 0x211   : > { %7547 = vst [vmem:[#allocation55_spill] sm:$0xff] %v5804_v6  ;;  %7548 = vst [vmem:[#allocation56_spill] sm:$0xff] %v5806_v10  ;;  %2741 = vrot.lane.b32.xlu1 %v5726_v59, %s5151_s1 }
 0x213   : > { %2363 = vrot.lane.b32.xlu0 %v5754_v16, %s5152_s12 }
 0x215   : > { %1741 = vrot.lane.b32.xlu1 %v5724_v58, %s5151_s1  ;;  %v5814_v14 = vpop.f32.mrb[24].mxu0 }
 0x216   : > { %v5816_v15 = vpop.f32.mrb[25].mxu0 }
 0x217   : > { %7549 = vst [vmem:[#allocation57_spill] sm:$0xff] %v5816_v15  ;;  %2747 = vrot.lane.b32.xlu0 %v5758_v20, %s5151_s1  ;;  %v5820_v19 = vpop.f32.mrb[26].mxu0 }
 0x218   : > { %v5822_v22 = vpop.f32.mrb[27].mxu0 }
 0x219   : > { %7550 = vst [vmem:[#allocation58_spill] sm:$0xff] %v5822_v22  ;;  %1805 = vrot.lane.b32.xlu1 %v5724_v58, %s5152_s12 }
 0x21b   : > { %1747 = vrot.lane.b32.xlu0 %v5756_v17, %s5151_s1 }
 0x21d   : > { %2295 = vrot.lane.b32.xlu1 %v5734_v0, %s5151_s1  ;;  %v5830_v28 = vpop.f32.mrb[28].mxu0 }
 0x21e   : > { %v5832_v29 = vpop.f32.mrb[29].mxu0 }
 0x21f   : > { %7551 = vst [vmem:[#allocation59_spill] sm:$0xff] %v5832_v29  ;;  %1811 = vrot.lane.b32.xlu0 %v5756_v17, %s5152_s12  ;;  %v5836_v34 = vpop.f32.mrb[30].mxu0 }
 0x220   : > { %v5838_v37 = vpop.f32.mrb[31].mxu0 }
 0x221   : > { %7552 = vst [vmem:[#allocation60_spill] sm:$0xff] %v5838_v37  ;;  %2297 = vrot.lane.b32.xlu1 %v5742_v11, %s5151_s1 }
 0x223   : > { %2367 = vrot.lane.b32.xlu0 %v5774_v31, %s5152_s12 }
 0x225   : > { %2361 = vrot.lane.b32.xlu1 %v5742_v11, %s5152_s12  ;;  %v5846_v44 = vpop.f32.mrb[32].mxu0 }
 0x226   : > { %v5848_v46 = vpop.f32.mrb[33].mxu0 }
 0x227   : > { %7553 = vst [vmem:[#allocation61_spill] sm:$0xff] %v5848_v46  ;;  %2751 = vrot.lane.b32.xlu0 %v5778_v35, %s5151_s1  ;;  %v5852_v54 = vpop.f32.mrb[34].mxu0 }
 0x228   : > { %v5854_v62 = vpop.f32.mrb[35].mxu0 }
 0x229   : > { %7554 = vst [vmem:[#allocation62_spill] sm:$0xff] %v5854_v62  ;;  %2745 = vrot.lane.b32.xlu1 %v5746_v13, %s5151_s1 }
 0x22b   : > { %1751 = vrot.lane.b32.xlu0 %v5776_v32, %s5151_s1 }
 0x22d   : > { %1745 = vrot.lane.b32.xlu1 %v5744_v12, %s5151_s1  ;;  %v5862_v27 = vpop.f32.mrb[36].mxu0 }
 0x22e   : > { %v5864_v21 = vpop.f32.mrb[37].mxu0 }
 0x22f   : > { %7555 = vst [vmem:[#allocation63_spill] sm:$0xff] %v5864_v21  ;;  %1815 = vrot.lane.b32.xlu0 %v5776_v32, %s5152_s12  ;;  %v5868_v58 = vpop.f32.mrb[38].mxu0 }
 0x230   : > { %7556 = vst [vmem:[#allocation64_spill] sm:$0xff] %v5868_v58  ;;  %v5870_v48 = vpop.f32.mrb[39].mxu0 }
 0x231   : > { %7557 = vst [vmem:[#allocation65_spill] sm:$0xff] %v5870_v48  ;;  %1809 = vrot.lane.b32.xlu1 %v5744_v12, %s5152_s12 }
 0x233   : > { %2371 = vrot.lane.b32.xlu0 %v5794_v50, %s5152_s12 }
 0x235   : > { %2299 = vrot.lane.b32.xlu1 %v5754_v16, %s5151_s1  ;;  %v5878_v39 = vpop.f32.mrb[40].mxu0 }
 0x236   : > { %7558 = vst [vmem:[#allocation66_spill] sm:$0xff] %v5878_v39  ;;  %v5880_v36 = vpop.f32.mrb[41].mxu0 }
 0x237   : > { %7559 = vst [vmem:[#allocation67_spill] sm:$0xff] %v5880_v36  ;;  %2755 = vrot.lane.b32.xlu0 %v5798_v56, %s5151_s1  ;;  %v5884_v33 = vpop.f32.mrb[42].mxu0 }
 0x238   : > { %7560 = vst [vmem:[#allocation68_spill] sm:$0xff] %v5884_v33  ;;  %v5886_v13 = vpop.f32.mrb[43].mxu0 }
 0x239   : > { %7561 = vst [vmem:[#allocation69_spill] sm:$0xff] %v5886_v13  ;;  %v5888_v59 = vpop.permute.xlu0 %1719  ;;  %2301 = vrot.lane.b32.xlu1 %v5762_v23, %s5151_s1 }
 0x23b   : > { %v5892_v12 = vpop.permute.xlu1 %1721  ;;  %1755 = vrot.lane.b32.xlu0 %v5796_v51, %s5151_s1 }
 0x23c   : > { %7562 = vst [vmem:[#allocation70_spill] sm:$0xff] %v5892_v12 }
 0x23d   : > { %v5896_v49 = vpop.permute.xlu0 %1783  ;;  %2365 = vrot.lane.b32.xlu1 %v5762_v23, %s5152_s12  ;;  %v5900_v17 = vpop.f32.mrb[44].mxu0 }
 0x23e   : > { %v5902_v1 = vpop.f32.mrb[45].mxu0 }
 0x23f   : > { %7563 = vst [vmem:[#allocation71_spill] sm:$0xff] %v5902_v1  ;;  %v5904_v53 = vpop.permute.xlu1 %1785  ;;  %1819 = vrot.lane.b32.xlu0 %v5796_v51, %s5152_s12  ;;  %v5908_v43 = vpop.f32.mrb[46].mxu0 }
 0x240   : > { %7564 = vst [vmem:[#allocation72_spill] sm:$0xff] %v5904_v53  ;;  %7565 = vst [vmem:[#allocation73_spill] sm:$0xff] %v5908_v43  ;;  %v5910_v12 = vpop.f32.mrb[47].mxu0 }
 0x241   : > { %7566 = vst [vmem:[#allocation74_spill] sm:$0xff] %v5910_v12  ;;  %v5912_v30 = vpop.permute.xlu0 %1723  ;;  %2749 = vrot.lane.b32.xlu1 %v5766_v26, %s5151_s1 }
 0x243   : > { %v5916_v56 = vpop.permute.xlu1 %1725  ;;  %2375 = vrot.lane.b32.xlu0 %v5814_v14, %s5152_s12 }
 0x244   : > { %7567 = vst [vmem:[#allocation75_spill] sm:$0xff] %v5916_v56 }
 0x245   : > { %v5920_v35 = vpop.permute.xlu0 %1787  ;;  %1749 = vrot.lane.b32.xlu1 %v5764_v25, %s5151_s1  ;;  %v5924_v53 = vpop.f32.mrb[48].mxu0 }
 0x246   : > { %7568 = vst [vmem:[#allocation76_spill] sm:$0xff] %v5924_v53  ;;  %v5926_v20 = vpop.f32.mrb[49].mxu0 }
 0x247   : > { %7569 = vst [vmem:[#allocation77_spill] sm:$0xff] %v5926_v20  ;;  %v5928_v12 = vpop.permute.xlu1 %1789  ;;  %2759 = vrot.lane.b32.xlu0 %v5816_v15, %s5151_s1  ;;  %v5932_v26 = vpop.f32.mrb[50].mxu0 }
 0x248   : > { %7570 = vst [vmem:[#allocation78_spill] sm:$0xff] %v5928_v12  ;;  %7571 = vst [vmem:[#allocation79_spill] sm:$0xff] %v5932_v26  ;;  %v5934_v56 = vpop.f32.mrb[51].mxu0  ;;  %v4725_v26 = vld [vmem:[#allocation8] sm:$0xff]  }
 0x249   : > { %7572 = vst [vmem:[#allocation80_spill] sm:$0xff] %v5934_v56  ;;  %v5936_v7 = vpop.permute.xlu0 %1727  ;;  %1813 = vrot.lane.b32.xlu1 %v5764_v25, %s5152_s12 }
 0x24a   : > { %7573 = vst [vmem:[#allocation81_spill] sm:$0xff] %v5936_v7 }
 0x24b   : > { %v5940_v55 = vpop.permute.xlu1 %1729  ;;  %2379 = vrot.lane.b32.xlu0 %v5830_v28, %s5152_s12 }
 0x24c   : > { %7574 = vst [vmem:[#allocation82_spill] sm:$0xff] %v5940_v55 }
 0x24d   : > { %v5944_v13 = vpop.permute.xlu0 %1791  ;;  %2303 = vrot.lane.b32.xlu1 %v5774_v31, %s5151_s1  ;;  %v5948_v12 = vpop.f32.mrb[52].mxu0 }
 0x24e   : > { %7575 = vst [vmem:[#allocation83_spill] sm:$0xff] %v5944_v13  ;;  %v5950_v15 = vpop.f32.mrb[53].mxu0  ;;  %v4724_v13 = vld [vmem:[#allocation8 + $0x40] sm:$0xff]  }
 0x24f   : > { %7576 = vst [vmem:[#allocation84_spill] sm:$0xff] %v5950_v15  ;;  %v5952_v56 = vpop.permute.xlu1 %1793  ;;  %2763 = vrot.lane.b32.xlu0 %v5832_v29, %s5151_s1  ;;  %v5956_v25 = vpop.f32.mrb[54].mxu0  ;;  %4239 = vmatprep.subr.bf16.mxu1 %v4724_v13  ;;  %v1680_v29 = vlaneseq }
 0x250   : > { %7577 = vst [vmem:[#allocation85_spill] sm:$0xff] %v5952_v56  ;;  %7578 = vst [vmem:[#allocation86_spill] sm:$0xff] %v5956_v25  ;;  %v5958_v55 = vpop.f32.mrb[55].mxu0  ;;  %4240 = vmatpush3.bf16.msra.mxu1 %v4725_v26  ;;  %v4727_v56 = vld [vmem:[#allocation8 + $0x8] sm:$0xff]  }
 0x251   : > { %7579 = vst [vmem:[#allocation87_spill] sm:$0xff] %v5958_v55  ;;  %v5960_v7 = vpop.permute.xlu0 %1731  ;;  %2305 = vrot.lane.b32.xlu1 %v5782_v38, %s5151_s1  ;;  %4241 = vmatprep.subr.bf16.mxu1 %v4726_v45  ;;  %v1681_v26 = vand.u32 127, %v1680_v29 }
 0x252   : > { %7580 = vst [vmem:[#allocation88_spill] sm:$0xff] %v5960_v7 }
 0x253   : > { %v5964_v31 = vpop.permute.xlu1 %1733  ;;  %2383 = vrot.lane.b32.xlu0 %v5846_v44, %s5152_s12  ;;  %v1686_v45 = vand.u32 1, %v1681_v26 }
 0x254   : > { %7581 = vst [vmem:[#allocation89_spill] sm:$0xff] %v5964_v31  ;;  %4242 = vmatpush3.bf16.msra.mxu1 %v4727_v56  ;;  %v4729_v56 = vld [vmem:[#allocation8 + $0x10] sm:$0xff]  }
 0x255   : > { %v5968_v25 = vpop.permute.xlu0 %1795  ;;  %2369 = vrot.lane.b32.xlu1 %v5782_v38, %s5152_s12  ;;  %v5972_v7 = vpop.f32.mrb[56].mxu0  ;;  %vm6004_vm0 = vcmp.eq.s32.totalorder %v1686_v45, 0 }
 0x256   : > { %7582 = vst [vmem:[#allocation90_spill] sm:$0xff] %v5968_v25  ;;  %v5974_v55 = vpop.f32.mrb[57].mxu0 }
 0x257   : > { %7583 = vst [vmem:[#allocation91_spill] sm:$0xff] %v5974_v55  ;;  %v5976_v33 = vpop.permute.xlu1 %1797  ;;  %2767 = vrot.lane.b32.xlu0 %v5848_v46, %s5151_s1  ;;  %v5980_v31 = vpop.f32.mrb[58].mxu0 }
 0x258   : > { %7584 = vst [vmem:[#allocation92_spill] sm:$0xff] %v5976_v33  ;;  %7585 = vst [vmem:[#allocation93_spill] sm:$0xff] %v5980_v31  ;;  %v5982_v13 = vpop.f32.mrb[59].mxu0 }
 0x259   : > { %7586 = vst [vmem:[#allocation94_spill] sm:$0xff] %v5982_v13  ;;  %v5984_v25 = vpop.permute.xlu0 %2735  ;;  %2753 = vrot.lane.b32.xlu1 %v5786_v41, %s5151_s1  ;;  %v4728_v13 = vld [vmem:[#allocation8 + $0x50] sm:$0xff]  }
 0x25a   : > { %7587 = vst [vmem:[#allocation95_spill] sm:$0xff] %v5984_v25  ;;  %4243 = vmatprep.subr.bf16.mxu1 %v4728_v13  ;;  %v6018_v13 = vld [vmem:[#allocation10] sm:$0xff] }
 0x25b   : > { %v2288_v38 = vpop.permute.xlu1 %2287  ;;  %2387 = vrot.lane.b32.xlu0 %v5862_v27, %s5152_s12  ;;  %4244 = vmatpush3.bf16.msra.mxu1 %v4729_v56  ;;  %7597 = vst [vmem:[#allocation103_spill] sm:$0xff] %v6018_v13 }
 0x25d   : > { %v5990_v33 = vpop.permute.xlu0 %1735  ;;  %1753 = vrot.lane.b32.xlu1 %v5784_v40, %s5151_s1  ;;  %v5994_v31 = vpop.f32.mrb[60].mxu0 }
 0x25e   : > { %7588 = vst [vmem:[#allocation96_spill] sm:$0xff] %v5990_v33  ;;  %7589 = vst [vmem:[#allocation97_spill] sm:$0xff] %v5994_v31  ;;  %v5996_v29 = vpop.f32.mrb[61].mxu0 }
 0x25f   : > { %7590 = vst [vmem:[#allocation98_spill] sm:$0xff] %v5996_v29  ;;  %v2352_v25 = vpop.permute.xlu1 %2351  ;;  %2771 = vrot.lane.b32.xlu0 %v5864_v21, %s5151_s1  ;;  %v6000_v41 = vpop.f32.mrb[62].mxu0  ;;  %v6012_v29 = vld [vmem:[#allocation11] sm:$0xff] }
 0x260   : > { %7591 = vst [vmem:[#allocation99_spill] sm:$0xff] %v6000_v41  ;;  %v6002_v46 = vpop.f32.mrb[63].mxu0  ;;  %7596 = vst [vmem:[#allocation102_spill] sm:$0xff] %v6012_v29  ;;  %v2415_v21 = vsel %vm6004_vm0, %v2288_v38, %v2352_v25  ;;  %v2447_v25 = vmul.f32 %v5694_v42, %v6018_v13  ;;  %v4730_v13 = vld [vmem:[#allocation8 + $0x58] sm:$0xff]  }
 0x261   : > { %7592 = vst [vmem:[#allocation100_spill] sm:$0xff] %v6002_v46  ;;  %v6008_v33 = vpop.permute.xlu0 %1799  ;;  %1817 = vrot.lane.b32.xlu1 %v5784_v40, %s5152_s12  ;;  %v2479_v45 = vmul.f32 %v2415_v21, %v6012_v29  ;;  %v494_v40 = vld [vmem:[#allocation10 + $0x8] sm:$0xff]  ;;  %4245 = vmatprep.subr.bf16.mxu1 %v4730_v13 }
 0x262   : > { %7595 = vst [vmem:[#allocation101_spill] sm:$0xff] %v6008_v33  ;;  %v526_v33 = vld [vmem:[#allocation11 + $0x8] sm:$0xff] }
 0x263   : > { %v2290_v48 = vpop.permute.xlu1 %2289  ;;  %2391 = vrot.lane.b32.xlu0 %v5878_v39, %s5152_s12  ;;  %v2511_v24 = vadd.f32 %v2479_v45, %v2447_v25 }
 0x265   : > { %v6021_v56 = vpop.permute.xlu0 %2355  ;;  %2307 = vrot.lane.b32.xlu1 %v5794_v50, %s5151_s1  ;;  %v4143_v46 = vpop.f32.mrb[64].mxu0  ;;  %v2448_v50 = vmul.f32 %v5702_v47, %v494_v40  ;;  %v2543_v47 = vmul.f32 0.088388346, %v2511_v24 }
 0x266   : > { %v4144_v41 = vpop.f32.mrb[65].mxu0 }
 0x267   : > { %v2354_v38 = vpop.permute.xlu1 %2353  ;;  %2775 = vrot.lane.b32.xlu0 %v5880_v36, %s5151_s1  ;;  %v6029_v39 = vadd.f32 %v4144_v41, %v4143_v46  ;;  %v4146_v51 = vpop.f32.mrb[66].mxu0  ;;  %v4731_v36 = vld [vmem:[#allocation8 + $0x18] sm:$0xff]  }
 0x268   : > { %v2416_v21 = vsel %vm6004_vm0, %v2290_v48, %v2354_v38  ;;  %v4147_v29 = vpop.f32.mrb[67].mxu0  ;;  %4246 = vmatpush3.bf16.msra.mxu1 %v4731_v36 }
 0x269   : > { %v2480_v58 = vmul.f32 %v2416_v21, %v526_v33  ;;  %v6034_v23 = vpop.permute.xlu0 %2739  ;;  %2309 = vrot.lane.b32.xlu1 %v5802_v63, %s5151_s1  ;;  %v6038_v42 = vadd.f32 %v4147_v29, %v4146_v51 }
 0x26a   : > { %7598 = vst [vmem:[#allocation104_spill] sm:$0xff] %v6034_v23 }
 0x26b   : > { %v2512_v41 = vadd.f32 %v2480_v58, %v2448_v50  ;;  %v6040_v46 = vpop.permute.xlu1 %2737  ;;  %2395 = vrot.lane.b32.xlu0 %v5900_v17, %s5152_s12 }
 0x26c   : > { %7599 = vst [vmem:[#allocation105_spill] sm:$0xff] %v6040_v46 }
 0x26d   : > { %v2544_v33 = vmul.f32 0.088388346, %v2512_v41  ;;  %v6044_v48 = vpop.permute.xlu0 %1739  ;;  %2373 = vrot.lane.b32.xlu1 %v5802_v63, %s5152_s12  ;;  %v4149_v40 = vpop.f32.mrb[68].mxu0  ;;  %v4732_v41 = vld [vmem:[#allocation8 + $0x60] sm:$0xff]  }
 0x26e   : > { %7600 = vst [vmem:[#allocation106_spill] sm:$0xff] %v6044_v48  ;;  %v4150_v51 = vpop.f32.mrb[69].mxu0  ;;  %4247 = vmatprep.subr.bf16.mxu1 %v4732_v41 }
 0x26f   : > { %v3924_v29 = vpack.c.bf16 %v2544_v33, %v2543_v47  ;;  %v6048_v45 = vpop.permute.xlu1 %1737  ;;  %2779 = vrot.lane.b32.xlu0 %v5902_v1, %s5151_s1  ;;  %v6052_v58 = vadd.f32 %v4150_v51, %v4149_v40  ;;  %v4152_v50 = vpop.f32.mrb[70].mxu0  ;;  %v4733_v47 = vld [vmem:[#allocation8 + $0x20] sm:$0xff]  }
 0x270   : > { %7601 = vst [vmem:[#allocation107_spill] sm:$0xff] %v6048_v45  ;;  %v4153_v13 = vpop.f32.mrb[71].mxu0  ;;  %4248 = vmatpush3.bf16.msra.mxu1 %v4733_v47 }
 0x271   : > { %3925 = vst [vmem:[%s6056_s13] sm:$0xff] %v3924_v29   ;;  %v6059_v24 = vpop.permute.xlu0 %1803  ;;  %2757 = vrot.lane.b32.xlu1 %v5806_v10, %s5151_s1  ;;  %v6063_v36 = vadd.f32 %v4153_v13, %v4152_v50  ;;  %v527_v13 = vld [vmem:[#allocation11 + $0x10] sm:$0xff] }
 0x272   : > { %7602 = vst [vmem:[#allocation108_spill] sm:$0xff] %v6059_v24 }
 0x273   : > { %7603 = vst [vmem:[#allocation109_spill] sm:$0xff] %v6063_v36  ;;  %v6065_v25 = vpop.permute.xlu1 %1801  ;;  %2333 = vrot.lane.b32.xlu0 %v5908_v43, %s5151_s1  ;;  %v4735_v36 = vld [vmem:[#allocation8 + $0x28] sm:$0xff]  }
 0x274   : > { %7604 = vst [vmem:[#allocation110_spill] sm:$0xff] %v6065_v25  ;;  %v495_v25 = vld [vmem:[#allocation10 + $0x10] sm:$0xff] }
 0x275   : > { %v6069_v38 = vpop.permute.xlu0 %2359  ;;  %1757 = vrot.lane.b32.xlu1 %v5804_v6, %s5151_s1  ;;  %v4155_v21 = vpop.f32.mrb[72].mxu0 }
 0x276   : > { %v4156_v33 = vpop.f32.mrb[73].mxu0 }
 0x277   : > { %v2292_v40 = vpop.permute.xlu1 %2291  ;;  %2399 = vrot.lane.b32.xlu0 %v5924_v53, %s5152_s12  ;;  %v6075_v51 = vadd.f32 %v4156_v33, %v4155_v21  ;;  %v4158_v29 = vpop.f32.mrb[74].mxu0  ;;  %v496_v33 = vld [vmem:[#allocation10 + $0x18] sm:$0xff] }
 0x278   : > { %v4159_v50 = vpop.f32.mrb[75].mxu0  ;;  %v2417_v46 = vsel %vm6004_vm0, %v2292_v40, %v6021_v56  ;;  %v2449_v56 = vmul.f32 %v5714_v52, %v495_v25  ;;  %v528_v40 = vld [vmem:[#allocation11 + $0x18] sm:$0xff]  ;;  %v4734_v25 = vld [vmem:[#allocation8 + $0x68] sm:$0xff]  }
 0x279   : > { %v6080_v23 = vpop.permute.xlu0 %2743  ;;  %1821 = vrot.lane.b32.xlu1 %v5804_v6, %s5152_s12  ;;  %v6084_v45 = vadd.f32 %v4159_v50, %v4158_v29  ;;  %v2481_v21 = vmul.f32 %v2417_v46, %v527_v13  ;;  %4249 = vmatprep.subr.bf16.mxu1 %v4734_v25 }
 0x27a   : > { %7605 = vst [vmem:[#allocation111_spill] sm:$0xff] %v6080_v23  ;;  %4250 = vmatpush3.bf16.msra.mxu1 %v4735_v36 }
 0x27b   : > { %7606 = vst [vmem:[#allocation112_spill] sm:$0xff] %v6084_v45  ;;  %v2294_v10 = vpop.permute.xlu1 %2293  ;;  %2783 = vrot.lane.b32.xlu0 %v5926_v20, %s5151_s1  ;;  %v2513_v45 = vadd.f32 %v2481_v21, %v2449_v56  ;;  %v4736_v56 = vld [vmem:[#allocation8 + $0x70] sm:$0xff]  }
 0x27c   : > { %4251 = vmatprep.subr.bf16.mxu1 %v4736_v56 }
 0x27d   : > { %v6088_v41 = vpop.permute.xlu0 %1743  ;;  %2311 = vrot.lane.b32.xlu1 %v5814_v14, %s5151_s1  ;;  %v4161_v47 = vpop.f32.mrb[76].mxu0 }
 0x27e   : > { %7607 = vst [vmem:[#allocation113_spill] sm:$0xff] %v6088_v41  ;;  %v4162_v23 = vpop.f32.mrb[77].mxu0  ;;  %v2450_v41 = vmul.f32 %v5722_v57, %v496_v33  ;;  %v4737_v33 = vld [vmem:[#allocation8 + $0x30] sm:$0xff]  }
 0x27f   : > { %v2358_v6 = vpop.permute.xlu1 %2357  ;;  %2403 = vrot.lane.b32.xlu0 %v5948_v12, %s5152_s12  ;;  %v6095_v29 = vadd.f32 %v4162_v23, %v4161_v47  ;;  %v4164_v50 = vpop.f32.mrb[78].mxu0  ;;  %4252 = vmatpush3.bf16.msra.mxu1 %v4737_v33  ;;  %v4738_v33 = vld [vmem:[#allocation8 + $0x78] sm:$0xff]  }
 0x280   : > { %v2418_v46 = vsel %vm6004_vm0, %v2294_v10, %v2358_v6  ;;  %v4165_v13 = vpop.f32.mrb[79].mxu0  ;;  %v2545_v6 = vmul.f32 0.088388346, %v2513_v45  ;;  %4253 = vmatprep.subr.bf16.mxu1 %v4738_v33 }
 0x281   : > { %v2482_v48 = vmul.f32 %v2418_v46, %v528_v40  ;;  %v6100_v24 = vpop.permute.xlu0 %1807  ;;  %2313 = vrot.lane.b32.xlu1 %v5820_v19, %s5151_s1  ;;  %v6104_v52 = vadd.f32 %v4165_v13, %v4164_v50 }
 0x283   : > { %v2514_v23 = vadd.f32 %v2482_v48, %v2450_v41  ;;  %v6106_v47 = vpop.permute.xlu1 %2741  ;;  %2787 = vrot.lane.b32.xlu0 %v5950_v15, %s5151_s1 }
 0x284   : > { %7608 = vst [vmem:[#allocation114_spill] sm:$0xff] %v6106_v47 }
 0x285   : > { %v2546_v57 = vmul.f32 0.088388346, %v2514_v23  ;;  %v6110_v10 = vpop.permute.xlu0 %2363  ;;  %2377 = vrot.lane.b32.xlu1 %v5820_v19, %s5152_s12  ;;  %v4167_v21 = vpop.f32.mrb[80].mxu0 }
 0x286   : > { %v4168_v40 = vpop.f32.mrb[81].mxu0 }
 0x287   : > { %v3929_v48 = vpack.c.bf16 %v2546_v57, %v2545_v6  ;;  %v6114_v41 = vpop.permute.xlu1 %1741  ;;  %2407 = vrot.lane.b32.xlu0 %v5972_v7, %s5152_s12  ;;  %v6118_v50 = vadd.f32 %v4168_v40, %v4167_v21  ;;  %v4170_v45 = vpop.f32.mrb[82].mxu0 }
 0x288   : > { %7609 = vst [vmem:[#allocation115_spill] sm:$0xff] %v6114_v41  ;;  %v4171_v36 = vpop.f32.mrb[83].mxu0  ;;  %v498_v41 = vld [vmem:[#allocation10 + $0x28] sm:$0xff] }
 0x289   : > { %4096 = vst [vmem:[%s6056_s13 + $0x8] sm:$0xff] %v3929_v48   ;;  %v6121_v46 = vpop.permute.xlu0 %2747  ;;  %2761 = vrot.lane.b32.xlu1 %v5822_v22, %s5151_s1  ;;  %v6125_v13 = vadd.f32 %v4171_v36, %v4170_v45  ;;  %v4739_v48 = vld [vmem:[#allocation8 + $0x38] sm:$0xff]   ;;  %v6143_v45 = vld [vmem:[#allocation11 + $0x20] sm:$0xff] }
 0x28a   : > { %7610 = vst [vmem:[#allocation116_spill] sm:$0xff] %v6121_v46  ;;  %4254 = vmatpush3.bf16.msra.mxu1 %v4739_v48  ;;  %v2452_v48 = vmul.f32 %v5742_v11, %v498_v41  ;;  %v6176_v11 = vld [vmem:[#allocation11 + $0x60] sm:$0xff]  ;;  %v1835_v41 = vsel %vm6004_vm0, %v5888_v59, %v5896_v49 }
 0x28b   : > { %7611 = vst [vmem:[#allocation117_spill] sm:$0xff] %v6125_v13  ;;  %v6127_v25 = vpop.permute.xlu1 %1805  ;;  %2791 = vrot.lane.b32.xlu0 %v5974_v55, %s5151_s1 }
 0x28c   : > { %7612 = vst [vmem:[#allocation118_spill] sm:$0xff] %v6127_v25  ;;  %v530_v25 = vld [vmem:[#allocation11 + $0x28] sm:$0xff] }
 0x28d   : > { %v6131_v23 = vpop.permute.xlu0 %1747  ;;  %2315 = vrot.lane.b32.xlu1 %v5830_v28, %s5151_s1  ;;  %v4173_v6 = vpop.f32.mrb[84].mxu0  ;;  %1552 = vmatmul.mubr.bf16.vlgmr.msra.gmra.mrb[40].mxu1 %v5564_v60 }
 0x28e   : > { %7613 = vst [vmem:[#allocation119_spill] sm:$0xff] %v6131_v23  ;;  %v4174_v57 = vpop.f32.mrb[85].mxu0  ;;  %1559 = vmatprep.mubr.bf16.mxu1 %v5567_v61 }
 0x28f   : > { %v2296_v21 = vpop.permute.xlu1 %2295  ;;  %2411 = vrot.lane.b32.xlu0 %v5994_v31, %s5152_s12  ;;  %v6137_v56 = vadd.f32 %v4174_v57, %v4173_v6  ;;  %v6150_v6 = vld [vmem:[#allocation10 + $0x20] sm:$0xff] }
 0x290   : > { %v2419_v36 = vsel %vm6004_vm0, %v2296_v21, %v6069_v38  ;;  %v2451_v38 = vmul.f32 %v5734_v0, %v6150_v6 }
 0x291   : > { %v6139_v40 = vpop.permute.xlu0 %1811  ;;  %2317 = vrot.lane.b32.xlu1 %v5836_v34, %s5151_s1  ;;  %v2483_v57 = vmul.f32 %v2419_v36, %v6143_v45 }
 0x292   : > { %7614 = vst [vmem:[#allocation120_spill] sm:$0xff] %v6139_v40 }
 0x293   : > { %v2298_v46 = vpop.permute.xlu1 %2297  ;;  %1695 = vrot.lane.b32.xlu0 %v6029_v39, %s5151_s1  ;;  %v2515_v36 = vadd.f32 %v2483_v57, %v2451_v38  ;;  %v6190_v57 = vld [vmem:[#allocation10 + $0xe0] sm:$0xff] }
 0x294   : > { %7618 = vst [vmem:[#allocation124_spill] sm:$0xff] %v6190_v57  ;;  %v6192_v38 = vld [vmem:[#allocation11 + $0xe0] sm:$0xff] }
 0x295   : > { %v6153_v47 = vpop.permute.xlu0 %2367  ;;  %2381 = vrot.lane.b32.xlu1 %v5836_v34, %s5152_s12  ;;  %v2547_v61 = vmul.f32 0.088388346, %v2515_v36  ;;  %1560 = vmatmul.mubr.bf16.gmra.mrb[44].mxu1 %v5579_v2  ;;  %7619 = vst [vmem:[#allocation125_spill] sm:$0xff] %v6192_v38 }
 0x296   : > { %1567 = vmatprep.mubr.bf16.mxu1 %v5582_v3  ;;  %v1883_v3 = vmul.f32 %v5776_v32, %v6190_v57 }
 0x297   : > { %v2362_v21 = vpop.permute.xlu1 %2361  ;;  %1759 = vrot.lane.b32.xlu0 %v6029_v39, %s5152_s12 }
 0x298   : > { %v2420_v33 = vsel %vm6004_vm0, %v2298_v46, %v2362_v21  ;;  %v1899_v21 = vmul.f32 %v1835_v41, %v6176_v11  ;;  %v6255_v41 = vld [vmem:[#allocation10 + $0xf0] sm:$0xff] }
 0x299   : > { %v2484_v22 = vmul.f32 %v2420_v33, %v530_v25  ;;  %v6166_v13 = vpop.permute.xlu0 %2751  ;;  %2765 = vrot.lane.b32.xlu1 %v5838_v37, %s5151_s1  ;;  %v6188_v25 = vld [vmem:[#allocation10 + $0x60] sm:$0xff]  ;;  %7624 = vst [vmem:[#allocation130_spill] sm:$0xff] %v6255_v41 }
 0x29a   : > { %7615 = vst [vmem:[#allocation121_spill] sm:$0xff] %v6166_v13  ;;  %v1867_v59 = vmul.f32 %v5646_v18, %v6188_v25 }
 0x29b   : > { %v2516_v60 = vadd.f32 %v2484_v22, %v2452_v48  ;;  %v6170_v0 = vpop.permute.xlu1 %2745  ;;  %1697 = vrot.lane.b32.xlu0 %v6038_v42, %s5151_s1  ;;  %v4176_v48 = vpop.f32.mrb[86].mxu0 }
 0x29c   : > { %7616 = vst [vmem:[#allocation122_spill] sm:$0xff] %v6170_v0  ;;  %v6209_v36 = vadd.f32 %v1899_v21, %v1867_v59  ;;  %v4177_v18 = vpop.f32.mrb[87].mxu0  ;;  %v6229_v21 = vld [vmem:[#allocation11 + $0x30] sm:$0xff] }
 0x29d   : > { %v2548_v23 = vmul.f32 0.088388346, %v2516_v60  ;;  %v1752_v40 = vpop.permute.xlu0 %1751  ;;  %2319 = vrot.lane.b32.xlu1 %v5846_v44, %s5151_s1  ;;  %1568 = vmatmul.mubr.bf16.gmra.mrb[48].mxu1 %v5593_v4 }
 0x29e   : > { %7621 = vst [vmem:[#allocation127_spill] sm:$0xff] %v6209_v36  ;;  %1575 = vmatprep.mubr.bf16.mxu1 %v5596_v5 }
 0x29f   : > { %v3934_v22 = vpack.c.bf16 %v2548_v23, %v2547_v61  ;;  %v6183_v46 = vpop.permute.xlu1 %1745  ;;  %1763 = vrot.lane.b32.xlu0 %v6052_v58, %s5152_s12 }
 0x2a0   : > { %7617 = vst [vmem:[#allocation123_spill] sm:$0xff] %v6183_v46  ;;  %v7628_v46 = vld [vmem:[#allocation24_spill] sm:$0xff] }
 0x2a1   : > { %4097 = vst [vmem:[%s6056_s13 + $0x10] sm:$0xff] %v3934_v22   ;;  %v1816_v49 = vpop.permute.xlu0 %1815  ;;  %2321 = vrot.lane.b32.xlu1 %v5852_v54, %s5151_s1 }
 0x2a2   : > { %v1851_v2 = vsel %vm6004_vm0, %v1752_v40, %v1816_v49  ;;  %v6217_v40 = vadd.f32 %v4177_v18, %v4176_v48  ;;  %v532_v48 = vld [vmem:[#allocation11 + $0x38] sm:$0xff] }
 0x2a3   : > { %v1915_v23 = vmul.f32 %v1851_v2, %v6192_v38  ;;  %v6205_v33 = vpop.permute.xlu1 %1809  ;;  %1703 = vrot.lane.b32.xlu0 %v6075_v51, %s5151_s1  ;;  %v6236_v2 = vld [vmem:[#allocation10 + $0x30] sm:$0xff] }
 0x2a4   : > { %7620 = vst [vmem:[#allocation126_spill] sm:$0xff] %v6205_v33  ;;  %v2453_v18 = vmul.f32 %v5754_v16, %v6236_v2 }
 0x2a5   : > { %v6211_v60 = vadd.f32 %v1915_v23, %v1883_v3  ;;  %v6213_v61 = vpop.permute.xlu0 %2371  ;;  %2385 = vrot.lane.b32.xlu1 %v5852_v54, %s5152_s12  ;;  %v500_v3 = vld [vmem:[#allocation10 + $0x38] sm:$0xff]  ;;  %v6241_v23 = vld [vmem:[#allocation11 + $0x70] sm:$0xff]  ;;  %1576 = vmatmul.mubr.bf16.gmra.mrb[52].mxu1 %v5607_v8 }
 0x2a6   : > { %1583 = vmatprep.mubr.bf16.mxu1 %v5610_v9 }
 0x2a7   : > { %7622 = vst [vmem:[#allocation128_spill] sm:$0xff] %v6211_v60  ;;  %v2300_v32 = vpop.permute.xlu1 %2299  ;;  %1767 = vrot.lane.b32.xlu0 %v6075_v51, %s5152_s12  ;;  %v7627_v60 = vld [vmem:[#allocation64_spill] sm:$0xff] }
 0x2a8   : > { %v2421_v4 = vsel %vm6004_vm0, %v2300_v32, %v6110_v10  ;;  %v1837_v10 = vsel %vm6004_vm0, %v5912_v30, %v5920_v35  ;;  %v6259_v30 = vld [vmem:[#allocation11 + $0xf0] sm:$0xff]  ;;  %v7626_v35 = vld [vmem:[#allocation44_spill] sm:$0xff] }
 0x2a9   : > { %v6225_v22 = vpop.permute.xlu0 %2755  ;;  %2769 = vrot.lane.b32.xlu1 %v5854_v62, %s5151_s1  ;;  %v2485_v5 = vmul.f32 %v2421_v4, %v6229_v21  ;;  %v6253_v4 = vld [vmem:[#allocation10 + $0x70] sm:$0xff]  ;;  %7625 = vst [vmem:[#allocation131_spill] sm:$0xff] %v6259_v30  ;;  %v2454_v8 = vmul.f32 %v7626_v35, %v500_v3  ;;  %v1901_v13 = vmul.f32 %v1837_v10, %v6241_v23 }
 0x2aa   : > { %7623 = vst [vmem:[#allocation129_spill] sm:$0xff] %v6225_v22  ;;  %v1869_v33 = vmul.f32 %v7628_v46, %v6253_v4 }
 0x2ab   : > { %v2302_v49 = vpop.permute.xlu1 %2301  ;;  %1707 = vrot.lane.b32.xlu0 %v6095_v29, %s5151_s1  ;;  %v2517_v16 = vadd.f32 %v2485_v5, %v2453_v18 }
 0x2ad   : > { %v1756_v59 = vpop.permute.xlu0 %1755  ;;  %2323 = vrot.lane.b32.xlu1 %v5862_v27, %s5151_s1 }
 0x2af   : > { %v2366_v32 = vpop.permute.xlu1 %2365  ;;  %1771 = vrot.lane.b32.xlu0 %v6095_v29, %s5152_s12 }
 0x2b0   : > { %v2422_v22 = vsel %vm6004_vm0, %v2302_v49, %v2366_v32  ;;  %v7629_v49 = vld [vmem:[#allocation53_spill] sm:$0xff] }
 0x2b1   : > { %v2486_v0 = vmul.f32 %v2422_v22, %v532_v48  ;;  %v1820_v36 = vpop.permute.xlu0 %1819  ;;  %2325 = vrot.lane.b32.xlu1 %v7627_v60, %s5151_s1  ;;  %v1885_v32 = vmul.f32 %v7629_v49, %v6255_v41  ;;  %v6276_v22 = vadd.f32 %v1901_v13, %v1869_v33  ;;  %v2549_v48 = vmul.f32 0.088388346, %v2517_v16  ;;  %v4741_v13 = vld [vmem:[%s5451_s16 + $0x54] ss:$8 sps:$4 sm:$0xff]  }
 0x2b2   : > { %v1853_v9 = vsel %vm6004_vm0, %v1756_v59, %v1820_v36  ;;  %v7635_v16 = vld [vmem:[#allocation65_spill] sm:$0xff]  ;;  %v7640_v33 = vld [vmem:[#allocation98_spill] sm:$0xff] }
 0x2b3   : > { %v2518_v3 = vadd.f32 %v2486_v0, %v2454_v8  ;;  %v1917_v10 = vmul.f32 %v1853_v9, %v6259_v30  ;;  %v6272_v5 = vpop.permute.xlu1 %2749  ;;  %1711 = vrot.lane.b32.xlu0 %v6118_v50, %s5151_s1  ;;  %7631 = vst [vmem:[#allocation64_spill] sm:$0xff] %v6276_v22  ;;  %v4740_v0 = vld [vmem:[%s5451_s16 + $0x40] ss:$8 sps:$4 sm:$0xff]   ;;  %v7643_v41 = vld [vmem:[#allocation49_spill] sm:$0xff] }
 0x2b4   : > { %7630 = vst [vmem:[#allocation44_spill] sm:$0xff] %v6272_v5  ;;  %1584 = vmatmul.mubr.bf16.gmra.mrb[56].mxu1 %v4740_v0  ;;  %v7639_v0 = vld [vmem:[#allocation68_spill] sm:$0xff] }
 0x2b5   : > { %v2550_v36 = vmul.f32 0.088388346, %v2518_v3  ;;  %v6278_v59 = vadd.f32 %v1917_v10, %v1885_v32  ;;  %v6280_v46 = vpop.permute.xlu0 %2375  ;;  %2389 = vrot.lane.b32.xlu1 %v7627_v60, %s5152_s12  ;;  %1591 = vmatprep.mubr.bf16.mxu1 %v4741_v13  ;;  %v7637_v32 = vld [vmem:[#allocation66_spill] sm:$0xff]  ;;  %v534_v22 = vld [vmem:[#allocation11 + $0x48] sm:$0xff] }
 0x2b6   : > { %v4742_v3 = vld [vmem:[%s5451_s16 + $0x50] ss:$8 sps:$4 sm:$0xff]  }
 0x2b7   : > { %7632 = vst [vmem:[#allocation24_spill] sm:$0xff] %v6278_v59  ;;  %v3939_v18 = vpack.c.bf16 %v2550_v36, %v2549_v48  ;;  %v6285_v35 = vpop.permute.xlu1 %1749  ;;  %1775 = vrot.lane.b32.xlu0 %v6118_v50, %s5152_s12  ;;  %v4743_v48 = vld [vmem:[%s5451_s16 + $0x64] ss:$8 sps:$4 sm:$0xff]   ;;  %v4744_v59 = vld [vmem:[%s5451_s16 + $0x60] ss:$8 sps:$4 sm:$0xff]  }
 0x2b8   : > { %7633 = vst [vmem:[#allocation53_spill] sm:$0xff] %v6285_v35  ;;  %v7641_v35 = vld [vmem:[#allocation47_spill] sm:$0xff] }
 0x2b9   : > { %4098 = vst [vmem:[%s6056_s13 + $0x18] sm:$0xff] %v3939_v18   ;;  %v6293_v8 = vpop.permute.xlu0 %2759  ;;  %2773 = vrot.lane.b32.xlu1 %v7635_v16, %s5151_s1  ;;  %v6313_v18 = vld [vmem:[#allocation11 + $0x40] sm:$0xff] }
 0x2ba   : > { %7634 = vst [vmem:[#allocation132_spill] sm:$0xff] %v6293_v8  ;;  %v6320_v8 = vld [vmem:[#allocation10 + $0x40] sm:$0xff] }
 0x2bb   : > { %v6297_v9 = vpop.permute.xlu1 %1813  ;;  %1715 = vrot.lane.b32.xlu0 %v6137_v56, %s5151_s1 }
 0x2bc   : > { %7636 = vst [vmem:[#allocation133_spill] sm:$0xff] %v6297_v9  ;;  %1592 = vmatmul.mubr.bf16.gmra.mrb[60].mxu1 %v4742_v3  ;;  %v7642_v9 = vld [vmem:[#allocation31_spill] sm:$0xff] }
 0x2bd   : > { %v6301_v49 = vpop.permute.xlu0 %2379  ;;  %2327 = vrot.lane.b32.xlu1 %v7637_v32, %s5151_s1  ;;  %1599 = vmatprep.mubr.bf16.mxu1 %v4743_v48 }
 0x2bf   : > { %v2304_v10 = vpop.permute.xlu1 %2303  ;;  %1779 = vrot.lane.b32.xlu0 %v6137_v56, %s5152_s12 }
 0x2c0   : > { %v2423_v13 = vsel %vm6004_vm0, %v2304_v10, %v6153_v47  ;;  %v2455_v47 = vmul.f32 %v7641_v35, %v6320_v8 }
 0x2c1   : > { %v6309_v36 = vpop.permute.xlu0 %2763  ;;  %2329 = vrot.lane.b32.xlu1 %v7639_v0, %s5151_s1  ;;  %v2487_v48 = vmul.f32 %v2423_v13, %v6313_v18 }
 0x2c2   : > { %7638 = vst [vmem:[#allocation66_spill] sm:$0xff] %v6309_v36  ;;  %v502_v36 = vld [vmem:[#allocation10 + $0x48] sm:$0xff] }
 0x2c3   : > { %v2306_v3 = vpop.permute.xlu1 %2305  ;;  %2795 = vrot.lane.b32.xlu0 %v7640_v33, %s5151_s1  ;;  %v4745_v33 = vld [vmem:[%s5451_s16 + $0x74] ss:$8 sps:$4 sm:$0xff]   ;;  %v2456_v30 = vmul.f32 %v7643_v41, %v502_v36  ;;  %v2519_v57 = vadd.f32 %v2487_v48, %v2455_v47  ;;  %v4746_v41 = vld [vmem:[%s5451_s16 + $0x70] ss:$8 sps:$4 sm:$0xff]   ;;  %v7652_v47 = vld [vmem:[#allocation43_spill] sm:$0xff] }
 0x2c4   : > { %1600 = vmatmul.mubr.bf16.gmra.mrb[64].mxu1 %v4744_v59  ;;  %v7645_v59 = vld [vmem:[#allocation69_spill] sm:$0xff] }
 0x2c5   : > { %v6323_v5 = vpop.permute.xlu0 %2383  ;;  %2393 = vrot.lane.b32.xlu1 %v7639_v0, %s5152_s12  ;;  %1607 = vmatprep.mubr.bf16.mxu1 %v4745_v33  ;;  %v2551_v33 = vmul.f32 0.088388346, %v2519_v57 }
 0x2c7   : > { %v2370_v10 = vpop.permute.xlu1 %2369  ;;  %2799 = vrot.lane.b32.xlu0 %v7642_v9, %s5152_s12  ;;  %v7647_v9 = vld [vmem:[#allocation35_spill] sm:$0xff] }
 0x2c8   : > { %v2424_v13 = vsel %vm6004_vm0, %v2306_v3, %v2370_v10  ;;  %v7653_v10 = vld [vmem:[#allocation74_spill] sm:$0xff] }
 0x2c9   : > { %v2488_v38 = vmul.f32 %v2424_v13, %v534_v22  ;;  %v6336_v16 = vpop.permute.xlu0 %2767  ;;  %2777 = vrot.lane.b32.xlu1 %v7645_v59, %s5151_s1  ;;  %v4748_v13 = vld [vmem:[%s5451_s16 + $0x80] ss:$8 sps:$4 sm:$0xff]  }
 0x2ca   : > { %7644 = vst [vmem:[#allocation68_spill] sm:$0xff] %v6336_v16  ;;  %v7656_v16 = vld [vmem:[#allocation54_spill] sm:$0xff] }
 0x2cb   : > { %v2520_v35 = vadd.f32 %v2488_v38, %v2456_v30  ;;  %v6340_v62 = vpop.permute.xlu1 %2753  ;;  %2803 = vrot.lane.b32.xlu0 %v7647_v9, %s5152_s12  ;;  %v7649_v38 = vld [vmem:[#allocation39_spill] sm:$0xff]  ;;  %v4750_v9 = vld [vmem:[%s5451_s16 + $0x90] ss:$8 sps:$4 sm:$0xff]  }
 0x2cc   : > { %7646 = vst [vmem:[#allocation47_spill] sm:$0xff] %v6340_v62  ;;  %1608 = vmatmul.mubr.bf16.gmra.mrb[68].mxu1 %v4746_v41  ;;  %v4747_v30 = vld [vmem:[%s5451_s16 + $0x84] ss:$8 sps:$4 sm:$0xff]   ;;  %v4749_v41 = vld [vmem:[%s5451_s16 + $0x94] ss:$8 sps:$4 sm:$0xff]  }
 0x2cd   : > { %v2552_v37 = vmul.f32 0.088388346, %v2520_v35  ;;  %v6344_v3 = vpop.permute.xlu0 %2387  ;;  %2331 = vrot.lane.b32.xlu1 %v5900_v17, %s5151_s1  ;;  %1615 = vmatprep.mubr.bf16.mxu1 %v4747_v30  ;;  %v6375_v30 = vld [vmem:[#allocation11 + $0x50] sm:$0xff] }
 0x2ce   : > { %v6382_v62 = vld [vmem:[#allocation10 + $0x50] sm:$0xff] }
 0x2cf   : > { %v3944_v22 = vpack.c.bf16 %v2552_v37, %v2551_v33  ;;  %v6349_v36 = vpop.permute.xlu1 %1753  ;;  %2807 = vrot.lane.b32.xlu0 %v7649_v38, %s5152_s12  ;;  %v7654_v33 = vld [vmem:[#allocation48_spill] sm:$0xff]  ;;  %v6391_v38 = vld [vmem:[#allocation11 + $0x58] sm:$0xff] }
 0x2d0   : > { %7648 = vst [vmem:[#allocation49_spill] sm:$0xff] %v6349_v36  ;;  %7659 = vst [vmem:[#allocation137_spill] sm:$0xff] %v6391_v38 }
 0x2d1   : > { %4099 = vst [vmem:[%s6056_s13 + $0x20] sm:$0xff] %v3944_v22   ;;  %v6355_v57 = vpop.permute.xlu0 %2771  ;;  %2397 = vrot.lane.b32.xlu1 %v5908_v43, %s5152_s12 }
 0x2d2   : > { %7650 = vst [vmem:[#allocation134_spill] sm:$0xff] %v6355_v57 }
 0x2d3   : > { %v6359_v48 = vpop.permute.xlu1 %1817  ;;  %2811 = vrot.lane.b32.xlu0 %v7652_v47, %s5152_s12  ;;  %v6389_v47 = vld [vmem:[#allocation10 + $0x58] sm:$0xff] }
 0x2d4   : > { %7651 = vst [vmem:[#allocation135_spill] sm:$0xff] %v6359_v48  ;;  %1616 = vmatmul.mubr.bf16.gmra.mrb[72].mxu1 %v4748_v13 }
 0x2d5   : > { %v6363_v37 = vpop.permute.xlu0 %2391  ;;  %2781 = vrot.lane.b32.xlu1 %v7653_v10, %s5151_s1  ;;  %1623 = vmatprep.mubr.bf16.mxu1 %v4749_v41  ;;  %v2458_v10 = vmul.f32 %v5802_v63, %v6389_v47  ;;  %v7665_v63 = vld [vmem:[#allocation80_spill] sm:$0xff] }
 0x2d7   : > { %v2308_v35 = vpop.permute.xlu1 %2307  ;;  %2815 = vrot.lane.b32.xlu0 %v7654_v33, %s5152_s12 }
 0x2d8   : > { %v2425_v57 = vsel %vm6004_vm0, %v2308_v35, %v6213_v61  ;;  %v7660_v61 = vld [vmem:[#allocation52_spill] sm:$0xff] }
 0x2d9   : > { %v6371_v22 = vpop.permute.xlu0 %2775  ;;  %2335 = vrot.lane.b32.xlu1 %v5924_v53, %s5151_s1  ;;  %v2489_v41 = vmul.f32 %v2425_v57, %v6375_v30  ;;  %v2457_v35 = vmul.f32 %v7660_v61, %v6382_v62  ;;  %v4751_v57 = vld [vmem:[%s5451_s16 + $0xa4] ss:$8 sps:$4 sm:$0xff]  }
 0x2da   : > { %7655 = vst [vmem:[#allocation136_spill] sm:$0xff] %v6371_v22  ;;  %v7657_v22 = vld [vmem:[#allocation79_spill] sm:$0xff] }
 0x2db   : > { %v2310_v13 = vpop.permute.xlu1 %2309  ;;  %2819 = vrot.lane.b32.xlu0 %v7656_v16, %s5152_s12  ;;  %7658 = vst [vmem:[#allocation79_spill] sm:$0xff] %v6389_v47  ;;  %v7661_v16 = vld [vmem:[#allocation57_spill] sm:$0xff]  ;;  %v2521_v59 = vadd.f32 %v2489_v41, %v2457_v35 }
 0x2dc   : > { %1624 = vmatmul.mubr.bf16.gmra.mrb[76].mxu1 %v4750_v9 }
 0x2dd   : > { %v6385_v33 = vpop.permute.xlu0 %2395  ;;  %2337 = vrot.lane.b32.xlu1 %v7657_v22, %s5151_s1  ;;  %1631 = vmatprep.mubr.bf16.mxu1 %v4751_v57  ;;  %v7664_v57 = vld [vmem:[#allocation59_spill] sm:$0xff] }
 0x2df   : > { %v2374_v36 = vpop.permute.xlu1 %2373  ;;  %2823 = vrot.lane.b32.xlu0 %v7661_v16, %s5152_s12 }
 0x2e0   : > { %v2426_v48 = vsel %vm6004_vm0, %v2310_v13, %v2374_v36  ;;  %v2553_v36 = vmul.f32 0.088388346, %v2521_v59 }
 0x2e1   : > { %v2490_v9 = vmul.f32 %v2426_v48, %v6391_v38  ;;  %v6404_v53 = vpop.permute.xlu0 %2779  ;;  %2401 = vrot.lane.b32.xlu1 %v7657_v22, %s5152_s12  ;;  %v4752_v48 = vld [vmem:[%s5451_s16 + $0xa0] ss:$8 sps:$4 sm:$0xff]   ;;  %v7686_v38 = vld [vmem:[#allocation26_spill] sm:$0xff] }
 0x2e2   : > { %7662 = vst [vmem:[#allocation52_spill] sm:$0xff] %v6404_v53  ;;  %v7669_v53 = vld [vmem:[#allocation63_spill] sm:$0xff] }
 0x2e3   : > { %v2522_v61 = vadd.f32 %v2490_v9, %v2458_v10  ;;  %v6408_v16 = vpop.permute.xlu1 %2757  ;;  %2827 = vrot.lane.b32.xlu0 %v7664_v57, %s5152_s12  ;;  %v7667_v10 = vld [vmem:[#allocation61_spill] sm:$0xff] }
 0x2e4   : > { %7663 = vst [vmem:[#allocation138_spill] sm:$0xff] %v6408_v16  ;;  %1632 = vmatmul.mubr.bf16.gmra.mrb[80].mxu1 %v4752_v48  ;;  %v4753_v9 = vld [vmem:[%s5451_s16 + $0xb4] ss:$8 sps:$4 sm:$0xff]   ;;  %v4754_v48 = vld [vmem:[%s5451_s16 + $0xb0] ss:$8 sps:$4 sm:$0xff]  }
 0x2e5   : > { %v2554_v13 = vmul.f32 0.088388346, %v2522_v61  ;;  %v6412_v43 = vpop.permute.xlu0 %2333  ;;  %2785 = vrot.lane.b32.xlu1 %v7665_v63, %s5151_s1  ;;  %1639 = vmatprep.mubr.bf16.mxu1 %v4753_v9 }
 0x2e7   : > { %v3949_v41 = vpack.c.bf16 %v2554_v13, %v2553_v36  ;;  %v6417_v35 = vpop.permute.xlu1 %1757  ;;  %2831 = vrot.lane.b32.xlu0 %v7667_v10, %s5152_s12  ;;  %v7671_v13 = vld [vmem:[#allocation86_spill] sm:$0xff]  ;;  %v4755_v10 = vld [vmem:[%s5451_s16 + $0xc4] ss:$8 sps:$4 sm:$0xff]  }
 0x2e8   : > { %7666 = vst [vmem:[#allocation139_spill] sm:$0xff] %v6417_v35  ;;  %v2459_v35 = vmul.f32 %v5814_v14, %v6188_v25 }
 0x2e9   : > { %4100 = vst [vmem:[%s6056_s13 + $0x28] sm:$0xff] %v3949_v41   ;;  %v6423_v59 = vpop.permute.xlu0 %2399  ;;  %2339 = vrot.lane.b32.xlu1 %v5948_v12, %s5151_s1  ;;  %v7672_v41 = vld [vmem:[#allocation67_spill] sm:$0xff] }
 0x2eb   : > { %v6427_v61 = vpop.permute.xlu1 %1821  ;;  %2835 = vrot.lane.b32.xlu0 %v7669_v53, %s5152_s12 }
 0x2ec   : > { %7668 = vst [vmem:[#allocation140_spill] sm:$0xff] %v6427_v61  ;;  %1640 = vmatmul.mubr.bf16.gmra.mrb[84].mxu1 %v4754_v48 }
 0x2ed   : > { %v6431_v36 = vpop.permute.xlu0 %2783  ;;  %2341 = vrot.lane.b32.xlu1 %v7671_v13, %s5151_s1  ;;  %1647 = vmatprep.mubr.bf16.mxu1 %v4755_v10  ;;  %v4756_v10 = vld [vmem:[%s5451_s16 + $0xc0] ss:$8 sps:$4 sm:$0xff]  }
 0x2ee   : > { %7670 = vst [vmem:[#allocation141_spill] sm:$0xff] %v6431_v36 }
 0x2ef   : > { %v2312_v9 = vpop.permute.xlu1 %2311  ;;  %2839 = vrot.lane.b32.xlu0 %v7672_v41, %s5152_s12  ;;  %v7674_v41 = vld [vmem:[#allocation87_spill] sm:$0xff] }
 0x2f0   : > { %v2427_v36 = vsel %vm6004_vm0, %v2312_v9, %v6280_v46  ;;  %v4757_v46 = vld [vmem:[%s5451_s16 + $0xd4] ss:$8 sps:$4 sm:$0xff]   ;;  %v6459_v9 = vld [vmem:[#allocation10 + $0x68] sm:$0xff] }
 0x2f1   : > { %v6439_v57 = vpop.permute.xlu0 %2403  ;;  %2405 = vrot.lane.b32.xlu1 %v7671_v13, %s5152_s12  ;;  %v2491_v48 = vmul.f32 %v2427_v36, %v6176_v11  ;;  %7675 = vst [vmem:[#allocation142_spill] sm:$0xff] %v6459_v9  ;;  %v6461_v11 = vld [vmem:[#allocation11 + $0x68] sm:$0xff] }
 0x2f2   : > { %7676 = vst [vmem:[#allocation143_spill] sm:$0xff] %v6461_v11 }
 0x2f3   : > { %v2314_v53 = vpop.permute.xlu1 %2313  ;;  %2843 = vrot.lane.b32.xlu0 %v5902_v1, %s5152_s12 }
 0x2f4   : > { %1648 = vmatmul.mubr.bf16.gmra.mrb[88].mxu1 %v4756_v10  ;;  %v2460_v10 = vmul.f32 %v5820_v19, %v6459_v9  ;;  %v7679_v19 = vld [vmem:[#allocation93_spill] sm:$0xff] }
 0x2f5   : > { %v6449_v16 = vpop.permute.xlu0 %2787  ;;  %2789 = vrot.lane.b32.xlu1 %v7674_v41, %s5151_s1  ;;  %1655 = vmatprep.mubr.bf16.mxu1 %v4757_v46 }
 0x2f6   : > { %7673 = vst [vmem:[#allocation86_spill] sm:$0xff] %v6449_v16  ;;  %v2523_v16 = vadd.f32 %v2491_v48, %v2459_v35  ;;  %v4758_v35 = vld [vmem:[%s5451_s16 + $0xd0] ss:$8 sps:$4 sm:$0xff]  }
 0x2f7   : > { %v2378_v61 = vpop.permute.xlu1 %2377  ;;  %2847 = vrot.lane.b32.xlu0 %v5926_v20, %s5152_s12 }
 0x2f8   : > { %v2428_v36 = vsel %vm6004_vm0, %v2314_v53, %v2378_v61  ;;  %v2555_v53 = vmul.f32 0.088388346, %v2523_v16 }
 0x2f9   : > { %v2492_v14 = vmul.f32 %v2428_v36, %v6461_v11  ;;  %v6468_v25 = vpop.permute.xlu0 %2407  ;;  %2343 = vrot.lane.b32.xlu1 %v5972_v7, %s5151_s1 }
 0x2fb   : > { %v2524_v46 = vadd.f32 %v2492_v14, %v2460_v10  ;;  %v6472_v20 = vpop.permute.xlu1 %2761  ;;  %2851 = vrot.lane.b32.xlu0 %v5950_v15, %s5152_s12  ;;  %v4759_v10 = vld [vmem:[%s5451_s16 + $0xe4] ss:$8 sps:$4 sm:$0xff]   ;;  %v4760_v15 = vld [vmem:[%s5451_s16 + $0xe0] ss:$8 sps:$4 sm:$0xff]  }
 0x2fc   : > { %7677 = vst [vmem:[#allocation144_spill] sm:$0xff] %v6472_v20  ;;  %1656 = vmatmul.mubr.bf16.gmra.mrb[92].mxu1 %v4758_v35  ;;  %v541_v35 = vld [vmem:[#allocation11 + $0x80] sm:$0xff] }
 0x2fd   : > { %v2556_v61 = vmul.f32 0.088388346, %v2524_v46  ;;  %v6476_v1 = vpop.permute.xlu0 %2791  ;;  %2345 = vrot.lane.b32.xlu1 %v7679_v19, %s5151_s1  ;;  %1663 = vmatprep.mubr.bf16.mxu1 %v4759_v10  ;;  %v7682_v10 = vld [vmem:[#allocation81_spill] sm:$0xff] }
 0x2fe   : > { %7678 = vst [vmem:[#allocation145_spill] sm:$0xff] %v6476_v1  ;;  %v2461_v1 = vmul.f32 %v5830_v28, %v6253_v4  ;;  %v7685_v28 = vld [vmem:[#allocation99_spill] sm:$0xff] }
 0x2ff   : > { %v3954_v48 = vpack.c.bf16 %v2556_v61, %v2555_v53  ;;  %v2316_v36 = vpop.permute.xlu1 %2315  ;;  %2855 = vrot.lane.b32.xlu0 %v5974_v55, %s5152_s12  ;;  %v7681_v55 = vld [vmem:[#allocation83_spill] sm:$0xff] }
 0x300   : > { %v2429_v14 = vsel %vm6004_vm0, %v2316_v36, %v6301_v49  ;;  %v4761_v49 = vld [vmem:[%s5451_s16 + $0xf4] ss:$8 sps:$4 sm:$0xff]  }
 0x301   : > { %4101 = vst [vmem:[%s6056_s13 + $0x30] sm:$0xff] %v3954_v48   ;;  %2409 = vrot.lane.b32.xlu1 %v7679_v19, %s5152_s12  ;;  %v6487_v16 = vpop.permute.xlu0 %2411  ;;  %v2493_v53 = vmul.f32 %v2429_v14, %v6241_v23  ;;  %v1839_v48 = vsel %vm6004_vm0, %v7682_v10, %v7681_v55  ;;  %v6503_v36 = vld [vmem:[#allocation10 + $0x78] sm:$0xff]  ;;  %v509_v23 = vld [vmem:[#allocation10 + $0x80] sm:$0xff] }
 0x302   : > { %7680 = vst [vmem:[#allocation93_spill] sm:$0xff] %v6487_v16  ;;  %7683 = vst [vmem:[#allocation83_spill] sm:$0xff] %v6503_v36  ;;  %v6505_v14 = vld [vmem:[#allocation11 + $0x78] sm:$0xff]  ;;  %v1903_v11 = vmul.f32 %v1839_v48, %v541_v35  ;;  %v2462_v55 = vmul.f32 %v5836_v34, %v6503_v36  ;;  %v1871_v47 = vmul.f32 %v7686_v38, %v509_v23 }
 0x303   : > { %v2318_v46 = vpop.permute.xlu1 %2317  ;;  %7684 = vst [vmem:[#allocation81_spill] sm:$0xff] %v6505_v14  ;;  %v2525_v10 = vadd.f32 %v2493_v53, %v2461_v1  ;;  %v7688_v48 = vld [vmem:[#allocation102_spill] sm:$0xff] }
 0x304   : > { %1664 = vmatmul.mubr.bf16.gmra.mrb[96].mxu1 %v4760_v15  ;;  %v1935_v53 = vadd.f32 %v1903_v11, %v1871_v47 }
 0x305   : > { %2347 = vrot.lane.b32.xlu1 %v5994_v31, %s5151_s1  ;;  %v1696_v61 = vpop.permute.xlu0 %1695  ;;  %1671 = vmatprep.mubr.bf16.mxu1 %v4761_v49  ;;  %v7687_v31 = vld [vmem:[#allocation103_spill] sm:$0xff] }
 0x307   : > { %v2382_v20 = vpop.permute.xlu1 %2381 }
 0x308   : > { %v2430_v9 = vsel %vm6004_vm0, %v2318_v46, %v2382_v20  ;;  %v1855_v20 = vmul.f32 %v6029_v39, %v7687_v31 }
 0x309   : > { %v2494_v15 = vmul.f32 %v2430_v9, %v6505_v14  ;;  %2349 = vrot.lane.b32.xlu1 %v7685_v28, %s5151_s1  ;;  %v1760_v4 = vpop.permute.xlu0 %1759  ;;  %v2557_v9 = vmul.f32 0.088388346, %v2525_v10  ;;  %v6537_v10 = vld [vmem:[#allocation11 + $0xa0] sm:$0xff] }
 0x30a   : > { %v1823_v49 = vsel %vm6004_vm0, %v1696_v61, %v1760_v4  ;;  %v4762_v61 = vld [vmem:[%s5451_s16 + $0xf0] ss:$8 sps:$4 sm:$0xff]   ;;  %s3246_s16 = sshll.u32 %s6786_s15, 4  ;;  %s7242_s16 = int_to_ptr.vmem [resolvable:$true] %s3246_s16 }
 0x30b   : > { %v2526_v46 = vadd.f32 %v2494_v15, %v2462_v55  ;;  %v1887_v34 = vmul.f32 %v1823_v49, %v7688_v48  ;;  %v6520_v1 = vpop.permute.xlu1 %2765  ;;  %v2463_v49 = vmul.f32 %v5846_v44, %v509_v23  ;;  %v6546_v48 = vld [vmem:[#allocation10 + $0xa0] sm:$0xff]  ;;  %v7692_v44 = vld [vmem:[#allocation109_spill] sm:$0xff] }
 0x30c   : > { %7689 = vst [vmem:[#allocation99_spill] sm:$0xff] %v6520_v1  ;;  %1672 = vmatmul.mubr.bf16.gmra.mrb[100].mxu1 %v4762_v61 }
 0x30d   : > { %v2558_v36 = vmul.f32 0.088388346, %v2526_v46  ;;  %v1919_v14 = vadd.f32 %v1887_v34, %v1855_v20  ;;  %2413 = vrot.lane.b32.xlu1 %v7685_v28, %s5152_s12  ;;  %v6524_v41 = vpop.permute.xlu0 %1697  ;;  %v6544_v46 = vld [vmem:[#allocation10 + $0x88] sm:$0xff] }
 0x30e   : > { %v2464_v34 = vmul.f32 %v5852_v54, %v6544_v46 }
 0x30f   : > { %v3959_v38 = vpack.c.bf16 %v2558_v36, %v2557_v9  ;;  %v2320_v4 = vpop.permute.xlu1 %2319  ;;  %v4500_v16 = vpack.i.bf16 %v1935_v53, %v1919_v14  ;;  %v7690_v36 = vld [vmem:[#allocation101_spill] sm:$0xff]  ;;  %v7691_v14 = vld [vmem:[#allocation96_spill] sm:$0xff] }
 0x310   : > { %v2431_v31 = vsel %vm6004_vm0, %v2320_v4, %v6323_v5  ;;  %v1843_v15 = vsel %vm6004_vm0, %v7691_v14, %v7690_v36  ;;  %v6548_v5 = vld [vmem:[#allocation11 + $0x88] sm:$0xff]  ;;  %v7693_v4 = vld [vmem:[#allocation30_spill] sm:$0xff] }
 0x311   : > { %4102 = vst [vmem:[%s6056_s13 + $0x38] sm:$0xff] %v3959_v38   ;;  %1761 = vrot.lane.b32.xlu1 %v6038_v42, %s5152_s12  ;;  %v6530_v39 = vpop.permute.xlu0 %1763  ;;  %v2495_v11 = vmul.f32 %v2431_v31, %v541_v35  ;;  %v1907_v53 = vmul.f32 %v1843_v15, %v6537_v10  ;;  %v1875_v31 = vmul.f32 %v7693_v4, %v6546_v48 }
 0x313   : > { %v2322_v47 = vpop.permute.xlu1 %2321  ;;  %v2527_v9 = vadd.f32 %v2495_v11, %v2463_v49  ;;  %v6567_v14 = vadd.f32 %v1907_v53, %v1875_v31  ;;  %v7700_v53 = vld [vmem:[#allocation38_spill] sm:$0xff] }
 0x315   : > { %1699 = vrot.lane.b32.xlu1 %v6052_v58, %s5151_s1  ;;  %v1704_v55 = vpop.permute.xlu0 %1703  ;;  %v2559_v15 = vmul.f32 0.088388346, %v2527_v9  ;;  %v6581_v9 = vld [vmem:[#allocation10 + $0xb0] sm:$0xff] }
 0x317   : > { %v2386_v20 = vpop.permute.xlu1 %2385 }
 0x318   : > { %v2432_v35 = vsel %vm6004_vm0, %v2322_v47, %v2386_v20  ;;  %v1859_v47 = vmul.f32 %v6075_v51, %v6150_v6  ;;  %v7695_v51 = vld [vmem:[#allocation108_spill] sm:$0xff]  ;;  %v7696_v6 = vld [vmem:[#allocation106_spill] sm:$0xff] }
 0x319   : > { %v2496_v61 = vmul.f32 %v2432_v35, %v6548_v5  ;;  %1701 = vrot.lane.b32.xlu1 %v7692_v44, %s5151_s1  ;;  %v1768_v23 = vpop.permute.xlu0 %1767  ;;  %v6573_v35 = vld [vmem:[#allocation11 + $0xb0] sm:$0xff] }
 0x31a   : > { %v1827_v38 = vsel %vm6004_vm0, %v1704_v55, %v1768_v23 }
 0x31b   : > { %v2528_v36 = vadd.f32 %v2496_v61, %v2464_v34  ;;  %v1891_v54 = vmul.f32 %v1827_v38, %v6143_v45  ;;  %v6565_v11 = vpop.permute.xlu1 %2769  ;;  %v1845_v45 = vsel %vm6004_vm0, %v7696_v6, %v7695_v51  ;;  %v7697_v38 = vld [vmem:[#allocation112_spill] sm:$0xff]  ;;  %v6597_v51 = vld [vmem:[#allocation11 + $0x90] sm:$0xff] }
 0x31c   : > { %7694 = vst [vmem:[#allocation26_spill] sm:$0xff] %v6565_v11  ;;  %v1909_v23 = vmul.f32 %v1845_v45, %v6573_v35 }
 0x31d   : > { %v2560_v49 = vmul.f32 0.088388346, %v2528_v36  ;;  %v6569_v20 = vadd.f32 %v1891_v54, %v1859_v47  ;;  %1765 = vrot.lane.b32.xlu1 %v7692_v44, %s5152_s12  ;;  %v1708_v55 = vpop.permute.xlu0 %1707  ;;  %4501 = vxpose.xlu0.b32.start [1/16] %v4500_v16, 128  ;;  %v7698_v47 = vld [vmem:[#allocation34_spill] sm:$0xff]  ;;  %v1861_v54 = vmul.f32 %v6095_v29, %v6236_v2  ;;  %v7699_v29 = vld [vmem:[#allocation113_spill] sm:$0xff] }
 0x31e   : > { %v1877_v36 = vmul.f32 %v7698_v47, %v6581_v9  ;;  %v6622_v47 = vld [vmem:[#allocation11 + $0x98] sm:$0xff] }
 0x31f   : > { %v3964_v34 = vpack.c.bf16 %v2560_v49, %v2559_v15  ;;  %v2324_v61 = vpop.permute.xlu1 %2323 }
 0x320   : > { %v2433_v4 = vsel %vm6004_vm0, %v2324_v61, %v6344_v3  ;;  %v6599_v6 = vadd.f32 %v1909_v23, %v1877_v36  ;;  %v6608_v61 = vld [vmem:[#allocation11 + $0xc0] sm:$0xff] }
 0x321   : > { %4103 = vst [vmem:[%s6056_s13 + $0x40] sm:$0xff] %v3964_v34   ;;  %1705 = vrot.lane.b32.xlu1 %v7697_v38, %s5151_s1  ;;  %v1772_v16 = vpop.permute.xlu0 %1771  ;;  %v2497_v45 = vmul.f32 %v2433_v4, %v6597_v51  ;;  %v6618_v4 = vld [vmem:[#allocation10 + $0x98] sm:$0xff] }
 0x322   : > { %v1829_v31 = vsel %vm6004_vm0, %v1708_v55, %v1772_v16  ;;  %v6606_v55 = vld [vmem:[#allocation10 + $0x90] sm:$0xff] }
 0x323   : > { %v1893_v15 = vmul.f32 %v1829_v31, %v6229_v21  ;;  %v2326_v49 = vpop.permute.xlu1 %2325  ;;  %v1847_v21 = vsel %vm6004_vm0, %v7699_v29, %v6100_v24  ;;  %v2465_v2 = vmul.f32 %v5862_v27, %v6606_v55  ;;  %v6620_v31 = vld [vmem:[#allocation10 + $0xc0] sm:$0xff] }
 0x324   : > { %v1911_v24 = vmul.f32 %v1847_v21, %v6608_v61  ;;  %v1879_v11 = vmul.f32 %v7700_v53, %v6620_v31  ;;  %v6647_v53 = vld [vmem:[#allocation11 + $0xd0] sm:$0xff] }
 0x325   : > { %v6602_v34 = vadd.f32 %v1893_v15, %v1861_v54  ;;  %1769 = vrot.lane.b32.xlu1 %v7697_v38, %s5152_s12  ;;  %v1712_v3 = vpop.permute.xlu0 %1711  ;;  %v2466_v54 = vmul.f32 %v7627_v60, %v6618_v4  ;;  %v2529_v15 = vadd.f32 %v2497_v45, %v2465_v2 }
 0x326   : > { %v6641_v21 = vadd.f32 %v1911_v24, %v1879_v11 }
 0x327   : > { %v2390_v23 = vpop.permute.xlu1 %2389  ;;  %v2561_v2 = vmul.f32 0.088388346, %v2529_v15  ;;  %v7704_v15 = vld [vmem:[#allocation117_spill] sm:$0xff] }
 0x328   : > { %v2434_v36 = vsel %vm6004_vm0, %v2326_v49, %v2390_v23  ;;  %v1863_v49 = vmul.f32 %v6118_v50, %v6320_v8  ;;  %v7703_v50 = vld [vmem:[#allocation119_spill] sm:$0xff] }
 0x329   : > { %v2498_v27 = vmul.f32 %v2434_v36, %v6622_v47  ;;  %1709 = vrot.lane.b32.xlu1 %v6104_v52, %s5151_s1  ;;  %v1776_v29 = vpop.permute.xlu0 %1775 }
 0x32a   : > { %v1831_v16 = vsel %vm6004_vm0, %v1712_v3, %v1776_v29  ;;  %v7702_v29 = vld [vmem:[#allocation120_spill] sm:$0xff] }
 0x32b   : > { %v2530_v23 = vadd.f32 %v2498_v27, %v2466_v54  ;;  %v1895_v60 = vmul.f32 %v1831_v16, %v6313_v18  ;;  %v6639_v45 = vpop.permute.xlu1 %2773  ;;  %v1849_v8 = vsel %vm6004_vm0, %v7703_v50, %v7702_v29  ;;  %v6655_v54 = vld [vmem:[#allocation10 + $0xd0] sm:$0xff] }
 0x32c   : > { %7701 = vst [vmem:[#allocation103_spill] sm:$0xff] %v6639_v45  ;;  %v1913_v24 = vmul.f32 %v1849_v8, %v6647_v53 }
 0x32d   : > { %v2562_v36 = vmul.f32 0.088388346, %v2530_v23  ;;  %v6643_v1 = vadd.f32 %v1895_v60, %v1863_v49  ;;  %1773 = vrot.lane.b32.xlu1 %v6104_v52, %s5152_s12  ;;  %v1716_v3 = vpop.permute.xlu0 %1715  ;;  %v7705_v60 = vld [vmem:[#allocation42_spill] sm:$0xff] }
 0x32f   : > { %v3969_v18 = vpack.c.bf16 %v2562_v36, %v2561_v2  ;;  %v2328_v16 = vpop.permute.xlu1 %2327  ;;  %v1881_v2 = vmul.f32 %v7705_v60, %v6655_v54  ;;  %v1865_v36 = vmul.f32 %v6137_v56, %v6382_v62  ;;  %v6682_v62 = vld [vmem:[#allocation10 + $0xa8] sm:$0xff] }
 0x330   : > { %v2435_v49 = vsel %vm6004_vm0, %v2328_v16, %v6363_v37  ;;  %v2467_v37 = vmul.f32 %v7637_v32, %v6546_v48  ;;  %v6684_v56 = vld [vmem:[#allocation11 + $0xa8] sm:$0xff] }
 0x331   : > { %4104 = vst [vmem:[%s6056_s13 + $0x48] sm:$0xff] %v3969_v18   ;;  %1713 = vrot.lane.b32.xlu1 %v7704_v15, %s5151_s1  ;;  %v1780_v27 = vpop.permute.xlu0 %1779  ;;  %v6671_v8 = vadd.f32 %v1913_v24, %v1881_v2  ;;  %v2499_v18 = vmul.f32 %v2435_v49, %v6537_v10  ;;  %v2468_v10 = vmul.f32 %v7639_v0, %v6682_v62 }
 0x332   : > { %v1833_v23 = vsel %vm6004_vm0, %v1716_v3, %v1780_v27 }
 0x333   : > { %v1897_v29 = vmul.f32 %v1833_v23, %v6375_v30  ;;  %v2330_v50 = vpop.permute.xlu1 %2329  ;;  %v2531_v24 = vadd.f32 %v2499_v18, %v2467_v37  ;;  %v6706_v37 = vld [vmem:[#allocation10 + $0xb8] sm:$0xff] }
 0x335   : > { %v6674_v11 = vadd.f32 %v1897_v29, %v1865_v36  ;;  %1777 = vrot.lane.b32.xlu1 %v7704_v15, %s5152_s12  ;;  %v2563_v49 = vmul.f32 0.088388346, %v2531_v24  ;;  %v7707_v29 = vld [vmem:[#allocation94_spill] sm:$0xff] }
 0x337   : > { %v2394_v3 = vpop.permute.xlu1 %2393 }
 0x338   : > { %v2436_v30 = vsel %vm6004_vm0, %v2330_v50, %v2394_v3  ;;  %v2469_v50 = vmul.f32 %v5900_v17, %v6581_v9  ;;  %v6708_v3 = vld [vmem:[#allocation11 + $0xb8] sm:$0xff] }
 0x339   : > { %v2500_v27 = vmul.f32 %v2436_v30, %v6684_v56  ;;  %1717 = vrot.lane.b32.xlu1 %v6217_v40, %s5151_s1 }
 0x33b   : > { %v2532_v32 = vadd.f32 %v2500_v27, %v2468_v10  ;;  %v6693_v48 = vpop.permute.xlu1 %2777  ;;  %v7709_v27 = vld [vmem:[#allocation100_spill] sm:$0xff] }
 0x33c   : > { %7706 = vst [vmem:[#allocation102_spill] sm:$0xff] %v6693_v48  ;;  %v7724_v48 = vld [vmem:[#allocation125_spill] sm:$0xff] }
 0x33d   : > { %v2564_v23 = vmul.f32 0.088388346, %v2532_v32  ;;  %1781 = vrot.lane.b32.xlu1 %v6217_v40, %s5152_s12 }
 0x33f   : > { %v3974_v60 = vpack.c.bf16 %v2564_v23, %v2563_v49  ;;  %v2332_v2 = vpop.permute.xlu1 %2331  ;;  %v7711_v23 = vld [vmem:[#allocation33_spill] sm:$0xff] }
 0x340   : > { %v2437_v0 = vsel %vm6004_vm0, %v2332_v2, %v6385_v33  ;;  %v7708_v33 = vld [vmem:[#allocation73_spill] sm:$0xff] }
 0x341   : > { %4105 = vst [vmem:[%s6056_s13 + $0x50] sm:$0xff] %v3974_v60   ;;  %v2501_v36 = vmul.f32 %v2437_v0, %v6573_v35  ;;  %2793 = vrot.lane.b32.xlu1 %v7707_v29, %s5151_s1  ;;  %v2470_v10 = vmul.f32 %v7708_v33, %v6706_v37 }
 0x343   : > { %v2398_v18 = vpop.permute.xlu1 %2397  ;;  %v2533_v35 = vadd.f32 %v2501_v36, %v2469_v50 }
 0x344   : > { %v2438_v30 = vsel %vm6004_vm0, %v6412_v43, %v2398_v18  ;;  %v7712_v43 = vld [vmem:[#allocation37_spill] sm:$0xff] }
 0x345   : > { %v2502_v24 = vmul.f32 %v2438_v30, %v6708_v3  ;;  %2797 = vrot.lane.b32.xlu1 %v7709_v27, %s5151_s1  ;;  %v2565_v32 = vmul.f32 0.088388346, %v2533_v35  ;;  %v7713_v18 = vld [vmem:[#allocation41_spill] sm:$0xff]  ;;  %v7714_v30 = vld [vmem:[#allocation76_spill] sm:$0xff] }
 0x346   : > { %v2471_v33 = vmul.f32 %v7714_v30, %v6620_v31  ;;  %v6733_v35 = vld [vmem:[#allocation10 + $0xc8] sm:$0xff]  ;;  %v7717_v30 = vld [vmem:[#allocation51_spill] sm:$0xff] }
 0x347   : > { %v2534_v17 = vadd.f32 %v2502_v24, %v2470_v10  ;;  %v6718_v9 = vpop.permute.xlu1 %2781  ;;  %v6735_v24 = vld [vmem:[#allocation11 + $0xc8] sm:$0xff] }
 0x348   : > { %7710 = vst [vmem:[#allocation101_spill] sm:$0xff] %v6718_v9 }
 0x349   : > { %v2566_v49 = vmul.f32 0.088388346, %v2534_v17  ;;  %2801 = vrot.lane.b32.xlu1 %v7711_v23, %s5152_s12 }
 0x34b   : > { %v3979_v60 = vpack.c.bf16 %v2566_v49, %v2565_v32  ;;  %v2336_v2 = vpop.permute.xlu1 %2335  ;;  %v7715_v49 = vld [vmem:[#allocation46_spill] sm:$0xff] }
 0x34c   : > { %v2439_v0 = vsel %vm6004_vm0, %v2336_v2, %v6423_v59  ;;  %v2472_v59 = vmul.f32 %v7657_v22, %v6733_v35 }
 0x34d   : > { %4106 = vst [vmem:[%s6056_s13 + $0x58] sm:$0xff] %v3979_v60   ;;  %2805 = vrot.lane.b32.xlu1 %v7712_v43, %s5152_s12  ;;  %v2503_v50 = vmul.f32 %v2439_v0, %v6608_v61 }
 0x34f   : > { %v2338_v36 = vpop.permute.xlu1 %2337  ;;  %v2535_v32 = vadd.f32 %v2503_v50, %v2471_v33 }
 0x351   : > { %2809 = vrot.lane.b32.xlu1 %v7713_v18, %s5152_s12  ;;  %v2567_v2 = vmul.f32 0.088388346, %v2535_v32  ;;  %v6759_v32 = vld [vmem:[#allocation10 + $0xd8] sm:$0xff] }
 0x353   : > { %v2402_v10 = vpop.permute.xlu1 %2401 }
 0x354   : > { %v2440_v17 = vsel %vm6004_vm0, %v2338_v36, %v2402_v10  ;;  %v7718_v36 = vld [vmem:[#allocation56_spill] sm:$0xff]  ;;  %v7719_v10 = vld [vmem:[#allocation58_spill] sm:$0xff] }
 0x355   : > { %v2504_v61 = vmul.f32 %v2440_v17, %v6735_v24  ;;  %2813 = vrot.lane.b32.xlu1 %v7715_v49, %s5152_s12  ;;  %v2473_v17 = vmul.f32 %v5948_v12, %v6655_v54 }
 0x357   : > { %v2536_v60 = vadd.f32 %v2504_v61, %v2472_v59  ;;  %v6744_v31 = vpop.permute.xlu1 %2785 }
 0x358   : > { %7716 = vst [vmem:[#allocation96_spill] sm:$0xff] %v6744_v31 }
 0x359   : > { %v2568_v0 = vmul.f32 0.088388346, %v2536_v60  ;;  %2817 = vrot.lane.b32.xlu1 %v7717_v30, %s5152_s12  ;;  %v7720_v60 = vld [vmem:[#allocation60_spill] sm:$0xff] }
 0x35b   : > { %v3984_v16 = vpack.c.bf16 %v2568_v0, %v2567_v2  ;;  %v2340_v9 = vpop.permute.xlu1 %2339 }
 0x35c   : > { %v2441_v22 = vsel %vm6004_vm0, %v2340_v9, %v6439_v57  ;;  %v2474_v57 = vmul.f32 %v7671_v13, %v6759_v32 }
 0x35d   : > { %4107 = vst [vmem:[%s6056_s13 + $0x60] sm:$0xff] %v3984_v16   ;;  %2821 = vrot.lane.b32.xlu1 %v7718_v36, %s5152_s12  ;;  %v2505_v33 = vmul.f32 %v2441_v22, %v6647_v53  ;;  %v6761_v16 = vld [vmem:[#allocation11 + $0xd8] sm:$0xff] }
 0x35e   : > { %v7722_v22 = vld [vmem:[#allocation62_spill] sm:$0xff] }
 0x35f   : > { %v2342_v50 = vpop.permute.xlu1 %2341  ;;  %v2537_v9 = vadd.f32 %v2505_v33, %v2473_v17 }
 0x361   : > { %2825 = vrot.lane.b32.xlu1 %v7719_v10, %s5152_s12  ;;  %v2569_v54 = vmul.f32 0.088388346, %v2537_v9 }
 0x363   : > { %v2406_v59 = vpop.permute.xlu1 %2405 }
 0x364   : > { %v2442_v61 = vsel %vm6004_vm0, %v2342_v50, %v2406_v59  ;;  %v4255_v50 = vpop.f32.mrb[40].mxu1 }
 0x365   : > { %v2506_v53 = vmul.f32 %v2442_v61, %v6761_v16  ;;  %2829 = vrot.lane.b32.xlu1 %v7720_v60, %s5152_s12  ;;  %v4256_v59 = vpop.f32.mrb[41].mxu1  ;;  %v7723_v61 = vld [vmem:[#allocation65_spill] sm:$0xff] }
 0x366   : > { %v4258_v33 = vpop.f32.mrb[42].mxu1 }
 0x367   : > { %v2538_v2 = vadd.f32 %v2506_v53, %v2474_v57  ;;  %v6770_v12 = vpop.permute.xlu1 %2789  ;;  %v4259_v17 = vpop.f32.mrb[43].mxu1  ;;  %v4257_v57 = vadd.f32 %v4256_v59, %v4255_v50  ;;  %v6789_v50 = vld [vmem:[#allocation10 + $0xe8] sm:$0xff] }
 0x368   : > { %7721 = vst [vmem:[#allocation109_spill] sm:$0xff] %v6770_v12  ;;  %v4260_v53 = vadd.f32 %v4259_v17, %v4258_v33  ;;  %v7726_v59 = vld [vmem:[#allocation124_spill] sm:$0xff] }
 0x369   : > { %v2570_v0 = vmul.f32 0.088388346, %v2538_v2  ;;  %2833 = vrot.lane.b32.xlu1 %v7722_v22, %s5152_s12  ;;  %v6795_v17 = vld [vmem:[#allocation11 + $0xe8] sm:$0xff] }
 0x36a   : > { %v3844_v12 = vpack.c.bf16 %v4260_v53, %v4257_v57 }
 0x36b   : > { %v3989_v31 = vpack.c.bf16 %v2570_v0, %v2569_v54  ;;  %v2344_v13 = vpop.permute.xlu1 %2343  ;;  %v7725_v54 = vld [vmem:[#allocation69_spill] sm:$0xff] }
 0x36c   : > { %v2443_v9 = vsel %vm6004_vm0, %v2344_v13, %v6468_v25  ;;  %3845 = vst [vmem:[%s6786_s15] sm:$0xff] %v3844_v12   ;;  %v2475_v25 = vmul.f32 %v5972_v7, %v7726_v59 }
 0x36d   : > { %4108 = vst [vmem:[%s6056_s13 + $0x68] sm:$0xff] %v3989_v31   ;;  %2837 = vrot.lane.b32.xlu1 %v7723_v61, %s5152_s12  ;;  %v2507_v45 = vmul.f32 %v2443_v9, %v7724_v48  ;;  %v4261_v31 = vpop.f32.mrb[44].mxu1  ;;  %v2476_v48 = vmul.f32 %v7679_v19, %v6789_v50 }
 0x36e   : > { %v4262_v0 = vpop.f32.mrb[45].mxu1 }
 0x36f   : > { %v2346_v2 = vpop.permute.xlu1 %2345  ;;  %v4264_v33 = vpop.f32.mrb[46].mxu1  ;;  %v2539_v12 = vadd.f32 %v2507_v45, %v2475_v25  ;;  %v4263_v61 = vadd.f32 %v4262_v0, %v4261_v31 }
 0x370   : > { %v4265_v53 = vpop.f32.mrb[47].mxu1 }
 0x371   : > { %2841 = vrot.lane.b32.xlu1 %v7725_v54, %s5152_s12  ;;  %v7727_v54 = vld [vmem:[#allocation74_spill] sm:$0xff]  ;;  %v4266_v7 = vadd.f32 %v4265_v53, %v4264_v33  ;;  %v2571_v10 = vmul.f32 0.088388346, %v2539_v12  ;;  %v7729_v33 = vld [vmem:[#allocation131_spill] sm:$0xff] }
 0x373   : > { %v2410_v13 = vpop.permute.xlu1 %2409  ;;  %v3849_v60 = vpack.c.bf16 %v4266_v7, %v4263_v61 }
 0x374   : > { %v2444_v57 = vsel %vm6004_vm0, %v2346_v2, %v2410_v13  ;;  %v4267_v2 = vpop.f32.mrb[48].mxu1  ;;  %v7728_v13 = vld [vmem:[#allocation93_spill] sm:$0xff] }
 0x375   : > { %v2508_v9 = vmul.f32 %v2444_v57, %v6795_v17  ;;  %2845 = vrot.lane.b32.xlu1 %v7727_v54, %s5152_s12  ;;  %4081 = vst [vmem:[%s6786_s15 + $0x8] sm:$0xff] %v3849_v60   ;;  %v4268_v25 = vpop.f32.mrb[49].mxu1  ;;  %v7731_v60 = vld [vmem:[#allocation85_spill] sm:$0xff] }
 0x376   : > { %v4270_v31 = vpop.f32.mrb[50].mxu1  ;;  %v4269_v53 = vadd.f32 %v4268_v25, %v4267_v2 }
 0x377   : > { %v2540_v59 = vadd.f32 %v2508_v9, %v2476_v48  ;;  %v2348_v22 = vpop.permute.xlu1 %2347  ;;  %v4271_v0 = vpop.f32.mrb[51].mxu1  ;;  %v7730_v48 = vld [vmem:[#allocation87_spill] sm:$0xff]  ;;  %v7732_v9 = vld [vmem:[#allocation82_spill] sm:$0xff] }
 0x378   : > { %v2445_v45 = vsel %vm6004_vm0, %v2348_v22, %v7728_v13  ;;  %v4272_v12 = vadd.f32 %v4271_v0, %v4270_v31  ;;  %v1840_v7 = vsel %vm6004_vm0, %v7732_v9, %v7731_v60  ;;  %v7733_v22 = vld [vmem:[#allocation130_spill] sm:$0xff]  ;;  %v4273_v0 = vpop.f32.mrb[52].mxu1 }
 0x379   : > { %v2572_v19 = vmul.f32 0.088388346, %v2540_v59  ;;  %2849 = vrot.lane.b32.xlu1 %v7665_v63, %s5152_s12  ;;  %v2509_v61 = vmul.f32 %v2445_v45, %v7729_v33  ;;  %v7734_v59 = vld [vmem:[#allocation97_spill] sm:$0xff]  ;;  %v6818_v63 = vld [vmem:[#allocation10 + $0xf8] sm:$0xff]  ;;  %v1904_v33 = vmul.f32 %v1840_v7, %v6548_v5 }
 0x37a   : > { %v3854_v13 = vpack.c.bf16 %v4272_v12, %v4269_v53  ;;  %v2478_v2 = vmul.f32 %v7685_v28, %v6818_v63  ;;  %v4274_v53 = vpop.f32.mrb[53].mxu1  ;;  %v7738_v28 = vld [vmem:[#allocation88_spill] sm:$0xff] }
 0x37b   : > { %v3994_v57 = vpack.c.bf16 %v2572_v19, %v2571_v10  ;;  %v2350_v54 = vpop.permute.xlu1 %2349  ;;  %v2477_v10 = vmul.f32 %v7734_v59, %v7733_v22  ;;  %v4275_v9 = vadd.f32 %v4274_v53, %v4273_v0  ;;  %v4276_v22 = vpop.f32.mrb[54].mxu1 }
 0x37c   : > { %4082 = vst [vmem:[%s6786_s15 + $0x10] sm:$0xff] %v3854_v13   ;;  %v4277_v7 = vpop.f32.mrb[55].mxu1 }
 0x37d   : > { %4109 = vst [vmem:[%s6056_s13 + $0x70] sm:$0xff] %v3994_v57   ;;  %2853 = vrot.lane.b32.xlu1 %v7730_v48, %s5152_s12  ;;  %v6820_v57 = vld [vmem:[#allocation11 + $0xf8] sm:$0xff]  ;;  %v2541_v25 = vadd.f32 %v2509_v61, %v2477_v10  ;;  %v6837_v10 = vld [vmem:[#allocation10 + $0x8] sm:$0xff]  ;;  %v4278_v0 = vadd.f32 %v4277_v7, %v4276_v22 }
 0x37e   : > { %7735 = vst [vmem:[#allocation30_spill] sm:$0xff] %v6820_v57  ;;  %v1856_v13 = vmul.f32 %v6837_v10, %v6038_v42 }
 0x37f   : > { %v2414_v19 = vpop.permute.xlu1 %2413 }
 0x380   : > { %v2446_v45 = vsel %vm6004_vm0, %v2350_v54, %v2414_v19  ;;  %v7736_v54 = vld [vmem:[#allocation27_spill] sm:$0xff]  ;;  %v7737_v19 = vld [vmem:[#allocation90_spill] sm:$0xff] }
 0x381   : > { %v2510_v31 = vmul.f32 %v2446_v45, %v6820_v57  ;;  %2857 = vrot.lane.b32.xlu1 %v7707_v29, %s5152_s12  ;;  %v1872_v59 = vmul.f32 %v7736_v54, %v6544_v46  ;;  %v1841_v61 = vsel %vm6004_vm0, %v7738_v28, %v7737_v19  ;;  %v2573_v45 = vmul.f32 0.088388346, %v2541_v25 }
 0x382   : > { %v1905_v42 = vmul.f32 %v1841_v61, %v6597_v51 }
 0x383   : > { %v2542_v12 = vadd.f32 %v2510_v31, %v2478_v2  ;;  %v1762_v60 = vpop.permute.xlu1 %1761  ;;  %v6844_v31 = vld [vmem:[#allocation11 + $0x8] sm:$0xff]  ;;  %v1936_v53 = vadd.f32 %v1904_v33, %v1872_v59  ;;  %v6860_v33 = vld [vmem:[#allocation11 + $0x10] sm:$0xff] }
 0x384   : > { %v1824_v5 = vsel %vm6004_vm0, %v6524_v41, %v1762_v60  ;;  %v3859_v41 = vpack.c.bf16 %v4278_v0, %v4275_v9 }
 0x385   : > { %v2574_v2 = vmul.f32 0.088388346, %v2542_v12  ;;  %v1888_v46 = vmul.f32 %v6844_v31, %v1824_v5  ;;  %2861 = vrot.lane.b32.xlu1 %v7709_v27, %s5152_s12  ;;  %v7739_v12 = vld [vmem:[#allocation28_spill] sm:$0xff]  ;;  %v6855_v5 = vld [vmem:[#allocation10 + $0x10] sm:$0xff] }
 0x386   : > { %v1873_v60 = vmul.f32 %v7739_v12, %v6606_v55  ;;  %v1857_v27 = vmul.f32 %v6855_v5, %v6052_v58  ;;  %4083 = vst [vmem:[%s6786_s15 + $0x18] sm:$0xff] %v3859_v41   ;;  %v7743_v41 = vld [vmem:[#allocation29_spill] sm:$0xff]  ;;  %v6875_v12 = vld [vmem:[#allocation10 + $0x18] sm:$0xff] }
 0x387   : > { %v3999_v54 = vpack.c.bf16 %v2574_v2, %v2573_v45  ;;  %v1920_v19 = vadd.f32 %v1888_v46, %v1856_v13  ;;  %v1700_v28 = vpop.permute.xlu1 %1699  ;;  %v4279_v9 = vpop.f32.mrb[56].mxu1  ;;  %v7740_v45 = vld [vmem:[#allocation92_spill] sm:$0xff]  ;;  %v7741_v2 = vld [vmem:[#allocation89_spill] sm:$0xff] }
 0x388   : > { %v1825_v25 = vsel %vm6004_vm0, %v1700_v28, %v6530_v39  ;;  %v4280_v59 = vpop.f32.mrb[57].mxu1  ;;  %v1937_v61 = vadd.f32 %v1905_v42, %v1873_v60  ;;  %v1842_v58 = vsel %vm6004_vm0, %v7741_v2, %v7740_v45  ;;  %v6869_v42 = vpop.permute.xlu0 %2795  ;;  %v1858_v60 = vmul.f32 %v6875_v12, %v7692_v44  ;;  %v7745_v45 = vld [vmem:[#allocation107_spill] sm:$0xff] }
 0x389   : > { %4110 = vst [vmem:[%s6056_s13 + $0x78] sm:$0xff] %v3999_v54   ;;  %v1889_v51 = vmul.f32 %v6860_v33, %v1825_v25  ;;  %v4502_v22 = vpack.i.bf16 %v1936_v53, %v1920_v19  ;;  %v4281_v7 = vadd.f32 %v4280_v59, %v4279_v9  ;;  %v4282_v55 = vpop.f32.mrb[58].mxu1  ;;  %v1906_v53 = vmul.f32 %v1842_v58, %v6622_v47 }
 0x38a   : > { %v4283_v46 = vpop.f32.mrb[59].mxu1  ;;  %7742 = vst [vmem:[#allocation108_spill] sm:$0xff] %v6869_v42  ;;  %v1874_v25 = vmul.f32 %v7743_v41, %v6618_v4  ;;  %v6894_v41 = vld [vmem:[#allocation10 + $0x28] sm:$0xff] }
 0x38b   : > { %v1921_v13 = vadd.f32 %v1889_v51, %v1857_v27  ;;  %v1702_v39 = vpop.permute.xlu1 %1701  ;;  %4503 = vxpose.xlu0.b32.cont [2/16] %v4502_v22, 128  ;;  %v4284_v54 = vadd.f32 %v4283_v46, %v4282_v55  ;;  %v6879_v51 = vld [vmem:[#allocation11 + $0x18] sm:$0xff] }
 0x38c   : > { %v1938_v59 = vadd.f32 %v1906_v53, %v1874_v25  ;;  %v7744_v55 = vld [vmem:[#allocation110_spill] sm:$0xff]  ;;  %v6887_v46 = vpop.permute.xlu0 %2799  ;;  %v1860_v25 = vmul.f32 %v6894_v41, %v7697_v38 }
 0x38d   : > { %v4504_v0 = vpack.i.bf16 %v1937_v61, %v1921_v13  ;;  %v3864_v28 = vpack.c.bf16 %v4284_v54, %v4281_v7  ;;  %v1844_v4 = vsel %vm6004_vm0, %v7745_v45, %v7744_v55  ;;  %v7748_v45 = vld [vmem:[#allocation118_spill] sm:$0xff] }
 0x38f   : > { %v1766_v19 = vpop.permute.xlu1 %1765  ;;  %4505 = vxpose.xlu0.b32.cont [3/16] %v4504_v0, 128  ;;  %4084 = vst [vmem:[%s6786_s15 + $0x20] sm:$0xff] %v3864_v28   ;;  %v4285_v22 = vpop.f32.mrb[60].mxu1  ;;  %v1908_v0 = vmul.f32 %v1844_v4, %v6684_v56  ;;  %v7746_v28 = vld [vmem:[#allocation32_spill] sm:$0xff]  ;;  %v7749_v4 = vld [vmem:[#allocation115_spill] sm:$0xff] }
 0x390   : > { %v1826_v27 = vsel %vm6004_vm0, %v1702_v39, %v1766_v19  ;;  %v4286_v9 = vpop.f32.mrb[61].mxu1  ;;  %v1846_v38 = vsel %vm6004_vm0, %v7749_v4, %v7748_v45 }
 0x391   : > { %v1890_v47 = vmul.f32 %v6879_v51, %v1826_v27  ;;  %v4287_v7 = vadd.f32 %v4286_v9, %v4285_v22  ;;  %v4288_v39 = vpop.f32.mrb[62].mxu1  ;;  %v1876_v27 = vmul.f32 %v7746_v28, %v6682_v62 }
 0x392   : > { %v4289_v2 = vpop.f32.mrb[63].mxu1 }
 0x393   : > { %v1922_v61 = vadd.f32 %v1890_v47, %v1858_v60  ;;  %v1706_v13 = vpop.permute.xlu1 %1705  ;;  %v4290_v58 = vadd.f32 %v4289_v2, %v4288_v39  ;;  %v6898_v60 = vld [vmem:[#allocation11 + $0x28] sm:$0xff]  ;;  %v6909_v2 = vpop.permute.xlu0 %2803 }
 0x395   : > { %v4506_v44 = vpack.i.bf16 %v1938_v59, %v1922_v61  ;;  %v3869_v53 = vpack.c.bf16 %v4290_v58, %v4287_v7  ;;  %v1940_v59 = vadd.f32 %v1908_v0, %v1876_v27  ;;  %v1910_v0 = vmul.f32 %v1846_v38, %v6708_v3  ;;  %v6916_v27 = vld [vmem:[#allocation10 + $0x38] sm:$0xff] }
 0x396   : > { %v7752_v38 = vld [vmem:[#allocation126_spill] sm:$0xff] }
 0x397   : > { %v1770_v54 = vpop.permute.xlu1 %1769  ;;  %4507 = vxpose.xlu0.b32.cont [4/16] %v4506_v44, 128  ;;  %4085 = vst [vmem:[%s6786_s15 + $0x28] sm:$0xff] %v3869_v53   ;;  %v4291_v22 = vpop.f32.mrb[64].mxu1 }
 0x398   : > { %v1828_v19 = vsel %vm6004_vm0, %v1706_v13, %v1770_v54  ;;  %v4292_v9 = vpop.f32.mrb[65].mxu1  ;;  %v7747_v13 = vpack.i.bf16 %v6567_v14, %v6569_v20  ;;  %v7750_v20 = vld [vmem:[#allocation36_spill] sm:$0xff] }
 0x399   : > { %v1892_v47 = vmul.f32 %v6898_v60, %v1828_v19  ;;  %v4293_v39 = vadd.f32 %v4292_v9, %v4291_v22  ;;  %v4294_v55 = vpop.f32.mrb[66].mxu1  ;;  %v1878_v28 = vmul.f32 %v7750_v20, %v6706_v37 }
 0x39a   : > { %v4295_v44 = vpop.f32.mrb[67].mxu1 }
 0x39b   : > { %v1924_v61 = vadd.f32 %v1892_v47, %v1860_v25  ;;  %v1710_v7 = vpop.permute.xlu1 %1709  ;;  %4509 = vxpose.xlu0.b32.cont [5/16] %v7747_v13, 128  ;;  %v4296_v54 = vadd.f32 %v4295_v44, %v4294_v55  ;;  %v1862_v25 = vmul.f32 %v6916_v27, %v6104_v52  ;;  %v6920_v47 = vld [vmem:[#allocation11 + $0x38] sm:$0xff]  ;;  %v1942_v13 = vadd.f32 %v1910_v0, %v1878_v28  ;;  %v7753_v52 = vld [vmem:[#allocation123_spill] sm:$0xff] }
 0x39c   : > { %v7751_v55 = vpack.i.bf16 %v6599_v6, %v6602_v34  ;;  %v1848_v44 = vsel %vm6004_vm0, %v7753_v52, %v7752_v38  ;;  %v7754_v34 = vld [vmem:[#allocation40_spill] sm:$0xff] }
 0x39d   : > { %v4510_v58 = vpack.i.bf16 %v1940_v59, %v1924_v61  ;;  %v3874_v19 = vpack.c.bf16 %v4296_v54, %v4293_v39  ;;  %v6924_v59 = vpop.permute.xlu0 %2807  ;;  %v1880_v28 = vmul.f32 %v7754_v34, %v6733_v35 }
 0x39f   : > { %v1774_v53 = vpop.permute.xlu1 %1773  ;;  %4511 = vxpose.xlu0.b32.cont [6/16] %v4510_v58, 128  ;;  %4086 = vst [vmem:[%s6786_s15 + $0x30] sm:$0xff] %v3874_v19   ;;  %v4297_v9 = vpop.f32.mrb[68].mxu1  ;;  %v1912_v19 = vmul.f32 %v1848_v44, %v6735_v24  ;;  %v7756_v44 = vld [vmem:[#allocation133_spill] sm:$0xff] }
 0x3a0   : > { %v1830_v14 = vsel %vm6004_vm0, %v1710_v7, %v1774_v53  ;;  %v4298_v61 = vpop.f32.mrb[69].mxu1 }
 0x3a1   : > { %v1894_v22 = vmul.f32 %v6920_v47, %v1830_v14  ;;  %v4299_v45 = vadd.f32 %v4298_v61, %v4297_v9  ;;  %v4300_v4 = vpop.f32.mrb[70].mxu1  ;;  %v6934_v20 = vpop.permute.xlu0 %2811  ;;  %v6944_v9 = vld [vmem:[#allocation11 + $0x48] sm:$0xff] }
 0x3a2   : > { %v4301_v58 = vpop.f32.mrb[71].mxu1 }
 0x3a3   : > { %v1926_v39 = vadd.f32 %v1894_v22, %v1862_v25  ;;  %v1714_v7 = vpop.permute.xlu1 %1713  ;;  %4513 = vxpose.xlu0.b32.cont [7/16] %v7751_v55, 128  ;;  %v4302_v53 = vadd.f32 %v4301_v58, %v4300_v4  ;;  %v6940_v25 = vld [vmem:[#allocation10 + $0x48] sm:$0xff]  ;;  %v1944_v55 = vadd.f32 %v1912_v19, %v1880_v28  ;;  %v7757_v58 = vld [vmem:[#allocation53_spill] sm:$0xff] }
 0x3a4   : > { %v1864_v22 = vmul.f32 %v6940_v25, %v7704_v15  ;;  %v1850_v15 = vsel %vm6004_vm0, %v7757_v58, %v7756_v44  ;;  %v7764_v58 = vld [vmem:[#allocation70_spill] sm:$0xff] }
 0x3a5   : > { %v4514_v54 = vpack.i.bf16 %v1942_v13, %v1926_v39  ;;  %v3879_v14 = vpack.c.bf16 %v4302_v53, %v4299_v45  ;;  %v1914_v19 = vmul.f32 %v1850_v15, %v6761_v16 }
 0x3a7   : > { %v1778_v0 = vpop.permute.xlu1 %1777  ;;  %4515 = vxpose.xlu0.b32.cont [8/16] %v4514_v54, 128  ;;  %4087 = vst [vmem:[%s6786_s15 + $0x38] sm:$0xff] %v3879_v14   ;;  %v4303_v13 = vpop.f32.mrb[72].mxu1 }
 0x3a8   : > { %v1832_v6 = vsel %vm6004_vm0, %v1714_v7, %v1778_v0  ;;  %v4304_v39 = vpop.f32.mrb[73].mxu1  ;;  %v7755_v7 = vpack.i.bf16 %v6641_v21, %v6643_v1  ;;  %v6955_v14 = vpop.permute.xlu0 %2815  ;;  %v7758_v21 = vld [vmem:[#allocation45_spill] sm:$0xff] }
 0x3a9   : > { %v1896_v61 = vmul.f32 %v6944_v9, %v1832_v6  ;;  %v4305_v38 = vadd.f32 %v4304_v39, %v4303_v13  ;;  %v4306_v52 = vpop.f32.mrb[74].mxu1  ;;  %v1882_v28 = vmul.f32 %v7758_v21, %v6759_v32  ;;  %v7761_v39 = vld [vmem:[#allocation79_spill] sm:$0xff] }
 0x3aa   : > { %v4307_v54 = vpop.f32.mrb[75].mxu1 }
 0x3ab   : > { %v1928_v45 = vadd.f32 %v1896_v61, %v1864_v22  ;;  %v1718_v4 = vpop.permute.xlu1 %1717  ;;  %4517 = vxpose.xlu0.b32.cont [9/16] %v7755_v7, 128  ;;  %v4308_v0 = vadd.f32 %v4307_v54, %v4306_v52  ;;  %v7759_v22 = vld [vmem:[#allocation135_spill] sm:$0xff]  ;;  %v7760_v61 = vld [vmem:[#allocation49_spill] sm:$0xff]  ;;  %v1946_v15 = vadd.f32 %v1914_v19, %v1882_v28 }
 0x3ac   : > { %v1852_v13 = vsel %vm6004_vm0, %v7760_v61, %v7759_v22  ;;  %v7767_v28 = vld [vmem:[#allocation143_spill] sm:$0xff] }
 0x3ad   : > { %v4518_v53 = vpack.i.bf16 %v1944_v55, %v1928_v45  ;;  %v3884_v34 = vpack.c.bf16 %v4308_v0, %v4305_v38  ;;  %v1866_v55 = vmul.f32 %v6217_v40, %v7761_v39  ;;  %v7762_v45 = vld [vmem:[#allocation137_spill] sm:$0xff]  ;;  %v7763_v38 = vld [vmem:[#allocation72_spill] sm:$0xff]  ;;  %v7765_v0 = vpack.i.bf16 %v6671_v8, %v6674_v11  ;;  %v7766_v39 = vld [vmem:[#allocation50_spill] sm:$0xff] }
 0x3ae   : > { %v1884_v19 = vmul.f32 %v7766_v39, %v6789_v50  ;;  %v7775_v39 = vld [vmem:[#allocation104_spill] sm:$0xff] }
 0x3af   : > { %v1782_v6 = vpop.permute.xlu1 %1781  ;;  %4519 = vxpose.xlu0.b32.cont [10/16] %v4518_v53, 128  ;;  %4088 = vst [vmem:[%s6786_s15 + $0x40] sm:$0xff] %v3884_v34   ;;  %v4309_v52 = vpop.f32.mrb[76].mxu1 }
 0x3b0   : > { %v1834_v1 = vsel %vm6004_vm0, %v1718_v4, %v1782_v6  ;;  %v4310_v44 = vpop.f32.mrb[77].mxu1  ;;  %v1836_v4 = vsel %vm6004_vm0, %v7764_v58, %v7763_v38  ;;  %v6980_v34 = vpop.permute.xlu0 %2819  ;;  %v7771_v58 = vld [vmem:[#allocation140_spill] sm:$0xff] }
 0x3b1   : > { %v1898_v7 = vmul.f32 %v1834_v1, %v7762_v45  ;;  %v4311_v6 = vadd.f32 %v4310_v44, %v4309_v52  ;;  %v4312_v40 = vpop.f32.mrb[78].mxu1  ;;  %v1916_v1 = vmul.f32 %v1852_v13, %v6795_v17  ;;  %v7768_v45 = vld [vmem:[#allocation95_spill] sm:$0xff] }
 0x3b2   : > { %v4313_v21 = vpop.f32.mrb[79].mxu1  ;;  %v2863_v11 = vsel %vm6004_vm0, %v7768_v45, %v6887_v46  ;;  %v7770_v52 = vld [vmem:[#allocation23_spill] sm:$0xff] }
 0x3b3   : > { %v1930_v54 = vadd.f32 %v1898_v7, %v1866_v55  ;;  %v6974_v53 = vpop.permute.xlu1 %2793  ;;  %4521 = vxpose.xlu0.b32.cont [11/16] %v7765_v0, 128  ;;  %v4314_v61 = vadd.f32 %v4313_v21, %v4312_v40  ;;  %v1900_v55 = vmul.f32 %v1836_v4, %v7767_v28  ;;  %v7769_v7 = vld [vmem:[#allocation142_spill] sm:$0xff]  ;;  %v1948_v38 = vadd.f32 %v1916_v1, %v1884_v19  ;;  %v7774_v4 = vld [vmem:[#allocation75_spill] sm:$0xff] }
 0x3b4   : > { %v1868_v44 = vmul.f32 %v7770_v52, %v7769_v7  ;;  %v7773_v0 = vld [vmem:[#allocation78_spill] sm:$0xff]  ;;  %v4775_v21 = vld [vmem:[#allocation11] sm:$0xff]  ;;  %v7007_v45 = vpop.permute.xlu0 %2823  ;;  %v2896_v52 = vmul.f32 %v6837_v10, %v7711_v23 }
 0x3b5   : > { %v4522_v22 = vpack.i.bf16 %v1946_v15, %v1930_v54  ;;  %v3889_v13 = vpack.c.bf16 %v4314_v61, %v4311_v6  ;;  %v7772_v15 = vld [vmem:[#allocation139_spill] sm:$0xff]  ;;  %v1838_v40 = vsel %vm6004_vm0, %v7774_v4, %v7773_v0  ;;  %v2927_v46 = vmul.f32 %v4775_v21, %v2863_v11  ;;  %v7778_v4 = vld [vmem:[#allocation128_spill] sm:$0xff] }
 0x3b6   : > { %v1854_v54 = vsel %vm6004_vm0, %v7772_v15, %v7771_v58  ;;  %v2865_v6 = vsel %vm6004_vm0, %v7775_v39, %v6909_v2  ;;  %v4776_v1 = vld [vmem:[#allocation10] sm:$0xff]  ;;  %v1932_v28 = vadd.f32 %v1900_v55, %v1868_v44 }
 0x3b7   : > { %v6989_v8 = vpop.permute.xlu1 %2797  ;;  %4523 = vxpose.xlu0.b32.cont [12/16] %v4522_v22, 128  ;;  %4089 = vst [vmem:[%s6786_s15 + $0x48] sm:$0xff] %v3889_v13   ;;  %v4315_v22 = vpop.f32.mrb[80].mxu1  ;;  %v7776_v61 = vld [vmem:[#allocation31_spill] sm:$0xff]  ;;  %v1918_v15 = vmul.f32 %v1854_v54, %v6820_v57  ;;  %v2929_v44 = vmul.f32 %v6860_v33, %v2865_v6  ;;  %v2898_v6 = vmul.f32 %v6875_v12, %v7712_v43 }
 0x3b8   : > { %v2895_v19 = vmul.f32 %v4776_v1, %v7776_v61  ;;  %v4316_v7 = vpop.f32.mrb[81].mxu1  ;;  %v7777_v58 = vld [vmem:[#allocation55_spill] sm:$0xff]  ;;  %v7781_v1 = vld [vmem:[#allocation81_spill] sm:$0xff]  ;;  %v4526_v10 = vpack.i.bf16 %v1948_v38, %v1932_v28 }
 0x3b9   : > { %v1886_v11 = vmul.f32 %v7777_v58, %v6818_v63  ;;  %v7779_v2 = vld [vmem:[#allocation127_spill] sm:$0xff]  ;;  %v4317_v21 = vadd.f32 %v4316_v7, %v4315_v22  ;;  %v4318_v39 = vpop.f32.mrb[82].mxu1  ;;  %v1902_v55 = vmul.f32 %v1838_v40, %v7781_v1  ;;  %v7782_v61 = vld [vmem:[#allocation105_spill] sm:$0xff] }
 0x3ba   : > { %v7780_v13 = vpack.i.bf16 %v7778_v4, %v7779_v2  ;;  %v4319_v42 = vpop.f32.mrb[83].mxu1  ;;  %v2959_v58 = vadd.f32 %v2927_v46, %v2895_v19  ;;  %v7783_v54 = vld [vmem:[#allocation111_spill] sm:$0xff]  ;;  %v7785_v2 = vld [vmem:[#allocation25_spill] sm:$0xff] }
 0x3bb   : > { %v2802_v0 = vpop.permute.xlu1 %2801  ;;  %v2867_v57 = vsel %vm6004_vm0, %v7783_v54, %v6924_v59  ;;  %v4320_v22 = vadd.f32 %v4319_v42, %v4318_v39  ;;  %v7784_v7 = vld [vmem:[#allocation83_spill] sm:$0xff]  ;;  %v1950_v38 = vadd.f32 %v1918_v15, %v1886_v11  ;;  %v7033_v42 = vpop.permute.xlu0 %2827  ;;  %v7787_v39 = vld [vmem:[#allocation114_spill] sm:$0xff] }
 0x3bc   : > { %4525 = vxpose.xlu0.b32.cont [13/16] %v7780_v13, 128  ;;  %v2864_v23 = vsel %vm6004_vm0, %v7782_v61, %v2802_v0  ;;  %v1870_v40 = vmul.f32 %v7785_v2, %v7784_v7  ;;  %v7786_v13 = vld [vmem:[#allocation35_spill] sm:$0xff] }
 0x3bd   : > { %v2928_v4 = vmul.f32 %v6844_v31, %v2864_v23  ;;  %v2897_v33 = vmul.f32 %v6855_v5, %v7786_v13  ;;  %v3894_v28 = vpack.c.bf16 %v4320_v22, %v4317_v21  ;;  %v4777_v1 = vld [vmem:[#allocation11 + $0x20] sm:$0xff]  ;;  %v2991_v5 = vmul.f32 0.088388346, %v2959_v58  ;;  %v7788_v23 = vld [vmem:[#allocation116_spill] sm:$0xff] }
 0x3be   : > { %v1934_v0 = vadd.f32 %v1902_v55, %v1870_v40  ;;  %v2931_v31 = vmul.f32 %v4777_v1, %v2867_v57  ;;  %v2869_v43 = vsel %vm6004_vm0, %v7788_v23, %v6934_v20  ;;  %v4778_v15 = vld [vmem:[#allocation10 + $0x20] sm:$0xff]  ;;  %v2900_v55 = vmul.f32 %v6894_v41, %v7713_v18  ;;  %v7791_v22 = vld [vmem:[#allocation64_spill] sm:$0xff] }
 0x3bf   : > { %v2960_v46 = vadd.f32 %v2928_v4, %v2896_v52  ;;  %v2806_v19 = vpop.permute.xlu1 %2805  ;;  %v2961_v59 = vadd.f32 %v2929_v44, %v2897_v33  ;;  %4090 = vst [vmem:[%s6786_s15 + $0x50] sm:$0xff] %v3894_v28   ;;  %v4321_v11 = vpop.f32.mrb[84].mxu1  ;;  %v7789_v21 = vld [vmem:[#allocation39_spill] sm:$0xff]  ;;  %v7790_v4 = vld [vmem:[#allocation24_spill] sm:$0xff]  ;;  %v4779_v33 = vld [vmem:[#allocation11 + $0x30] sm:$0xff] }
 0x3c0   : > { %4527 = vxpose.xlu0.b32.cont [14/16] %v4526_v10, 128  ;;  %v2866_v61 = vsel %vm6004_vm0, %v7787_v39, %v2806_v19  ;;  %v2899_v57 = vmul.f32 %v4778_v15, %v7789_v21  ;;  %v4322_v44 = vpop.f32.mrb[85].mxu1  ;;  %v7792_v7 = vpack.i.bf16 %v7790_v4, %v7791_v22  ;;  %v4530_v20 = vpack.i.bf16 %v1950_v38, %v1934_v0  ;;  %v7793_v19 = vld [vmem:[#allocation122_spill] sm:$0xff]  ;;  %v7794_v28 = vld [vmem:[#allocation121_spill] sm:$0xff] }
 0x3c1   : > { %v2992_v12 = vmul.f32 0.088388346, %v2960_v46  ;;  %v2930_v52 = vmul.f32 %v6879_v51, %v2866_v61  ;;  %v4323_v2 = vadd.f32 %v4322_v44, %v4321_v11  ;;  %v4324_v51 = vpop.f32.mrb[86].mxu1  ;;  %v2993_v40 = vmul.f32 0.088388346, %v2961_v59  ;;  %v4780_v59 = vld [vmem:[#allocation10 + $0x30] sm:$0xff]  ;;  %v7060_v61 = vpop.permute.xlu0 %2831 }
 0x3c2   : > { %v2963_v13 = vadd.f32 %v2931_v31, %v2899_v57  ;;  %v2933_v46 = vmul.f32 %v4779_v33, %v2869_v43  ;;  %v4325_v41 = vpop.f32.mrb[87].mxu1  ;;  %v7795_v31 = vld [vmem:[#allocation43_spill] sm:$0xff]  ;;  %v7797_v44 = vld [vmem:[#allocation129_spill] sm:$0xff] }
 0x3c3   : > { %v4004_v10 = vpack.c.bf16 %v2992_v12, %v2991_v5  ;;  %v2962_v58 = vadd.f32 %v2930_v52, %v2898_v6  ;;  %v2810_v54 = vpop.permute.xlu1 %2809  ;;  %v2871_v6 = vsel %vm6004_vm0, %v7794_v28, %v6955_v14  ;;  %v4326_v0 = vadd.f32 %v4325_v41, %v4324_v51  ;;  %v4781_v11 = vld [vmem:[#allocation11 + $0x40] sm:$0xff] }
 0x3c4   : > { %4529 = vxpose.xlu0.b32.cont [15/16] %v7792_v7, 128  ;;  %v2868_v18 = vsel %vm6004_vm0, %v7793_v19, %v2810_v54  ;;  %v2901_v39 = vmul.f32 %v4780_v59, %v7795_v31  ;;  %v2902_v14 = vmul.f32 %v6916_v27, %v7715_v49  ;;  %v2935_v15 = vmul.f32 %v4781_v11, %v2871_v6  ;;  %v4782_v49 = vld [vmem:[#allocation10 + $0x40] sm:$0xff]  ;;  %v7798_v27 = vld [vmem:[#allocation48_spill] sm:$0xff]  ;;  %v7801_v59 = vld [vmem:[#allocation54_spill] sm:$0xff] }
 0x3c5   : > { %4111 = vst [vmem:[%s6056_s13 + $0x80] sm:$0xff] %v4004_v10   ;;  %v2994_v1 = vmul.f32 0.088388346, %v2962_v58  ;;  %v2932_v38 = vmul.f32 %v6898_v60, %v2868_v18  ;;  %v3899_v12 = vpack.c.bf16 %v4326_v0, %v4323_v2  ;;  %v7796_v60 = vld [vmem:[#allocation44_spill] sm:$0xff]  ;;  %v2995_v57 = vmul.f32 0.088388346, %v2963_v13 }
 0x3c6   : > { %v2965_v52 = vadd.f32 %v2933_v46, %v2901_v39  ;;  %v2873_v10 = vsel %vm6004_vm0, %v7797_v44, %v6980_v34  ;;  %v2903_v4 = vmul.f32 %v4782_v49, %v7798_v27  ;;  %v2904_v7 = vmul.f32 %v6940_v25, %v7717_v30  ;;  %v4783_v46 = vld [vmem:[#allocation11 + $0x50] sm:$0xff]  ;;  %v7799_v18 = vld [vmem:[#allocation47_spill] sm:$0xff]  ;;  %v7800_v6 = vld [vmem:[#allocation132_spill] sm:$0xff] }
 0x3c7   : > { %v4009_v5 = vpack.c.bf16 %v2994_v1, %v2993_v40  ;;  %v2964_v23 = vadd.f32 %v2932_v38, %v2900_v55  ;;  %v2814_v43 = vpop.permute.xlu1 %2813  ;;  %4091 = vst [vmem:[%s6786_s15 + $0x58] sm:$0xff] %v3899_v12   ;;  %v4327_v54 = vpop.f32.mrb[88].mxu1  ;;  %v2937_v19 = vmul.f32 %v4783_v46, %v2873_v10  ;;  %v2875_v30 = vsel %vm6004_vm0, %v7800_v6, %v7007_v45  ;;  %v4784_v0 = vld [vmem:[#allocation10 + $0x50] sm:$0xff]  ;;  %v4785_v12 = vld [vmem:[#allocation10 + $0x58] sm:$0xff]  ;;  %v4786_v11 = vld [vmem:[#allocation11 + $0x60] sm:$0xff] }
 0x3c8   : > { %4531 = vxpose.xlu0.b32.end [16/16] %v4530_v20, 128  ;;  %v2870_v21 = vsel %vm6004_vm0, %v7796_v60, %v2814_v43  ;;  %v4328_v22 = vpop.f32.mrb[89].mxu1  ;;  %v2997_v34 = vmul.f32 0.088388346, %v2965_v52  ;;  %v2967_v33 = vadd.f32 %v2935_v15, %v2903_v4  ;;  %v2905_v31 = vmul.f32 %v4784_v0, %v7801_v59  ;;  %v7802_v15 = vld [vmem:[#allocation138_spill] sm:$0xff]  ;;  %v4790_v46 = vld [vmem:[#allocation11 + $0x70] sm:$0xff]  ;;  %v7807_v6 = vld [vmem:[#allocation68_spill] sm:$0xff] }
 0x3c9   : > { %4112 = vst [vmem:[%s6056_s13 + $0x88] sm:$0xff] %v4009_v5   ;;  %v2996_v55 = vmul.f32 0.088388346, %v2964_v23  ;;  %v2934_v58 = vmul.f32 %v6920_v47, %v2870_v21  ;;  %v4329_v40 = vadd.f32 %v4328_v22, %v4327_v54  ;;  %v4330_v13 = vpop.f32.mrb[90].mxu1  ;;  %v7077_v47 = vpop.permute.xlu0 %2835  ;;  %v2939_v45 = vmul.f32 %v4786_v11, %v2875_v30  ;;  %v7803_v21 = vld [vmem:[#allocation66_spill] sm:$0xff]  ;;  %v7804_v54 = vld [vmem:[#allocation57_spill] sm:$0xff] }
 0x3ca   : > { %v4331_v28 = vpop.f32.mrb[91].mxu1  ;;  %v2969_v52 = vadd.f32 %v2937_v19, %v2905_v31  ;;  %v2999_v60 = vmul.f32 0.088388346, %v2967_v33  ;;  %v4787_v10 = vld [vmem:[#allocation11 + $0x58] sm:$0xff]  ;;  %v4789_v22 = vld [vmem:[#allocation10 + $0x68] sm:$0xff]  ;;  %v2879_v30 = vsel %vm6004_vm0, %v7807_v6, %v7060_v61  ;;  %v4792_v59 = vld [vmem:[#allocation10 + $0x70] sm:$0xff] }
 0x3cb   : > { %v4014_v20 = vpack.c.bf16 %v2996_v55, %v2995_v57  ;;  %v2966_v2 = vadd.f32 %v2934_v58, %v2902_v14  ;;  %v2818_v51 = vpop.permute.xlu1 %2817  ;;  %v4332_v38 = vadd.f32 %v4331_v28, %v4330_v13  ;;  %v2906_v14 = vmul.f32 %v4785_v12, %v7718_v36  ;;  %v4788_v36 = vld [vmem:[#allocation10 + $0x60] sm:$0xff] }
 0x3cc   : > { %v2872_v41 = vsel %vm6004_vm0, %v7799_v18, %v2818_v51  ;;  %v2877_v57 = vsel %vm6004_vm0, %v7803_v21, %v7033_v42  ;;  %v2907_v49 = vmul.f32 %v4788_v36, %v7804_v54  ;;  %v7806_v18 = vld [vmem:[#allocation144_spill] sm:$0xff]  ;;  %v7808_v31 = vld [vmem:[#allocation59_spill] sm:$0xff] }
 0x3cd   : > { %4113 = vst [vmem:[%s6056_s13 + $0x90] sm:$0xff] %v4014_v20   ;;  %v2998_v25 = vmul.f32 0.088388346, %v2966_v2  ;;  %v2936_v1 = vmul.f32 %v6944_v9, %v2872_v41  ;;  %v3904_v43 = vpack.c.bf16 %v4332_v38, %v4329_v40  ;;  %v7100_v27 = vpop.permute.xlu0 %2839  ;;  %v2941_v19 = vmul.f32 %v4790_v46, %v2877_v57  ;;  %v7811_v57 = vld [vmem:[#allocation134_spill] sm:$0xff] }
 0x3ce   : > { %v2971_v33 = vadd.f32 %v2939_v45, %v2907_v49  ;;  %v4796_v49 = vld [vmem:[#allocation10 + $0x80] sm:$0xff] }
 0x3cf   : > { %v4019_v39 = vpack.c.bf16 %v2998_v25, %v2997_v34  ;;  %v2968_v5 = vadd.f32 %v2936_v1, %v2904_v7  ;;  %v2822_v23 = vpop.permute.xlu1 %2821  ;;  %4092 = vst [vmem:[%s6786_s15 + $0x60] sm:$0xff] %v3904_v43   ;;  %v4333_v58 = vpop.f32.mrb[92].mxu1  ;;  %v7805_v7 = vld [vmem:[#allocation58_spill] sm:$0xff]  ;;  %v3001_v34 = vmul.f32 0.088388346, %v2969_v52  ;;  %v4791_v1 = vld [vmem:[#allocation11 + $0x68] sm:$0xff] }
 0x3d0   : > { %v2874_v9 = vsel %vm6004_vm0, %v7802_v15, %v2822_v23  ;;  %v4334_v4 = vpop.f32.mrb[93].mxu1  ;;  %v2908_v20 = vmul.f32 %v4789_v22, %v7805_v7  ;;  %v7809_v52 = vld [vmem:[#allocation60_spill] sm:$0xff]  ;;  %v4794_v15 = vld [vmem:[#allocation11 + $0x80] sm:$0xff]  ;;  %v3003_v21 = vmul.f32 0.088388346, %v2971_v33 }
 0x3d1   : > { %4114 = vst [vmem:[%s6056_s13 + $0x98] sm:$0xff] %v4019_v39   ;;  %v3000_v44 = vmul.f32 0.088388346, %v2968_v5  ;;  %v2938_v55 = vmul.f32 %v4787_v10, %v2874_v9  ;;  %v4335_v42 = vadd.f32 %v4334_v4, %v4333_v58  ;;  %v4336_v13 = vpop.f32.mrb[94].mxu1  ;;  %v2909_v39 = vmul.f32 %v4792_v59, %v7808_v31  ;;  %v7810_v9 = vld [vmem:[#allocation99_spill] sm:$0xff]  ;;  %v7120_v10 = vpop.permute.xlu0 %2843  ;;  %v4795_v58 = vld [vmem:[#allocation11 + $0x78] sm:$0xff] }
 0x3d2   : > { %v4337_v28 = vpop.f32.mrb[95].mxu1  ;;  %v2943_v61 = vmul.f32 %v4794_v15, %v2879_v30  ;;  %v7812_v4 = vld [vmem:[#allocation61_spill] sm:$0xff]  ;;  %v7815_v30 = vld [vmem:[#allocation136_spill] sm:$0xff] }
 0x3d3   : > { %v4024_v2 = vpack.c.bf16 %v3000_v44, %v2999_v60  ;;  %v2970_v51 = vadd.f32 %v2938_v55, %v2906_v14  ;;  %v2826_v40 = vpop.permute.xlu1 %2825  ;;  %v4338_v0 = vadd.f32 %v4337_v28, %v4336_v13  ;;  %v4793_v14 = vld [vmem:[#allocation10 + $0x78] sm:$0xff]  ;;  %v2973_v45 = vadd.f32 %v2941_v19, %v2909_v39  ;;  %v4798_v19 = vld [vmem:[#allocation11 + $0x90] sm:$0xff]  ;;  %v7816_v39 = vld [vmem:[#allocation63_spill] sm:$0xff] }
 0x3d4   : > { %v2876_v41 = vsel %vm6004_vm0, %v7806_v18, %v2826_v40  ;;  %v2910_v11 = vmul.f32 %v4793_v14, %v7809_v52  ;;  %v2881_v44 = vsel %vm6004_vm0, %v7811_v57, %v7077_v47  ;;  %v2911_v22 = vmul.f32 %v4796_v49, %v7812_v4  ;;  %v4800_v31 = vld [vmem:[#allocation10 + $0x90] sm:$0xff]  ;;  %v4804_v4 = vld [vmem:[#allocation10 + $0xa0] sm:$0xff] }
 0x3d5   : > { %4115 = vst [vmem:[%s6056_s13 + $0xa0] sm:$0xff] %v4024_v2   ;;  %v3002_v25 = vmul.f32 0.088388346, %v2970_v51  ;;  %v2940_v38 = vmul.f32 %v4791_v1, %v2876_v41  ;;  %v3909_v12 = vpack.c.bf16 %v4338_v0, %v4335_v42  ;;  %v7813_v2 = vld [vmem:[#allocation62_spill] sm:$0xff]  ;;  %v3005_v33 = vmul.f32 0.088388346, %v2973_v45 }
 0x3d6   : > { %v2975_v46 = vadd.f32 %v2943_v61, %v2911_v22  ;;  %v2945_v18 = vmul.f32 %v4798_v19, %v2881_v44  ;;  %v7814_v41 = vld [vmem:[#allocation26_spill] sm:$0xff]  ;;  %v7817_v45 = vld [vmem:[#allocation65_spill] sm:$0xff]  ;;  %v7819_v44 = vld [vmem:[#allocation52_spill] sm:$0xff] }
 0x3d7   : > { %v4029_v5 = vpack.c.bf16 %v3002_v25, %v3001_v34  ;;  %v2972_v23 = vadd.f32 %v2940_v38, %v2908_v20  ;;  %v2830_v43 = vpop.permute.xlu1 %2829  ;;  %4093 = vst [vmem:[%s6786_s15 + $0x68] sm:$0xff] %v3909_v12   ;;  %v4339_v54 = vpop.f32.mrb[96].mxu1  ;;  %v4797_v20 = vld [vmem:[#allocation10 + $0x88] sm:$0xff]  ;;  %v2883_v25 = vsel %vm6004_vm0, %v7815_v30, %v7100_v27  ;;  %v4802_v27 = vld [vmem:[#allocation11 + $0xa0] sm:$0xff] }
 0x3d8   : > { %v2878_v60 = vsel %vm6004_vm0, %v7810_v9, %v2830_v43  ;;  %v4340_v7 = vpop.f32.mrb[97].mxu1  ;;  %v2912_v51 = vmul.f32 %v4797_v20, %v7813_v2  ;;  %v4799_v38 = vld [vmem:[#allocation11 + $0x88] sm:$0xff]  ;;  %v2947_v9 = vmul.f32 %v4802_v27, %v2883_v25  ;;  %v3007_v57 = vmul.f32 0.088388346, %v2975_v46  ;;  %v7820_v22 = vld [vmem:[#allocation67_spill] sm:$0xff]  ;;  %v7821_v2 = vld [vmem:[#allocation69_spill] sm:$0xff] }
 0x3d9   : > { %4116 = vst [vmem:[%s6056_s13 + $0xa8] sm:$0xff] %v4029_v5   ;;  %v3004_v55 = vmul.f32 0.088388346, %v2972_v23  ;;  %v2942_v36 = vmul.f32 %v4795_v58, %v2878_v60  ;;  %v4341_v47 = vadd.f32 %v4340_v7, %v4339_v54  ;;  %v4342_v34 = vpop.f32.mrb[98].mxu1  ;;  %v2913_v5 = vmul.f32 %v4800_v31, %v7816_v39  ;;  %v2848_v23 = vpop.permute.xlu0 %2847  ;;  %v7818_v60 = vld [vmem:[#allocation103_spill] sm:$0xff]  ;;  %v4805_v46 = vld [vmem:[#allocation11 + $0xb0] sm:$0xff] }
 0x3da   : > { %v4343_v6 = vpop.f32.mrb[99].mxu1  ;;  %v2915_v7 = vmul.f32 %v4804_v4, %v7820_v22 }
 0x3db   : > { %v4034_v40 = vpack.c.bf16 %v3004_v55, %v3003_v21  ;;  %v2974_v42 = vadd.f32 %v2942_v36, %v2910_v11  ;;  %v2834_v13 = vpop.permute.xlu1 %2833  ;;  %v4344_v59 = vadd.f32 %v4343_v6, %v4342_v34  ;;  %v4801_v11 = vld [vmem:[#allocation10 + $0x98] sm:$0xff]  ;;  %v2977_v61 = vadd.f32 %v2945_v18, %v2913_v5  ;;  %v7823_v6 = vld [vmem:[#allocation141_spill] sm:$0xff] }
 0x3dc   : > { %v2880_v28 = vsel %vm6004_vm0, %v7814_v41, %v2834_v13  ;;  %v2914_v15 = vmul.f32 %v4801_v11, %v7817_v45  ;;  %v2885_v55 = vsel %vm6004_vm0, %v7819_v44, %v7120_v10  ;;  %v4803_v36 = vld [vmem:[#allocation11 + $0x98] sm:$0xff]  ;;  %v2887_v30 = vsel %vm6004_vm0, %v7823_v6, %v2848_v23  ;;  %v4807_v11 = vld [vmem:[#allocation11 + $0xc0] sm:$0xff]  ;;  %v7826_v45 = vld [vmem:[#allocation101_spill] sm:$0xff] }
 0x3dd   : > { %4117 = vst [vmem:[%s6056_s13 + $0xb0] sm:$0xff] %v4034_v40   ;;  %v3006_v1 = vmul.f32 0.088388346, %v2974_v42  ;;  %v2944_v0 = vmul.f32 %v4799_v38, %v2880_v28  ;;  %v3914_v52 = vpack.c.bf16 %v4344_v59, %v4341_v47  ;;  %v3009_v10 = vmul.f32 0.088388346, %v2977_v61  ;;  %v7822_v18 = vld [vmem:[#allocation102_spill] sm:$0xff]  ;;  %v2852_v25 = vpop.permute.xlu0 %2851 }
 0x3de   : > { %v2949_v19 = vmul.f32 %v4805_v46, %v2885_v55  ;;  %v7824_v59 = vld [vmem:[#allocation71_spill] sm:$0xff]  ;;  %v2951_v23 = vmul.f32 %v4807_v11, %v2887_v30  ;;  %v7828_v44 = vld [vmem:[#allocation86_spill] sm:$0xff] }
 0x3df   : > { %v4039_v43 = vpack.c.bf16 %v3006_v1, %v3005_v33  ;;  %v2976_v12 = vadd.f32 %v2944_v0, %v2912_v51  ;;  %v2838_v14 = vpop.permute.xlu1 %2837  ;;  %4094 = vst [vmem:[%s6786_s15 + $0x70] sm:$0xff] %v3914_v52   ;;  %v4345_v49 = vpop.f32.mrb[100].mxu1  ;;  %v2916_v51 = vmul.f32 %v7821_v2, %v6682_v62  ;;  %v2979_v33 = vadd.f32 %v2947_v9, %v2915_v7  ;;  %v4806_v0 = vld [vmem:[#allocation10 + $0xb0] sm:$0xff]  ;;  %v7830_v7 = vld [vmem:[#allocation96_spill] sm:$0xff] }
 0x3e0   : > { %v2882_v21 = vsel %vm6004_vm0, %v7818_v60, %v2838_v14  ;;  %v4346_v20 = vpop.f32.mrb[101].mxu1  ;;  %v2917_v31 = vmul.f32 %v4806_v0, %v7824_v59  ;;  %v7825_v14 = vld [vmem:[#allocation74_spill] sm:$0xff]  ;;  %v4808_v60 = vld [vmem:[#allocation10 + $0xc0] sm:$0xff]  ;;  %v4809_v2 = vld [vmem:[#allocation11 + $0xd0] sm:$0xff] }
 0x3e1   : > { %4118 = vst [vmem:[%s6056_s13 + $0xb8] sm:$0xff] %v4039_v43   ;;  %v3008_v58 = vmul.f32 0.088388346, %v2976_v12  ;;  %v2946_v54 = vmul.f32 %v4803_v36, %v2882_v21  ;;  %v4347_v47 = vadd.f32 %v4346_v20, %v4345_v49  ;;  %v4348_v34 = vpop.f32.mrb[102].mxu1  ;;  %v2918_v52 = vmul.f32 %v7825_v14, %v6706_v37  ;;  %v7827_v21 = vld [vmem:[#allocation77_spill] sm:$0xff]  ;;  %v2856_v55 = vpop.permute.xlu0 %2855  ;;  %v7829_v49 = vld [vmem:[#allocation80_spill] sm:$0xff] }
 0x3e2   : > { %v4349_v28 = vpop.f32.mrb[103].mxu1  ;;  %v3011_v61 = vmul.f32 0.088388346, %v2979_v33  ;;  %v2889_v37 = vsel %vm6004_vm0, %v7828_v44, %v2852_v25  ;;  %v2920_v4 = vmul.f32 %v7829_v49, %v6733_v35  ;;  %v4811_v25 = vld [vmem:[#allocation11 + $0xe0] sm:$0xff] }
 0x3e3   : > { %v4044_v40 = vpack.c.bf16 %v3008_v58, %v3007_v57  ;;  %v2978_v42 = vadd.f32 %v2946_v54, %v2914_v15  ;;  %v2842_v13 = vpop.permute.xlu1 %2841  ;;  %v4350_v38 = vadd.f32 %v4349_v28, %v4348_v34  ;;  %v2919_v57 = vmul.f32 %v4808_v60, %v7827_v21  ;;  %v4810_v34 = vld [vmem:[#allocation10 + $0xd0] sm:$0xff]  ;;  %v4812_v0 = vld [vmem:[#allocation10 + $0xe0] sm:$0xff] }
 0x3e4   : > { %v2884_v41 = vsel %vm6004_vm0, %v7822_v18, %v2842_v13  ;;  %v7831_v13 = vld [vmem:[#allocation145_spill] sm:$0xff]  ;;  %v2922_v18 = vmul.f32 %v7730_v48, %v6759_v32  ;;  %v7835_v59 = vld [vmem:[#allocation91_spill] sm:$0xff] }
 0x3e5   : > { %4119 = vst [vmem:[%s6056_s13 + $0xc0] sm:$0xff] %v4044_v40   ;;  %v3010_v62 = vmul.f32 0.088388346, %v2978_v42  ;;  %v2948_v1 = vmul.f32 %v2884_v41, %v6684_v56  ;;  %v3919_v12 = vpack.c.bf16 %v4350_v38, %v4347_v47  ;;  %v2981_v56 = vadd.f32 %v2949_v19, %v2917_v31  ;;  %v7833_v28 = vld [vmem:[#allocation109_spill] sm:$0xff] }
 0x3e6   : > { %v2983_v22 = vadd.f32 %v2951_v23, %v2919_v57  ;;  %v2891_v47 = vsel %vm6004_vm0, %v7831_v13, %v2856_v55  ;;  %v2923_v31 = vmul.f32 %v4812_v0, %v7835_v59 }
 0x3e7   : > { %v4049_v39 = vpack.c.bf16 %v3010_v62, %v3009_v10  ;;  %v2980_v5 = vadd.f32 %v2948_v1, %v2916_v51  ;;  %v2846_v43 = vpop.permute.xlu1 %2845  ;;  %4095 = vst [vmem:[%s6786_s15 + $0x78] sm:$0xff] %v3919_v12   ;;  %v3013_v20 = vmul.f32 0.088388346, %v2981_v56  ;;  %v2953_v51 = vmul.f32 %v4809_v2, %v2889_v37  ;;  %v7832_v10 = vld [vmem:[#allocation84_spill] sm:$0xff]  ;;  %v7837_v56 = vld [vmem:[#allocation30_spill] sm:$0xff]  ;;  %s5153_s15 = smov [#allocation14]  }
 0x3e8   : > { %v2886_v15 = vsel %vm6004_vm0, %v7826_v45, %v2846_v43  ;;  %v2921_v35 = vmul.f32 %v4810_v34, %v7832_v10  ;;  %v3015_v41 = vmul.f32 0.088388346, %v2983_v22  ;;  %v2955_v62 = vmul.f32 %v4811_v25, %v2891_v47  ;;  %s4989_s0 = sshll.u32 %s5153_s15, 4  ;;  %s4990_s0 = int_to_ptr.vmem [resolvable:$false] %s4989_s0 }
 0x3e9   : > { %4120 = vst [vmem:[%s6056_s13 + $0xc8] sm:$0xff] %v4049_v39   ;;  %v3012_v27 = vmul.f32 0.088388346, %v2980_v5  ;;  %v2950_v9 = vmul.f32 %v2886_v15, %v6708_v3  ;;  %v2924_v5 = vmul.f32 %v7707_v29, %v6789_v50  ;;  %v7836_v29 = vld [vmem:[#allocation100_spill] sm:$0xff]  ;;  %s4991_s2 = scalar_lea.vmem %s4990_s0, 4096  ;;  %p4992_p7 = scmp.lt.s32.totalorder %s7235_s14, %s4990_s0 }
 0x3ea   : > { %v2985_v30 = vadd.f32 %v2953_v51, %v2921_v35  ;;  %v2987_v14 = vadd.f32 %v2955_v62, %v2923_v31  ;;  %v2926_v50 = vmul.f32 %v7836_v29, %v6818_v63  ;;  %p4993_p9 = scmp.lt.s32.totalorder %s4991_s2, %s4985_s20 }
 0x3eb   : > { %v4054_v58 = vpack.c.bf16 %v3012_v27, %v3011_v61  ;;  %v2982_v36 = vadd.f32 %v2950_v9, %v2918_v52  ;;  %v2850_v54 = vpop.permute.xlu1 %2849 }
 0x3ec   : > { %v2888_v3 = vsel %vm6004_vm0, %v7830_v7, %v2850_v54  ;;  %v3017_v12 = vmul.f32 0.088388346, %v2985_v30  ;;  %v3019_v61 = vmul.f32 0.088388346, %v2987_v14  ;;  %p4994_p10 = por %p4993_p9, %p4992_p7 }
 0x3ed   : > { %4121 = vst [vmem:[%s6056_s13 + $0xd0] sm:$0xff] %v4054_v58   ;;  %v3014_v40 = vmul.f32 0.088388346, %v2982_v36  ;;  %v2952_v42 = vmul.f32 %v2888_v3, %v6735_v24  ;;  %v7834_v24 = vld [vmem:[#allocation98_spill] sm:$0xff] }
 0x3ee   : > { %p4995_p1 = pnand %p4994_p10, %p4988_p3 }
 0x3ef   : > { %v4059_v33 = vpack.c.bf16 %v3014_v40, %v3013_v20  ;;  %v2984_v46 = vadd.f32 %v2952_v42, %v2920_v4  ;;  %v2854_v19 = vpop.permute.xlu1 %2853 }
 0x3f0   : > { %v2890_v6 = vsel %vm6004_vm0, %v7833_v28, %v2854_v19 }
 0x3f1   : > { %2859 = vrot.lane.b32.xlu0 %v7834_v24, %s5152_s12  ;;  %4122 = vst [vmem:[%s6056_s13 + $0xd8] sm:$0xff] %v4059_v33   ;;  %v3016_v1 = vmul.f32 0.088388346, %v2984_v46  ;;  %v2954_v38 = vmul.f32 %v2890_v6, %v6761_v16  ;;  %s7839_s12 = sld [smem:[#allocation151_spill]] }
 0x3f3   : > { %v4064_v32 = vpack.c.bf16 %v3016_v1, %v3015_v41  ;;  %v2986_v48 = vadd.f32 %v2954_v38, %v2922_v18  ;;  %v2858_v39 = vpop.permute.xlu1 %2857 }
 0x3f4   : > { %v2892_v43 = vsel %vm6004_vm0, %v6974_v53, %v2858_v39 }
 0x3f5   : > { %4123 = vst [vmem:[%s6056_s13 + $0xe0] sm:$0xff] %v4064_v32   ;;  %v3018_v52 = vmul.f32 0.088388346, %v2986_v48  ;;  %v2956_v16 = vmul.f32 %v2892_v43, %v6795_v17 }
 0x3f7   : > { %v4069_v11 = vpack.c.bf16 %v3018_v52, %v3017_v12  ;;  %v2988_v23 = vadd.f32 %v2956_v16, %v2924_v5  ;;  %v2862_v45 = vpop.permute.xlu1 %2861  ;;  %s7240_s6 = scalar_lea.hbm %s7839_s12, %s3839_s26 }
 0x3f8   : > { %v2894_v15 = vsel %vm6004_vm0, %v6989_v8, %v2862_v45 }
 0x3f9   : > { %4124 = vst [vmem:[%s6056_s13 + $0xe8] sm:$0xff] %v4069_v11   ;;  %v3020_v53 = vmul.f32 0.088388346, %v2988_v23  ;;  %v2958_v27 = vmul.f32 %v2894_v15, %v7837_v56 }
 0x3fb   : > { %v4074_v9 = vpack.c.bf16 %v3020_v53, %v3019_v61  ;;  %v7204_v60 = vadd.f32 %v2958_v27, %v2926_v50 }
 0x3fd   : > { %4125 = vst [vmem:[%s6056_s13 + $0xf0] sm:$0xff] %v4074_v9  }
 0x40c   : > { %v4532_v17 = vpop.trf.xlu0 }
 0x40d   : > { %v4536_v21 = vunpack.i.h.bf16 %v4532_v17  ;;  %v4533_v57 = vunpack.i.l.bf16 %v4532_v17 }
 0x40f   : > { %v3726_v44 = vpack.c.bf16 %v4536_v21, %v4533_v57 }
 0x410   : > { %v4537_v37 = vpop.trf.xlu0 }
 0x411   : > { %2111 = vst [vmem:[%s7209_s24] sm:$0xff] %v3726_v44  ;;  %v4541_v63 = vunpack.i.h.bf16 %v4537_v37  ;;  %v4538_v8 = vunpack.i.l.bf16 %v4537_v37 }
 0x413   : > { %v3727_v55 = vpack.c.bf16 %v4541_v63, %v4538_v8 }
 0x414   : > { %v4542_v58 = vpop.trf.xlu0 }
 0x415   : > { %2112 = vst [vmem:[%s7209_s24 + $0x8] sm:$0xff] %v3727_v55  ;;  %v4546_v36 = vunpack.i.h.bf16 %v4542_v58  ;;  %v4543_v54 = vunpack.i.l.bf16 %v4542_v58 }
 0x417   : > { %v3728_v49 = vpack.c.bf16 %v4546_v36, %v4543_v54 }
 0x418   : > { %v4547_v4 = vpop.trf.xlu0 }
 0x419   : > { %2113 = vst [vmem:[%s7209_s24 + $0x10] sm:$0xff] %v3728_v49  ;;  %v4551_v22 = vunpack.i.h.bf16 %v4547_v4  ;;  %v4548_v7 = vunpack.i.l.bf16 %v4547_v4 }
 0x41b   : > { %v3729_v3 = vpack.c.bf16 %v4551_v22, %v4548_v7 }
 0x41c   : > { %v4552_v20 = vpop.trf.xlu0 }
 0x41d   : > { %2114 = vst [vmem:[%s7209_s24 + $0x18] sm:$0xff] %v3729_v3  ;;  %v4556_v2 = vunpack.i.h.bf16 %v4552_v20  ;;  %v4553_v51 = vunpack.i.l.bf16 %v4552_v20 }
 0x41f   : > { %v3730_v40 = vpack.c.bf16 %v4556_v2, %v4553_v51 }
 0x420   : > { %v4557_v42 = vpop.trf.xlu0 }
 0x421   : > { %2115 = vst [vmem:[%s7209_s24 + $0x20] sm:$0xff] %v3730_v40  ;;  %v4561_v13 = vunpack.i.h.bf16 %v4557_v42  ;;  %v4558_v47 = vunpack.i.l.bf16 %v4557_v42 }
 0x423   : > { %v3731_v34 = vpack.c.bf16 %v4561_v13, %v4558_v47 }
 0x424   : > { %v4562_v10 = vpop.trf.xlu0 }
 0x425   : > { %2116 = vst [vmem:[%s7209_s24 + $0x28] sm:$0xff] %v3731_v34  ;;  %v4566_v35 = vunpack.i.h.bf16 %v4562_v10  ;;  %v4563_v33 = vunpack.i.l.bf16 %v4562_v10 }
 0x427   : > { %v3732_v46 = vpack.c.bf16 %v4566_v35, %v4563_v33 }
 0x428   : > { %v4567_v19 = vpop.trf.xlu0 }
 0x429   : > { %2117 = vst [vmem:[%s7209_s24 + $0x30] sm:$0xff] %v3732_v46  ;;  %v4571_v18 = vunpack.i.h.bf16 %v4567_v19  ;;  %v4568_v41 = vunpack.i.l.bf16 %v4567_v19 }
 0x42b   : > { %v3733_v28 = vpack.c.bf16 %v4571_v18, %v4568_v41 }
 0x42c   : > { %v4572_v6 = vpop.trf.xlu0 }
 0x42d   : > { %2118 = vst [vmem:[%s7209_s24 + $0x38] sm:$0xff] %v3733_v28  ;;  %v4576_v30 = vunpack.i.h.bf16 %v4572_v6  ;;  %v4573_v25 = vunpack.i.l.bf16 %v4572_v6 }
 0x42f   : > { %v3734_v62 = vpack.c.bf16 %v4576_v30, %v4573_v25 }
 0x430   : > { %v4577_v1 = vpop.trf.xlu0 }
 0x431   : > { %2119 = vst [vmem:[%s7209_s24 + $0x40] sm:$0xff] %v3734_v62  ;;  %v4581_v38 = vunpack.i.h.bf16 %v4577_v1  ;;  %v4578_v0 = vunpack.i.l.bf16 %v4577_v1 }
 0x433   : > { %v3735_v59 = vpack.c.bf16 %v4581_v38, %v4578_v0 }
 0x434   : > { %v4582_v31 = vpop.trf.xlu0 }
 0x435   : > { %2120 = vst [vmem:[%s7209_s24 + $0x48] sm:$0xff] %v3735_v59  ;;  %v4586_v32 = vunpack.i.h.bf16 %v4582_v31  ;;  %v4583_v48 = vunpack.i.l.bf16 %v4582_v31 }
 0x437   : > { %v3736_v39 = vpack.c.bf16 %v4586_v32, %v4583_v48 }
 0x438   : > { %v4587_v5 = vpop.trf.xlu0 }
 0x439   : > { %2121 = vst [vmem:[%s7209_s24 + $0x50] sm:$0xff] %v3736_v39  ;;  %v4591_v43 = vunpack.i.h.bf16 %v4587_v5  ;;  %v4588_v12 = vunpack.i.l.bf16 %v4587_v5 }
 0x43b   : > { %v3737_v14 = vpack.c.bf16 %v4591_v43, %v4588_v12 }
 0x43c   : > { %v4592_v52 = vpop.trf.xlu0 }
 0x43d   : > { %2122 = vst [vmem:[%s7209_s24 + $0x58] sm:$0xff] %v3737_v14  ;;  %v4596_v16 = vunpack.i.h.bf16 %v4592_v52  ;;  %v4593_v11 = vunpack.i.l.bf16 %v4592_v52 }
 0x43f   : > { %v3738_v23 = vpack.c.bf16 %v4596_v16, %v4593_v11 }
 0x440   : > { %v4597_v45 = vpop.trf.xlu0 }
 0x441   : > { %2123 = vst [vmem:[%s7209_s24 + $0x60] sm:$0xff] %v3738_v23  ;;  %v4601_v15 = vunpack.i.h.bf16 %v4597_v45  ;;  %v4598_v29 = vunpack.i.l.bf16 %v4597_v45 }
 0x443   : > { %v3739_v50 = vpack.c.bf16 %v4601_v15, %v4598_v29 }
 0x444   : > { %v4602_v61 = vpop.trf.xlu0 }
 0x445   : > { %2124 = vst [vmem:[%s7209_s24 + $0x68] sm:$0xff] %v3739_v50  ;;  %v4606_v53 = vunpack.i.h.bf16 %v4602_v61  ;;  %v4603_v56 = vunpack.i.l.bf16 %v4602_v61 }
 0x447   : > { %v3740_v27 = vpack.c.bf16 %v4606_v53, %v4603_v56 }
 0x448   : > { %v4607_v9 = vpop.trf.xlu0 }
 0x449   : > { %2125 = vst [vmem:[%s7209_s24 + $0x70] sm:$0xff] %v3740_v27  ;;  %v4611_v17 = vunpack.i.h.bf16 %v4607_v9  ;;  %v4608_v21 = vunpack.i.l.bf16 %v4607_v9 }
 0x44b   : > { %v3741_v57 = vpack.c.bf16 %v4611_v17, %v4608_v21 }
 0x44d   : > { %2126 = vst [vmem:[%s7209_s24 + $0x78] sm:$0xff] %v3741_v57 }
 0x44e   : > { %4998 = shalt.err (!%p4995_p1)
}
 0x44f   : > { %s4999_s24 = scalar_lea.hbm %s7231_s8, 2048  ;;  %s5003_s11 = scalar_lea.hbm %s7838_s18, 4096 }
 0x450   : > { %p5000_p13 = scmp.ne.s32.totalorder %s7231_s8, %s4999_s24  ;;  %p5004_p5 = scmp.lt.u32.totalorder %s7231_s8, %s7838_s18 }
 0x451   : > { %p5005_p11 = scmp.lt.u32.totalorder %s5003_s11, %s4999_s24  ;;  %p5007_p6 = scmp.lt.u32.totalorder %s4999_s24, %s7231_s8 }
 0x452   : > { %p5001_p2 = pnand %p5000_p13, %p7840_p0 }
 0x453   : > { %p5006_p12 = por %p5005_p11, %p5004_p5 }
 0x454   : > { %p5002_p4 = pneg %p5001_p2 }
 0x455   : > { %p5008_p8 = por %p5007_p6, %p5006_p12 }
 0x457   : > { %p5009_p3 = pnand %p5008_p8, %p5002_p4 }
 0x459   : > { %5012 = shalt.err (!%p5009_p3)
}
 0x45a   : > { %s5154_s2 = smov 128   ;;  %s5155_s20 = smov 8  }
 0x45b   : > { %4390 = dma.vmem_to_hbm [thread:$0]  (%p7840_p0), %s7235_s14, 2048, %s7231_s8, %s7245_s7, %s5154_s2, %s5154_s2, %s5155_s20  }
 0x45c   : > { %s5013_s15 = scalar_lea.vmem %s7242_s16, 2048  ;;  %s5156_s24 = smov [#allocation16]  }
 0x45d   : > { %p5014_p7 = scmp.ne.s32.totalorder %s7242_s16, %s5013_s15  ;;  %s5017_s21 = sshll.u32 %s5156_s24, 4  ;;  %s5018_s21 = int_to_ptr.vmem [resolvable:$false] %s5017_s21 }
 0x45e   : > { %s5019_s26 = scalar_lea.vmem %s5018_s21, 4096  ;;  %p5020_p1 = scmp.lt.s32.totalorder %s7242_s16, %s5018_s21 }
 0x45f   : > { %p5015_p9 = pnand %p5014_p7, %p7840_p0  ;;  %p5021_p13 = scmp.lt.s32.totalorder %s5019_s26, %s5013_s15 }
 0x461   : > { %p5016_p10 = pneg %p5015_p9  ;;  %p5022_p2 = por %p5021_p13, %p5020_p1 }
 0x463   : > { %p5023_p4 = pnand %p5022_p2, %p5016_p10 }
 0x465   : > { %5026 = shalt.err (!%p5023_p4)
}
 0x466   : > { %s5027_s14 = scalar_lea.hbm %s7240_s6, 2048  ;;  %s5031_s1 = scalar_lea.hbm %s7839_s12, 4096 }
 0x467   : > { %p5028_p5 = scmp.ne.s32.totalorder %s7240_s6, %s5027_s14  ;;  %p5032_p6 = scmp.lt.u32.totalorder %s7240_s6, %s7839_s12 }
 0x468   : > { %p5033_p8 = scmp.lt.u32.totalorder %s5031_s1, %s5027_s14  ;;  %p5035_p7 = scmp.lt.u32.totalorder %s5027_s14, %s7240_s6 }
 0x469   : > { %p5029_p11 = pnand %p5028_p5, %p7840_p0 }
 0x46a   : > { %p5034_p3 = por %p5033_p8, %p5032_p6 }
 0x46b   : > { %p5030_p12 = pneg %p5029_p11 }
 0x46c   : > { %p5036_p9 = por %p5035_p7, %p5034_p3 }
 0x46e   : > { %p5037_p10 = pnand %p5036_p9, %p5030_p12 }
 0x470   : > { %5040 = shalt.err (!%p5037_p10)
}
 0x471   : > { %s5157_s20 = smov 64   ;;  %s5158_s15 = smov 4   ;;  %v2860_v44 = vpop.permute.xlu0 %2859  ;;  %v7841_v37 = vld [vmem:[#allocation108_spill] sm:$0xff]  ;;  %v4813_v8 = vld [vmem:[#allocation10 + $0xf0] sm:$0xff]  ;;  %v3022_v49 = vmul.f32 0.088388346, %v7204_v60 }
 0x472   : > { %4391 = dma.vmem_to_hbm [thread:$0]  (%p7840_p0), %s7242_s16, 2048, %s7240_s6, %s7245_s7, %s5157_s20, %s5157_s20, %s5158_s15   ;;  %v2893_v63 = vsel %vm6004_vm0, %v7841_v37, %v2860_v44  ;;  %v2925_v55 = vmul.f32 %v4813_v8, %v7834_v24  ;;  %v4814_v58 = vld [vmem:[#allocation11 + $0xf0] sm:$0xff] }
 0x473   : > { %v2957_v36 = vmul.f32 %v4814_v58, %v2893_v63  ;;  %s3838_s24 = sshll.u32 %s5131_s30, 12  ;;  %s3210_s21 = sshll.u32 %s6056_s13, 4  ;;  %s7306_s21 = int_to_ptr.vmem [resolvable:$true] %s3210_s21 }
 0x474   : > { %s7842_s7 = sld [smem:[#allocation149_spill]]  ;;  %s3185_s14 = scalar_lea.sflag [#allocation4], %s5445_s17 }
 0x475   : > { %v2989_v54 = vadd.f32 %v2957_v36, %v2925_v55  ;;  %s5041_s8 = scalar_lea.vmem %s7306_s21, 4096  ;;  %s5159_s30 = smov [#allocation13]  }
 0x476   : > { %p5042_p1 = scmp.ne.s32.totalorder %s7306_s21, %s5041_s8  ;;  %s5045_s11 = sshll.u32 %s5159_s30, 4  ;;  %s5046_s11 = int_to_ptr.vmem [resolvable:$false] %s5045_s11 }
 0x477   : > { %v3021_v4 = vmul.f32 0.088388346, %v2989_v54  ;;  %s5047_s1 = scalar_lea.vmem %s5046_s11, 8192  ;;  %p5048_p4 = scmp.lt.s32.totalorder %s7306_s21, %s5046_s11 }
 0x478   : > { %p5043_p13 = pnand %p5042_p1, %p7840_p0  ;;  %p5049_p5 = scmp.lt.s32.totalorder %s5047_s1, %s5041_s8 }
 0x479   : > { %v4079_v22 = vpack.c.bf16 %v3022_v49, %v3021_v4 }
 0x47a   : > { %s7304_s26 = scalar_lea.hbm %s7842_s7, %s3838_s24  ;;  %p5044_p2 = pneg %p5043_p13 }
 0x47b   : > { %4126 = vst [vmem:[%s6056_s13 + $0xf8] sm:$0xff] %v4079_v22   ;;  %p5050_p11 = por %p5049_p5, %p5048_p4 }
 0x47d   : > { %p5051_p12 = pnand %p5050_p11, %p5044_p2 }
 0x47f   : > { %5054 = shalt.err (!%p5051_p12)
}
 0x480   : > { %s5055_s13 = scalar_lea.hbm %s7304_s26, 4096  ;;  %s5059_s24 = scalar_lea.hbm %s7842_s7, 8192 }
 0x481   : > { %p5056_p6 = scmp.ne.s32.totalorder %s7304_s26, %s5055_s13  ;;  %p5060_p7 = scmp.lt.u32.totalorder %s7304_s26, %s7842_s7 }
 0x482   : > { %p5061_p9 = scmp.lt.u32.totalorder %s5059_s24, %s5055_s13  ;;  %p5063_p1 = scmp.lt.u32.totalorder %s5055_s13, %s7304_s26 }
 0x483   : > { %p5057_p8 = pnand %p5056_p6, %p7840_p0 }
 0x484   : > { %p5062_p10 = por %p5061_p9, %p5060_p7 }
 0x485   : > { %p5058_p3 = pneg %p5057_p8 }
 0x486   : > { %p5064_p13 = por %p5063_p1, %p5062_p10 }
 0x488   : > { %p5065_p2 = pnand %p5064_p13, %p5058_p3 }
 0x48a   : > { %5068 = shalt.err (!%p5065_p2)
}
 0x48b   : > { %4389 = dma.vmem_to_hbm [thread:$0]  (%p7840_p0), %s7306_s21, 4096, %s7304_s26, %s3185_s14, %s5157_s20, %s5157_s20, %s5158_s15  }
 0x48c PF: > { %s3261_s8 = sand.u32 1, %s5119_s27   ;;  %p7843_p4 = scmp.ne.s32.totalorder %s7505_s25, 0 }
 0x48d   : > { %p7844_p5 = scmp.ge.s32.totalorder %s5139_s10, 2  ;;  %s3262_s30 = scalar_lea.sflag [#allocation4], %s3261_s8 }
 0x48f   : > { %p4416_p11 = pnand %p7844_p5, %p7843_p4 }
 0x491   : > { %5110 = dma.done.wait (!%p4416_p11), %s3262_s30, 4096  }
 0x492   : > { %5112 = vsyncadd (!%p4416_p11), %s3262_s30, 4294963200  ;;  %s7845_s19 = sadd.s32 4294967294, %s5139_s10  }
 0x493   : > { %s3270_s11 = sand.u32 1, %s7845_s19  }
 0x494   : > { %s3271_s1 = scalar_lea.sflag [#allocation15], %s3270_s11 }
 0x495   : > { %5114 = dma.done.wait (!%p4416_p11), %s3271_s1, 4096  }
 0x496   : > { %5116 = vsyncadd (!%p4416_p11), %s3271_s1, 4294963200  ;;  %s31_s10 = sadd.s32 1, %s5139_s10   ;;  %s7846_s27 = smov %s5123_s28 }
 0x497   : > { %p28_p0 = scmp.ge.s32.totalorder %s31_s10, 4   ;;  %s7847_s28 = smov %s5127_s29 }
 0x498   : > { %s7848_s29 = smov %s5390_s22  ;;  %s7849_s30 = smov %s5135_s9 }
 0x499   : > { %s7850_s9 = smov %s7852_s23  ;;  %30 = sbr.rel (!%p28_p0) target bundleno = 18 (0x12), region = 144 }
 0x4a0   :  { %3285 = vsyncpa [#allocation3], 1 }
 0x4a1   :  { %3287 = vsyncpa [#allocation3 + $0x1], 1 }
 0x4a2   :  { %3288 = vsyncpa [#allocation6], 1 }
 0x4a3   :  { %3289 = vsyncpa [#allocation9], 1 }
 0x4a4   :  { %3290 = vsyncpa [#allocation12], 1 }
 0x4a5   :  { %3291 = vsyncpa [#allocation4], 1 }
 0x4a6   :  { %3293 = vsyncpa [#allocation4 + $0x1], 1 }
 0x4a7   :  { %3294 = vsyncpa [#allocation15], 1 }
 0x4a8   :  { %3296 = vsyncpa [#allocation15 + $0x1], 1 }

// kernel: tpu_custom_call.1
= control target key start
LH: loop header
LB: loop body
LE: loop exit
PB: predicated region body
PF: predicated region fallthrough
CT: control target
= control target key end

     0   :  { %s7361_s0 = inlined_call_operand.hbm [shape: bf16[2,256,256], index: 0, kind: input, shape index: {}]   ;;  %s7362_s1 = inlined_call_operand.hbm [shape: bf16[256,256], index: 1, kind: input, shape index: {}]   ;;  %s7363_s2 = inlined_call_operand.hbm [shape: bf16[256,128], index: 2, kind: input, shape index: {}]   ;;  %s7364_s3 = inlined_call_operand.hbm [shape: bf16[256,128], index: 3, kind: input, shape index: {}]   ;;  %s7365_s4 = inlined_call_operand.hbm [shape: f32[256,128], index: 4, kind: input, shape index: {}]   ;;  %s7366_s5 = inlined_call_operand.hbm [shape: f32[256,128], index: 5, kind: input, shape index: {}]   ;;  %s7367_s6 = inlined_call_operand.hbm [shape: bf16[2,1,2,256,128], index: 6, kind: output, shape index: {0}]   ;;  %s7368_s7 = inlined_call_operand.hbm [shape: bf16[2,1,128,256], index: 7, kind: output, shape index: {1}]   ;;  %s7369_s8 = inlined_call_operand.hbm [shape: bf16[2,1,256,128], index: 8, kind: output, shape index: {2}]  }
   0x1   :  { %7488 = sst [smem:[#allocation146_spill]] %s7361_s0 }
   0x2   :  { %7489 = sst [smem:[#allocation147_spill]] %s7362_s1 }
   0x3   :  { %7490 = sst [smem:[#allocation148_spill]] %s7363_s2 }
   0x4   :  { %7491 = sst [smem:[#allocation149_spill]] %s7367_s6 }
   0x5   :  { %7492 = sst [smem:[#allocation150_spill]] %s7368_s7 }
   0x6   :  { %7493 = sst [smem:[#allocation151_spill]] %s7369_s8 }
   0x7   :  { %14 = vsyncpa [#allocation3], 0 }
   0x8   :  { %16 = vsyncpa [#allocation3 + $0x1], 0 }
   0x9   :  { %17 = vsyncpa [#allocation6], 0 }
   0xa   :  { %18 = vsyncpa [#allocation9], 0 }
   0xb   :  { %19 = vsyncpa [#allocation12], 0 }
   0xc   :  { %20 = vsyncpa [#allocation4], 0 }
   0xd   :  { %22 = vsyncpa [#allocation4 + $0x1], 0 }
   0xe   :  { %23 = vsyncpa [#allocation15], 0 }
   0xf   :  { %25 = vsyncpa [#allocation15 + $0x1], 0  ;;  %s5205_s27 = smov 0   ;;  %s5207_s28 = smov 0  }
  0x10   :  { %s5209_s29 = smov 0   ;;  %s5211_s30 = smov 0  }
  0x11   :  { %s5213_s9 = smov 0   ;;  %s5215_s10 = smov 0  }
  0x12 LB: > { %s5236_s11 = sadd.s32 4294967295, %s5139_s10   ;;  %p3454_p0 = scmp.ge.s32.totalorder %s5139_s10, 1  ;;  %s5139_s10 = sphi %s5215_s10, %s31_s10   ;;  %s5135_s9 = sphi %s5213_s9, %s7850_s9   ;;  %s5131_s30 = sphi %s5211_s30, %s7849_s30   ;;  %s5127_s29 = sphi %s5209_s29, %s7848_s29   ;;  %s5123_s28 = sphi %s5207_s28, %s7847_s28   ;;  %s5119_s27 = sphi %s5205_s27, %s7846_s27  }
  0x13   : > { %p7370_p1 = scmp.eq.s32.totalorder %s5236_s11, 0  ;;  %p275_p2 = scmp.lt.s32.totalorder %s5139_s10, 3 }
  0x14   : > { %s5141_s13 = smov [#allocation5]   ;;  %s5142_s16 = smov [#allocation8]  }
  0x15   : > { %p5241_p3 = pnand %p3454_p0, %p275_p2  ;;  %s287_s14 = sshll.u32 %s5141_s13, 4  ;;  %s288_s14 = int_to_ptr.vmem [resolvable:$true] %s287_s14 }
  0x16   : > { %s313_s17 = sshll.u32 %s5142_s16, 4  ;;  %s7496_s1 = sld [smem:[#allocation147_spill]]  ;;  %s314_s17 = int_to_ptr.vmem [resolvable:$true] %s313_s17 }
  0x17   : > { %s7494_s12 = scalar_select %p5241_p3, 1, 0 }
  0x18   : > { %p4395_p4 = pneg %p5241_p3 }
  0x1a   : > { %p5250_p6 = pnand %p4395_p4, %p7370_p1 }
  0x1c   : > { %s4815_s20 = scalar_lea.hbm %s7496_s1, 4096  ;;  %p5262_p8 = pneg %p5250_p6 }
  0x1d   : > { %p4816_p7 = scmp.ne.s32.totalorder %s7496_s1, %s4815_s20  ;;  %p4822_p11 = scmp.lt.u32.totalorder %s4815_s20, %s7496_s1 }
  0x1f   : > { %p4818_p9 = pnand %p5262_p8, %p4816_p7 }
  0x21   : > { %p4819_p10 = pneg %p4818_p9 }
  0x23   : > { %p4824_p12 = pnand %p4822_p11, %p4819_p10 }
  0x25   : > { %4827 = shalt.err (!%p4824_p12)
}
  0x26   : > { %s4828_s26 = scalar_lea.vmem %s288_s14, 4096  ;;  %p4836_p4 = scmp.lt.s32.totalorder %s288_s14, %s288_s14 }
  0x27   : > { %p4829_p13 = scmp.ne.s32.totalorder %s288_s14, %s4828_s26  ;;  %p4837_p5 = scmp.lt.s32.totalorder %s4828_s26, %s4828_s26 }
  0x29   : > { %p4831_p0 = pnand %p4829_p13, %p5262_p8  ;;  %p4838_p1 = por %p4837_p5, %p4836_p4 }
  0x2b   : > { %p4832_p2 = pneg %p4831_p0 }
  0x2d   : > { %p4839_p3 = pnand %p4838_p1, %p4832_p2 }
  0x2f   : > { %4842 = shalt.err (!%p4839_p3)
}
  0x30   : > { %s7375_s13 = smov 128   ;;  %s7377_s16 = smov 8  }
  0x31   : > { %4398 = dma.hbm_to_vmem [thread:$0]  (!%p5250_p6), %s7496_s1, 4096, %s288_s14, [#allocation6], %s7375_s13, %s7375_s13, %s7377_s16  }
  0x32   : > { %s5145_s20 = smov [#allocation7]   ;;  %s4843_s25 = scalar_lea.hbm %s7364_s3, 2048 }
  0x33   : > { %s300_s21 = sshll.u32 %s5145_s20, 4  ;;  %p4844_p1 = scmp.ne.s32.totalorder %s7364_s3, %s4843_s25  ;;  %s301_s21 = int_to_ptr.vmem [resolvable:$true] %s300_s21 }
  0x34   : > { %p4850_p7 = scmp.lt.u32.totalorder %s4843_s25, %s7364_s3 }
  0x35   : > { %p4846_p3 = pnand %p4844_p1, %p5262_p8 }
  0x37   : > { %p4847_p5 = pneg %p4846_p3 }
  0x39   : > { %p4852_p9 = pnand %p4850_p7, %p4847_p5 }
  0x3b   : > { %4855 = shalt.err (!%p4852_p9)
}
  0x3c   : > { %s4856_s14 = scalar_lea.vmem %s314_s17, 2048  ;;  %p4864_p13 = scmp.lt.s32.totalorder %s314_s17, %s314_s17 }
  0x3d   : > { %p4857_p10 = scmp.ne.s32.totalorder %s314_s17, %s4856_s14  ;;  %p4865_p0 = scmp.lt.s32.totalorder %s4856_s14, %s4856_s14 }
  0x3f   : > { %p4859_p11 = pnand %p4857_p10, %p5262_p8  ;;  %p4866_p2 = por %p4865_p0, %p4864_p13 }
  0x41   : > { %p4860_p12 = pneg %p4859_p11 }
  0x43   : > { %p4867_p4 = pnand %p4866_p2, %p4860_p12 }
  0x45   : > { %4870 = shalt.err (!%p4867_p4)
}
  0x46   : > { %s5146_s6 = smov 64   ;;  %s5147_s18 = smov 4  }
  0x47   : > { %4404 = dma.hbm_to_vmem [thread:$0]  (!%p5250_p6), %s7364_s3, 2048, %s314_s17, [#allocation9], %s5146_s6, %s5146_s6, %s5147_s18  }
  0x48   : > { %s7498_s2 = sld [smem:[#allocation148_spill]] }
  0x4e   : > { %s4871_s22 = scalar_lea.hbm %s7498_s2, 2048 }
  0x4f   : > { %p4872_p1 = scmp.ne.s32.totalorder %s7498_s2, %s4871_s22  ;;  %p4878_p7 = scmp.lt.u32.totalorder %s4871_s22, %s7498_s2 }
  0x51   : > { %p4874_p3 = pnand %p4872_p1, %p5262_p8 }
  0x53   : > { %p4875_p5 = pneg %p4874_p3 }
  0x55   : > { %p4880_p9 = pnand %p4878_p7, %p4875_p5 }
  0x57   : > { %4883 = shalt.err (!%p4880_p9)
}
  0x58   : > { %s4884_s7 = scalar_lea.vmem %s301_s21, 2048  ;;  %p4892_p13 = scmp.lt.s32.totalorder %s301_s21, %s301_s21 }
  0x59   : > { %p4885_p10 = scmp.ne.s32.totalorder %s301_s21, %s4884_s7  ;;  %p4893_p0 = scmp.lt.s32.totalorder %s4884_s7, %s4884_s7 }
  0x5b   : > { %p4887_p11 = pnand %p4885_p10, %p5262_p8  ;;  %p4894_p2 = por %p4893_p0, %p4892_p13 }
  0x5d   : > { %p4888_p12 = pneg %p4887_p11 }
  0x5f   : > { %p4895_p4 = pnand %p4894_p2, %p4888_p12 }
  0x61   : > { %4898 = shalt.err (!%p4895_p4)
}
  0x62   : > { %4401 = dma.hbm_to_vmem [thread:$0]  (!%p5250_p6), %s7498_s2, 2048, %s301_s21, [#allocation6], %s5146_s6, %s5146_s6, %s5147_s18  }
  0x63   : > { %s5148_s19 = smov [#allocation10]   ;;  %s5149_s22 = smov [#allocation11]  }
  0x64   : > { %s329_s20 = sshll.u32 %s5148_s19, 4  ;;  %s345_s24 = sshll.u32 %s5149_s22, 4  ;;  %s330_s20 = int_to_ptr.vmem [resolvable:$true] %s329_s20  ;;  %s346_s24 = int_to_ptr.vmem [resolvable:$true] %s345_s24 }
  0x65   : > { %s4899_s14 = scalar_lea.hbm %s7365_s4, 4096 }
  0x66   : > { %p4900_p1 = scmp.ne.s32.totalorder %s7365_s4, %s4899_s14  ;;  %p4906_p7 = scmp.lt.u32.totalorder %s4899_s14, %s7365_s4 }
  0x68   : > { %p4902_p3 = pnand %p4900_p1, %p5262_p8 }
  0x6a   : > { %p4903_p5 = pneg %p4902_p3 }
  0x6c   : > { %p4908_p9 = pnand %p4906_p7, %p4903_p5 }
  0x6e   : > { %4911 = shalt.err (!%p4908_p9)
}
  0x6f   : > { %s4912_s21 = scalar_lea.vmem %s330_s20, 4096  ;;  %p4920_p13 = scmp.lt.s32.totalorder %s330_s20, %s330_s20 }
  0x70   : > { %p4913_p10 = scmp.ne.s32.totalorder %s330_s20, %s4912_s21  ;;  %p4921_p0 = scmp.lt.s32.totalorder %s4912_s21, %s4912_s21 }
  0x72   : > { %p4915_p11 = pnand %p4913_p10, %p5262_p8  ;;  %p4922_p2 = por %p4921_p0, %p4920_p13 }
  0x74   : > { %p4916_p12 = pneg %p4915_p11 }
  0x76   : > { %p4923_p4 = pnand %p4922_p2, %p4916_p12 }
  0x78   : > { %4926 = shalt.err (!%p4923_p4)
}
  0x79   : > { %s7499_s13 = smov 8   ;;  %s7500_s6 = smov 128  }
  0x7a   : > { %4407 = dma.hbm_to_vmem [thread:$0]  (!%p5250_p6), %s7365_s4, 4096, %s330_s20, [#allocation9], %s7500_s6, %s7500_s6, %s7499_s13  }
  0x7b   : > { %s4927_s22 = scalar_lea.hbm %s7366_s5, 4096 }
  0x7c   : > { %p4928_p1 = scmp.ne.s32.totalorder %s7366_s5, %s4927_s22  ;;  %p4934_p7 = scmp.lt.u32.totalorder %s4927_s22, %s7366_s5 }
  0x7e   : > { %p4930_p3 = pnand %p4928_p1, %p5262_p8 }
  0x80   : > { %p4931_p5 = pneg %p4930_p3 }
  0x82   : > { %p4936_p9 = pnand %p4934_p7, %p4931_p5 }
  0x84   : > { %4939 = shalt.err (!%p4936_p9)
}
  0x85   : > { %s4940_s17 = scalar_lea.vmem %s346_s24, 4096  ;;  %p4948_p13 = scmp.lt.s32.totalorder %s346_s24, %s346_s24 }
  0x86   : > { %p4941_p10 = scmp.ne.s32.totalorder %s346_s24, %s4940_s17  ;;  %p4949_p0 = scmp.lt.s32.totalorder %s4940_s17, %s4940_s17 }
  0x88   : > { %p4943_p11 = pnand %p4941_p10, %p5262_p8  ;;  %p4950_p2 = por %p4949_p0, %p4948_p13 }
  0x8a   : > { %p4944_p12 = pneg %p4943_p11 }
  0x8c   : > { %p4951_p4 = pnand %p4950_p2, %p4944_p12 }
  0x8e   : > { %4954 = shalt.err (!%p4951_p4)
}
  0x8f   : > { %4410 = dma.hbm_to_vmem [thread:$0]  (!%p5250_p6), %s7366_s5, 4096, %s346_s24, [#allocation12], %s7500_s6, %s7500_s6, %s7499_s13  }
  0x90   : > { %s7379_s15 = sadd.s32 4294967294, %s5139_s10   ;;  %s43_s23 = sadd.s32 1, %s5135_s9 }
  0x91   : > { %s52_s16 = sadd.s32 1, %s5127_s29  ;;  %p45_p8 = scmp.ge.s32.totalorder %s43_s23, 2 }
  0x92   : > { %p59_p1 = scmp.ne.s32.totalorder %s5127_s29, %s5123_s28  ;;  %p60_p3 = scmp.eq.s32.totalorder %s5139_s10, 0 }
  0x93   : > { %p65_p5 = scmp.ne.s32.totalorder %s5123_s28, %s5119_s27  ;;  %s7852_s23 = smov (%p45_p8, %s43_s23), 0 }
  0x94   : > { %p5369_p7 = por %p60_p3, %p59_p1  ;;  %p7502_p9 = scmp.eq.s32.totalorder %s5236_s11, 0 }
  0x95   : > { %s47_s8 = ssub.s32 %s5135_s9, %s7852_s23  ;;  %p206_p10 = scmp.eq.s32.totalorder %s5236_s11, 1 }
  0x96   : > { %p5375_p6 = por %p7502_p9, %p65_p5  ;;  %p50_p11 = scmp.eq.s32.totalorder %s47_s8, 0 }
  0x97   : > { %p212_p12 = scmp.eq.s32.totalorder %s7379_s15, 1  ;;  %p5384_p13 = por %p206_p10, %p59_p1 }
  0x98   : > { %p4430_p0 = scmp.lt.s32.totalorder %s5139_s10, 2  ;;  %s359_s26 = sand.u32 1, %s5127_s29  }
  0x99   : > { %s7504_s19 = scalar_select %p5384_p13, 1, 0 }
  0x9a   : > { %s5390_s22 = scalar_select %p50_p11, %s5127_s29, %s52_s16  }
  0x9b   : > { %p5392_p2 = por %p212_p12, %p65_p5  ;;  %s3461_s14 = sshll.u32 %s359_s26, 8 }
  0x9c   : > { %s3725_s7 = sshll.u32 %s5135_s9, 12  ;;  %s7506_s0 = sld [smem:[#allocation146_spill]] }
  0x9d   : > { %s7505_s25 = scalar_select %p5392_p2, 1, 0 }
  0x9e   : > { %s363_s8 = scalar_lea.vmem [#allocation2], %s3461_s14  ;;  %p5407_p4 = pnand %p4430_p0, %p5369_p7 }
  0x9f   : > { %s373_s15 = sshll.u32 %s363_s8, 4  ;;  %s5411_s1 = scalar_lea.sflag [#allocation3], %s359_s26  ;;  %s5403_s15 = int_to_ptr.vmem [resolvable:$true] %s373_s15 }
  0xa0   : > { %p4957_p1 = pneg %p5407_p4 }
  0xa2   : > { %s5401_s21 = scalar_lea.hbm %s7506_s0, %s3725_s7  ;;  %s4960_s18 = scalar_lea.hbm %s7506_s0, 8192 }
  0xa3   : > { %s4955_s17 = scalar_lea.hbm %s5401_s21, 4096  ;;  %p4961_p7 = scmp.lt.u32.totalorder %s5401_s21, %s7506_s0 }
  0xa4   : > { %p4956_p8 = scmp.ne.s32.totalorder %s5401_s21, %s4955_s17  ;;  %p4962_p9 = scmp.lt.u32.totalorder %s4960_s18, %s4955_s17 }
  0xa5   : > { %p4964_p11 = scmp.lt.u32.totalorder %s4955_s17, %s5401_s21 }
  0xa6   : > { %p4958_p3 = pnand %p4957_p1, %p4956_p8  ;;  %p4963_p10 = por %p4962_p9, %p4961_p7 }
  0xa8   : > { %p4959_p5 = pneg %p4958_p3  ;;  %p4965_p12 = por %p4964_p11, %p4963_p10 }
  0xaa   : > { %p4966_p0 = pnand %p4965_p12, %p4959_p5 }
  0xac   : > { %4969 = shalt.err (!%p4966_p0)
}
  0xad   : > { %s4970_s26 = scalar_lea.vmem %s5403_s15, 4096  ;;  %s5150_s14 = smov [#allocation2]  }
  0xae   : > { %p4971_p8 = scmp.ne.s32.totalorder %s5403_s15, %s4970_s26  ;;  %s4975_s7 = sshll.u32 %s5150_s14, 4  ;;  %s4976_s7 = int_to_ptr.vmem [resolvable:$false] %s4975_s7 }
  0xaf   : > { %s4977_s20 = scalar_lea.vmem %s4976_s7, 8192  ;;  %p4978_p13 = scmp.lt.s32.totalorder %s5403_s15, %s4976_s7 }
  0xb0   : > { %p4973_p3 = pnand %p4971_p8, %p4957_p1  ;;  %p4979_p7 = scmp.lt.s32.totalorder %s4977_s20, %s4970_s26 }
  0xb2   : > { %p4974_p2 = pneg %p4973_p3  ;;  %p4980_p9 = por %p4979_p7, %p4978_p13 }
  0xb4   : > { %p4981_p10 = pnand %p4980_p9, %p4974_p2 }
  0xb6   : > { %4984 = shalt.err (!%p4981_p10)
}
  0xb7   : > { %4414 = dma.hbm_to_vmem [thread:$0]  (!%p5407_p4), %s5401_s21, 4096, %s5403_s15, %s5411_s1, %s7500_s6, %s7500_s6, %s7499_s13  }
  0xb8   : > { %p7508_p1 = scmp.ne.s32.totalorder %s7494_s12, 0 }
  0xba   : > { %385 = sbr.rel (%p7508_p1) target bundleno = 1164 (0x48c), region = 44 }
  0xc1   : > { %s5445_s17 = sand.u32 1, %s5123_s28  }
  0xc2   : > { %s3465_s18 = sshll.u32 %s5445_s17, 8  ;;  %s388_s8 = scalar_lea.sflag [#allocation3], %s5445_s17 }
  0xc3   : > { %s5451_s16 = scalar_lea.vmem [#allocation2], %s3465_s18 }
  0xc4   : > { %5094 = dma.done.wait (%p5375_p6), %s388_s8, 4096  }
  0xc5   : > { %5096 = vsyncadd (%p5375_p6), %s388_s8, 4294963200  ;;  %p7509_p13 = scmp.eq.s32.totalorder %s5236_s11, 0 }
  0xc7   : > { %5098 = dma.done.wait (%p7509_p13), [#allocation6], 6144   ;;  %p7510_p2 = pmov %p7509_p13 }
  0xc9   : > { %5100 = vsyncadd (%p7510_p2), [#allocation6], 4294961152  ;;  %p7511_p4 = pmov %p7510_p2 }
  0xca   : > { %p7512_p5 = pmov %p7510_p2 }
  0xcb   : > { %5102 = dma.done.wait (%p7511_p4), [#allocation9], 6144  }
  0xcc   : > { %5104 = vsyncadd (%p7512_p5), [#allocation9], 4294961152  ;;  %p7513_p11 = pmov %p7510_p2 }
  0xcd   : > { %p7514_p12 = pmov %p7510_p2 }
  0xce   : > { %5106 = dma.done.wait (%p7513_p11), [#allocation12], 4096  }
  0xcf   : > { %5108 = vsyncadd (%p7514_p12), [#allocation12], 4294963200  ;;  %v5469_v0 = vld [vmem:[#allocation7 + $0x40] sm:$0xff]   ;;  %v5475_v4 = vld [vmem:[#allocation7 + $0x48] sm:$0xff]   ;;  %s5151_s1 = smov 127   ;;  %s5152_s12 = smov 1  }
  0xd0   : > { %v5471_v1 = vld [vmem:[#allocation7] sm:$0xff]   ;;  %4351 = vmatprep.subr.bf16.mxu1 %v5469_v0  ;;  %v5477_v5 = vld [vmem:[#allocation7 + $0x8] sm:$0xff]   ;;  %v4619_v6 = vld [vmem:[#allocation5 + $0x14] ss:$8 sps:$4 sm:$0xff]   ;;  %s6056_s13 = scalar_lea.vmem [#allocation13], %s3465_s18  ;;  %s3472_s6 = sshll.u32 %s5445_s17, 7 }
  0xd1   : > { %v4614_v2 = vld [vmem:[#allocation5 + $0x4] ss:$8 sps:$4 sm:$0xff]   ;;  %4359 = vmatpush3.bf16.msra.mxu1 %v5471_v1  ;;  %v4616_v3 = vld [vmem:[#allocation5] ss:$8 sps:$4 sm:$0xff]   ;;  %v4621_v7 = vld [vmem:[#allocation5 + $0x10] ss:$8 sps:$4 sm:$0xff]  }
  0xd2   : > { %909 = vmatprep.subr.bf16.mxu0 %v4614_v2  ;;  %4352 = vmatprep.subr.bf16.mxu1 %v5475_v4  ;;  %v5481_v8 = vld [vmem:[#allocation7 + $0x50] sm:$0xff]   ;;  %v4624_v10 = vld [vmem:[#allocation5 + $0x24] ss:$8 sps:$4 sm:$0xff]   ;;  %v4626_v11 = vld [vmem:[#allocation5 + $0x20] ss:$8 sps:$4 sm:$0xff]   ;;  %s6786_s15 = scalar_lea.vmem [#allocation16], %s3472_s6 }
  0xd3   : > { %910 = vmatpush1.bf16.msra.mxu0 %v4616_v3  ;;  %v5483_v9 = vld [vmem:[#allocation7 + $0x10] sm:$0xff]   ;;  %v5486_v12 = vld [vmem:[#allocation7 + $0x58] sm:$0xff]   ;;  %v5492_v16 = vld [vmem:[#allocation7 + $0x60] sm:$0xff]   ;;  %s7209_s24 = scalar_lea.vmem [#allocation14], %s3472_s6  ;;  %s3189_s21 = sand.u32 1, %s5236_s11  }
  0xd4   : > { %911 = vmatprep.subr.bf16.mxu0 %v4619_v6  ;;  %v5489_v13 = vld [vmem:[#allocation7 + $0x18] sm:$0xff]   ;;  %v5495_v17 = vld [vmem:[#allocation7 + $0x20] sm:$0xff]   ;;  %v5498_v20 = vld [vmem:[#allocation7 + $0x68] sm:$0xff]   ;;  %s3839_s26 = sshll.u32 %s5131_s30, 11  ;;  %s3228_s14 = sshll.u32 %s7209_s24, 4  ;;  %s7235_s14 = int_to_ptr.vmem [resolvable:$true] %s3228_s14 }
  0xd5   : > { %4360 = vmatpush3.bf16.msra.mxu1 %v5477_v5  ;;  %v4629_v14 = vld [vmem:[#allocation5 + $0x34] ss:$8 sps:$4 sm:$0xff]   ;;  %v4631_v15 = vld [vmem:[#allocation5 + $0x30] ss:$8 sps:$4 sm:$0xff]   ;;  %v4634_v18 = vld [vmem:[#allocation5 + $0x44] ss:$8 sps:$4 sm:$0xff]  }
  0xd6   : > { %4353 = vmatprep.subr.bf16.mxu1 %v5481_v8  ;;  %v4636_v19 = vld [vmem:[#allocation5 + $0x40] ss:$8 sps:$4 sm:$0xff]   ;;  %v4639_v22 = vld [vmem:[#allocation5 + $0x54] ss:$8 sps:$4 sm:$0xff]   ;;  %v4641_v24 = vld [vmem:[#allocation5 + $0x50] ss:$8 sps:$4 sm:$0xff]  }
  0xd7   : > { %912 = vmatpush1.bf16.msra.mxu0 %v4621_v7  ;;  %v5501_v21 = vld [vmem:[#allocation7 + $0x28] sm:$0xff]   ;;  %v5504_v23 = vld [vmem:[#allocation7 + $0x70] sm:$0xff]   ;;  %v5510_v27 = vld [vmem:[#allocation7 + $0x78] sm:$0xff]   ;;  %s7838_s18 = sld [smem:[#allocation150_spill]]  ;;  %s7245_s7 = scalar_lea.sflag [#allocation15], %s3189_s21 }
  0xd8   : > { %913 = vmatprep.subr.bf16.mxu0 %v4624_v10  ;;  %v4644_v25 = vld [vmem:[#allocation5 + $0x64] ss:$8 sps:$4 sm:$0xff]   ;;  %v5507_v26 = vld [vmem:[#allocation7 + $0x30] sm:$0xff]   ;;  %v4646_v28 = vld [vmem:[#allocation5 + $0x60] ss:$8 sps:$4 sm:$0xff]   ;;  %s4985_s20 = scalar_lea.vmem %s7235_s14, 2048 }
  0xd9   : > { %4361 = vmatpush3.bf16.msra.mxu1 %v5483_v9  ;;  %v4649_v29 = vld [vmem:[#allocation5 + $0x74] ss:$8 sps:$4 sm:$0xff]   ;;  %v5516_v31 = vld [vmem:[%s5451_s16 + $0x64] ss:$8 sps:$4 sm:$0xff]   ;;  %v4651_v32 = vld [vmem:[#allocation5 + $0x70] ss:$8 sps:$4 sm:$0xff]   ;;  %p4986_p6 = scmp.ne.s32.totalorder %s7235_s14, %s4985_s20 }
  0xda   : > { %4354 = vmatprep.subr.bf16.mxu1 %v5486_v12  ;;  %v5513_v30 = vld [vmem:[#allocation7 + $0x38] sm:$0xff]   ;;  %1310 = vmatprep.mubr.bf16.mxu1 %v5516_v31  ;;  %v5521_v33 = vld [vmem:[%s5451_s16 + $0x60] ss:$8 sps:$4 sm:$0xff]   ;;  %v4655_v34 = vld [vmem:[#allocation5 + $0x84] ss:$8 sps:$4 sm:$0xff]   ;;  %p7840_p0 = scmp.ne.s32.totalorder %s7504_s19, 0 }
  0xdb   : > { %914 = vmatpush1.bf16.msra.mxu0 %v4626_v11  ;;  %v5525_v35 = vld [vmem:[%s5451_s16 + $0x74] ss:$8 sps:$4 sm:$0xff]   ;;  %v4657_v36 = vld [vmem:[#allocation5 + $0x80] ss:$8 sps:$4 sm:$0xff]   ;;  %v4660_v38 = vld [vmem:[#allocation5 + $0x90] ss:$8 sps:$4 sm:$0xff]  }
  0xdc   : > { %915 = vmatprep.subr.bf16.mxu0 %v4629_v14  ;;  %v4658_v37 = vld [vmem:[#allocation5 + $0x94] ss:$8 sps:$4 sm:$0xff]   ;;  %v5530_v39 = vld [vmem:[%s5451_s16 + $0x70] ss:$8 sps:$4 sm:$0xff]   ;;  %v4664_v40 = vld [vmem:[#allocation5 + $0xa4] ss:$8 sps:$4 sm:$0xff]   ;;  %p4987_p8 = pnand %p4986_p6, %p7840_p0 }
  0xdd   : > { %4362 = vmatpush3.bf16.msra.mxu1 %v5489_v13  ;;  %v5533_v41 = vld [vmem:[%s5451_s16 + $0x84] ss:$8 sps:$4 sm:$0xff]   ;;  %v4666_v42 = vld [vmem:[#allocation5 + $0xa0] ss:$8 sps:$4 sm:$0xff]   ;;  %v4667_v43 = vld [vmem:[#allocation5 + $0xb4] ss:$8 sps:$4 sm:$0xff]   ;;  %s7231_s8 = scalar_lea.hbm %s7838_s18, %s3839_s26 }
  0xde   : > { %4355 = vmatprep.subr.bf16.mxu1 %v5492_v16  ;;  %v5538_v44 = vld [vmem:[%s5451_s16 + $0x4] ss:$8 sps:$4 sm:$0xff]   ;;  %v4669_v45 = vld [vmem:[#allocation5 + $0xb0] ss:$8 sps:$4 sm:$0xff]   ;;  %v5542_v46 = vld [vmem:[%s5451_s16 + $0x80] ss:$8 sps:$4 sm:$0xff]   ;;  %p4988_p3 = pneg %p4987_p8 }
  0xdf   : > { %916 = vmatpush1.bf16.msra.mxu0 %v4631_v15  ;;  %941 = vmatprep.mubr.bf16.mxu0 %v5538_v44  ;;  %v4673_v47 = vld [vmem:[#allocation5 + $0xc4] ss:$8 sps:$4 sm:$0xff]   ;;  %v5545_v48 = vld [vmem:[%s5451_s16 + $0x94] ss:$8 sps:$4 sm:$0xff]   ;;  %v4675_v49 = vld [vmem:[#allocation5 + $0xc0] ss:$8 sps:$4 sm:$0xff]  }
  0xe0   : > { %917 = vmatprep.subr.bf16.mxu0 %v4634_v18  ;;  %v4676_v50 = vld [vmem:[#allocation5 + $0xd4] ss:$8 sps:$4 sm:$0xff]   ;;  %v4678_v51 = vld [vmem:[#allocation5 + $0xd0] ss:$8 sps:$4 sm:$0xff]   ;;  %v4682_v53 = vld [vmem:[#allocation5 + $0xe4] ss:$8 sps:$4 sm:$0xff]  }
  0xe1   : > { %4363 = vmatpush3.bf16.msra.mxu1 %v5495_v17  ;;  %v5550_v52 = vld [vmem:[%s5451_s16 + $0x90] ss:$8 sps:$4 sm:$0xff]   ;;  %v5553_v54 = vld [vmem:[%s5451_s16 + $0xa4] ss:$8 sps:$4 sm:$0xff]   ;;  %v4684_v55 = vld [vmem:[#allocation5 + $0xe0] ss:$8 sps:$4 sm:$0xff]  }
  0xe2   : > { %4356 = vmatprep.subr.bf16.mxu1 %v5498_v20  ;;  %v4685_v56 = vld [vmem:[#allocation5 + $0xf4] ss:$8 sps:$4 sm:$0xff]   ;;  %v4687_v57 = vld [vmem:[#allocation5 + $0xf0] ss:$8 sps:$4 sm:$0xff]   ;;  %v5558_v58 = vld [vmem:[%s5451_s16 + $0xa0] ss:$8 sps:$4 sm:$0xff]  }
  0xe3   : > { %918 = vmatpush1.bf16.msra.mxu0 %v4636_v19  ;;  %v5561_v59 = vld [vmem:[%s5451_s16 + $0xb4] ss:$8 sps:$4 sm:$0xff]   ;;  %v5564_v60 = vld [vmem:[%s5451_s16] ss:$8 sps:$4 sm:$0xff]   ;;  %v4699_v62 = vld [vmem:[%s5451_s16 + $0xb0] ss:$8 sps:$4 sm:$0xff]  }
  0xe4   : > { %919 = vmatprep.subr.bf16.mxu0 %v4639_v22  ;;  %v5567_v61 = vld [vmem:[%s5451_s16 + $0x14] ss:$8 sps:$4 sm:$0xff]   ;;  %v4703_v63 = vld [vmem:[%s5451_s16 + $0xc4] ss:$8 sps:$4 sm:$0xff]   ;;  %v5579_v2 = vld [vmem:[%s5451_s16 + $0x10] ss:$8 sps:$4 sm:$0xff]  }
  0xe5   : > { %4364 = vmatpush3.bf16.msra.mxu1 %v5501_v21  ;;  %v5582_v3 = vld [vmem:[%s5451_s16 + $0x24] ss:$8 sps:$4 sm:$0xff]   ;;  %v4711_v6 = vld [vmem:[%s5451_s16 + $0xd0] ss:$8 sps:$4 sm:$0xff]   ;;  %v4717_v10 = vld [vmem:[%s5451_s16 + $0xe0] ss:$8 sps:$4 sm:$0xff]  }
  0xe6   : > { %4357 = vmatprep.subr.bf16.mxu1 %v5504_v23  ;;  %v4715_v7 = vld [vmem:[%s5451_s16 + $0xe4] ss:$8 sps:$4 sm:$0xff]   ;;  %v4721_v11 = vld [vmem:[%s5451_s16 + $0xf4] ss:$8 sps:$4 sm:$0xff]   ;;  %v4723_v14 = vld [vmem:[%s5451_s16 + $0xf0] ss:$8 sps:$4 sm:$0xff]  }
  0xe7   : > { %920 = vmatpush1.bf16.msra.mxu0 %v4641_v24  ;;  %v4720_v15 = vld [vmem:[%s5451_s16 + $0x50] ss:$8 sps:$4 sm:$0xff]  }
  0xe8   : > { %921 = vmatprep.subr.bf16.mxu0 %v4644_v25 }
  0xe9   : > { %4365 = vmatpush3.bf16.msra.mxu1 %v5507_v26 }
  0xea   : > { %4358 = vmatprep.subr.bf16.mxu1 %v5510_v27 }
  0xeb   : > { %922 = vmatpush1.bf16.msra.mxu0 %v4646_v28 }
  0xec   : > { %923 = vmatprep.subr.bf16.mxu0 %v4649_v29 }
  0xed   : > { %4366 = vmatpush3.bf16.msra.mxu1 %v5513_v30 }
  0xef   : > { %924 = vmatpush1.bf16.msra.mxu0 %v4651_v32 }
  0xf0   : > { %1311 = vmatmul.mubr.bf16.vlgmr.msra.gmra.mrb[0].mxu1 %v5521_v33  ;;  %925 = vmatprep.subr.bf16.mxu0 %v4655_v34 }
  0xf1   : > { %1318 = vmatprep.mubr.bf16.mxu1 %v5525_v35 }
  0xf3   : > { %926 = vmatpush1.bf16.msra.mxu0 %v4657_v36 }
  0xf4   : > { %927 = vmatprep.subr.bf16.mxu0 %v4658_v37 }
  0xf7   : > { %928 = vmatpush1.bf16.msra.mxu0 %v4660_v38 }
  0xf8   : > { %1319 = vmatmul.mubr.bf16.gmra.mrb[4].mxu1 %v5530_v39  ;;  %929 = vmatprep.subr.bf16.mxu0 %v4664_v40 }
  0xf9   : > { %1326 = vmatprep.mubr.bf16.mxu1 %v5533_v41 }
  0xfb   : > { %930 = vmatpush1.bf16.msra.mxu0 %v4666_v42 }
  0xfc   : > { %931 = vmatprep.subr.bf16.mxu0 %v4667_v43 }
  0xff   : > { %932 = vmatpush1.bf16.msra.mxu0 %v4669_v45 }
 0x100   : > { %1327 = vmatmul.mubr.bf16.gmra.mrb[8].mxu1 %v5542_v46  ;;  %933 = vmatprep.subr.bf16.mxu0 %v4673_v47 }
 0x101   : > { %1334 = vmatprep.mubr.bf16.mxu1 %v5545_v48 }
 0x103   : > { %934 = vmatpush1.bf16.msra.mxu0 %v4675_v49 }
 0x104   : > { %935 = vmatprep.subr.bf16.mxu0 %v4676_v50 }
 0x107   : > { %936 = vmatpush1.bf16.msra.mxu0 %v4678_v51 }
 0x108   : > { %1335 = vmatmul.mubr.bf16.gmra.mrb[12].mxu1 %v5550_v52  ;;  %937 = vmatprep.subr.bf16.mxu0 %v4682_v53 }
 0x109   : > { %1342 = vmatprep.mubr.bf16.mxu1 %v5553_v54 }
 0x10b   : > { %938 = vmatpush1.bf16.msra.mxu0 %v4684_v55 }
 0x10c   : > { %939 = vmatprep.subr.bf16.mxu0 %v4685_v56 }
 0x10f   : > { %940 = vmatpush1.bf16.msra.mxu0 %v4687_v57 }
 0x110   : > { %1343 = vmatmul.mubr.bf16.gmra.mrb[16].mxu1 %v5558_v58  ;;  %4127 = vmatprep.subr.bf16.mxu0 %v5469_v0  ;;  %v4705_v0 = vld [vmem:[%s5451_s16 + $0xc0] ss:$8 sps:$4 sm:$0xff]  }
 0x111   : > { %1350 = vmatprep.mubr.bf16.mxu1 %v5561_v59 }
 0x112   : > { %942 = vmatmul.mubr.bf16.vlgmr.msra.gmra.mrb[0].mxu0 %v5564_v60 }
 0x113   : > { %951 = vmatprep.mubr.bf16.mxu0 %v5567_v61  ;;  %4128 = vmatpush3.bf16.msra.mxu0 %v5471_v1  ;;  %v4709_v1 = vld [vmem:[%s5451_s16 + $0xd4] ss:$8 sps:$4 sm:$0xff]  }
 0x114   : > { %4129 = vmatprep.subr.bf16.mxu0 %v5475_v4  ;;  %v5593_v4 = vld [vmem:[%s5451_s16 + $0x20] ss:$8 sps:$4 sm:$0xff]  }
 0x117   : > { %4130 = vmatpush3.bf16.msra.mxu0 %v5477_v5  ;;  %v5596_v5 = vld [vmem:[%s5451_s16 + $0x34] ss:$8 sps:$4 sm:$0xff]  }
 0x118   : > { %1351 = vmatmul.mubr.bf16.gmra.mrb[20].mxu1 %v4699_v62  ;;  %4131 = vmatprep.subr.bf16.mxu0 %v5481_v8  ;;  %v5607_v8 = vld [vmem:[%s5451_s16 + $0x30] ss:$8 sps:$4 sm:$0xff]  }
 0x119   : > { %1358 = vmatprep.mubr.bf16.mxu1 %v4703_v63 }
 0x11a   : > { %952 = vmatmul.mubr.bf16.gmra.mrb[4].mxu0 %v5579_v2 }
 0x11b   : > { %961 = vmatprep.mubr.bf16.mxu0 %v5582_v3  ;;  %4132 = vmatpush3.bf16.msra.mxu0 %v5483_v9  ;;  %v5610_v9 = vld [vmem:[%s5451_s16 + $0x44] ss:$8 sps:$4 sm:$0xff]  }
 0x11c   : > { %4133 = vmatprep.subr.bf16.mxu0 %v5486_v12  ;;  %v4714_v12 = vld [vmem:[%s5451_s16 + $0x40] ss:$8 sps:$4 sm:$0xff]  }
 0x11f   : > { %4134 = vmatpush3.bf16.msra.mxu0 %v5489_v13  ;;  %v4718_v13 = vld [vmem:[%s5451_s16 + $0x54] ss:$8 sps:$4 sm:$0xff]  }
 0x120   : > { %1359 = vmatmul.mubr.bf16.gmra.mrb[24].mxu1 %v4705_v0  ;;  %4135 = vmatprep.subr.bf16.mxu0 %v5492_v16 }
 0x121   : > { %1366 = vmatprep.mubr.bf16.mxu1 %v4709_v1 }
 0x122   : > { %962 = vmatmul.mubr.bf16.gmra.mrb[8].mxu0 %v5593_v4 }
 0x123   : > { %971 = vmatprep.mubr.bf16.mxu0 %v5596_v5  ;;  %4136 = vmatpush3.bf16.msra.mxu0 %v5495_v17 }
 0x124   : > { %4137 = vmatprep.subr.bf16.mxu0 %v5498_v20 }
 0x127   : > { %4138 = vmatpush3.bf16.msra.mxu0 %v5501_v21 }
 0x128   : > { %1367 = vmatmul.mubr.bf16.gmra.mrb[28].mxu1 %v4711_v6  ;;  %4139 = vmatprep.subr.bf16.mxu0 %v5504_v23 }
 0x129   : > { %1374 = vmatprep.mubr.bf16.mxu1 %v4715_v7 }
 0x12a   : > { %972 = vmatmul.mubr.bf16.gmra.mrb[12].mxu0 %v5607_v8 }
 0x12b   : > { %981 = vmatprep.mubr.bf16.mxu0 %v5610_v9  ;;  %4140 = vmatpush3.bf16.msra.mxu0 %v5507_v26 }
 0x12c   : > { %4141 = vmatprep.subr.bf16.mxu0 %v5510_v27 }
 0x12f   : > { %4142 = vmatpush3.bf16.msra.mxu0 %v5513_v30 }
 0x130   : > { %1375 = vmatmul.mubr.bf16.gmra.mrb[32].mxu1 %v4717_v10 }
 0x131   : > { %1382 = vmatprep.mubr.bf16.mxu1 %v4721_v11 }
 0x132   : > { %982 = vmatmul.mubr.bf16.gmra.mrb[16].mxu0 %v4714_v12 }
 0x133   : > { %991 = vmatprep.mubr.bf16.mxu0 %v4718_v13 }
 0x138   : > { %1383 = vmatmul.mubr.bf16.gmra.mrb[36].mxu1 %v4723_v14 }
 0x139   : > { %1551 = vmatprep.mubr.bf16.mxu1 %v5538_v44 }
 0x13a   : > { %992 = vmatmul.mubr.bf16.gmra.mrb[20].mxu0 %v4720_v15 }
 0x13b   : > { %1001 = vmatprep.mubr.bf16.mxu0 %v5516_v31 }
 0x142   : > { %1002 = vmatmul.mubr.bf16.gmra.mrb[24].mxu0 %v5521_v33 }
 0x143   : > { %1011 = vmatprep.mubr.bf16.mxu0 %v5525_v35 }
 0x14a   : > { %1012 = vmatmul.mubr.bf16.gmra.mrb[28].mxu0 %v5530_v39 }
 0x14b   : > { %1021 = vmatprep.mubr.bf16.mxu0 %v5533_v41 }
 0x152   : > { %1022 = vmatmul.mubr.bf16.gmra.mrb[32].mxu0 %v5542_v46 }
 0x153   : > { %1031 = vmatprep.mubr.bf16.mxu0 %v5545_v48 }
 0x15a   : > { %1032 = vmatmul.mubr.bf16.gmra.mrb[36].mxu0 %v5550_v52 }
 0x15b   : > { %1041 = vmatprep.mubr.bf16.mxu0 %v5553_v54 }
 0x162   : > { %1042 = vmatmul.mubr.bf16.gmra.mrb[40].mxu0 %v5558_v58 }
 0x163   : > { %1051 = vmatprep.mubr.bf16.mxu0 %v5561_v59 }
 0x16a   : > { %1052 = vmatmul.mubr.bf16.gmra.mrb[44].mxu0 %v4699_v62 }
 0x16b   : > { %1061 = vmatprep.mubr.bf16.mxu0 %v4703_v63 }
 0x172   : > { %1062 = vmatmul.mubr.bf16.gmra.mrb[48].mxu0 %v4705_v0 }
 0x173   : > { %1071 = vmatprep.mubr.bf16.mxu0 %v4709_v1 }
 0x17a   : > { %1072 = vmatmul.mubr.bf16.gmra.mrb[52].mxu0 %v4711_v6 }
 0x17b   : > { %1081 = vmatprep.mubr.bf16.mxu0 %v4715_v7 }
 0x182   : > { %1082 = vmatmul.mubr.bf16.gmra.mrb[56].mxu0 %v4717_v10 }
 0x183   : > { %1091 = vmatprep.mubr.bf16.mxu0 %v4721_v11 }
 0x18a   : > { %1092 = vmatmul.mubr.bf16.gmra.mrb[60].mxu0 %v4723_v14 }
 0x18b   : > { %1262 = vmatprep.mubr.bf16.mxu0 %v5538_v44 }
 0x192   : > { %1263 = vmatmul.mubr.bf16.vlgmr.msra.gmra.mrb[64].mxu0 %v5564_v60 }
 0x193   : > { %1270 = vmatprep.mubr.bf16.mxu0 %v5567_v61 }
 0x19a   : > { %1271 = vmatmul.mubr.bf16.gmra.mrb[68].mxu0 %v5579_v2 }
 0x19b   : > { %1278 = vmatprep.mubr.bf16.mxu0 %v5582_v3 }
 0x1a2   : > { %1279 = vmatmul.mubr.bf16.gmra.mrb[72].mxu0 %v5593_v4 }
 0x1a3   : > { %1286 = vmatprep.mubr.bf16.mxu0 %v5596_v5 }
 0x1aa   : > { %1287 = vmatmul.mubr.bf16.gmra.mrb[76].mxu0 %v5607_v8 }
 0x1ab   : > { %1294 = vmatprep.mubr.bf16.mxu0 %v5610_v9 }
 0x1b2   : > { %1295 = vmatmul.mubr.bf16.gmra.mrb[80].mxu0 %v4714_v12 }
 0x1b3   : > { %1302 = vmatprep.mubr.bf16.mxu0 %v4718_v13 }
 0x1ba   : > { %1303 = vmatmul.mubr.bf16.gmra.mrb[84].mxu0 %v4720_v15 }
 0x1c3   : > { %v4179_v16 = vpop.f32.mrb[0].mxu1 }
 0x1c4   : > { %v4180_v17 = vpop.f32.mrb[1].mxu1 }
 0x1c5   : > { %v5646_v18 = vadd.f32 %v4180_v17, %v4179_v16  ;;  %v4182_v19 = vpop.f32.mrb[2].mxu1 }
 0x1c6   : > { %v4183_v20 = vpop.f32.mrb[3].mxu1 }
 0x1c7   : > { %v5648_v21 = vadd.f32 %v4183_v20, %v4182_v19  ;;  %1719 = vrot.lane.b32.xlu0 %v5646_v18, %s5151_s1 }
 0x1c9   : > { %7515 = vst [vmem:[#allocation23_spill] sm:$0xff] %v5648_v21  ;;  %1721 = vrot.lane.b32.xlu1 %v5648_v21, %s5151_s1 }
 0x1cb   : > { %v4185_v22 = vpop.f32.mrb[4].mxu1  ;;  %1783 = vrot.lane.b32.xlu0 %v5646_v18, %s5152_s12 }
 0x1cc   : > { %v4186_v23 = vpop.f32.mrb[5].mxu1 }
 0x1cd   : > { %v5656_v24 = vadd.f32 %v4186_v23, %v4185_v22  ;;  %v4188_v25 = vpop.f32.mrb[6].mxu1  ;;  %1785 = vrot.lane.b32.xlu1 %v5648_v21, %s5152_s12 }
 0x1ce   : > { %v4189_v26 = vpop.f32.mrb[7].mxu1 }
 0x1cf   : > { %7516 = vst [vmem:[#allocation24_spill] sm:$0xff] %v5656_v24  ;;  %v5660_v27 = vadd.f32 %v4189_v26, %v4188_v25  ;;  %1723 = vrot.lane.b32.xlu0 %v5656_v24, %s5151_s1 }
 0x1d1   : > { %7517 = vst [vmem:[#allocation25_spill] sm:$0xff] %v5660_v27  ;;  %1725 = vrot.lane.b32.xlu1 %v5660_v27, %s5151_s1 }
 0x1d3   : > { %v4191_v28 = vpop.f32.mrb[8].mxu1  ;;  %1787 = vrot.lane.b32.xlu0 %v5656_v24, %s5152_s12 }
 0x1d4   : > { %v4192_v29 = vpop.f32.mrb[9].mxu1 }
 0x1d5   : > { %v5668_v30 = vadd.f32 %v4192_v29, %v4191_v28  ;;  %v4194_v31 = vpop.f32.mrb[10].mxu1  ;;  %1789 = vrot.lane.b32.xlu1 %v5660_v27, %s5152_s12 }
 0x1d6   : > { %v4195_v32 = vpop.f32.mrb[11].mxu1 }
 0x1d7   : > { %7518 = vst [vmem:[#allocation26_spill] sm:$0xff] %v5668_v30  ;;  %v5672_v33 = vadd.f32 %v4195_v32, %v4194_v31  ;;  %1727 = vrot.lane.b32.xlu0 %v5668_v30, %s5151_s1 }
 0x1d9   : > { %7519 = vst [vmem:[#allocation27_spill] sm:$0xff] %v5672_v33  ;;  %1729 = vrot.lane.b32.xlu1 %v5672_v33, %s5151_s1 }
 0x1db   : > { %v4197_v34 = vpop.f32.mrb[12].mxu1  ;;  %1791 = vrot.lane.b32.xlu0 %v5668_v30, %s5152_s12 }
 0x1dc   : > { %v4198_v35 = vpop.f32.mrb[13].mxu1 }
 0x1dd   : > { %v5680_v36 = vadd.f32 %v4198_v35, %v4197_v34  ;;  %v4200_v37 = vpop.f32.mrb[14].mxu1  ;;  %1793 = vrot.lane.b32.xlu1 %v5672_v33, %s5152_s12 }
 0x1de   : > { %v4201_v38 = vpop.f32.mrb[15].mxu1 }
 0x1df   : > { %7520 = vst [vmem:[#allocation28_spill] sm:$0xff] %v5680_v36  ;;  %v5684_v39 = vadd.f32 %v4201_v38, %v4200_v37  ;;  %1731 = vrot.lane.b32.xlu0 %v5680_v36, %s5151_s1 }
 0x1e1   : > { %7521 = vst [vmem:[#allocation29_spill] sm:$0xff] %v5684_v39  ;;  %1733 = vrot.lane.b32.xlu1 %v5684_v39, %s5151_s1 }
 0x1e3   : > { %1795 = vrot.lane.b32.xlu0 %v5680_v36, %s5152_s12  ;;  %v4203_v40 = vpop.f32.mrb[16].mxu1 }
 0x1e4   : > { %v4204_v41 = vpop.f32.mrb[17].mxu1 }
 0x1e5   : > { %1797 = vrot.lane.b32.xlu1 %v5684_v39, %s5152_s12  ;;  %v5694_v42 = vpop.f32.mrb[0].mxu0  ;;  %v5696_v43 = vadd.f32 %v4204_v41, %v4203_v40  ;;  %v4206_v44 = vpop.f32.mrb[18].mxu1 }
 0x1e6   : > { %v5698_v45 = vpop.f32.mrb[1].mxu0  ;;  %v4207_v46 = vpop.f32.mrb[19].mxu1 }
 0x1e7   : > { %7522 = vst [vmem:[#allocation30_spill] sm:$0xff] %v5696_v43  ;;  %7523 = vst [vmem:[#allocation31_spill] sm:$0xff] %v5698_v45  ;;  %2735 = vrot.lane.b32.xlu0 %v5698_v45, %s5151_s1  ;;  %v5702_v47 = vpop.f32.mrb[2].mxu0  ;;  %v5704_v48 = vadd.f32 %v4207_v46, %v4206_v44  ;;  %v4726_v45 = vld [vmem:[#allocation8 + $0x48] sm:$0xff]  }
 0x1e8   : > { %v5706_v49 = vpop.f32.mrb[3].mxu0 }
 0x1e9   : > { %7524 = vst [vmem:[#allocation32_spill] sm:$0xff] %v5704_v48  ;;  %7525 = vst [vmem:[#allocation33_spill] sm:$0xff] %v5706_v49  ;;  %2287 = vrot.lane.b32.xlu1 %v5694_v42, %s5151_s1 }
 0x1eb   : > { %1735 = vrot.lane.b32.xlu0 %v5696_v43, %s5151_s1  ;;  %v4209_v50 = vpop.f32.mrb[20].mxu1 }
 0x1ec   : > { %v4210_v51 = vpop.f32.mrb[21].mxu1 }
 0x1ed   : > { %2351 = vrot.lane.b32.xlu1 %v5694_v42, %s5152_s12  ;;  %v5714_v52 = vpop.f32.mrb[4].mxu0  ;;  %v5716_v53 = vadd.f32 %v4210_v51, %v4209_v50  ;;  %v4212_v54 = vpop.f32.mrb[22].mxu1 }
 0x1ee   : > { %v5718_v55 = vpop.f32.mrb[5].mxu0  ;;  %v4213_v56 = vpop.f32.mrb[23].mxu1 }
 0x1ef   : > { %7526 = vst [vmem:[#allocation34_spill] sm:$0xff] %v5716_v53  ;;  %7527 = vst [vmem:[#allocation35_spill] sm:$0xff] %v5718_v55  ;;  %1799 = vrot.lane.b32.xlu0 %v5696_v43, %s5152_s12  ;;  %v5722_v57 = vpop.f32.mrb[6].mxu0  ;;  %v5724_v58 = vadd.f32 %v4213_v56, %v4212_v54 }
 0x1f0   : > { %v5726_v59 = vpop.f32.mrb[7].mxu0 }
 0x1f1   : > { %7528 = vst [vmem:[#allocation36_spill] sm:$0xff] %v5724_v58  ;;  %7529 = vst [vmem:[#allocation37_spill] sm:$0xff] %v5726_v59  ;;  %2289 = vrot.lane.b32.xlu1 %v5702_v47, %s5151_s1 }
 0x1f3   : > { %2355 = vrot.lane.b32.xlu0 %v5714_v52, %s5152_s12  ;;  %v4215_v62 = vpop.f32.mrb[24].mxu1 }
 0x1f4   : > { %v4216_v63 = vpop.f32.mrb[25].mxu1 }
 0x1f5   : > { %2353 = vrot.lane.b32.xlu1 %v5702_v47, %s5152_s12  ;;  %v5734_v0 = vpop.f32.mrb[8].mxu0  ;;  %v5736_v1 = vadd.f32 %v4216_v63, %v4215_v62  ;;  %v4218_v6 = vpop.f32.mrb[26].mxu1 }
 0x1f6   : > { %v5738_v7 = vpop.f32.mrb[9].mxu0  ;;  %v4219_v10 = vpop.f32.mrb[27].mxu1 }
 0x1f7   : > { %7530 = vst [vmem:[#allocation38_spill] sm:$0xff] %v5736_v1  ;;  %7531 = vst [vmem:[#allocation39_spill] sm:$0xff] %v5738_v7  ;;  %2739 = vrot.lane.b32.xlu0 %v5718_v55, %s5151_s1  ;;  %v5742_v11 = vpop.f32.mrb[10].mxu0  ;;  %v5744_v12 = vadd.f32 %v4219_v10, %v4218_v6 }
 0x1f8   : > { %v5746_v13 = vpop.f32.mrb[11].mxu0 }
 0x1f9   : > { %7532 = vst [vmem:[#allocation40_spill] sm:$0xff] %v5744_v12  ;;  %7533 = vst [vmem:[#allocation41_spill] sm:$0xff] %v5746_v13  ;;  %2737 = vrot.lane.b32.xlu1 %v5706_v49, %s5151_s1 }
 0x1fb   : > { %1739 = vrot.lane.b32.xlu0 %v5716_v53, %s5151_s1  ;;  %v4221_v14 = vpop.f32.mrb[28].mxu1 }
 0x1fc   : > { %v4222_v15 = vpop.f32.mrb[29].mxu1 }
 0x1fd   : > { %1737 = vrot.lane.b32.xlu1 %v5704_v48, %s5151_s1  ;;  %v5754_v16 = vpop.f32.mrb[12].mxu0  ;;  %v5756_v17 = vadd.f32 %v4222_v15, %v4221_v14  ;;  %v4224_v19 = vpop.f32.mrb[30].mxu1 }
 0x1fe   : > { %v5758_v20 = vpop.f32.mrb[13].mxu0  ;;  %v4225_v22 = vpop.f32.mrb[31].mxu1 }
 0x1ff   : > { %7534 = vst [vmem:[#allocation42_spill] sm:$0xff] %v5756_v17  ;;  %7535 = vst [vmem:[#allocation43_spill] sm:$0xff] %v5758_v20  ;;  %1803 = vrot.lane.b32.xlu0 %v5716_v53, %s5152_s12  ;;  %v5762_v23 = vpop.f32.mrb[14].mxu0  ;;  %v5764_v25 = vadd.f32 %v4225_v22, %v4224_v19 }
 0x200   : > { %7536 = vst [vmem:[#allocation44_spill] sm:$0xff] %v5762_v23  ;;  %v5766_v26 = vpop.f32.mrb[15].mxu0 }
 0x201   : > { %7537 = vst [vmem:[#allocation45_spill] sm:$0xff] %v5764_v25  ;;  %7538 = vst [vmem:[#allocation46_spill] sm:$0xff] %v5766_v26  ;;  %1801 = vrot.lane.b32.xlu1 %v5704_v48, %s5152_s12 }
 0x203   : > { %2359 = vrot.lane.b32.xlu0 %v5734_v0, %s5152_s12  ;;  %v4227_v28 = vpop.f32.mrb[32].mxu1 }
 0x204   : > { %v4228_v29 = vpop.f32.mrb[33].mxu1 }
 0x205   : > { %2291 = vrot.lane.b32.xlu1 %v5714_v52, %s5151_s1  ;;  %v5774_v31 = vpop.f32.mrb[16].mxu0  ;;  %v5776_v32 = vadd.f32 %v4228_v29, %v4227_v28  ;;  %v4230_v34 = vpop.f32.mrb[34].mxu1 }
 0x206   : > { %7539 = vst [vmem:[#allocation47_spill] sm:$0xff] %v5774_v31  ;;  %v5778_v35 = vpop.f32.mrb[17].mxu0  ;;  %v4231_v37 = vpop.f32.mrb[35].mxu1 }
 0x207   : > { %7540 = vst [vmem:[#allocation48_spill] sm:$0xff] %v5778_v35  ;;  %2743 = vrot.lane.b32.xlu0 %v5738_v7, %s5151_s1  ;;  %v5782_v38 = vpop.f32.mrb[18].mxu0  ;;  %v5784_v40 = vadd.f32 %v4231_v37, %v4230_v34 }
 0x208   : > { %7541 = vst [vmem:[#allocation49_spill] sm:$0xff] %v5782_v38  ;;  %v5786_v41 = vpop.f32.mrb[19].mxu0 }
 0x209   : > { %7542 = vst [vmem:[#allocation50_spill] sm:$0xff] %v5784_v40  ;;  %7543 = vst [vmem:[#allocation51_spill] sm:$0xff] %v5786_v41  ;;  %2293 = vrot.lane.b32.xlu1 %v5722_v57, %s5151_s1 }
 0x20b   : > { %1743 = vrot.lane.b32.xlu0 %v5736_v1, %s5151_s1  ;;  %v4233_v44 = vpop.f32.mrb[36].mxu1 }
 0x20c   : > { %v4234_v46 = vpop.f32.mrb[37].mxu1 }
 0x20d   : > { %2357 = vrot.lane.b32.xlu1 %v5722_v57, %s5152_s12  ;;  %v5794_v50 = vpop.f32.mrb[20].mxu0  ;;  %v5796_v51 = vadd.f32 %v4234_v46, %v4233_v44  ;;  %v4236_v54 = vpop.f32.mrb[38].mxu1 }
 0x20e   : > { %7544 = vst [vmem:[#allocation52_spill] sm:$0xff] %v5794_v50  ;;  %v5798_v56 = vpop.f32.mrb[21].mxu0  ;;  %v4237_v62 = vpop.f32.mrb[39].mxu1 }
 0x20f   : > { %7545 = vst [vmem:[#allocation53_spill] sm:$0xff] %v5796_v51  ;;  %7546 = vst [vmem:[#allocation54_spill] sm:$0xff] %v5798_v56  ;;  %1807 = vrot.lane.b32.xlu0 %v5736_v1, %s5152_s12  ;;  %v5802_v63 = vpop.f32.mrb[22].mxu0  ;;  %v5804_v6 = vadd.f32 %v4237_v62, %v4236_v54 }
 0x210   : > { %v5806_v10 = vpop.f32.mrb[23].mxu0 }
 0x211   : > { %7547 = vst [vmem:[#allocation55_spill] sm:$0xff] %v5804_v6  ;;  %7548 = vst [vmem:[#allocation56_spill] sm:$0xff] %v5806_v10  ;;  %2741 = vrot.lane.b32.xlu1 %v5726_v59, %s5151_s1 }
 0x213   : > { %2363 = vrot.lane.b32.xlu0 %v5754_v16, %s5152_s12 }
 0x215   : > { %1741 = vrot.lane.b32.xlu1 %v5724_v58, %s5151_s1  ;;  %v5814_v14 = vpop.f32.mrb[24].mxu0 }
 0x216   : > { %v5816_v15 = vpop.f32.mrb[25].mxu0 }
 0x217   : > { %7549 = vst [vmem:[#allocation57_spill] sm:$0xff] %v5816_v15  ;;  %2747 = vrot.lane.b32.xlu0 %v5758_v20, %s5151_s1  ;;  %v5820_v19 = vpop.f32.mrb[26].mxu0 }
 0x218   : > { %v5822_v22 = vpop.f32.mrb[27].mxu0 }
 0x219   : > { %7550 = vst [vmem:[#allocation58_spill] sm:$0xff] %v5822_v22  ;;  %1805 = vrot.lane.b32.xlu1 %v5724_v58, %s5152_s12 }
 0x21b   : > { %1747 = vrot.lane.b32.xlu0 %v5756_v17, %s5151_s1 }
 0x21d   : > { %2295 = vrot.lane.b32.xlu1 %v5734_v0, %s5151_s1  ;;  %v5830_v28 = vpop.f32.mrb[28].mxu0 }
 0x21e   : > { %v5832_v29 = vpop.f32.mrb[29].mxu0 }
 0x21f   : > { %7551 = vst [vmem:[#allocation59_spill] sm:$0xff] %v5832_v29  ;;  %1811 = vrot.lane.b32.xlu0 %v5756_v17, %s5152_s12  ;;  %v5836_v34 = vpop.f32.mrb[30].mxu0 }
 0x220   : > { %v5838_v37 = vpop.f32.mrb[31].mxu0 }
 0x221   : > { %7552 = vst [vmem:[#allocation60_spill] sm:$0xff] %v5838_v37  ;;  %2297 = vrot.lane.b32.xlu1 %v5742_v11, %s5151_s1 }
 0x223   : > { %2367 = vrot.lane.b32.xlu0 %v5774_v31, %s5152_s12 }
 0x225   : > { %2361 = vrot.lane.b32.xlu1 %v5742_v11, %s5152_s12  ;;  %v5846_v44 = vpop.f32.mrb[32].mxu0 }
 0x226   : > { %v5848_v46 = vpop.f32.mrb[33].mxu0 }
 0x227   : > { %7553 = vst [vmem:[#allocation61_spill] sm:$0xff] %v5848_v46  ;;  %2751 = vrot.lane.b32.xlu0 %v5778_v35, %s5151_s1  ;;  %v5852_v54 = vpop.f32.mrb[34].mxu0 }
 0x228   : > { %v5854_v62 = vpop.f32.mrb[35].mxu0 }
 0x229   : > { %7554 = vst [vmem:[#allocation62_spill] sm:$0xff] %v5854_v62  ;;  %2745 = vrot.lane.b32.xlu1 %v5746_v13, %s5151_s1 }
 0x22b   : > { %1751 = vrot.lane.b32.xlu0 %v5776_v32, %s5151_s1 }
 0x22d   : > { %1745 = vrot.lane.b32.xlu1 %v5744_v12, %s5151_s1  ;;  %v5862_v27 = vpop.f32.mrb[36].mxu0 }
 0x22e   : > { %v5864_v21 = vpop.f32.mrb[37].mxu0 }
 0x22f   : > { %7555 = vst [vmem:[#allocation63_spill] sm:$0xff] %v5864_v21  ;;  %1815 = vrot.lane.b32.xlu0 %v5776_v32, %s5152_s12  ;;  %v5868_v58 = vpop.f32.mrb[38].mxu0 }
 0x230   : > { %7556 = vst [vmem:[#allocation64_spill] sm:$0xff] %v5868_v58  ;;  %v5870_v48 = vpop.f32.mrb[39].mxu0 }
 0x231   : > { %7557 = vst [vmem:[#allocation65_spill] sm:$0xff] %v5870_v48  ;;  %1809 = vrot.lane.b32.xlu1 %v5744_v12, %s5152_s12 }
 0x233   : > { %2371 = vrot.lane.b32.xlu0 %v5794_v50, %s5152_s12 }
 0x235   : > { %2299 = vrot.lane.b32.xlu1 %v5754_v16, %s5151_s1  ;;  %v5878_v39 = vpop.f32.mrb[40].mxu0 }
 0x236   : > { %7558 = vst [vmem:[#allocation66_spill] sm:$0xff] %v5878_v39  ;;  %v5880_v36 = vpop.f32.mrb[41].mxu0 }
 0x237   : > { %7559 = vst [vmem:[#allocation67_spill] sm:$0xff] %v5880_v36  ;;  %2755 = vrot.lane.b32.xlu0 %v5798_v56, %s5151_s1  ;;  %v5884_v33 = vpop.f32.mrb[42].mxu0 }
 0x238   : > { %7560 = vst [vmem:[#allocation68_spill] sm:$0xff] %v5884_v33  ;;  %v5886_v13 = vpop.f32.mrb[43].mxu0 }
 0x239   : > { %7561 = vst [vmem:[#allocation69_spill] sm:$0xff] %v5886_v13  ;;  %v5888_v59 = vpop.permute.xlu0 %1719  ;;  %2301 = vrot.lane.b32.xlu1 %v5762_v23, %s5151_s1 }
 0x23b   : > { %v5892_v12 = vpop.permute.xlu1 %1721  ;;  %1755 = vrot.lane.b32.xlu0 %v5796_v51, %s5151_s1 }
 0x23c   : > { %7562 = vst [vmem:[#allocation70_spill] sm:$0xff] %v5892_v12 }
 0x23d   : > { %v5896_v49 = vpop.permute.xlu0 %1783  ;;  %2365 = vrot.lane.b32.xlu1 %v5762_v23, %s5152_s12  ;;  %v5900_v17 = vpop.f32.mrb[44].mxu0 }
 0x23e   : > { %v5902_v1 = vpop.f32.mrb[45].mxu0 }
 0x23f   : > { %7563 = vst [vmem:[#allocation71_spill] sm:$0xff] %v5902_v1  ;;  %v5904_v53 = vpop.permute.xlu1 %1785  ;;  %1819 = vrot.lane.b32.xlu0 %v5796_v51, %s5152_s12  ;;  %v5908_v43 = vpop.f32.mrb[46].mxu0 }
 0x240   : > { %7564 = vst [vmem:[#allocation72_spill] sm:$0xff] %v5904_v53  ;;  %7565 = vst [vmem:[#allocation73_spill] sm:$0xff] %v5908_v43  ;;  %v5910_v12 = vpop.f32.mrb[47].mxu0 }
 0x241   : > { %7566 = vst [vmem:[#allocation74_spill] sm:$0xff] %v5910_v12  ;;  %v5912_v30 = vpop.permute.xlu0 %1723  ;;  %2749 = vrot.lane.b32.xlu1 %v5766_v26, %s5151_s1 }
 0x243   : > { %v5916_v56 = vpop.permute.xlu1 %1725  ;;  %2375 = vrot.lane.b32.xlu0 %v5814_v14, %s5152_s12 }
 0x244   : > { %7567 = vst [vmem:[#allocation75_spill] sm:$0xff] %v5916_v56 }
 0x245   : > { %v5920_v35 = vpop.permute.xlu0 %1787  ;;  %1749 = vrot.lane.b32.xlu1 %v5764_v25, %s5151_s1  ;;  %v5924_v53 = vpop.f32.mrb[48].mxu0 }
 0x246   : > { %7568 = vst [vmem:[#allocation76_spill] sm:$0xff] %v5924_v53  ;;  %v5926_v20 = vpop.f32.mrb[49].mxu0 }
 0x247   : > { %7569 = vst [vmem:[#allocation77_spill] sm:$0xff] %v5926_v20  ;;  %v5928_v12 = vpop.permute.xlu1 %1789  ;;  %2759 = vrot.lane.b32.xlu0 %v5816_v15, %s5151_s1  ;;  %v5932_v26 = vpop.f32.mrb[50].mxu0 }
 0x248   : > { %7570 = vst [vmem:[#allocation78_spill] sm:$0xff] %v5928_v12  ;;  %7571 = vst [vmem:[#allocation79_spill] sm:$0xff] %v5932_v26  ;;  %v5934_v56 = vpop.f32.mrb[51].mxu0  ;;  %v4725_v26 = vld [vmem:[#allocation8] sm:$0xff]  }
 0x249   : > { %7572 = vst [vmem:[#allocation80_spill] sm:$0xff] %v5934_v56  ;;  %v5936_v7 = vpop.permute.xlu0 %1727  ;;  %1813 = vrot.lane.b32.xlu1 %v5764_v25, %s5152_s12 }
 0x24a   : > { %7573 = vst [vmem:[#allocation81_spill] sm:$0xff] %v5936_v7 }
 0x24b   : > { %v5940_v55 = vpop.permute.xlu1 %1729  ;;  %2379 = vrot.lane.b32.xlu0 %v5830_v28, %s5152_s12 }
 0x24c   : > { %7574 = vst [vmem:[#allocation82_spill] sm:$0xff] %v5940_v55 }
 0x24d   : > { %v5944_v13 = vpop.permute.xlu0 %1791  ;;  %2303 = vrot.lane.b32.xlu1 %v5774_v31, %s5151_s1  ;;  %v5948_v12 = vpop.f32.mrb[52].mxu0 }
 0x24e   : > { %7575 = vst [vmem:[#allocation83_spill] sm:$0xff] %v5944_v13  ;;  %v5950_v15 = vpop.f32.mrb[53].mxu0  ;;  %v4724_v13 = vld [vmem:[#allocation8 + $0x40] sm:$0xff]  }
 0x24f   : > { %7576 = vst [vmem:[#allocation84_spill] sm:$0xff] %v5950_v15  ;;  %v5952_v56 = vpop.permute.xlu1 %1793  ;;  %2763 = vrot.lane.b32.xlu0 %v5832_v29, %s5151_s1  ;;  %v5956_v25 = vpop.f32.mrb[54].mxu0  ;;  %4239 = vmatprep.subr.bf16.mxu1 %v4724_v13  ;;  %v1680_v29 = vlaneseq }
 0x250   : > { %7577 = vst [vmem:[#allocation85_spill] sm:$0xff] %v5952_v56  ;;  %7578 = vst [vmem:[#allocation86_spill] sm:$0xff] %v5956_v25  ;;  %v5958_v55 = vpop.f32.mrb[55].mxu0  ;;  %4240 = vmatpush3.bf16.msra.mxu1 %v4725_v26  ;;  %v4727_v56 = vld [vmem:[#allocation8 + $0x8] sm:$0xff]  }
 0x251   : > { %7579 = vst [vmem:[#allocation87_spill] sm:$0xff] %v5958_v55  ;;  %v5960_v7 = vpop.permute.xlu0 %1731  ;;  %2305 = vrot.lane.b32.xlu1 %v5782_v38, %s5151_s1  ;;  %4241 = vmatprep.subr.bf16.mxu1 %v4726_v45  ;;  %v1681_v26 = vand.u32 127, %v1680_v29 }
 0x252   : > { %7580 = vst [vmem:[#allocation88_spill] sm:$0xff] %v5960_v7 }
 0x253   : > { %v5964_v31 = vpop.permute.xlu1 %1733  ;;  %2383 = vrot.lane.b32.xlu0 %v5846_v44, %s5152_s12  ;;  %v1686_v45 = vand.u32 1, %v1681_v26 }
 0x254   : > { %7581 = vst [vmem:[#allocation89_spill] sm:$0xff] %v5964_v31  ;;  %4242 = vmatpush3.bf16.msra.mxu1 %v4727_v56  ;;  %v4729_v56 = vld [vmem:[#allocation8 + $0x10] sm:$0xff]  }
 0x255   : > { %v5968_v25 = vpop.permute.xlu0 %1795  ;;  %2369 = vrot.lane.b32.xlu1 %v5782_v38, %s5152_s12  ;;  %v5972_v7 = vpop.f32.mrb[56].mxu0  ;;  %vm6004_vm0 = vcmp.eq.s32.totalorder %v1686_v45, 0 }
 0x256   : > { %7582 = vst [vmem:[#allocation90_spill] sm:$0xff] %v5968_v25  ;;  %v5974_v55 = vpop.f32.mrb[57].mxu0 }
 0x257   : > { %7583 = vst [vmem:[#allocation91_spill] sm:$0xff] %v5974_v55  ;;  %v5976_v33 = vpop.permute.xlu1 %1797  ;;  %2767 = vrot.lane.b32.xlu0 %v5848_v46, %s5151_s1  ;;  %v5980_v31 = vpop.f32.mrb[58].mxu0 }
 0x258   : > { %7584 = vst [vmem:[#allocation92_spill] sm:$0xff] %v5976_v33  ;;  %7585 = vst [vmem:[#allocation93_spill] sm:$0xff] %v5980_v31  ;;  %v5982_v13 = vpop.f32.mrb[59].mxu0 }
 0x259   : > { %7586 = vst [vmem:[#allocation94_spill] sm:$0xff] %v5982_v13  ;;  %v5984_v25 = vpop.permute.xlu0 %2735  ;;  %2753 = vrot.lane.b32.xlu1 %v5786_v41, %s5151_s1  ;;  %v4728_v13 = vld [vmem:[#allocation8 + $0x50] sm:$0xff]  }
 0x25a   : > { %7587 = vst [vmem:[#allocation95_spill] sm:$0xff] %v5984_v25  ;;  %4243 = vmatprep.subr.bf16.mxu1 %v4728_v13  ;;  %v6018_v13 = vld [vmem:[#allocation10] sm:$0xff] }
 0x25b   : > { %v2288_v38 = vpop.permute.xlu1 %2287  ;;  %2387 = vrot.lane.b32.xlu0 %v5862_v27, %s5152_s12  ;;  %4244 = vmatpush3.bf16.msra.mxu1 %v4729_v56  ;;  %7597 = vst [vmem:[#allocation103_spill] sm:$0xff] %v6018_v13 }
 0x25d   : > { %v5990_v33 = vpop.permute.xlu0 %1735  ;;  %1753 = vrot.lane.b32.xlu1 %v5784_v40, %s5151_s1  ;;  %v5994_v31 = vpop.f32.mrb[60].mxu0 }
 0x25e   : > { %7588 = vst [vmem:[#allocation96_spill] sm:$0xff] %v5990_v33  ;;  %7589 = vst [vmem:[#allocation97_spill] sm:$0xff] %v5994_v31  ;;  %v5996_v29 = vpop.f32.mrb[61].mxu0 }
 0x25f   : > { %7590 = vst [vmem:[#allocation98_spill] sm:$0xff] %v5996_v29  ;;  %v2352_v25 = vpop.permute.xlu1 %2351  ;;  %2771 = vrot.lane.b32.xlu0 %v5864_v21, %s5151_s1  ;;  %v6000_v41 = vpop.f32.mrb[62].mxu0  ;;  %v6012_v29 = vld [vmem:[#allocation11] sm:$0xff] }
 0x260   : > { %7591 = vst [vmem:[#allocation99_spill] sm:$0xff] %v6000_v41  ;;  %v6002_v46 = vpop.f32.mrb[63].mxu0  ;;  %7596 = vst [vmem:[#allocation102_spill] sm:$0xff] %v6012_v29  ;;  %v2415_v21 = vsel %vm6004_vm0, %v2288_v38, %v2352_v25  ;;  %v2447_v25 = vmul.f32 %v5694_v42, %v6018_v13  ;;  %v4730_v13 = vld [vmem:[#allocation8 + $0x58] sm:$0xff]  }
 0x261   : > { %7592 = vst [vmem:[#allocation100_spill] sm:$0xff] %v6002_v46  ;;  %v6008_v33 = vpop.permute.xlu0 %1799  ;;  %1817 = vrot.lane.b32.xlu1 %v5784_v40, %s5152_s12  ;;  %v2479_v45 = vmul.f32 %v2415_v21, %v6012_v29  ;;  %v494_v40 = vld [vmem:[#allocation10 + $0x8] sm:$0xff]  ;;  %4245 = vmatprep.subr.bf16.mxu1 %v4730_v13 }
 0x262   : > { %7595 = vst [vmem:[#allocation101_spill] sm:$0xff] %v6008_v33  ;;  %v526_v33 = vld [vmem:[#allocation11 + $0x8] sm:$0xff] }
 0x263   : > { %v2290_v48 = vpop.permute.xlu1 %2289  ;;  %2391 = vrot.lane.b32.xlu0 %v5878_v39, %s5152_s12  ;;  %v2511_v24 = vadd.f32 %v2479_v45, %v2447_v25 }
 0x265   : > { %v6021_v56 = vpop.permute.xlu0 %2355  ;;  %2307 = vrot.lane.b32.xlu1 %v5794_v50, %s5151_s1  ;;  %v4143_v46 = vpop.f32.mrb[64].mxu0  ;;  %v2448_v50 = vmul.f32 %v5702_v47, %v494_v40  ;;  %v2543_v47 = vmul.f32 0.088388346, %v2511_v24 }
 0x266   : > { %v4144_v41 = vpop.f32.mrb[65].mxu0 }
 0x267   : > { %v2354_v38 = vpop.permute.xlu1 %2353  ;;  %2775 = vrot.lane.b32.xlu0 %v5880_v36, %s5151_s1  ;;  %v6029_v39 = vadd.f32 %v4144_v41, %v4143_v46  ;;  %v4146_v51 = vpop.f32.mrb[66].mxu0  ;;  %v4731_v36 = vld [vmem:[#allocation8 + $0x18] sm:$0xff]  }
 0x268   : > { %v2416_v21 = vsel %vm6004_vm0, %v2290_v48, %v2354_v38  ;;  %v4147_v29 = vpop.f32.mrb[67].mxu0  ;;  %4246 = vmatpush3.bf16.msra.mxu1 %v4731_v36 }
 0x269   : > { %v2480_v58 = vmul.f32 %v2416_v21, %v526_v33  ;;  %v6034_v23 = vpop.permute.xlu0 %2739  ;;  %2309 = vrot.lane.b32.xlu1 %v5802_v63, %s5151_s1  ;;  %v6038_v42 = vadd.f32 %v4147_v29, %v4146_v51 }
 0x26a   : > { %7598 = vst [vmem:[#allocation104_spill] sm:$0xff] %v6034_v23 }
 0x26b   : > { %v2512_v41 = vadd.f32 %v2480_v58, %v2448_v50  ;;  %v6040_v46 = vpop.permute.xlu1 %2737  ;;  %2395 = vrot.lane.b32.xlu0 %v5900_v17, %s5152_s12 }
 0x26c   : > { %7599 = vst [vmem:[#allocation105_spill] sm:$0xff] %v6040_v46 }
 0x26d   : > { %v2544_v33 = vmul.f32 0.088388346, %v2512_v41  ;;  %v6044_v48 = vpop.permute.xlu0 %1739  ;;  %2373 = vrot.lane.b32.xlu1 %v5802_v63, %s5152_s12  ;;  %v4149_v40 = vpop.f32.mrb[68].mxu0  ;;  %v4732_v41 = vld [vmem:[#allocation8 + $0x60] sm:$0xff]  }
 0x26e   : > { %7600 = vst [vmem:[#allocation106_spill] sm:$0xff] %v6044_v48  ;;  %v4150_v51 = vpop.f32.mrb[69].mxu0  ;;  %4247 = vmatprep.subr.bf16.mxu1 %v4732_v41 }
 0x26f   : > { %v3924_v29 = vpack.c.bf16 %v2544_v33, %v2543_v47  ;;  %v6048_v45 = vpop.permute.xlu1 %1737  ;;  %2779 = vrot.lane.b32.xlu0 %v5902_v1, %s5151_s1  ;;  %v6052_v58 = vadd.f32 %v4150_v51, %v4149_v40  ;;  %v4152_v50 = vpop.f32.mrb[70].mxu0  ;;  %v4733_v47 = vld [vmem:[#allocation8 + $0x20] sm:$0xff]  }
 0x270   : > { %7601 = vst [vmem:[#allocation107_spill] sm:$0xff] %v6048_v45  ;;  %v4153_v13 = vpop.f32.mrb[71].mxu0  ;;  %4248 = vmatpush3.bf16.msra.mxu1 %v4733_v47 }
 0x271   : > { %3925 = vst [vmem:[%s6056_s13] sm:$0xff] %v3924_v29   ;;  %v6059_v24 = vpop.permute.xlu0 %1803  ;;  %2757 = vrot.lane.b32.xlu1 %v5806_v10, %s5151_s1  ;;  %v6063_v36 = vadd.f32 %v4153_v13, %v4152_v50  ;;  %v527_v13 = vld [vmem:[#allocation11 + $0x10] sm:$0xff] }
 0x272   : > { %7602 = vst [vmem:[#allocation108_spill] sm:$0xff] %v6059_v24 }
 0x273   : > { %7603 = vst [vmem:[#allocation109_spill] sm:$0xff] %v6063_v36  ;;  %v6065_v25 = vpop.permute.xlu1 %1801  ;;  %2333 = vrot.lane.b32.xlu0 %v5908_v43, %s5151_s1  ;;  %v4735_v36 = vld [vmem:[#allocation8 + $0x28] sm:$0xff]  }
 0x274   : > { %7604 = vst [vmem:[#allocation110_spill] sm:$0xff] %v6065_v25  ;;  %v495_v25 = vld [vmem:[#allocation10 + $0x10] sm:$0xff] }
 0x275   : > { %v6069_v38 = vpop.permute.xlu0 %2359  ;;  %1757 = vrot.lane.b32.xlu1 %v5804_v6, %s5151_s1  ;;  %v4155_v21 = vpop.f32.mrb[72].mxu0 }
 0x276   : > { %v4156_v33 = vpop.f32.mrb[73].mxu0 }
 0x277   : > { %v2292_v40 = vpop.permute.xlu1 %2291  ;;  %2399 = vrot.lane.b32.xlu0 %v5924_v53, %s5152_s12  ;;  %v6075_v51 = vadd.f32 %v4156_v33, %v4155_v21  ;;  %v4158_v29 = vpop.f32.mrb[74].mxu0  ;;  %v496_v33 = vld [vmem:[#allocation10 + $0x18] sm:$0xff] }
 0x278   : > { %v4159_v50 = vpop.f32.mrb[75].mxu0  ;;  %v2417_v46 = vsel %vm6004_vm0, %v2292_v40, %v6021_v56  ;;  %v2449_v56 = vmul.f32 %v5714_v52, %v495_v25  ;;  %v528_v40 = vld [vmem:[#allocation11 + $0x18] sm:$0xff]  ;;  %v4734_v25 = vld [vmem:[#allocation8 + $0x68] sm:$0xff]  }
 0x279   : > { %v6080_v23 = vpop.permute.xlu0 %2743  ;;  %1821 = vrot.lane.b32.xlu1 %v5804_v6, %s5152_s12  ;;  %v6084_v45 = vadd.f32 %v4159_v50, %v4158_v29  ;;  %v2481_v21 = vmul.f32 %v2417_v46, %v527_v13  ;;  %4249 = vmatprep.subr.bf16.mxu1 %v4734_v25 }
 0x27a   : > { %7605 = vst [vmem:[#allocation111_spill] sm:$0xff] %v6080_v23  ;;  %4250 = vmatpush3.bf16.msra.mxu1 %v4735_v36 }
 0x27b   : > { %7606 = vst [vmem:[#allocation112_spill] sm:$0xff] %v6084_v45  ;;  %v2294_v10 = vpop.permute.xlu1 %2293  ;;  %2783 = vrot.lane.b32.xlu0 %v5926_v20, %s5151_s1  ;;  %v2513_v45 = vadd.f32 %v2481_v21, %v2449_v56  ;;  %v4736_v56 = vld [vmem:[#allocation8 + $0x70] sm:$0xff]  }
 0x27c   : > { %4251 = vmatprep.subr.bf16.mxu1 %v4736_v56 }
 0x27d   : > { %v6088_v41 = vpop.permute.xlu0 %1743  ;;  %2311 = vrot.lane.b32.xlu1 %v5814_v14, %s5151_s1  ;;  %v4161_v47 = vpop.f32.mrb[76].mxu0 }
 0x27e   : > { %7607 = vst [vmem:[#allocation113_spill] sm:$0xff] %v6088_v41  ;;  %v4162_v23 = vpop.f32.mrb[77].mxu0  ;;  %v2450_v41 = vmul.f32 %v5722_v57, %v496_v33  ;;  %v4737_v33 = vld [vmem:[#allocation8 + $0x30] sm:$0xff]  }
 0x27f   : > { %v2358_v6 = vpop.permute.xlu1 %2357  ;;  %2403 = vrot.lane.b32.xlu0 %v5948_v12, %s5152_s12  ;;  %v6095_v29 = vadd.f32 %v4162_v23, %v4161_v47  ;;  %v4164_v50 = vpop.f32.mrb[78].mxu0  ;;  %4252 = vmatpush3.bf16.msra.mxu1 %v4737_v33  ;;  %v4738_v33 = vld [vmem:[#allocation8 + $0x78] sm:$0xff]  }
 0x280   : > { %v2418_v46 = vsel %vm6004_vm0, %v2294_v10, %v2358_v6  ;;  %v4165_v13 = vpop.f32.mrb[79].mxu0  ;;  %v2545_v6 = vmul.f32 0.088388346, %v2513_v45  ;;  %4253 = vmatprep.subr.bf16.mxu1 %v4738_v33 }
 0x281   : > { %v2482_v48 = vmul.f32 %v2418_v46, %v528_v40  ;;  %v6100_v24 = vpop.permute.xlu0 %1807  ;;  %2313 = vrot.lane.b32.xlu1 %v5820_v19, %s5151_s1  ;;  %v6104_v52 = vadd.f32 %v4165_v13, %v4164_v50 }
 0x283   : > { %v2514_v23 = vadd.f32 %v2482_v48, %v2450_v41  ;;  %v6106_v47 = vpop.permute.xlu1 %2741  ;;  %2787 = vrot.lane.b32.xlu0 %v5950_v15, %s5151_s1 }
 0x284   : > { %7608 = vst [vmem:[#allocation114_spill] sm:$0xff] %v6106_v47 }
 0x285   : > { %v2546_v57 = vmul.f32 0.088388346, %v2514_v23  ;;  %v6110_v10 = vpop.permute.xlu0 %2363  ;;  %2377 = vrot.lane.b32.xlu1 %v5820_v19, %s5152_s12  ;;  %v4167_v21 = vpop.f32.mrb[80].mxu0 }
 0x286   : > { %v4168_v40 = vpop.f32.mrb[81].mxu0 }
 0x287   : > { %v3929_v48 = vpack.c.bf16 %v2546_v57, %v2545_v6  ;;  %v6114_v41 = vpop.permute.xlu1 %1741  ;;  %2407 = vrot.lane.b32.xlu0 %v5972_v7, %s5152_s12  ;;  %v6118_v50 = vadd.f32 %v4168_v40, %v4167_v21  ;;  %v4170_v45 = vpop.f32.mrb[82].mxu0 }
 0x288   : > { %7609 = vst [vmem:[#allocation115_spill] sm:$0xff] %v6114_v41  ;;  %v4171_v36 = vpop.f32.mrb[83].mxu0  ;;  %v498_v41 = vld [vmem:[#allocation10 + $0x28] sm:$0xff] }
 0x289   : > { %4096 = vst [vmem:[%s6056_s13 + $0x8] sm:$0xff] %v3929_v48   ;;  %v6121_v46 = vpop.permute.xlu0 %2747  ;;  %2761 = vrot.lane.b32.xlu1 %v5822_v22, %s5151_s1  ;;  %v6125_v13 = vadd.f32 %v4171_v36, %v4170_v45  ;;  %v4739_v48 = vld [vmem:[#allocation8 + $0x38] sm:$0xff]   ;;  %v6143_v45 = vld [vmem:[#allocation11 + $0x20] sm:$0xff] }
 0x28a   : > { %7610 = vst [vmem:[#allocation116_spill] sm:$0xff] %v6121_v46  ;;  %4254 = vmatpush3.bf16.msra.mxu1 %v4739_v48  ;;  %v2452_v48 = vmul.f32 %v5742_v11, %v498_v41  ;;  %v6176_v11 = vld [vmem:[#allocation11 + $0x60] sm:$0xff]  ;;  %v1835_v41 = vsel %vm6004_vm0, %v5888_v59, %v5896_v49 }
 0x28b   : > { %7611 = vst [vmem:[#allocation117_spill] sm:$0xff] %v6125_v13  ;;  %v6127_v25 = vpop.permute.xlu1 %1805  ;;  %2791 = vrot.lane.b32.xlu0 %v5974_v55, %s5151_s1 }
 0x28c   : > { %7612 = vst [vmem:[#allocation118_spill] sm:$0xff] %v6127_v25  ;;  %v530_v25 = vld [vmem:[#allocation11 + $0x28] sm:$0xff] }
 0x28d   : > { %v6131_v23 = vpop.permute.xlu0 %1747  ;;  %2315 = vrot.lane.b32.xlu1 %v5830_v28, %s5151_s1  ;;  %v4173_v6 = vpop.f32.mrb[84].mxu0  ;;  %1552 = vmatmul.mubr.bf16.vlgmr.msra.gmra.mrb[40].mxu1 %v5564_v60 }
 0x28e   : > { %7613 = vst [vmem:[#allocation119_spill] sm:$0xff] %v6131_v23  ;;  %v4174_v57 = vpop.f32.mrb[85].mxu0  ;;  %1559 = vmatprep.mubr.bf16.mxu1 %v5567_v61 }
 0x28f   : > { %v2296_v21 = vpop.permute.xlu1 %2295  ;;  %2411 = vrot.lane.b32.xlu0 %v5994_v31, %s5152_s12  ;;  %v6137_v56 = vadd.f32 %v4174_v57, %v4173_v6  ;;  %v6150_v6 = vld [vmem:[#allocation10 + $0x20] sm:$0xff] }
 0x290   : > { %v2419_v36 = vsel %vm6004_vm0, %v2296_v21, %v6069_v38  ;;  %v2451_v38 = vmul.f32 %v5734_v0, %v6150_v6 }
 0x291   : > { %v6139_v40 = vpop.permute.xlu0 %1811  ;;  %2317 = vrot.lane.b32.xlu1 %v5836_v34, %s5151_s1  ;;  %v2483_v57 = vmul.f32 %v2419_v36, %v6143_v45 }
 0x292   : > { %7614 = vst [vmem:[#allocation120_spill] sm:$0xff] %v6139_v40 }
 0x293   : > { %v2298_v46 = vpop.permute.xlu1 %2297  ;;  %1695 = vrot.lane.b32.xlu0 %v6029_v39, %s5151_s1  ;;  %v2515_v36 = vadd.f32 %v2483_v57, %v2451_v38  ;;  %v6190_v57 = vld [vmem:[#allocation10 + $0xe0] sm:$0xff] }
 0x294   : > { %7618 = vst [vmem:[#allocation124_spill] sm:$0xff] %v6190_v57  ;;  %v6192_v38 = vld [vmem:[#allocation11 + $0xe0] sm:$0xff] }
 0x295   : > { %v6153_v47 = vpop.permute.xlu0 %2367  ;;  %2381 = vrot.lane.b32.xlu1 %v5836_v34, %s5152_s12  ;;  %v2547_v61 = vmul.f32 0.088388346, %v2515_v36  ;;  %1560 = vmatmul.mubr.bf16.gmra.mrb[44].mxu1 %v5579_v2  ;;  %7619 = vst [vmem:[#allocation125_spill] sm:$0xff] %v6192_v38 }
 0x296   : > { %1567 = vmatprep.mubr.bf16.mxu1 %v5582_v3  ;;  %v1883_v3 = vmul.f32 %v5776_v32, %v6190_v57 }
 0x297   : > { %v2362_v21 = vpop.permute.xlu1 %2361  ;;  %1759 = vrot.lane.b32.xlu0 %v6029_v39, %s5152_s12 }
 0x298   : > { %v2420_v33 = vsel %vm6004_vm0, %v2298_v46, %v2362_v21  ;;  %v1899_v21 = vmul.f32 %v1835_v41, %v6176_v11  ;;  %v6255_v41 = vld [vmem:[#allocation10 + $0xf0] sm:$0xff] }
 0x299   : > { %v2484_v22 = vmul.f32 %v2420_v33, %v530_v25  ;;  %v6166_v13 = vpop.permute.xlu0 %2751  ;;  %2765 = vrot.lane.b32.xlu1 %v5838_v37, %s5151_s1  ;;  %v6188_v25 = vld [vmem:[#allocation10 + $0x60] sm:$0xff]  ;;  %7624 = vst [vmem:[#allocation130_spill] sm:$0xff] %v6255_v41 }
 0x29a   : > { %7615 = vst [vmem:[#allocation121_spill] sm:$0xff] %v6166_v13  ;;  %v1867_v59 = vmul.f32 %v5646_v18, %v6188_v25 }
 0x29b   : > { %v2516_v60 = vadd.f32 %v2484_v22, %v2452_v48  ;;  %v6170_v0 = vpop.permute.xlu1 %2745  ;;  %1697 = vrot.lane.b32.xlu0 %v6038_v42, %s5151_s1  ;;  %v4176_v48 = vpop.f32.mrb[86].mxu0 }
 0x29c   : > { %7616 = vst [vmem:[#allocation122_spill] sm:$0xff] %v6170_v0  ;;  %v6209_v36 = vadd.f32 %v1899_v21, %v1867_v59  ;;  %v4177_v18 = vpop.f32.mrb[87].mxu0  ;;  %v6229_v21 = vld [vmem:[#allocation11 + $0x30] sm:$0xff] }
 0x29d   : > { %v2548_v23 = vmul.f32 0.088388346, %v2516_v60  ;;  %v1752_v40 = vpop.permute.xlu0 %1751  ;;  %2319 = vrot.lane.b32.xlu1 %v5846_v44, %s5151_s1  ;;  %1568 = vmatmul.mubr.bf16.gmra.mrb[48].mxu1 %v5593_v4 }
 0x29e   : > { %7621 = vst [vmem:[#allocation127_spill] sm:$0xff] %v6209_v36  ;;  %1575 = vmatprep.mubr.bf16.mxu1 %v5596_v5 }
 0x29f   : > { %v3934_v22 = vpack.c.bf16 %v2548_v23, %v2547_v61  ;;  %v6183_v46 = vpop.permute.xlu1 %1745  ;;  %1763 = vrot.lane.b32.xlu0 %v6052_v58, %s5152_s12 }
 0x2a0   : > { %7617 = vst [vmem:[#allocation123_spill] sm:$0xff] %v6183_v46  ;;  %v7628_v46 = vld [vmem:[#allocation24_spill] sm:$0xff] }
 0x2a1   : > { %4097 = vst [vmem:[%s6056_s13 + $0x10] sm:$0xff] %v3934_v22   ;;  %v1816_v49 = vpop.permute.xlu0 %1815  ;;  %2321 = vrot.lane.b32.xlu1 %v5852_v54, %s5151_s1 }
 0x2a2   : > { %v1851_v2 = vsel %vm6004_vm0, %v1752_v40, %v1816_v49  ;;  %v6217_v40 = vadd.f32 %v4177_v18, %v4176_v48  ;;  %v532_v48 = vld [vmem:[#allocation11 + $0x38] sm:$0xff] }
 0x2a3   : > { %v1915_v23 = vmul.f32 %v1851_v2, %v6192_v38  ;;  %v6205_v33 = vpop.permute.xlu1 %1809  ;;  %1703 = vrot.lane.b32.xlu0 %v6075_v51, %s5151_s1  ;;  %v6236_v2 = vld [vmem:[#allocation10 + $0x30] sm:$0xff] }
 0x2a4   : > { %7620 = vst [vmem:[#allocation126_spill] sm:$0xff] %v6205_v33  ;;  %v2453_v18 = vmul.f32 %v5754_v16, %v6236_v2 }
 0x2a5   : > { %v6211_v60 = vadd.f32 %v1915_v23, %v1883_v3  ;;  %v6213_v61 = vpop.permute.xlu0 %2371  ;;  %2385 = vrot.lane.b32.xlu1 %v5852_v54, %s5152_s12  ;;  %v500_v3 = vld [vmem:[#allocation10 + $0x38] sm:$0xff]  ;;  %v6241_v23 = vld [vmem:[#allocation11 + $0x70] sm:$0xff]  ;;  %1576 = vmatmul.mubr.bf16.gmra.mrb[52].mxu1 %v5607_v8 }
 0x2a6   : > { %1583 = vmatprep.mubr.bf16.mxu1 %v5610_v9 }
 0x2a7   : > { %7622 = vst [vmem:[#allocation128_spill] sm:$0xff] %v6211_v60  ;;  %v2300_v32 = vpop.permute.xlu1 %2299  ;;  %1767 = vrot.lane.b32.xlu0 %v6075_v51, %s5152_s12  ;;  %v7627_v60 = vld [vmem:[#allocation64_spill] sm:$0xff] }
 0x2a8   : > { %v2421_v4 = vsel %vm6004_vm0, %v2300_v32, %v6110_v10  ;;  %v1837_v10 = vsel %vm6004_vm0, %v5912_v30, %v5920_v35  ;;  %v6259_v30 = vld [vmem:[#allocation11 + $0xf0] sm:$0xff]  ;;  %v7626_v35 = vld [vmem:[#allocation44_spill] sm:$0xff] }
 0x2a9   : > { %v6225_v22 = vpop.permute.xlu0 %2755  ;;  %2769 = vrot.lane.b32.xlu1 %v5854_v62, %s5151_s1  ;;  %v2485_v5 = vmul.f32 %v2421_v4, %v6229_v21  ;;  %v6253_v4 = vld [vmem:[#allocation10 + $0x70] sm:$0xff]  ;;  %7625 = vst [vmem:[#allocation131_spill] sm:$0xff] %v6259_v30  ;;  %v2454_v8 = vmul.f32 %v7626_v35, %v500_v3  ;;  %v1901_v13 = vmul.f32 %v1837_v10, %v6241_v23 }
 0x2aa   : > { %7623 = vst [vmem:[#allocation129_spill] sm:$0xff] %v6225_v22  ;;  %v1869_v33 = vmul.f32 %v7628_v46, %v6253_v4 }
 0x2ab   : > { %v2302_v49 = vpop.permute.xlu1 %2301  ;;  %1707 = vrot.lane.b32.xlu0 %v6095_v29, %s5151_s1  ;;  %v2517_v16 = vadd.f32 %v2485_v5, %v2453_v18 }
 0x2ad   : > { %v1756_v59 = vpop.permute.xlu0 %1755  ;;  %2323 = vrot.lane.b32.xlu1 %v5862_v27, %s5151_s1 }
 0x2af   : > { %v2366_v32 = vpop.permute.xlu1 %2365  ;;  %1771 = vrot.lane.b32.xlu0 %v6095_v29, %s5152_s12 }
 0x2b0   : > { %v2422_v22 = vsel %vm6004_vm0, %v2302_v49, %v2366_v32  ;;  %v7629_v49 = vld [vmem:[#allocation53_spill] sm:$0xff] }
 0x2b1   : > { %v2486_v0 = vmul.f32 %v2422_v22, %v532_v48  ;;  %v1820_v36 = vpop.permute.xlu0 %1819  ;;  %2325 = vrot.lane.b32.xlu1 %v7627_v60, %s5151_s1  ;;  %v1885_v32 = vmul.f32 %v7629_v49, %v6255_v41  ;;  %v6276_v22 = vadd.f32 %v1901_v13, %v1869_v33  ;;  %v2549_v48 = vmul.f32 0.088388346, %v2517_v16  ;;  %v4741_v13 = vld [vmem:[%s5451_s16 + $0x54] ss:$8 sps:$4 sm:$0xff]  }
 0x2b2   : > { %v1853_v9 = vsel %vm6004_vm0, %v1756_v59, %v1820_v36  ;;  %v7635_v16 = vld [vmem:[#allocation65_spill] sm:$0xff]  ;;  %v7640_v33 = vld [vmem:[#allocation98_spill] sm:$0xff] }
 0x2b3   : > { %v2518_v3 = vadd.f32 %v2486_v0, %v2454_v8  ;;  %v1917_v10 = vmul.f32 %v1853_v9, %v6259_v30  ;;  %v6272_v5 = vpop.permute.xlu1 %2749  ;;  %1711 = vrot.lane.b32.xlu0 %v6118_v50, %s5151_s1  ;;  %7631 = vst [vmem:[#allocation64_spill] sm:$0xff] %v6276_v22  ;;  %v4740_v0 = vld [vmem:[%s5451_s16 + $0x40] ss:$8 sps:$4 sm:$0xff]   ;;  %v7643_v41 = vld [vmem:[#allocation49_spill] sm:$0xff] }
 0x2b4   : > { %7630 = vst [vmem:[#allocation44_spill] sm:$0xff] %v6272_v5  ;;  %1584 = vmatmul.mubr.bf16.gmra.mrb[56].mxu1 %v4740_v0  ;;  %v7639_v0 = vld [vmem:[#allocation68_spill] sm:$0xff] }
 0x2b5   : > { %v2550_v36 = vmul.f32 0.088388346, %v2518_v3  ;;  %v6278_v59 = vadd.f32 %v1917_v10, %v1885_v32  ;;  %v6280_v46 = vpop.permute.xlu0 %2375  ;;  %2389 = vrot.lane.b32.xlu1 %v7627_v60, %s5152_s12  ;;  %1591 = vmatprep.mubr.bf16.mxu1 %v4741_v13  ;;  %v7637_v32 = vld [vmem:[#allocation66_spill] sm:$0xff]  ;;  %v534_v22 = vld [vmem:[#allocation11 + $0x48] sm:$0xff] }
 0x2b6   : > { %v4742_v3 = vld [vmem:[%s5451_s16 + $0x50] ss:$8 sps:$4 sm:$0xff]  }
 0x2b7   : > { %7632 = vst [vmem:[#allocation24_spill] sm:$0xff] %v6278_v59  ;;  %v3939_v18 = vpack.c.bf16 %v2550_v36, %v2549_v48  ;;  %v6285_v35 = vpop.permute.xlu1 %1749  ;;  %1775 = vrot.lane.b32.xlu0 %v6118_v50, %s5152_s12  ;;  %v4743_v48 = vld [vmem:[%s5451_s16 + $0x64] ss:$8 sps:$4 sm:$0xff]   ;;  %v4744_v59 = vld [vmem:[%s5451_s16 + $0x60] ss:$8 sps:$4 sm:$0xff]  }
 0x2b8   : > { %7633 = vst [vmem:[#allocation53_spill] sm:$0xff] %v6285_v35  ;;  %v7641_v35 = vld [vmem:[#allocation47_spill] sm:$0xff] }
 0x2b9   : > { %4098 = vst [vmem:[%s6056_s13 + $0x18] sm:$0xff] %v3939_v18   ;;  %v6293_v8 = vpop.permute.xlu0 %2759  ;;  %2773 = vrot.lane.b32.xlu1 %v7635_v16, %s5151_s1  ;;  %v6313_v18 = vld [vmem:[#allocation11 + $0x40] sm:$0xff] }
 0x2ba   : > { %7634 = vst [vmem:[#allocation132_spill] sm:$0xff] %v6293_v8  ;;  %v6320_v8 = vld [vmem:[#allocation10 + $0x40] sm:$0xff] }
 0x2bb   : > { %v6297_v9 = vpop.permute.xlu1 %1813  ;;  %1715 = vrot.lane.b32.xlu0 %v6137_v56, %s5151_s1 }
 0x2bc   : > { %7636 = vst [vmem:[#allocation133_spill] sm:$0xff] %v6297_v9  ;;  %1592 = vmatmul.mubr.bf16.gmra.mrb[60].mxu1 %v4742_v3  ;;  %v7642_v9 = vld [vmem:[#allocation31_spill] sm:$0xff] }
 0x2bd   : > { %v6301_v49 = vpop.permute.xlu0 %2379  ;;  %2327 = vrot.lane.b32.xlu1 %v7637_v32, %s5151_s1  ;;  %1599 = vmatprep.mubr.bf16.mxu1 %v4743_v48 }
 0x2bf   : > { %v2304_v10 = vpop.permute.xlu1 %2303  ;;  %1779 = vrot.lane.b32.xlu0 %v6137_v56, %s5152_s12 }
 0x2c0   : > { %v2423_v13 = vsel %vm6004_vm0, %v2304_v10, %v6153_v47  ;;  %v2455_v47 = vmul.f32 %v7641_v35, %v6320_v8 }
 0x2c1   : > { %v6309_v36 = vpop.permute.xlu0 %2763  ;;  %2329 = vrot.lane.b32.xlu1 %v7639_v0, %s5151_s1  ;;  %v2487_v48 = vmul.f32 %v2423_v13, %v6313_v18 }
 0x2c2   : > { %7638 = vst [vmem:[#allocation66_spill] sm:$0xff] %v6309_v36  ;;  %v502_v36 = vld [vmem:[#allocation10 + $0x48] sm:$0xff] }
 0x2c3   : > { %v2306_v3 = vpop.permute.xlu1 %2305  ;;  %2795 = vrot.lane.b32.xlu0 %v7640_v33, %s5151_s1  ;;  %v4745_v33 = vld [vmem:[%s5451_s16 + $0x74] ss:$8 sps:$4 sm:$0xff]   ;;  %v2456_v30 = vmul.f32 %v7643_v41, %v502_v36  ;;  %v2519_v57 = vadd.f32 %v2487_v48, %v2455_v47  ;;  %v4746_v41 = vld [vmem:[%s5451_s16 + $0x70] ss:$8 sps:$4 sm:$0xff]   ;;  %v7652_v47 = vld [vmem:[#allocation43_spill] sm:$0xff] }
 0x2c4   : > { %1600 = vmatmul.mubr.bf16.gmra.mrb[64].mxu1 %v4744_v59  ;;  %v7645_v59 = vld [vmem:[#allocation69_spill] sm:$0xff] }
 0x2c5   : > { %v6323_v5 = vpop.permute.xlu0 %2383  ;;  %2393 = vrot.lane.b32.xlu1 %v7639_v0, %s5152_s12  ;;  %1607 = vmatprep.mubr.bf16.mxu1 %v4745_v33  ;;  %v2551_v33 = vmul.f32 0.088388346, %v2519_v57 }
 0x2c7   : > { %v2370_v10 = vpop.permute.xlu1 %2369  ;;  %2799 = vrot.lane.b32.xlu0 %v7642_v9, %s5152_s12  ;;  %v7647_v9 = vld [vmem:[#allocation35_spill] sm:$0xff] }
 0x2c8   : > { %v2424_v13 = vsel %vm6004_vm0, %v2306_v3, %v2370_v10  ;;  %v7653_v10 = vld [vmem:[#allocation74_spill] sm:$0xff] }
 0x2c9   : > { %v2488_v38 = vmul.f32 %v2424_v13, %v534_v22  ;;  %v6336_v16 = vpop.permute.xlu0 %2767  ;;  %2777 = vrot.lane.b32.xlu1 %v7645_v59, %s5151_s1  ;;  %v4748_v13 = vld [vmem:[%s5451_s16 + $0x80] ss:$8 sps:$4 sm:$0xff]  }
 0x2ca   : > { %7644 = vst [vmem:[#allocation68_spill] sm:$0xff] %v6336_v16  ;;  %v7656_v16 = vld [vmem:[#allocation54_spill] sm:$0xff] }
 0x2cb   : > { %v2520_v35 = vadd.f32 %v2488_v38, %v2456_v30  ;;  %v6340_v62 = vpop.permute.xlu1 %2753  ;;  %2803 = vrot.lane.b32.xlu0 %v7647_v9, %s5152_s12  ;;  %v7649_v38 = vld [vmem:[#allocation39_spill] sm:$0xff]  ;;  %v4750_v9 = vld [vmem:[%s5451_s16 + $0x90] ss:$8 sps:$4 sm:$0xff]  }
 0x2cc   : > { %7646 = vst [vmem:[#allocation47_spill] sm:$0xff] %v6340_v62  ;;  %1608 = vmatmul.mubr.bf16.gmra.mrb[68].mxu1 %v4746_v41  ;;  %v4747_v30 = vld [vmem:[%s5451_s16 + $0x84] ss:$8 sps:$4 sm:$0xff]   ;;  %v4749_v41 = vld [vmem:[%s5451_s16 + $0x94] ss:$8 sps:$4 sm:$0xff]  }
 0x2cd   : > { %v2552_v37 = vmul.f32 0.088388346, %v2520_v35  ;;  %v6344_v3 = vpop.permute.xlu0 %2387  ;;  %2331 = vrot.lane.b32.xlu1 %v5900_v17, %s5151_s1  ;;  %1615 = vmatprep.mubr.bf16.mxu1 %v4747_v30  ;;  %v6375_v30 = vld [vmem:[#allocation11 + $0x50] sm:$0xff] }
 0x2ce   : > { %v6382_v62 = vld [vmem:[#allocation10 + $0x50] sm:$0xff] }
 0x2cf   : > { %v3944_v22 = vpack.c.bf16 %v2552_v37, %v2551_v33  ;;  %v6349_v36 = vpop.permute.xlu1 %1753  ;;  %2807 = vrot.lane.b32.xlu0 %v7649_v38, %s5152_s12  ;;  %v7654_v33 = vld [vmem:[#allocation48_spill] sm:$0xff]  ;;  %v6391_v38 = vld [vmem:[#allocation11 + $0x58] sm:$0xff] }
 0x2d0   : > { %7648 = vst [vmem:[#allocation49_spill] sm:$0xff] %v6349_v36  ;;  %7659 = vst [vmem:[#allocation137_spill] sm:$0xff] %v6391_v38 }
 0x2d1   : > { %4099 = vst [vmem:[%s6056_s13 + $0x20] sm:$0xff] %v3944_v22   ;;  %v6355_v57 = vpop.permute.xlu0 %2771  ;;  %2397 = vrot.lane.b32.xlu1 %v5908_v43, %s5152_s12 }
 0x2d2   : > { %7650 = vst [vmem:[#allocation134_spill] sm:$0xff] %v6355_v57 }
 0x2d3   : > { %v6359_v48 = vpop.permute.xlu1 %1817  ;;  %2811 = vrot.lane.b32.xlu0 %v7652_v47, %s5152_s12  ;;  %v6389_v47 = vld [vmem:[#allocation10 + $0x58] sm:$0xff] }
 0x2d4   : > { %7651 = vst [vmem:[#allocation135_spill] sm:$0xff] %v6359_v48  ;;  %1616 = vmatmul.mubr.bf16.gmra.mrb[72].mxu1 %v4748_v13 }
 0x2d5   : > { %v6363_v37 = vpop.permute.xlu0 %2391  ;;  %2781 = vrot.lane.b32.xlu1 %v7653_v10, %s5151_s1  ;;  %1623 = vmatprep.mubr.bf16.mxu1 %v4749_v41  ;;  %v2458_v10 = vmul.f32 %v5802_v63, %v6389_v47  ;;  %v7665_v63 = vld [vmem:[#allocation80_spill] sm:$0xff] }
 0x2d7   : > { %v2308_v35 = vpop.permute.xlu1 %2307  ;;  %2815 = vrot.lane.b32.xlu0 %v7654_v33, %s5152_s12 }
 0x2d8   : > { %v2425_v57 = vsel %vm6004_vm0, %v2308_v35, %v6213_v61  ;;  %v7660_v61 = vld [vmem:[#allocation52_spill] sm:$0xff] }
 0x2d9   : > { %v6371_v22 = vpop.permute.xlu0 %2775  ;;  %2335 = vrot.lane.b32.xlu1 %v5924_v53, %s5151_s1  ;;  %v2489_v41 = vmul.f32 %v2425_v57, %v6375_v30  ;;  %v2457_v35 = vmul.f32 %v7660_v61, %v6382_v62  ;;  %v4751_v57 = vld [vmem:[%s5451_s16 + $0xa4] ss:$8 sps:$4 sm:$0xff]  }
 0x2da   : > { %7655 = vst [vmem:[#allocation136_spill] sm:$0xff] %v6371_v22  ;;  %v7657_v22 = vld [vmem:[#allocation79_spill] sm:$0xff] }
 0x2db   : > { %v2310_v13 = vpop.permute.xlu1 %2309  ;;  %2819 = vrot.lane.b32.xlu0 %v7656_v16, %s5152_s12  ;;  %7658 = vst [vmem:[#allocation79_spill] sm:$0xff] %v6389_v47  ;;  %v7661_v16 = vld [vmem:[#allocation57_spill] sm:$0xff]  ;;  %v2521_v59 = vadd.f32 %v2489_v41, %v2457_v35 }
 0x2dc   : > { %1624 = vmatmul.mubr.bf16.gmra.mrb[76].mxu1 %v4750_v9 }
 0x2dd   : > { %v6385_v33 = vpop.permute.xlu0 %2395  ;;  %2337 = vrot.lane.b32.xlu1 %v7657_v22, %s5151_s1  ;;  %1631 = vmatprep.mubr.bf16.mxu1 %v4751_v57  ;;  %v7664_v57 = vld [vmem:[#allocation59_spill] sm:$0xff] }
 0x2df   : > { %v2374_v36 = vpop.permute.xlu1 %2373  ;;  %2823 = vrot.lane.b32.xlu0 %v7661_v16, %s5152_s12 }
 0x2e0   : > { %v2426_v48 = vsel %vm6004_vm0, %v2310_v13, %v2374_v36  ;;  %v2553_v36 = vmul.f32 0.088388346, %v2521_v59 }
 0x2e1   : > { %v2490_v9 = vmul.f32 %v2426_v48, %v6391_v38  ;;  %v6404_v53 = vpop.permute.xlu0 %2779  ;;  %2401 = vrot.lane.b32.xlu1 %v7657_v22, %s5152_s12  ;;  %v4752_v48 = vld [vmem:[%s5451_s16 + $0xa0] ss:$8 sps:$4 sm:$0xff]   ;;  %v7686_v38 = vld [vmem:[#allocation26_spill] sm:$0xff] }
 0x2e2   : > { %7662 = vst [vmem:[#allocation52_spill] sm:$0xff] %v6404_v53  ;;  %v7669_v53 = vld [vmem:[#allocation63_spill] sm:$0xff] }
 0x2e3   : > { %v2522_v61 = vadd.f32 %v2490_v9, %v2458_v10  ;;  %v6408_v16 = vpop.permute.xlu1 %2757  ;;  %2827 = vrot.lane.b32.xlu0 %v7664_v57, %s5152_s12  ;;  %v7667_v10 = vld [vmem:[#allocation61_spill] sm:$0xff] }
 0x2e4   : > { %7663 = vst [vmem:[#allocation138_spill] sm:$0xff] %v6408_v16  ;;  %1632 = vmatmul.mubr.bf16.gmra.mrb[80].mxu1 %v4752_v48  ;;  %v4753_v9 = vld [vmem:[%s5451_s16 + $0xb4] ss:$8 sps:$4 sm:$0xff]   ;;  %v4754_v48 = vld [vmem:[%s5451_s16 + $0xb0] ss:$8 sps:$4 sm:$0xff]  }
 0x2e5   : > { %v2554_v13 = vmul.f32 0.088388346, %v2522_v61  ;;  %v6412_v43 = vpop.permute.xlu0 %2333  ;;  %2785 = vrot.lane.b32.xlu1 %v7665_v63, %s5151_s1  ;;  %1639 = vmatprep.mubr.bf16.mxu1 %v4753_v9 }
 0x2e7   : > { %v3949_v41 = vpack.c.bf16 %v2554_v13, %v2553_v36  ;;  %v6417_v35 = vpop.permute.xlu1 %1757  ;;  %2831 = vrot.lane.b32.xlu0 %v7667_v10, %s5152_s12  ;;  %v7671_v13 = vld [vmem:[#allocation86_spill] sm:$0xff]  ;;  %v4755_v10 = vld [vmem:[%s5451_s16 + $0xc4] ss:$8 sps:$4 sm:$0xff]  }
 0x2e8   : > { %7666 = vst [vmem:[#allocation139_spill] sm:$0xff] %v6417_v35  ;;  %v2459_v35 = vmul.f32 %v5814_v14, %v6188_v25 }
 0x2e9   : > { %4100 = vst [vmem:[%s6056_s13 + $0x28] sm:$0xff] %v3949_v41   ;;  %v6423_v59 = vpop.permute.xlu0 %2399  ;;  %2339 = vrot.lane.b32.xlu1 %v5948_v12, %s5151_s1  ;;  %v7672_v41 = vld [vmem:[#allocation67_spill] sm:$0xff] }
 0x2eb   : > { %v6427_v61 = vpop.permute.xlu1 %1821  ;;  %2835 = vrot.lane.b32.xlu0 %v7669_v53, %s5152_s12 }
 0x2ec   : > { %7668 = vst [vmem:[#allocation140_spill] sm:$0xff] %v6427_v61  ;;  %1640 = vmatmul.mubr.bf16.gmra.mrb[84].mxu1 %v4754_v48 }
 0x2ed   : > { %v6431_v36 = vpop.permute.xlu0 %2783  ;;  %2341 = vrot.lane.b32.xlu1 %v7671_v13, %s5151_s1  ;;  %1647 = vmatprep.mubr.bf16.mxu1 %v4755_v10  ;;  %v4756_v10 = vld [vmem:[%s5451_s16 + $0xc0] ss:$8 sps:$4 sm:$0xff]  }
 0x2ee   : > { %7670 = vst [vmem:[#allocation141_spill] sm:$0xff] %v6431_v36 }
 0x2ef   : > { %v2312_v9 = vpop.permute.xlu1 %2311  ;;  %2839 = vrot.lane.b32.xlu0 %v7672_v41, %s5152_s12  ;;  %v7674_v41 = vld [vmem:[#allocation87_spill] sm:$0xff] }
 0x2f0   : > { %v2427_v36 = vsel %vm6004_vm0, %v2312_v9, %v6280_v46  ;;  %v4757_v46 = vld [vmem:[%s5451_s16 + $0xd4] ss:$8 sps:$4 sm:$0xff]   ;;  %v6459_v9 = vld [vmem:[#allocation10 + $0x68] sm:$0xff] }
 0x2f1   : > { %v6439_v57 = vpop.permute.xlu0 %2403  ;;  %2405 = vrot.lane.b32.xlu1 %v7671_v13, %s5152_s12  ;;  %v2491_v48 = vmul.f32 %v2427_v36, %v6176_v11  ;;  %7675 = vst [vmem:[#allocation142_spill] sm:$0xff] %v6459_v9  ;;  %v6461_v11 = vld [vmem:[#allocation11 + $0x68] sm:$0xff] }
 0x2f2   : > { %7676 = vst [vmem:[#allocation143_spill] sm:$0xff] %v6461_v11 }
 0x2f3   : > { %v2314_v53 = vpop.permute.xlu1 %2313  ;;  %2843 = vrot.lane.b32.xlu0 %v5902_v1, %s5152_s12 }
 0x2f4   : > { %1648 = vmatmul.mubr.bf16.gmra.mrb[88].mxu1 %v4756_v10  ;;  %v2460_v10 = vmul.f32 %v5820_v19, %v6459_v9  ;;  %v7679_v19 = vld [vmem:[#allocation93_spill] sm:$0xff] }
 0x2f5   : > { %v6449_v16 = vpop.permute.xlu0 %2787  ;;  %2789 = vrot.lane.b32.xlu1 %v7674_v41, %s5151_s1  ;;  %1655 = vmatprep.mubr.bf16.mxu1 %v4757_v46 }
 0x2f6   : > { %7673 = vst [vmem:[#allocation86_spill] sm:$0xff] %v6449_v16  ;;  %v2523_v16 = vadd.f32 %v2491_v48, %v2459_v35  ;;  %v4758_v35 = vld [vmem:[%s5451_s16 + $0xd0] ss:$8 sps:$4 sm:$0xff]  }
 0x2f7   : > { %v2378_v61 = vpop.permute.xlu1 %2377  ;;  %2847 = vrot.lane.b32.xlu0 %v5926_v20, %s5152_s12 }
 0x2f8   : > { %v2428_v36 = vsel %vm6004_vm0, %v2314_v53, %v2378_v61  ;;  %v2555_v53 = vmul.f32 0.088388346, %v2523_v16 }
 0x2f9   : > { %v2492_v14 = vmul.f32 %v2428_v36, %v6461_v11  ;;  %v6468_v25 = vpop.permute.xlu0 %2407  ;;  %2343 = vrot.lane.b32.xlu1 %v5972_v7, %s5151_s1 }
 0x2fb   : > { %v2524_v46 = vadd.f32 %v2492_v14, %v2460_v10  ;;  %v6472_v20 = vpop.permute.xlu1 %2761  ;;  %2851 = vrot.lane.b32.xlu0 %v5950_v15, %s5152_s12  ;;  %v4759_v10 = vld [vmem:[%s5451_s16 + $0xe4] ss:$8 sps:$4 sm:$0xff]   ;;  %v4760_v15 = vld [vmem:[%s5451_s16 + $0xe0] ss:$8 sps:$4 sm:$0xff]  }
 0x2fc   : > { %7677 = vst [vmem:[#allocation144_spill] sm:$0xff] %v6472_v20  ;;  %1656 = vmatmul.mubr.bf16.gmra.mrb[92].mxu1 %v4758_v35  ;;  %v541_v35 = vld [vmem:[#allocation11 + $0x80] sm:$0xff] }
 0x2fd   : > { %v2556_v61 = vmul.f32 0.088388346, %v2524_v46  ;;  %v6476_v1 = vpop.permute.xlu0 %2791  ;;  %2345 = vrot.lane.b32.xlu1 %v7679_v19, %s5151_s1  ;;  %1663 = vmatprep.mubr.bf16.mxu1 %v4759_v10  ;;  %v7682_v10 = vld [vmem:[#allocation81_spill] sm:$0xff] }
 0x2fe   : > { %7678 = vst [vmem:[#allocation145_spill] sm:$0xff] %v6476_v1  ;;  %v2461_v1 = vmul.f32 %v5830_v28, %v6253_v4  ;;  %v7685_v28 = vld [vmem:[#allocation99_spill] sm:$0xff] }
 0x2ff   : > { %v3954_v48 = vpack.c.bf16 %v2556_v61, %v2555_v53  ;;  %v2316_v36 = vpop.permute.xlu1 %2315  ;;  %2855 = vrot.lane.b32.xlu0 %v5974_v55, %s5152_s12  ;;  %v7681_v55 = vld [vmem:[#allocation83_spill] sm:$0xff] }
 0x300   : > { %v2429_v14 = vsel %vm6004_vm0, %v2316_v36, %v6301_v49  ;;  %v4761_v49 = vld [vmem:[%s5451_s16 + $0xf4] ss:$8 sps:$4 sm:$0xff]  }
 0x301   : > { %4101 = vst [vmem:[%s6056_s13 + $0x30] sm:$0xff] %v3954_v48   ;;  %2409 = vrot.lane.b32.xlu1 %v7679_v19, %s5152_s12  ;;  %v6487_v16 = vpop.permute.xlu0 %2411  ;;  %v2493_v53 = vmul.f32 %v2429_v14, %v6241_v23  ;;  %v1839_v48 = vsel %vm6004_vm0, %v7682_v10, %v7681_v55  ;;  %v6503_v36 = vld [vmem:[#allocation10 + $0x78] sm:$0xff]  ;;  %v509_v23 = vld [vmem:[#allocation10 + $0x80] sm:$0xff] }
 0x302   : > { %7680 = vst [vmem:[#allocation93_spill] sm:$0xff] %v6487_v16  ;;  %7683 = vst [vmem:[#allocation83_spill] sm:$0xff] %v6503_v36  ;;  %v6505_v14 = vld [vmem:[#allocation11 + $0x78] sm:$0xff]  ;;  %v1903_v11 = vmul.f32 %v1839_v48, %v541_v35  ;;  %v2462_v55 = vmul.f32 %v5836_v34, %v6503_v36  ;;  %v1871_v47 = vmul.f32 %v7686_v38, %v509_v23 }
 0x303   : > { %v2318_v46 = vpop.permute.xlu1 %2317  ;;  %7684 = vst [vmem:[#allocation81_spill] sm:$0xff] %v6505_v14  ;;  %v2525_v10 = vadd.f32 %v2493_v53, %v2461_v1  ;;  %v7688_v48 = vld [vmem:[#allocation102_spill] sm:$0xff] }
 0x304   : > { %1664 = vmatmul.mubr.bf16.gmra.mrb[96].mxu1 %v4760_v15  ;;  %v1935_v53 = vadd.f32 %v1903_v11, %v1871_v47 }
 0x305   : > { %2347 = vrot.lane.b32.xlu1 %v5994_v31, %s5151_s1  ;;  %v1696_v61 = vpop.permute.xlu0 %1695  ;;  %1671 = vmatprep.mubr.bf16.mxu1 %v4761_v49  ;;  %v7687_v31 = vld [vmem:[#allocation103_spill] sm:$0xff] }
 0x307   : > { %v2382_v20 = vpop.permute.xlu1 %2381 }
 0x308   : > { %v2430_v9 = vsel %vm6004_vm0, %v2318_v46, %v2382_v20  ;;  %v1855_v20 = vmul.f32 %v6029_v39, %v7687_v31 }
 0x309   : > { %v2494_v15 = vmul.f32 %v2430_v9, %v6505_v14  ;;  %2349 = vrot.lane.b32.xlu1 %v7685_v28, %s5151_s1  ;;  %v1760_v4 = vpop.permute.xlu0 %1759  ;;  %v2557_v9 = vmul.f32 0.088388346, %v2525_v10  ;;  %v6537_v10 = vld [vmem:[#allocation11 + $0xa0] sm:$0xff] }
 0x30a   : > { %v1823_v49 = vsel %vm6004_vm0, %v1696_v61, %v1760_v4  ;;  %v4762_v61 = vld [vmem:[%s5451_s16 + $0xf0] ss:$8 sps:$4 sm:$0xff]   ;;  %s3246_s16 = sshll.u32 %s6786_s15, 4  ;;  %s7242_s16 = int_to_ptr.vmem [resolvable:$true] %s3246_s16 }
 0x30b   : > { %v2526_v46 = vadd.f32 %v2494_v15, %v2462_v55  ;;  %v1887_v34 = vmul.f32 %v1823_v49, %v7688_v48  ;;  %v6520_v1 = vpop.permute.xlu1 %2765  ;;  %v2463_v49 = vmul.f32 %v5846_v44, %v509_v23  ;;  %v6546_v48 = vld [vmem:[#allocation10 + $0xa0] sm:$0xff]  ;;  %v7692_v44 = vld [vmem:[#allocation109_spill] sm:$0xff] }
 0x30c   : > { %7689 = vst [vmem:[#allocation99_spill] sm:$0xff] %v6520_v1  ;;  %1672 = vmatmul.mubr.bf16.gmra.mrb[100].mxu1 %v4762_v61 }
 0x30d   : > { %v2558_v36 = vmul.f32 0.088388346, %v2526_v46  ;;  %v1919_v14 = vadd.f32 %v1887_v34, %v1855_v20  ;;  %2413 = vrot.lane.b32.xlu1 %v7685_v28, %s5152_s12  ;;  %v6524_v41 = vpop.permute.xlu0 %1697  ;;  %v6544_v46 = vld [vmem:[#allocation10 + $0x88] sm:$0xff] }
 0x30e   : > { %v2464_v34 = vmul.f32 %v5852_v54, %v6544_v46 }
 0x30f   : > { %v3959_v38 = vpack.c.bf16 %v2558_v36, %v2557_v9  ;;  %v2320_v4 = vpop.permute.xlu1 %2319  ;;  %v4500_v16 = vpack.i.bf16 %v1935_v53, %v1919_v14  ;;  %v7690_v36 = vld [vmem:[#allocation101_spill] sm:$0xff]  ;;  %v7691_v14 = vld [vmem:[#allocation96_spill] sm:$0xff] }
 0x310   : > { %v2431_v31 = vsel %vm6004_vm0, %v2320_v4, %v6323_v5  ;;  %v1843_v15 = vsel %vm6004_vm0, %v7691_v14, %v7690_v36  ;;  %v6548_v5 = vld [vmem:[#allocation11 + $0x88] sm:$0xff]  ;;  %v7693_v4 = vld [vmem:[#allocation30_spill] sm:$0xff] }
 0x311   : > { %4102 = vst [vmem:[%s6056_s13 + $0x38] sm:$0xff] %v3959_v38   ;;  %1761 = vrot.lane.b32.xlu1 %v6038_v42, %s5152_s12  ;;  %v6530_v39 = vpop.permute.xlu0 %1763  ;;  %v2495_v11 = vmul.f32 %v2431_v31, %v541_v35  ;;  %v1907_v53 = vmul.f32 %v1843_v15, %v6537_v10  ;;  %v1875_v31 = vmul.f32 %v7693_v4, %v6546_v48 }
 0x313   : > { %v2322_v47 = vpop.permute.xlu1 %2321  ;;  %v2527_v9 = vadd.f32 %v2495_v11, %v2463_v49  ;;  %v6567_v14 = vadd.f32 %v1907_v53, %v1875_v31  ;;  %v7700_v53 = vld [vmem:[#allocation38_spill] sm:$0xff] }
 0x315   : > { %1699 = vrot.lane.b32.xlu1 %v6052_v58, %s5151_s1  ;;  %v1704_v55 = vpop.permute.xlu0 %1703  ;;  %v2559_v15 = vmul.f32 0.088388346, %v2527_v9  ;;  %v6581_v9 = vld [vmem:[#allocation10 + $0xb0] sm:$0xff] }
 0x317   : > { %v2386_v20 = vpop.permute.xlu1 %2385 }
 0x318   : > { %v2432_v35 = vsel %vm6004_vm0, %v2322_v47, %v2386_v20  ;;  %v1859_v47 = vmul.f32 %v6075_v51, %v6150_v6  ;;  %v7695_v51 = vld [vmem:[#allocation108_spill] sm:$0xff]  ;;  %v7696_v6 = vld [vmem:[#allocation106_spill] sm:$0xff] }
 0x319   : > { %v2496_v61 = vmul.f32 %v2432_v35, %v6548_v5  ;;  %1701 = vrot.lane.b32.xlu1 %v7692_v44, %s5151_s1  ;;  %v1768_v23 = vpop.permute.xlu0 %1767  ;;  %v6573_v35 = vld [vmem:[#allocation11 + $0xb0] sm:$0xff] }
 0x31a   : > { %v1827_v38 = vsel %vm6004_vm0, %v1704_v55, %v1768_v23 }
 0x31b   : > { %v2528_v36 = vadd.f32 %v2496_v61, %v2464_v34  ;;  %v1891_v54 = vmul.f32 %v1827_v38, %v6143_v45  ;;  %v6565_v11 = vpop.permute.xlu1 %2769  ;;  %v1845_v45 = vsel %vm6004_vm0, %v7696_v6, %v7695_v51  ;;  %v7697_v38 = vld [vmem:[#allocation112_spill] sm:$0xff]  ;;  %v6597_v51 = vld [vmem:[#allocation11 + $0x90] sm:$0xff] }
 0x31c   : > { %7694 = vst [vmem:[#allocation26_spill] sm:$0xff] %v6565_v11  ;;  %v1909_v23 = vmul.f32 %v1845_v45, %v6573_v35 }
 0x31d   : > { %v2560_v49 = vmul.f32 0.088388346, %v2528_v36  ;;  %v6569_v20 = vadd.f32 %v1891_v54, %v1859_v47  ;;  %1765 = vrot.lane.b32.xlu1 %v7692_v44, %s5152_s12  ;;  %v1708_v55 = vpop.permute.xlu0 %1707  ;;  %4501 = vxpose.xlu0.b32.start [1/16] %v4500_v16, 128  ;;  %v7698_v47 = vld [vmem:[#allocation34_spill] sm:$0xff]  ;;  %v1861_v54 = vmul.f32 %v6095_v29, %v6236_v2  ;;  %v7699_v29 = vld [vmem:[#allocation113_spill] sm:$0xff] }
 0x31e   : > { %v1877_v36 = vmul.f32 %v7698_v47, %v6581_v9  ;;  %v6622_v47 = vld [vmem:[#allocation11 + $0x98] sm:$0xff] }
 0x31f   : > { %v3964_v34 = vpack.c.bf16 %v2560_v49, %v2559_v15  ;;  %v2324_v61 = vpop.permute.xlu1 %2323 }
 0x320   : > { %v2433_v4 = vsel %vm6004_vm0, %v2324_v61, %v6344_v3  ;;  %v6599_v6 = vadd.f32 %v1909_v23, %v1877_v36  ;;  %v6608_v61 = vld [vmem:[#allocation11 + $0xc0] sm:$0xff] }
 0x321   : > { %4103 = vst [vmem:[%s6056_s13 + $0x40] sm:$0xff] %v3964_v34   ;;  %1705 = vrot.lane.b32.xlu1 %v7697_v38, %s5151_s1  ;;  %v1772_v16 = vpop.permute.xlu0 %1771  ;;  %v2497_v45 = vmul.f32 %v2433_v4, %v6597_v51  ;;  %v6618_v4 = vld [vmem:[#allocation10 + $0x98] sm:$0xff] }
 0x322   : > { %v1829_v31 = vsel %vm6004_vm0, %v1708_v55, %v1772_v16  ;;  %v6606_v55 = vld [vmem:[#allocation10 + $0x90] sm:$0xff] }
 0x323   : > { %v1893_v15 = vmul.f32 %v1829_v31, %v6229_v21  ;;  %v2326_v49 = vpop.permute.xlu1 %2325  ;;  %v1847_v21 = vsel %vm6004_vm0, %v7699_v29, %v6100_v24  ;;  %v2465_v2 = vmul.f32 %v5862_v27, %v6606_v55  ;;  %v6620_v31 = vld [vmem:[#allocation10 + $0xc0] sm:$0xff] }
 0x324   : > { %v1911_v24 = vmul.f32 %v1847_v21, %v6608_v61  ;;  %v1879_v11 = vmul.f32 %v7700_v53, %v6620_v31  ;;  %v6647_v53 = vld [vmem:[#allocation11 + $0xd0] sm:$0xff] }
 0x325   : > { %v6602_v34 = vadd.f32 %v1893_v15, %v1861_v54  ;;  %1769 = vrot.lane.b32.xlu1 %v7697_v38, %s5152_s12  ;;  %v1712_v3 = vpop.permute.xlu0 %1711  ;;  %v2466_v54 = vmul.f32 %v7627_v60, %v6618_v4  ;;  %v2529_v15 = vadd.f32 %v2497_v45, %v2465_v2 }
 0x326   : > { %v6641_v21 = vadd.f32 %v1911_v24, %v1879_v11 }
 0x327   : > { %v2390_v23 = vpop.permute.xlu1 %2389  ;;  %v2561_v2 = vmul.f32 0.088388346, %v2529_v15  ;;  %v7704_v15 = vld [vmem:[#allocation117_spill] sm:$0xff] }
 0x328   : > { %v2434_v36 = vsel %vm6004_vm0, %v2326_v49, %v2390_v23  ;;  %v1863_v49 = vmul.f32 %v6118_v50, %v6320_v8  ;;  %v7703_v50 = vld [vmem:[#allocation119_spill] sm:$0xff] }
 0x329   : > { %v2498_v27 = vmul.f32 %v2434_v36, %v6622_v47  ;;  %1709 = vrot.lane.b32.xlu1 %v6104_v52, %s5151_s1  ;;  %v1776_v29 = vpop.permute.xlu0 %1775 }
 0x32a   : > { %v1831_v16 = vsel %vm6004_vm0, %v1712_v3, %v1776_v29  ;;  %v7702_v29 = vld [vmem:[#allocation120_spill] sm:$0xff] }
 0x32b   : > { %v2530_v23 = vadd.f32 %v2498_v27, %v2466_v54  ;;  %v1895_v60 = vmul.f32 %v1831_v16, %v6313_v18  ;;  %v6639_v45 = vpop.permute.xlu1 %2773  ;;  %v1849_v8 = vsel %vm6004_vm0, %v7703_v50, %v7702_v29  ;;  %v6655_v54 = vld [vmem:[#allocation10 + $0xd0] sm:$0xff] }
 0x32c   : > { %7701 = vst [vmem:[#allocation103_spill] sm:$0xff] %v6639_v45  ;;  %v1913_v24 = vmul.f32 %v1849_v8, %v6647_v53 }
 0x32d   : > { %v2562_v36 = vmul.f32 0.088388346, %v2530_v23  ;;  %v6643_v1 = vadd.f32 %v1895_v60, %v1863_v49  ;;  %1773 = vrot.lane.b32.xlu1 %v6104_v52, %s5152_s12  ;;  %v1716_v3 = vpop.permute.xlu0 %1715  ;;  %v7705_v60 = vld [vmem:[#allocation42_spill] sm:$0xff] }
 0x32f   : > { %v3969_v18 = vpack.c.bf16 %v2562_v36, %v2561_v2  ;;  %v2328_v16 = vpop.permute.xlu1 %2327  ;;  %v1881_v2 = vmul.f32 %v7705_v60, %v6655_v54  ;;  %v1865_v36 = vmul.f32 %v6137_v56, %v6382_v62  ;;  %v6682_v62 = vld [vmem:[#allocation10 + $0xa8] sm:$0xff] }
 0x330   : > { %v2435_v49 = vsel %vm6004_vm0, %v2328_v16, %v6363_v37  ;;  %v2467_v37 = vmul.f32 %v7637_v32, %v6546_v48  ;;  %v6684_v56 = vld [vmem:[#allocation11 + $0xa8] sm:$0xff] }
 0x331   : > { %4104 = vst [vmem:[%s6056_s13 + $0x48] sm:$0xff] %v3969_v18   ;;  %1713 = vrot.lane.b32.xlu1 %v7704_v15, %s5151_s1  ;;  %v1780_v27 = vpop.permute.xlu0 %1779  ;;  %v6671_v8 = vadd.f32 %v1913_v24, %v1881_v2  ;;  %v2499_v18 = vmul.f32 %v2435_v49, %v6537_v10  ;;  %v2468_v10 = vmul.f32 %v7639_v0, %v6682_v62 }
 0x332   : > { %v1833_v23 = vsel %vm6004_vm0, %v1716_v3, %v1780_v27 }
 0x333   : > { %v1897_v29 = vmul.f32 %v1833_v23, %v6375_v30  ;;  %v2330_v50 = vpop.permute.xlu1 %2329  ;;  %v2531_v24 = vadd.f32 %v2499_v18, %v2467_v37  ;;  %v6706_v37 = vld [vmem:[#allocation10 + $0xb8] sm:$0xff] }
 0x335   : > { %v6674_v11 = vadd.f32 %v1897_v29, %v1865_v36  ;;  %1777 = vrot.lane.b32.xlu1 %v7704_v15, %s5152_s12  ;;  %v2563_v49 = vmul.f32 0.088388346, %v2531_v24  ;;  %v7707_v29 = vld [vmem:[#allocation94_spill] sm:$0xff] }
 0x337   : > { %v2394_v3 = vpop.permute.xlu1 %2393 }
 0x338   : > { %v2436_v30 = vsel %vm6004_vm0, %v2330_v50, %v2394_v3  ;;  %v2469_v50 = vmul.f32 %v5900_v17, %v6581_v9  ;;  %v6708_v3 = vld [vmem:[#allocation11 + $0xb8] sm:$0xff] }
 0x339   : > { %v2500_v27 = vmul.f32 %v2436_v30, %v6684_v56  ;;  %1717 = vrot.lane.b32.xlu1 %v6217_v40, %s5151_s1 }
 0x33b   : > { %v2532_v32 = vadd.f32 %v2500_v27, %v2468_v10  ;;  %v6693_v48 = vpop.permute.xlu1 %2777  ;;  %v7709_v27 = vld [vmem:[#allocation100_spill] sm:$0xff] }
 0x33c   : > { %7706 = vst [vmem:[#allocation102_spill] sm:$0xff] %v6693_v48  ;;  %v7724_v48 = vld [vmem:[#allocation125_spill] sm:$0xff] }
 0x33d   : > { %v2564_v23 = vmul.f32 0.088388346, %v2532_v32  ;;  %1781 = vrot.lane.b32.xlu1 %v6217_v40, %s5152_s12 }
 0x33f   : > { %v3974_v60 = vpack.c.bf16 %v2564_v23, %v2563_v49  ;;  %v2332_v2 = vpop.permute.xlu1 %2331  ;;  %v7711_v23 = vld [vmem:[#allocation33_spill] sm:$0xff] }
 0x340   : > { %v2437_v0 = vsel %vm6004_vm0, %v2332_v2, %v6385_v33  ;;  %v7708_v33 = vld [vmem:[#allocation73_spill] sm:$0xff] }
 0x341   : > { %4105 = vst [vmem:[%s6056_s13 + $0x50] sm:$0xff] %v3974_v60   ;;  %v2501_v36 = vmul.f32 %v2437_v0, %v6573_v35  ;;  %2793 = vrot.lane.b32.xlu1 %v7707_v29, %s5151_s1  ;;  %v2470_v10 = vmul.f32 %v7708_v33, %v6706_v37 }
 0x343   : > { %v2398_v18 = vpop.permute.xlu1 %2397  ;;  %v2533_v35 = vadd.f32 %v2501_v36, %v2469_v50 }
 0x344   : > { %v2438_v30 = vsel %vm6004_vm0, %v6412_v43, %v2398_v18  ;;  %v7712_v43 = vld [vmem:[#allocation37_spill] sm:$0xff] }
 0x345   : > { %v2502_v24 = vmul.f32 %v2438_v30, %v6708_v3  ;;  %2797 = vrot.lane.b32.xlu1 %v7709_v27, %s5151_s1  ;;  %v2565_v32 = vmul.f32 0.088388346, %v2533_v35  ;;  %v7713_v18 = vld [vmem:[#allocation41_spill] sm:$0xff]  ;;  %v7714_v30 = vld [vmem:[#allocation76_spill] sm:$0xff] }
 0x346   : > { %v2471_v33 = vmul.f32 %v7714_v30, %v6620_v31  ;;  %v6733_v35 = vld [vmem:[#allocation10 + $0xc8] sm:$0xff]  ;;  %v7717_v30 = vld [vmem:[#allocation51_spill] sm:$0xff] }
 0x347   : > { %v2534_v17 = vadd.f32 %v2502_v24, %v2470_v10  ;;  %v6718_v9 = vpop.permute.xlu1 %2781  ;;  %v6735_v24 = vld [vmem:[#allocation11 + $0xc8] sm:$0xff] }
 0x348   : > { %7710 = vst [vmem:[#allocation101_spill] sm:$0xff] %v6718_v9 }
 0x349   : > { %v2566_v49 = vmul.f32 0.088388346, %v2534_v17  ;;  %2801 = vrot.lane.b32.xlu1 %v7711_v23, %s5152_s12 }
 0x34b   : > { %v3979_v60 = vpack.c.bf16 %v2566_v49, %v2565_v32  ;;  %v2336_v2 = vpop.permute.xlu1 %2335  ;;  %v7715_v49 = vld [vmem:[#allocation46_spill] sm:$0xff] }
 0x34c   : > { %v2439_v0 = vsel %vm6004_vm0, %v2336_v2, %v6423_v59  ;;  %v2472_v59 = vmul.f32 %v7657_v22, %v6733_v35 }
 0x34d   : > { %4106 = vst [vmem:[%s6056_s13 + $0x58] sm:$0xff] %v3979_v60   ;;  %2805 = vrot.lane.b32.xlu1 %v7712_v43, %s5152_s12  ;;  %v2503_v50 = vmul.f32 %v2439_v0, %v6608_v61 }
 0x34f   : > { %v2338_v36 = vpop.permute.xlu1 %2337  ;;  %v2535_v32 = vadd.f32 %v2503_v50, %v2471_v33 }
 0x351   : > { %2809 = vrot.lane.b32.xlu1 %v7713_v18, %s5152_s12  ;;  %v2567_v2 = vmul.f32 0.088388346, %v2535_v32  ;;  %v6759_v32 = vld [vmem:[#allocation10 + $0xd8] sm:$0xff] }
 0x353   : > { %v2402_v10 = vpop.permute.xlu1 %2401 }
 0x354   : > { %v2440_v17 = vsel %vm6004_vm0, %v2338_v36, %v2402_v10  ;;  %v7718_v36 = vld [vmem:[#allocation56_spill] sm:$0xff]  ;;  %v7719_v10 = vld [vmem:[#allocation58_spill] sm:$0xff] }
 0x355   : > { %v2504_v61 = vmul.f32 %v2440_v17, %v6735_v24  ;;  %2813 = vrot.lane.b32.xlu1 %v7715_v49, %s5152_s12  ;;  %v2473_v17 = vmul.f32 %v5948_v12, %v6655_v54 }
 0x357   : > { %v2536_v60 = vadd.f32 %v2504_v61, %v2472_v59  ;;  %v6744_v31 = vpop.permute.xlu1 %2785 }
 0x358   : > { %7716 = vst [vmem:[#allocation96_spill] sm:$0xff] %v6744_v31 }
 0x359   : > { %v2568_v0 = vmul.f32 0.088388346, %v2536_v60  ;;  %2817 = vrot.lane.b32.xlu1 %v7717_v30, %s5152_s12  ;;  %v7720_v60 = vld [vmem:[#allocation60_spill] sm:$0xff] }
 0x35b   : > { %v3984_v16 = vpack.c.bf16 %v2568_v0, %v2567_v2  ;;  %v2340_v9 = vpop.permute.xlu1 %2339 }
 0x35c   : > { %v2441_v22 = vsel %vm6004_vm0, %v2340_v9, %v6439_v57  ;;  %v2474_v57 = vmul.f32 %v7671_v13, %v6759_v32 }
 0x35d   : > { %4107 = vst [vmem:[%s6056_s13 + $0x60] sm:$0xff] %v3984_v16   ;;  %2821 = vrot.lane.b32.xlu1 %v7718_v36, %s5152_s12  ;;  %v2505_v33 = vmul.f32 %v2441_v22, %v6647_v53  ;;  %v6761_v16 = vld [vmem:[#allocation11 + $0xd8] sm:$0xff] }
 0x35e   : > { %v7722_v22 = vld [vmem:[#allocation62_spill] sm:$0xff] }
 0x35f   : > { %v2342_v50 = vpop.permute.xlu1 %2341  ;;  %v2537_v9 = vadd.f32 %v2505_v33, %v2473_v17 }
 0x361   : > { %2825 = vrot.lane.b32.xlu1 %v7719_v10, %s5152_s12  ;;  %v2569_v54 = vmul.f32 0.088388346, %v2537_v9 }
 0x363   : > { %v2406_v59 = vpop.permute.xlu1 %2405 }
 0x364   : > { %v2442_v61 = vsel %vm6004_vm0, %v2342_v50, %v2406_v59  ;;  %v4255_v50 = vpop.f32.mrb[40].mxu1 }
 0x365   : > { %v2506_v53 = vmul.f32 %v2442_v61, %v6761_v16  ;;  %2829 = vrot.lane.b32.xlu1 %v7720_v60, %s5152_s12  ;;  %v4256_v59 = vpop.f32.mrb[41].mxu1  ;;  %v7723_v61 = vld [vmem:[#allocation65_spill] sm:$0xff] }
 0x366   : > { %v4258_v33 = vpop.f32.mrb[42].mxu1 }
 0x367   : > { %v2538_v2 = vadd.f32 %v2506_v53, %v2474_v57  ;;  %v6770_v12 = vpop.permute.xlu1 %2789  ;;  %v4259_v17 = vpop.f32.mrb[43].mxu1  ;;  %v4257_v57 = vadd.f32 %v4256_v59, %v4255_v50  ;;  %v6789_v50 = vld [vmem:[#allocation10 + $0xe8] sm:$0xff] }
 0x368   : > { %7721 = vst [vmem:[#allocation109_spill] sm:$0xff] %v6770_v12  ;;  %v4260_v53 = vadd.f32 %v4259_v17, %v4258_v33  ;;  %v7726_v59 = vld [vmem:[#allocation124_spill] sm:$0xff] }
 0x369   : > { %v2570_v0 = vmul.f32 0.088388346, %v2538_v2  ;;  %2833 = vrot.lane.b32.xlu1 %v7722_v22, %s5152_s12  ;;  %v6795_v17 = vld [vmem:[#allocation11 + $0xe8] sm:$0xff] }
 0x36a   : > { %v3844_v12 = vpack.c.bf16 %v4260_v53, %v4257_v57 }
 0x36b   : > { %v3989_v31 = vpack.c.bf16 %v2570_v0, %v2569_v54  ;;  %v2344_v13 = vpop.permute.xlu1 %2343  ;;  %v7725_v54 = vld [vmem:[#allocation69_spill] sm:$0xff] }
 0x36c   : > { %v2443_v9 = vsel %vm6004_vm0, %v2344_v13, %v6468_v25  ;;  %3845 = vst [vmem:[%s6786_s15] sm:$0xff] %v3844_v12   ;;  %v2475_v25 = vmul.f32 %v5972_v7, %v7726_v59 }
 0x36d   : > { %4108 = vst [vmem:[%s6056_s13 + $0x68] sm:$0xff] %v3989_v31   ;;  %2837 = vrot.lane.b32.xlu1 %v7723_v61, %s5152_s12  ;;  %v2507_v45 = vmul.f32 %v2443_v9, %v7724_v48  ;;  %v4261_v31 = vpop.f32.mrb[44].mxu1  ;;  %v2476_v48 = vmul.f32 %v7679_v19, %v6789_v50 }
 0x36e   : > { %v4262_v0 = vpop.f32.mrb[45].mxu1 }
 0x36f   : > { %v2346_v2 = vpop.permute.xlu1 %2345  ;;  %v4264_v33 = vpop.f32.mrb[46].mxu1  ;;  %v2539_v12 = vadd.f32 %v2507_v45, %v2475_v25  ;;  %v4263_v61 = vadd.f32 %v4262_v0, %v4261_v31 }
 0x370   : > { %v4265_v53 = vpop.f32.mrb[47].mxu1 }
 0x371   : > { %2841 = vrot.lane.b32.xlu1 %v7725_v54, %s5152_s12  ;;  %v7727_v54 = vld [vmem:[#allocation74_spill] sm:$0xff]  ;;  %v4266_v7 = vadd.f32 %v4265_v53, %v4264_v33  ;;  %v2571_v10 = vmul.f32 0.088388346, %v2539_v12  ;;  %v7729_v33 = vld [vmem:[#allocation131_spill] sm:$0xff] }
 0x373   : > { %v2410_v13 = vpop.permute.xlu1 %2409  ;;  %v3849_v60 = vpack.c.bf16 %v4266_v7, %v4263_v61 }
 0x374   : > { %v2444_v57 = vsel %vm6004_vm0, %v2346_v2, %v2410_v13  ;;  %v4267_v2 = vpop.f32.mrb[48].mxu1  ;;  %v7728_v13 = vld [vmem:[#allocation93_spill] sm:$0xff] }
 0x375   : > { %v2508_v9 = vmul.f32 %v2444_v57, %v6795_v17  ;;  %2845 = vrot.lane.b32.xlu1 %v7727_v54, %s5152_s12  ;;  %4081 = vst [vmem:[%s6786_s15 + $0x8] sm:$0xff] %v3849_v60   ;;  %v4268_v25 = vpop.f32.mrb[49].mxu1  ;;  %v7731_v60 = vld [vmem:[#allocation85_spill] sm:$0xff] }
 0x376   : > { %v4270_v31 = vpop.f32.mrb[50].mxu1  ;;  %v4269_v53 = vadd.f32 %v4268_v25, %v4267_v2 }
 0x377   : > { %v2540_v59 = vadd.f32 %v2508_v9, %v2476_v48  ;;  %v2348_v22 = vpop.permute.xlu1 %2347  ;;  %v4271_v0 = vpop.f32.mrb[51].mxu1  ;;  %v7730_v48 = vld [vmem:[#allocation87_spill] sm:$0xff]  ;;  %v7732_v9 = vld [vmem:[#allocation82_spill] sm:$0xff] }
 0x378   : > { %v2445_v45 = vsel %vm6004_vm0, %v2348_v22, %v7728_v13  ;;  %v4272_v12 = vadd.f32 %v4271_v0, %v4270_v31  ;;  %v1840_v7 = vsel %vm6004_vm0, %v7732_v9, %v7731_v60  ;;  %v7733_v22 = vld [vmem:[#allocation130_spill] sm:$0xff]  ;;  %v4273_v0 = vpop.f32.mrb[52].mxu1 }
 0x379   : > { %v2572_v19 = vmul.f32 0.088388346, %v2540_v59  ;;  %2849 = vrot.lane.b32.xlu1 %v7665_v63, %s5152_s12  ;;  %v2509_v61 = vmul.f32 %v2445_v45, %v7729_v33  ;;  %v7734_v59 = vld [vmem:[#allocation97_spill] sm:$0xff]  ;;  %v6818_v63 = vld [vmem:[#allocation10 + $0xf8] sm:$0xff]  ;;  %v1904_v33 = vmul.f32 %v1840_v7, %v6548_v5 }
 0x37a   : > { %v3854_v13 = vpack.c.bf16 %v4272_v12, %v4269_v53  ;;  %v2478_v2 = vmul.f32 %v7685_v28, %v6818_v63  ;;  %v4274_v53 = vpop.f32.mrb[53].mxu1  ;;  %v7738_v28 = vld [vmem:[#allocation88_spill] sm:$0xff] }
 0x37b   : > { %v3994_v57 = vpack.c.bf16 %v2572_v19, %v2571_v10  ;;  %v2350_v54 = vpop.permute.xlu1 %2349  ;;  %v2477_v10 = vmul.f32 %v7734_v59, %v7733_v22  ;;  %v4275_v9 = vadd.f32 %v4274_v53, %v4273_v0  ;;  %v4276_v22 = vpop.f32.mrb[54].mxu1 }
 0x37c   : > { %4082 = vst [vmem:[%s6786_s15 + $0x10] sm:$0xff] %v3854_v13   ;;  %v4277_v7 = vpop.f32.mrb[55].mxu1 }
 0x37d   : > { %4109 = vst [vmem:[%s6056_s13 + $0x70] sm:$0xff] %v3994_v57   ;;  %2853 = vrot.lane.b32.xlu1 %v7730_v48, %s5152_s12  ;;  %v6820_v57 = vld [vmem:[#allocation11 + $0xf8] sm:$0xff]  ;;  %v2541_v25 = vadd.f32 %v2509_v61, %v2477_v10  ;;  %v6837_v10 = vld [vmem:[#allocation10 + $0x8] sm:$0xff]  ;;  %v4278_v0 = vadd.f32 %v4277_v7, %v4276_v22 }
 0x37e   : > { %7735 = vst [vmem:[#allocation30_spill] sm:$0xff] %v6820_v57  ;;  %v1856_v13 = vmul.f32 %v6837_v10, %v6038_v42 }
 0x37f   : > { %v2414_v19 = vpop.permute.xlu1 %2413 }
 0x380   : > { %v2446_v45 = vsel %vm6004_vm0, %v2350_v54, %v2414_v19  ;;  %v7736_v54 = vld [vmem:[#allocation27_spill] sm:$0xff]  ;;  %v7737_v19 = vld [vmem:[#allocation90_spill] sm:$0xff] }
 0x381   : > { %v2510_v31 = vmul.f32 %v2446_v45, %v6820_v57  ;;  %2857 = vrot.lane.b32.xlu1 %v7707_v29, %s5152_s12  ;;  %v1872_v59 = vmul.f32 %v7736_v54, %v6544_v46  ;;  %v1841_v61 = vsel %vm6004_vm0, %v7738_v28, %v7737_v19  ;;  %v2573_v45 = vmul.f32 0.088388346, %v2541_v25 }
 0x382   : > { %v1905_v42 = vmul.f32 %v1841_v61, %v6597_v51 }
 0x383   : > { %v2542_v12 = vadd.f32 %v2510_v31, %v2478_v2  ;;  %v1762_v60 = vpop.permute.xlu1 %1761  ;;  %v6844_v31 = vld [vmem:[#allocation11 + $0x8] sm:$0xff]  ;;  %v1936_v53 = vadd.f32 %v1904_v33, %v1872_v59  ;;  %v6860_v33 = vld [vmem:[#allocation11 + $0x10] sm:$0xff] }
 0x384   : > { %v1824_v5 = vsel %vm6004_vm0, %v6524_v41, %v1762_v60  ;;  %v3859_v41 = vpack.c.bf16 %v4278_v0, %v4275_v9 }
 0x385   : > { %v2574_v2 = vmul.f32 0.088388346, %v2542_v12  ;;  %v1888_v46 = vmul.f32 %v6844_v31, %v1824_v5  ;;  %2861 = vrot.lane.b32.xlu1 %v7709_v27, %s5152_s12  ;;  %v7739_v12 = vld [vmem:[#allocation28_spill] sm:$0xff]  ;;  %v6855_v5 = vld [vmem:[#allocation10 + $0x10] sm:$0xff] }
 0x386   : > { %v1873_v60 = vmul.f32 %v7739_v12, %v6606_v55  ;;  %v1857_v27 = vmul.f32 %v6855_v5, %v6052_v58  ;;  %4083 = vst [vmem:[%s6786_s15 + $0x18] sm:$0xff] %v3859_v41   ;;  %v7743_v41 = vld [vmem:[#allocation29_spill] sm:$0xff]  ;;  %v6875_v12 = vld [vmem:[#allocation10 + $0x18] sm:$0xff] }
 0x387   : > { %v3999_v54 = vpack.c.bf16 %v2574_v2, %v2573_v45  ;;  %v1920_v19 = vadd.f32 %v1888_v46, %v1856_v13  ;;  %v1700_v28 = vpop.permute.xlu1 %1699  ;;  %v4279_v9 = vpop.f32.mrb[56].mxu1  ;;  %v7740_v45 = vld [vmem:[#allocation92_spill] sm:$0xff]  ;;  %v7741_v2 = vld [vmem:[#allocation89_spill] sm:$0xff] }
 0x388   : > { %v1825_v25 = vsel %vm6004_vm0, %v1700_v28, %v6530_v39  ;;  %v4280_v59 = vpop.f32.mrb[57].mxu1  ;;  %v1937_v61 = vadd.f32 %v1905_v42, %v1873_v60  ;;  %v1842_v58 = vsel %vm6004_vm0, %v7741_v2, %v7740_v45  ;;  %v6869_v42 = vpop.permute.xlu0 %2795  ;;  %v1858_v60 = vmul.f32 %v6875_v12, %v7692_v44  ;;  %v7745_v45 = vld [vmem:[#allocation107_spill] sm:$0xff] }
 0x389   : > { %4110 = vst [vmem:[%s6056_s13 + $0x78] sm:$0xff] %v3999_v54   ;;  %v1889_v51 = vmul.f32 %v6860_v33, %v1825_v25  ;;  %v4502_v22 = vpack.i.bf16 %v1936_v53, %v1920_v19  ;;  %v4281_v7 = vadd.f32 %v4280_v59, %v4279_v9  ;;  %v4282_v55 = vpop.f32.mrb[58].mxu1  ;;  %v1906_v53 = vmul.f32 %v1842_v58, %v6622_v47 }
 0x38a   : > { %v4283_v46 = vpop.f32.mrb[59].mxu1  ;;  %7742 = vst [vmem:[#allocation108_spill] sm:$0xff] %v6869_v42  ;;  %v1874_v25 = vmul.f32 %v7743_v41, %v6618_v4  ;;  %v6894_v41 = vld [vmem:[#allocation10 + $0x28] sm:$0xff] }
 0x38b   : > { %v1921_v13 = vadd.f32 %v1889_v51, %v1857_v27  ;;  %v1702_v39 = vpop.permute.xlu1 %1701  ;;  %4503 = vxpose.xlu0.b32.cont [2/16] %v4502_v22, 128  ;;  %v4284_v54 = vadd.f32 %v4283_v46, %v4282_v55  ;;  %v6879_v51 = vld [vmem:[#allocation11 + $0x18] sm:$0xff] }
 0x38c   : > { %v1938_v59 = vadd.f32 %v1906_v53, %v1874_v25  ;;  %v7744_v55 = vld [vmem:[#allocation110_spill] sm:$0xff]  ;;  %v6887_v46 = vpop.permute.xlu0 %2799  ;;  %v1860_v25 = vmul.f32 %v6894_v41, %v7697_v38 }
 0x38d   : > { %v4504_v0 = vpack.i.bf16 %v1937_v61, %v1921_v13  ;;  %v3864_v28 = vpack.c.bf16 %v4284_v54, %v4281_v7  ;;  %v1844_v4 = vsel %vm6004_vm0, %v7745_v45, %v7744_v55  ;;  %v7748_v45 = vld [vmem:[#allocation118_spill] sm:$0xff] }
 0x38f   : > { %v1766_v19 = vpop.permute.xlu1 %1765  ;;  %4505 = vxpose.xlu0.b32.cont [3/16] %v4504_v0, 128  ;;  %4084 = vst [vmem:[%s6786_s15 + $0x20] sm:$0xff] %v3864_v28   ;;  %v4285_v22 = vpop.f32.mrb[60].mxu1  ;;  %v1908_v0 = vmul.f32 %v1844_v4, %v6684_v56  ;;  %v7746_v28 = vld [vmem:[#allocation32_spill] sm:$0xff]  ;;  %v7749_v4 = vld [vmem:[#allocation115_spill] sm:$0xff] }
 0x390   : > { %v1826_v27 = vsel %vm6004_vm0, %v1702_v39, %v1766_v19  ;;  %v4286_v9 = vpop.f32.mrb[61].mxu1  ;;  %v1846_v38 = vsel %vm6004_vm0, %v7749_v4, %v7748_v45 }
 0x391   : > { %v1890_v47 = vmul.f32 %v6879_v51, %v1826_v27  ;;  %v4287_v7 = vadd.f32 %v4286_v9, %v4285_v22  ;;  %v4288_v39 = vpop.f32.mrb[62].mxu1  ;;  %v1876_v27 = vmul.f32 %v7746_v28, %v6682_v62 }
 0x392   : > { %v4289_v2 = vpop.f32.mrb[63].mxu1 }
 0x393   : > { %v1922_v61 = vadd.f32 %v1890_v47, %v1858_v60  ;;  %v1706_v13 = vpop.permute.xlu1 %1705  ;;  %v4290_v58 = vadd.f32 %v4289_v2, %v4288_v39  ;;  %v6898_v60 = vld [vmem:[#allocation11 + $0x28] sm:$0xff]  ;;  %v6909_v2 = vpop.permute.xlu0 %2803 }
 0x395   : > { %v4506_v44 = vpack.i.bf16 %v1938_v59, %v1922_v61  ;;  %v3869_v53 = vpack.c.bf16 %v4290_v58, %v4287_v7  ;;  %v1940_v59 = vadd.f32 %v1908_v0, %v1876_v27  ;;  %v1910_v0 = vmul.f32 %v1846_v38, %v6708_v3  ;;  %v6916_v27 = vld [vmem:[#allocation10 + $0x38] sm:$0xff] }
 0x396   : > { %v7752_v38 = vld [vmem:[#allocation126_spill] sm:$0xff] }
 0x397   : > { %v1770_v54 = vpop.permute.xlu1 %1769  ;;  %4507 = vxpose.xlu0.b32.cont [4/16] %v4506_v44, 128  ;;  %4085 = vst [vmem:[%s6786_s15 + $0x28] sm:$0xff] %v3869_v53   ;;  %v4291_v22 = vpop.f32.mrb[64].mxu1 }
 0x398   : > { %v1828_v19 = vsel %vm6004_vm0, %v1706_v13, %v1770_v54  ;;  %v4292_v9 = vpop.f32.mrb[65].mxu1  ;;  %v7747_v13 = vpack.i.bf16 %v6567_v14, %v6569_v20  ;;  %v7750_v20 = vld [vmem:[#allocation36_spill] sm:$0xff] }
 0x399   : > { %v1892_v47 = vmul.f32 %v6898_v60, %v1828_v19  ;;  %v4293_v39 = vadd.f32 %v4292_v9, %v4291_v22  ;;  %v4294_v55 = vpop.f32.mrb[66].mxu1  ;;  %v1878_v28 = vmul.f32 %v7750_v20, %v6706_v37 }
 0x39a   : > { %v4295_v44 = vpop.f32.mrb[67].mxu1 }
 0x39b   : > { %v1924_v61 = vadd.f32 %v1892_v47, %v1860_v25  ;;  %v1710_v7 = vpop.permute.xlu1 %1709  ;;  %4509 = vxpose.xlu0.b32.cont [5/16] %v7747_v13, 128  ;;  %v4296_v54 = vadd.f32 %v4295_v44, %v4294_v55  ;;  %v1862_v25 = vmul.f32 %v6916_v27, %v6104_v52  ;;  %v6920_v47 = vld [vmem:[#allocation11 + $0x38] sm:$0xff]  ;;  %v1942_v13 = vadd.f32 %v1910_v0, %v1878_v28  ;;  %v7753_v52 = vld [vmem:[#allocation123_spill] sm:$0xff] }
 0x39c   : > { %v7751_v55 = vpack.i.bf16 %v6599_v6, %v6602_v34  ;;  %v1848_v44 = vsel %vm6004_vm0, %v7753_v52, %v7752_v38  ;;  %v7754_v34 = vld [vmem:[#allocation40_spill] sm:$0xff] }
 0x39d   : > { %v4510_v58 = vpack.i.bf16 %v1940_v59, %v1924_v61  ;;  %v3874_v19 = vpack.c.bf16 %v4296_v54, %v4293_v39  ;;  %v6924_v59 = vpop.permute.xlu0 %2807  ;;  %v1880_v28 = vmul.f32 %v7754_v34, %v6733_v35 }
 0x39f   : > { %v1774_v53 = vpop.permute.xlu1 %1773  ;;  %4511 = vxpose.xlu0.b32.cont [6/16] %v4510_v58, 128  ;;  %4086 = vst [vmem:[%s6786_s15 + $0x30] sm:$0xff] %v3874_v19   ;;  %v4297_v9 = vpop.f32.mrb[68].mxu1  ;;  %v1912_v19 = vmul.f32 %v1848_v44, %v6735_v24  ;;  %v7756_v44 = vld [vmem:[#allocation133_spill] sm:$0xff] }
 0x3a0   : > { %v1830_v14 = vsel %vm6004_vm0, %v1710_v7, %v1774_v53  ;;  %v4298_v61 = vpop.f32.mrb[69].mxu1 }
 0x3a1   : > { %v1894_v22 = vmul.f32 %v6920_v47, %v1830_v14  ;;  %v4299_v45 = vadd.f32 %v4298_v61, %v4297_v9  ;;  %v4300_v4 = vpop.f32.mrb[70].mxu1  ;;  %v6934_v20 = vpop.permute.xlu0 %2811  ;;  %v6944_v9 = vld [vmem:[#allocation11 + $0x48] sm:$0xff] }
 0x3a2   : > { %v4301_v58 = vpop.f32.mrb[71].mxu1 }
 0x3a3   : > { %v1926_v39 = vadd.f32 %v1894_v22, %v1862_v25  ;;  %v1714_v7 = vpop.permute.xlu1 %1713  ;;  %4513 = vxpose.xlu0.b32.cont [7/16] %v7751_v55, 128  ;;  %v4302_v53 = vadd.f32 %v4301_v58, %v4300_v4  ;;  %v6940_v25 = vld [vmem:[#allocation10 + $0x48] sm:$0xff]  ;;  %v1944_v55 = vadd.f32 %v1912_v19, %v1880_v28  ;;  %v7757_v58 = vld [vmem:[#allocation53_spill] sm:$0xff] }
 0x3a4   : > { %v1864_v22 = vmul.f32 %v6940_v25, %v7704_v15  ;;  %v1850_v15 = vsel %vm6004_vm0, %v7757_v58, %v7756_v44  ;;  %v7764_v58 = vld [vmem:[#allocation70_spill] sm:$0xff] }
 0x3a5   : > { %v4514_v54 = vpack.i.bf16 %v1942_v13, %v1926_v39  ;;  %v3879_v14 = vpack.c.bf16 %v4302_v53, %v4299_v45  ;;  %v1914_v19 = vmul.f32 %v1850_v15, %v6761_v16 }
 0x3a7   : > { %v1778_v0 = vpop.permute.xlu1 %1777  ;;  %4515 = vxpose.xlu0.b32.cont [8/16] %v4514_v54, 128  ;;  %4087 = vst [vmem:[%s6786_s15 + $0x38] sm:$0xff] %v3879_v14   ;;  %v4303_v13 = vpop.f32.mrb[72].mxu1 }
 0x3a8   : > { %v1832_v6 = vsel %vm6004_vm0, %v1714_v7, %v1778_v0  ;;  %v4304_v39 = vpop.f32.mrb[73].mxu1  ;;  %v7755_v7 = vpack.i.bf16 %v6641_v21, %v6643_v1  ;;  %v6955_v14 = vpop.permute.xlu0 %2815  ;;  %v7758_v21 = vld [vmem:[#allocation45_spill] sm:$0xff] }
 0x3a9   : > { %v1896_v61 = vmul.f32 %v6944_v9, %v1832_v6  ;;  %v4305_v38 = vadd.f32 %v4304_v39, %v4303_v13  ;;  %v4306_v52 = vpop.f32.mrb[74].mxu1  ;;  %v1882_v28 = vmul.f32 %v7758_v21, %v6759_v32  ;;  %v7761_v39 = vld [vmem:[#allocation79_spill] sm:$0xff] }
 0x3aa   : > { %v4307_v54 = vpop.f32.mrb[75].mxu1 }
 0x3ab   : > { %v1928_v45 = vadd.f32 %v1896_v61, %v1864_v22  ;;  %v1718_v4 = vpop.permute.xlu1 %1717  ;;  %4517 = vxpose.xlu0.b32.cont [9/16] %v7755_v7, 128  ;;  %v4308_v0 = vadd.f32 %v4307_v54, %v4306_v52  ;;  %v7759_v22 = vld [vmem:[#allocation135_spill] sm:$0xff]  ;;  %v7760_v61 = vld [vmem:[#allocation49_spill] sm:$0xff]  ;;  %v1946_v15 = vadd.f32 %v1914_v19, %v1882_v28 }
 0x3ac   : > { %v1852_v13 = vsel %vm6004_vm0, %v7760_v61, %v7759_v22  ;;  %v7767_v28 = vld [vmem:[#allocation143_spill] sm:$0xff] }
 0x3ad   : > { %v4518_v53 = vpack.i.bf16 %v1944_v55, %v1928_v45  ;;  %v3884_v34 = vpack.c.bf16 %v4308_v0, %v4305_v38  ;;  %v1866_v55 = vmul.f32 %v6217_v40, %v7761_v39  ;;  %v7762_v45 = vld [vmem:[#allocation137_spill] sm:$0xff]  ;;  %v7763_v38 = vld [vmem:[#allocation72_spill] sm:$0xff]  ;;  %v7765_v0 = vpack.i.bf16 %v6671_v8, %v6674_v11  ;;  %v7766_v39 = vld [vmem:[#allocation50_spill] sm:$0xff] }
 0x3ae   : > { %v1884_v19 = vmul.f32 %v7766_v39, %v6789_v50  ;;  %v7775_v39 = vld [vmem:[#allocation104_spill] sm:$0xff] }
 0x3af   : > { %v1782_v6 = vpop.permute.xlu1 %1781  ;;  %4519 = vxpose.xlu0.b32.cont [10/16] %v4518_v53, 128  ;;  %4088 = vst [vmem:[%s6786_s15 + $0x40] sm:$0xff] %v3884_v34   ;;  %v4309_v52 = vpop.f32.mrb[76].mxu1 }
 0x3b0   : > { %v1834_v1 = vsel %vm6004_vm0, %v1718_v4, %v1782_v6  ;;  %v4310_v44 = vpop.f32.mrb[77].mxu1  ;;  %v1836_v4 = vsel %vm6004_vm0, %v7764_v58, %v7763_v38  ;;  %v6980_v34 = vpop.permute.xlu0 %2819  ;;  %v7771_v58 = vld [vmem:[#allocation140_spill] sm:$0xff] }
 0x3b1   : > { %v1898_v7 = vmul.f32 %v1834_v1, %v7762_v45  ;;  %v4311_v6 = vadd.f32 %v4310_v44, %v4309_v52  ;;  %v4312_v40 = vpop.f32.mrb[78].mxu1  ;;  %v1916_v1 = vmul.f32 %v1852_v13, %v6795_v17  ;;  %v7768_v45 = vld [vmem:[#allocation95_spill] sm:$0xff] }
 0x3b2   : > { %v4313_v21 = vpop.f32.mrb[79].mxu1  ;;  %v2863_v11 = vsel %vm6004_vm0, %v7768_v45, %v6887_v46  ;;  %v7770_v52 = vld [vmem:[#allocation23_spill] sm:$0xff] }
 0x3b3   : > { %v1930_v54 = vadd.f32 %v1898_v7, %v1866_v55  ;;  %v6974_v53 = vpop.permute.xlu1 %2793  ;;  %4521 = vxpose.xlu0.b32.cont [11/16] %v7765_v0, 128  ;;  %v4314_v61 = vadd.f32 %v4313_v21, %v4312_v40  ;;  %v1900_v55 = vmul.f32 %v1836_v4, %v7767_v28  ;;  %v7769_v7 = vld [vmem:[#allocation142_spill] sm:$0xff]  ;;  %v1948_v38 = vadd.f32 %v1916_v1, %v1884_v19  ;;  %v7774_v4 = vld [vmem:[#allocation75_spill] sm:$0xff] }
 0x3b4   : > { %v1868_v44 = vmul.f32 %v7770_v52, %v7769_v7  ;;  %v7773_v0 = vld [vmem:[#allocation78_spill] sm:$0xff]  ;;  %v4775_v21 = vld [vmem:[#allocation11] sm:$0xff]  ;;  %v7007_v45 = vpop.permute.xlu0 %2823  ;;  %v2896_v52 = vmul.f32 %v6837_v10, %v7711_v23 }
 0x3b5   : > { %v4522_v22 = vpack.i.bf16 %v1946_v15, %v1930_v54  ;;  %v3889_v13 = vpack.c.bf16 %v4314_v61, %v4311_v6  ;;  %v7772_v15 = vld [vmem:[#allocation139_spill] sm:$0xff]  ;;  %v1838_v40 = vsel %vm6004_vm0, %v7774_v4, %v7773_v0  ;;  %v2927_v46 = vmul.f32 %v4775_v21, %v2863_v11  ;;  %v7778_v4 = vld [vmem:[#allocation128_spill] sm:$0xff] }
 0x3b6   : > { %v1854_v54 = vsel %vm6004_vm0, %v7772_v15, %v7771_v58  ;;  %v2865_v6 = vsel %vm6004_vm0, %v7775_v39, %v6909_v2  ;;  %v4776_v1 = vld [vmem:[#allocation10] sm:$0xff]  ;;  %v1932_v28 = vadd.f32 %v1900_v55, %v1868_v44 }
 0x3b7   : > { %v6989_v8 = vpop.permute.xlu1 %2797  ;;  %4523 = vxpose.xlu0.b32.cont [12/16] %v4522_v22, 128  ;;  %4089 = vst [vmem:[%s6786_s15 + $0x48] sm:$0xff] %v3889_v13   ;;  %v4315_v22 = vpop.f32.mrb[80].mxu1  ;;  %v7776_v61 = vld [vmem:[#allocation31_spill] sm:$0xff]  ;;  %v1918_v15 = vmul.f32 %v1854_v54, %v6820_v57  ;;  %v2929_v44 = vmul.f32 %v6860_v33, %v2865_v6  ;;  %v2898_v6 = vmul.f32 %v6875_v12, %v7712_v43 }
 0x3b8   : > { %v2895_v19 = vmul.f32 %v4776_v1, %v7776_v61  ;;  %v4316_v7 = vpop.f32.mrb[81].mxu1  ;;  %v7777_v58 = vld [vmem:[#allocation55_spill] sm:$0xff]  ;;  %v7781_v1 = vld [vmem:[#allocation81_spill] sm:$0xff]  ;;  %v4526_v10 = vpack.i.bf16 %v1948_v38, %v1932_v28 }
 0x3b9   : > { %v1886_v11 = vmul.f32 %v7777_v58, %v6818_v63  ;;  %v7779_v2 = vld [vmem:[#allocation127_spill] sm:$0xff]  ;;  %v4317_v21 = vadd.f32 %v4316_v7, %v4315_v22  ;;  %v4318_v39 = vpop.f32.mrb[82].mxu1  ;;  %v1902_v55 = vmul.f32 %v1838_v40, %v7781_v1  ;;  %v7782_v61 = vld [vmem:[#allocation105_spill] sm:$0xff] }
 0x3ba   : > { %v7780_v13 = vpack.i.bf16 %v7778_v4, %v7779_v2  ;;  %v4319_v42 = vpop.f32.mrb[83].mxu1  ;;  %v2959_v58 = vadd.f32 %v2927_v46, %v2895_v19  ;;  %v7783_v54 = vld [vmem:[#allocation111_spill] sm:$0xff]  ;;  %v7785_v2 = vld [vmem:[#allocation25_spill] sm:$0xff] }
 0x3bb   : > { %v2802_v0 = vpop.permute.xlu1 %2801  ;;  %v2867_v57 = vsel %vm6004_vm0, %v7783_v54, %v6924_v59  ;;  %v4320_v22 = vadd.f32 %v4319_v42, %v4318_v39  ;;  %v7784_v7 = vld [vmem:[#allocation83_spill] sm:$0xff]  ;;  %v1950_v38 = vadd.f32 %v1918_v15, %v1886_v11  ;;  %v7033_v42 = vpop.permute.xlu0 %2827  ;;  %v7787_v39 = vld [vmem:[#allocation114_spill] sm:$0xff] }
 0x3bc   : > { %4525 = vxpose.xlu0.b32.cont [13/16] %v7780_v13, 128  ;;  %v2864_v23 = vsel %vm6004_vm0, %v7782_v61, %v2802_v0  ;;  %v1870_v40 = vmul.f32 %v7785_v2, %v7784_v7  ;;  %v7786_v13 = vld [vmem:[#allocation35_spill] sm:$0xff] }
 0x3bd   : > { %v2928_v4 = vmul.f32 %v6844_v31, %v2864_v23  ;;  %v2897_v33 = vmul.f32 %v6855_v5, %v7786_v13  ;;  %v3894_v28 = vpack.c.bf16 %v4320_v22, %v4317_v21  ;;  %v4777_v1 = vld [vmem:[#allocation11 + $0x20] sm:$0xff]  ;;  %v2991_v5 = vmul.f32 0.088388346, %v2959_v58  ;;  %v7788_v23 = vld [vmem:[#allocation116_spill] sm:$0xff] }
 0x3be   : > { %v1934_v0 = vadd.f32 %v1902_v55, %v1870_v40  ;;  %v2931_v31 = vmul.f32 %v4777_v1, %v2867_v57  ;;  %v2869_v43 = vsel %vm6004_vm0, %v7788_v23, %v6934_v20  ;;  %v4778_v15 = vld [vmem:[#allocation10 + $0x20] sm:$0xff]  ;;  %v2900_v55 = vmul.f32 %v6894_v41, %v7713_v18  ;;  %v7791_v22 = vld [vmem:[#allocation64_spill] sm:$0xff] }
 0x3bf   : > { %v2960_v46 = vadd.f32 %v2928_v4, %v2896_v52  ;;  %v2806_v19 = vpop.permute.xlu1 %2805  ;;  %v2961_v59 = vadd.f32 %v2929_v44, %v2897_v33  ;;  %4090 = vst [vmem:[%s6786_s15 + $0x50] sm:$0xff] %v3894_v28   ;;  %v4321_v11 = vpop.f32.mrb[84].mxu1  ;;  %v7789_v21 = vld [vmem:[#allocation39_spill] sm:$0xff]  ;;  %v7790_v4 = vld [vmem:[#allocation24_spill] sm:$0xff]  ;;  %v4779_v33 = vld [vmem:[#allocation11 + $0x30] sm:$0xff] }
 0x3c0   : > { %4527 = vxpose.xlu0.b32.cont [14/16] %v4526_v10, 128  ;;  %v2866_v61 = vsel %vm6004_vm0, %v7787_v39, %v2806_v19  ;;  %v2899_v57 = vmul.f32 %v4778_v15, %v7789_v21  ;;  %v4322_v44 = vpop.f32.mrb[85].mxu1  ;;  %v7792_v7 = vpack.i.bf16 %v7790_v4, %v7791_v22  ;;  %v4530_v20 = vpack.i.bf16 %v1950_v38, %v1934_v0  ;;  %v7793_v19 = vld [vmem:[#allocation122_spill] sm:$0xff]  ;;  %v7794_v28 = vld [vmem:[#allocation121_spill] sm:$0xff] }
 0x3c1   : > { %v2992_v12 = vmul.f32 0.088388346, %v2960_v46  ;;  %v2930_v52 = vmul.f32 %v6879_v51, %v2866_v61  ;;  %v4323_v2 = vadd.f32 %v4322_v44, %v4321_v11  ;;  %v4324_v51 = vpop.f32.mrb[86].mxu1  ;;  %v2993_v40 = vmul.f32 0.088388346, %v2961_v59  ;;  %v4780_v59 = vld [vmem:[#allocation10 + $0x30] sm:$0xff]  ;;  %v7060_v61 = vpop.permute.xlu0 %2831 }
 0x3c2   : > { %v2963_v13 = vadd.f32 %v2931_v31, %v2899_v57  ;;  %v2933_v46 = vmul.f32 %v4779_v33, %v2869_v43  ;;  %v4325_v41 = vpop.f32.mrb[87].mxu1  ;;  %v7795_v31 = vld [vmem:[#allocation43_spill] sm:$0xff]  ;;  %v7797_v44 = vld [vmem:[#allocation129_spill] sm:$0xff] }
 0x3c3   : > { %v4004_v10 = vpack.c.bf16 %v2992_v12, %v2991_v5  ;;  %v2962_v58 = vadd.f32 %v2930_v52, %v2898_v6  ;;  %v2810_v54 = vpop.permute.xlu1 %2809  ;;  %v2871_v6 = vsel %vm6004_vm0, %v7794_v28, %v6955_v14  ;;  %v4326_v0 = vadd.f32 %v4325_v41, %v4324_v51  ;;  %v4781_v11 = vld [vmem:[#allocation11 + $0x40] sm:$0xff] }
 0x3c4   : > { %4529 = vxpose.xlu0.b32.cont [15/16] %v7792_v7, 128  ;;  %v2868_v18 = vsel %vm6004_vm0, %v7793_v19, %v2810_v54  ;;  %v2901_v39 = vmul.f32 %v4780_v59, %v7795_v31  ;;  %v2902_v14 = vmul.f32 %v6916_v27, %v7715_v49  ;;  %v2935_v15 = vmul.f32 %v4781_v11, %v2871_v6  ;;  %v4782_v49 = vld [vmem:[#allocation10 + $0x40] sm:$0xff]  ;;  %v7798_v27 = vld [vmem:[#allocation48_spill] sm:$0xff]  ;;  %v7801_v59 = vld [vmem:[#allocation54_spill] sm:$0xff] }
 0x3c5   : > { %4111 = vst [vmem:[%s6056_s13 + $0x80] sm:$0xff] %v4004_v10   ;;  %v2994_v1 = vmul.f32 0.088388346, %v2962_v58  ;;  %v2932_v38 = vmul.f32 %v6898_v60, %v2868_v18  ;;  %v3899_v12 = vpack.c.bf16 %v4326_v0, %v4323_v2  ;;  %v7796_v60 = vld [vmem:[#allocation44_spill] sm:$0xff]  ;;  %v2995_v57 = vmul.f32 0.088388346, %v2963_v13 }
 0x3c6   : > { %v2965_v52 = vadd.f32 %v2933_v46, %v2901_v39  ;;  %v2873_v10 = vsel %vm6004_vm0, %v7797_v44, %v6980_v34  ;;  %v2903_v4 = vmul.f32 %v4782_v49, %v7798_v27  ;;  %v2904_v7 = vmul.f32 %v6940_v25, %v7717_v30  ;;  %v4783_v46 = vld [vmem:[#allocation11 + $0x50] sm:$0xff]  ;;  %v7799_v18 = vld [vmem:[#allocation47_spill] sm:$0xff]  ;;  %v7800_v6 = vld [vmem:[#allocation132_spill] sm:$0xff] }
 0x3c7   : > { %v4009_v5 = vpack.c.bf16 %v2994_v1, %v2993_v40  ;;  %v2964_v23 = vadd.f32 %v2932_v38, %v2900_v55  ;;  %v2814_v43 = vpop.permute.xlu1 %2813  ;;  %4091 = vst [vmem:[%s6786_s15 + $0x58] sm:$0xff] %v3899_v12   ;;  %v4327_v54 = vpop.f32.mrb[88].mxu1  ;;  %v2937_v19 = vmul.f32 %v4783_v46, %v2873_v10  ;;  %v2875_v30 = vsel %vm6004_vm0, %v7800_v6, %v7007_v45  ;;  %v4784_v0 = vld [vmem:[#allocation10 + $0x50] sm:$0xff]  ;;  %v4785_v12 = vld [vmem:[#allocation10 + $0x58] sm:$0xff]  ;;  %v4786_v11 = vld [vmem:[#allocation11 + $0x60] sm:$0xff] }
 0x3c8   : > { %4531 = vxpose.xlu0.b32.end [16/16] %v4530_v20, 128  ;;  %v2870_v21 = vsel %vm6004_vm0, %v7796_v60, %v2814_v43  ;;  %v4328_v22 = vpop.f32.mrb[89].mxu1  ;;  %v2997_v34 = vmul.f32 0.088388346, %v2965_v52  ;;  %v2967_v33 = vadd.f32 %v2935_v15, %v2903_v4  ;;  %v2905_v31 = vmul.f32 %v4784_v0, %v7801_v59  ;;  %v7802_v15 = vld [vmem:[#allocation138_spill] sm:$0xff]  ;;  %v4790_v46 = vld [vmem:[#allocation11 + $0x70] sm:$0xff]  ;;  %v7807_v6 = vld [vmem:[#allocation68_spill] sm:$0xff] }
 0x3c9   : > { %4112 = vst [vmem:[%s6056_s13 + $0x88] sm:$0xff] %v4009_v5   ;;  %v2996_v55 = vmul.f32 0.088388346, %v2964_v23  ;;  %v2934_v58 = vmul.f32 %v6920_v47, %v2870_v21  ;;  %v4329_v40 = vadd.f32 %v4328_v22, %v4327_v54  ;;  %v4330_v13 = vpop.f32.mrb[90].mxu1  ;;  %v7077_v47 = vpop.permute.xlu0 %2835  ;;  %v2939_v45 = vmul.f32 %v4786_v11, %v2875_v30  ;;  %v7803_v21 = vld [vmem:[#allocation66_spill] sm:$0xff]  ;;  %v7804_v54 = vld [vmem:[#allocation57_spill] sm:$0xff] }
 0x3ca   : > { %v4331_v28 = vpop.f32.mrb[91].mxu1  ;;  %v2969_v52 = vadd.f32 %v2937_v19, %v2905_v31  ;;  %v2999_v60 = vmul.f32 0.088388346, %v2967_v33  ;;  %v4787_v10 = vld [vmem:[#allocation11 + $0x58] sm:$0xff]  ;;  %v4789_v22 = vld [vmem:[#allocation10 + $0x68] sm:$0xff]  ;;  %v2879_v30 = vsel %vm6004_vm0, %v7807_v6, %v7060_v61  ;;  %v4792_v59 = vld [vmem:[#allocation10 + $0x70] sm:$0xff] }
 0x3cb   : > { %v4014_v20 = vpack.c.bf16 %v2996_v55, %v2995_v57  ;;  %v2966_v2 = vadd.f32 %v2934_v58, %v2902_v14  ;;  %v2818_v51 = vpop.permute.xlu1 %2817  ;;  %v4332_v38 = vadd.f32 %v4331_v28, %v4330_v13  ;;  %v2906_v14 = vmul.f32 %v4785_v12, %v7718_v36  ;;  %v4788_v36 = vld [vmem:[#allocation10 + $0x60] sm:$0xff] }
 0x3cc   : > { %v2872_v41 = vsel %vm6004_vm0, %v7799_v18, %v2818_v51  ;;  %v2877_v57 = vsel %vm6004_vm0, %v7803_v21, %v7033_v42  ;;  %v2907_v49 = vmul.f32 %v4788_v36, %v7804_v54  ;;  %v7806_v18 = vld [vmem:[#allocation144_spill] sm:$0xff]  ;;  %v7808_v31 = vld [vmem:[#allocation59_spill] sm:$0xff] }
 0x3cd   : > { %4113 = vst [vmem:[%s6056_s13 + $0x90] sm:$0xff] %v4014_v20   ;;  %v2998_v25 = vmul.f32 0.088388346, %v2966_v2  ;;  %v2936_v1 = vmul.f32 %v6944_v9, %v2872_v41  ;;  %v3904_v43 = vpack.c.bf16 %v4332_v38, %v4329_v40  ;;  %v7100_v27 = vpop.permute.xlu0 %2839  ;;  %v2941_v19 = vmul.f32 %v4790_v46, %v2877_v57  ;;  %v7811_v57 = vld [vmem:[#allocation134_spill] sm:$0xff] }
 0x3ce   : > { %v2971_v33 = vadd.f32 %v2939_v45, %v2907_v49  ;;  %v4796_v49 = vld [vmem:[#allocation10 + $0x80] sm:$0xff] }
 0x3cf   : > { %v4019_v39 = vpack.c.bf16 %v2998_v25, %v2997_v34  ;;  %v2968_v5 = vadd.f32 %v2936_v1, %v2904_v7  ;;  %v2822_v23 = vpop.permute.xlu1 %2821  ;;  %4092 = vst [vmem:[%s6786_s15 + $0x60] sm:$0xff] %v3904_v43   ;;  %v4333_v58 = vpop.f32.mrb[92].mxu1  ;;  %v7805_v7 = vld [vmem:[#allocation58_spill] sm:$0xff]  ;;  %v3001_v34 = vmul.f32 0.088388346, %v2969_v52  ;;  %v4791_v1 = vld [vmem:[#allocation11 + $0x68] sm:$0xff] }
 0x3d0   : > { %v2874_v9 = vsel %vm6004_vm0, %v7802_v15, %v2822_v23  ;;  %v4334_v4 = vpop.f32.mrb[93].mxu1  ;;  %v2908_v20 = vmul.f32 %v4789_v22, %v7805_v7  ;;  %v7809_v52 = vld [vmem:[#allocation60_spill] sm:$0xff]  ;;  %v4794_v15 = vld [vmem:[#allocation11 + $0x80] sm:$0xff]  ;;  %v3003_v21 = vmul.f32 0.088388346, %v2971_v33 }
 0x3d1   : > { %4114 = vst [vmem:[%s6056_s13 + $0x98] sm:$0xff] %v4019_v39   ;;  %v3000_v44 = vmul.f32 0.088388346, %v2968_v5  ;;  %v2938_v55 = vmul.f32 %v4787_v10, %v2874_v9  ;;  %v4335_v42 = vadd.f32 %v4334_v4, %v4333_v58  ;;  %v4336_v13 = vpop.f32.mrb[94].mxu1  ;;  %v2909_v39 = vmul.f32 %v4792_v59, %v7808_v31  ;;  %v7810_v9 = vld [vmem:[#allocation99_spill] sm:$0xff]  ;;  %v7120_v10 = vpop.permute.xlu0 %2843  ;;  %v4795_v58 = vld [vmem:[#allocation11 + $0x78] sm:$0xff] }
 0x3d2   : > { %v4337_v28 = vpop.f32.mrb[95].mxu1  ;;  %v2943_v61 = vmul.f32 %v4794_v15, %v2879_v30  ;;  %v7812_v4 = vld [vmem:[#allocation61_spill] sm:$0xff]  ;;  %v7815_v30 = vld [vmem:[#allocation136_spill] sm:$0xff] }
 0x3d3   : > { %v4024_v2 = vpack.c.bf16 %v3000_v44, %v2999_v60  ;;  %v2970_v51 = vadd.f32 %v2938_v55, %v2906_v14  ;;  %v2826_v40 = vpop.permute.xlu1 %2825  ;;  %v4338_v0 = vadd.f32 %v4337_v28, %v4336_v13  ;;  %v4793_v14 = vld [vmem:[#allocation10 + $0x78] sm:$0xff]  ;;  %v2973_v45 = vadd.f32 %v2941_v19, %v2909_v39  ;;  %v4798_v19 = vld [vmem:[#allocation11 + $0x90] sm:$0xff]  ;;  %v7816_v39 = vld [vmem:[#allocation63_spill] sm:$0xff] }
 0x3d4   : > { %v2876_v41 = vsel %vm6004_vm0, %v7806_v18, %v2826_v40  ;;  %v2910_v11 = vmul.f32 %v4793_v14, %v7809_v52  ;;  %v2881_v44 = vsel %vm6004_vm0, %v7811_v57, %v7077_v47  ;;  %v2911_v22 = vmul.f32 %v4796_v49, %v7812_v4  ;;  %v4800_v31 = vld [vmem:[#allocation10 + $0x90] sm:$0xff]  ;;  %v4804_v4 = vld [vmem:[#allocation10 + $0xa0] sm:$0xff] }
 0x3d5   : > { %4115 = vst [vmem:[%s6056_s13 + $0xa0] sm:$0xff] %v4024_v2   ;;  %v3002_v25 = vmul.f32 0.088388346, %v2970_v51  ;;  %v2940_v38 = vmul.f32 %v4791_v1, %v2876_v41  ;;  %v3909_v12 = vpack.c.bf16 %v4338_v0, %v4335_v42  ;;  %v7813_v2 = vld [vmem:[#allocation62_spill] sm:$0xff]  ;;  %v3005_v33 = vmul.f32 0.088388346, %v2973_v45 }
 0x3d6   : > { %v2975_v46 = vadd.f32 %v2943_v61, %v2911_v22  ;;  %v2945_v18 = vmul.f32 %v4798_v19, %v2881_v44  ;;  %v7814_v41 = vld [vmem:[#allocation26_spill] sm:$0xff]  ;;  %v7817_v45 = vld [vmem:[#allocation65_spill] sm:$0xff]  ;;  %v7819_v44 = vld [vmem:[#allocation52_spill] sm:$0xff] }
 0x3d7   : > { %v4029_v5 = vpack.c.bf16 %v3002_v25, %v3001_v34  ;;  %v2972_v23 = vadd.f32 %v2940_v38, %v2908_v20  ;;  %v2830_v43 = vpop.permute.xlu1 %2829  ;;  %4093 = vst [vmem:[%s6786_s15 + $0x68] sm:$0xff] %v3909_v12   ;;  %v4339_v54 = vpop.f32.mrb[96].mxu1  ;;  %v4797_v20 = vld [vmem:[#allocation10 + $0x88] sm:$0xff]  ;;  %v2883_v25 = vsel %vm6004_vm0, %v7815_v30, %v7100_v27  ;;  %v4802_v27 = vld [vmem:[#allocation11 + $0xa0] sm:$0xff] }
 0x3d8   : > { %v2878_v60 = vsel %vm6004_vm0, %v7810_v9, %v2830_v43  ;;  %v4340_v7 = vpop.f32.mrb[97].mxu1  ;;  %v2912_v51 = vmul.f32 %v4797_v20, %v7813_v2  ;;  %v4799_v38 = vld [vmem:[#allocation11 + $0x88] sm:$0xff]  ;;  %v2947_v9 = vmul.f32 %v4802_v27, %v2883_v25  ;;  %v3007_v57 = vmul.f32 0.088388346, %v2975_v46  ;;  %v7820_v22 = vld [vmem:[#allocation67_spill] sm:$0xff]  ;;  %v7821_v2 = vld [vmem:[#allocation69_spill] sm:$0xff] }
 0x3d9   : > { %4116 = vst [vmem:[%s6056_s13 + $0xa8] sm:$0xff] %v4029_v5   ;;  %v3004_v55 = vmul.f32 0.088388346, %v2972_v23  ;;  %v2942_v36 = vmul.f32 %v4795_v58, %v2878_v60  ;;  %v4341_v47 = vadd.f32 %v4340_v7, %v4339_v54  ;;  %v4342_v34 = vpop.f32.mrb[98].mxu1  ;;  %v2913_v5 = vmul.f32 %v4800_v31, %v7816_v39  ;;  %v2848_v23 = vpop.permute.xlu0 %2847  ;;  %v7818_v60 = vld [vmem:[#allocation103_spill] sm:$0xff]  ;;  %v4805_v46 = vld [vmem:[#allocation11 + $0xb0] sm:$0xff] }
 0x3da   : > { %v4343_v6 = vpop.f32.mrb[99].mxu1  ;;  %v2915_v7 = vmul.f32 %v4804_v4, %v7820_v22 }
 0x3db   : > { %v4034_v40 = vpack.c.bf16 %v3004_v55, %v3003_v21  ;;  %v2974_v42 = vadd.f32 %v2942_v36, %v2910_v11  ;;  %v2834_v13 = vpop.permute.xlu1 %2833  ;;  %v4344_v59 = vadd.f32 %v4343_v6, %v4342_v34  ;;  %v4801_v11 = vld [vmem:[#allocation10 + $0x98] sm:$0xff]  ;;  %v2977_v61 = vadd.f32 %v2945_v18, %v2913_v5  ;;  %v7823_v6 = vld [vmem:[#allocation141_spill] sm:$0xff] }
 0x3dc   : > { %v2880_v28 = vsel %vm6004_vm0, %v7814_v41, %v2834_v13  ;;  %v2914_v15 = vmul.f32 %v4801_v11, %v7817_v45  ;;  %v2885_v55 = vsel %vm6004_vm0, %v7819_v44, %v7120_v10  ;;  %v4803_v36 = vld [vmem:[#allocation11 + $0x98] sm:$0xff]  ;;  %v2887_v30 = vsel %vm6004_vm0, %v7823_v6, %v2848_v23  ;;  %v4807_v11 = vld [vmem:[#allocation11 + $0xc0] sm:$0xff]  ;;  %v7826_v45 = vld [vmem:[#allocation101_spill] sm:$0xff] }
 0x3dd   : > { %4117 = vst [vmem:[%s6056_s13 + $0xb0] sm:$0xff] %v4034_v40   ;;  %v3006_v1 = vmul.f32 0.088388346, %v2974_v42  ;;  %v2944_v0 = vmul.f32 %v4799_v38, %v2880_v28  ;;  %v3914_v52 = vpack.c.bf16 %v4344_v59, %v4341_v47  ;;  %v3009_v10 = vmul.f32 0.088388346, %v2977_v61  ;;  %v7822_v18 = vld [vmem:[#allocation102_spill] sm:$0xff]  ;;  %v2852_v25 = vpop.permute.xlu0 %2851 }
 0x3de   : > { %v2949_v19 = vmul.f32 %v4805_v46, %v2885_v55  ;;  %v7824_v59 = vld [vmem:[#allocation71_spill] sm:$0xff]  ;;  %v2951_v23 = vmul.f32 %v4807_v11, %v2887_v30  ;;  %v7828_v44 = vld [vmem:[#allocation86_spill] sm:$0xff] }
 0x3df   : > { %v4039_v43 = vpack.c.bf16 %v3006_v1, %v3005_v33  ;;  %v2976_v12 = vadd.f32 %v2944_v0, %v2912_v51  ;;  %v2838_v14 = vpop.permute.xlu1 %2837  ;;  %4094 = vst [vmem:[%s6786_s15 + $0x70] sm:$0xff] %v3914_v52   ;;  %v4345_v49 = vpop.f32.mrb[100].mxu1  ;;  %v2916_v51 = vmul.f32 %v7821_v2, %v6682_v62  ;;  %v2979_v33 = vadd.f32 %v2947_v9, %v2915_v7  ;;  %v4806_v0 = vld [vmem:[#allocation10 + $0xb0] sm:$0xff]  ;;  %v7830_v7 = vld [vmem:[#allocation96_spill] sm:$0xff] }
 0x3e0   : > { %v2882_v21 = vsel %vm6004_vm0, %v7818_v60, %v2838_v14  ;;  %v4346_v20 = vpop.f32.mrb[101].mxu1  ;;  %v2917_v31 = vmul.f32 %v4806_v0, %v7824_v59  ;;  %v7825_v14 = vld [vmem:[#allocation74_spill] sm:$0xff]  ;;  %v4808_v60 = vld [vmem:[#allocation10 + $0xc0] sm:$0xff]  ;;  %v4809_v2 = vld [vmem:[#allocation11 + $0xd0] sm:$0xff] }
 0x3e1   : > { %4118 = vst [vmem:[%s6056_s13 + $0xb8] sm:$0xff] %v4039_v43   ;;  %v3008_v58 = vmul.f32 0.088388346, %v2976_v12  ;;  %v2946_v54 = vmul.f32 %v4803_v36, %v2882_v21  ;;  %v4347_v47 = vadd.f32 %v4346_v20, %v4345_v49  ;;  %v4348_v34 = vpop.f32.mrb[102].mxu1  ;;  %v2918_v52 = vmul.f32 %v7825_v14, %v6706_v37  ;;  %v7827_v21 = vld [vmem:[#allocation77_spill] sm:$0xff]  ;;  %v2856_v55 = vpop.permute.xlu0 %2855  ;;  %v7829_v49 = vld [vmem:[#allocation80_spill] sm:$0xff] }
 0x3e2   : > { %v4349_v28 = vpop.f32.mrb[103].mxu1  ;;  %v3011_v61 = vmul.f32 0.088388346, %v2979_v33  ;;  %v2889_v37 = vsel %vm6004_vm0, %v7828_v44, %v2852_v25  ;;  %v2920_v4 = vmul.f32 %v7829_v49, %v6733_v35  ;;  %v4811_v25 = vld [vmem:[#allocation11 + $0xe0] sm:$0xff] }
 0x3e3   : > { %v4044_v40 = vpack.c.bf16 %v3008_v58, %v3007_v57  ;;  %v2978_v42 = vadd.f32 %v2946_v54, %v2914_v15  ;;  %v2842_v13 = vpop.permute.xlu1 %2841  ;;  %v4350_v38 = vadd.f32 %v4349_v28, %v4348_v34  ;;  %v2919_v57 = vmul.f32 %v4808_v60, %v7827_v21  ;;  %v4810_v34 = vld [vmem:[#allocation10 + $0xd0] sm:$0xff]  ;;  %v4812_v0 = vld [vmem:[#allocation10 + $0xe0] sm:$0xff] }
 0x3e4   : > { %v2884_v41 = vsel %vm6004_vm0, %v7822_v18, %v2842_v13  ;;  %v7831_v13 = vld [vmem:[#allocation145_spill] sm:$0xff]  ;;  %v2922_v18 = vmul.f32 %v7730_v48, %v6759_v32  ;;  %v7835_v59 = vld [vmem:[#allocation91_spill] sm:$0xff] }
 0x3e5   : > { %4119 = vst [vmem:[%s6056_s13 + $0xc0] sm:$0xff] %v4044_v40   ;;  %v3010_v62 = vmul.f32 0.088388346, %v2978_v42  ;;  %v2948_v1 = vmul.f32 %v2884_v41, %v6684_v56  ;;  %v3919_v12 = vpack.c.bf16 %v4350_v38, %v4347_v47  ;;  %v2981_v56 = vadd.f32 %v2949_v19, %v2917_v31  ;;  %v7833_v28 = vld [vmem:[#allocation109_spill] sm:$0xff] }
 0x3e6   : > { %v2983_v22 = vadd.f32 %v2951_v23, %v2919_v57  ;;  %v2891_v47 = vsel %vm6004_vm0, %v7831_v13, %v2856_v55  ;;  %v2923_v31 = vmul.f32 %v4812_v0, %v7835_v59 }
 0x3e7   : > { %v4049_v39 = vpack.c.bf16 %v3010_v62, %v3009_v10  ;;  %v2980_v5 = vadd.f32 %v2948_v1, %v2916_v51  ;;  %v2846_v43 = vpop.permute.xlu1 %2845  ;;  %4095 = vst [vmem:[%s6786_s15 + $0x78] sm:$0xff] %v3919_v12   ;;  %v3013_v20 = vmul.f32 0.088388346, %v2981_v56  ;;  %v2953_v51 = vmul.f32 %v4809_v2, %v2889_v37  ;;  %v7832_v10 = vld [vmem:[#allocation84_spill] sm:$0xff]  ;;  %v7837_v56 = vld [vmem:[#allocation30_spill] sm:$0xff]  ;;  %s5153_s15 = smov [#allocation14]  }
 0x3e8   : > { %v2886_v15 = vsel %vm6004_vm0, %v7826_v45, %v2846_v43  ;;  %v2921_v35 = vmul.f32 %v4810_v34, %v7832_v10  ;;  %v3015_v41 = vmul.f32 0.088388346, %v2983_v22  ;;  %v2955_v62 = vmul.f32 %v4811_v25, %v2891_v47  ;;  %s4989_s0 = sshll.u32 %s5153_s15, 4  ;;  %s4990_s0 = int_to_ptr.vmem [resolvable:$false] %s4989_s0 }
 0x3e9   : > { %4120 = vst [vmem:[%s6056_s13 + $0xc8] sm:$0xff] %v4049_v39   ;;  %v3012_v27 = vmul.f32 0.088388346, %v2980_v5  ;;  %v2950_v9 = vmul.f32 %v2886_v15, %v6708_v3  ;;  %v2924_v5 = vmul.f32 %v7707_v29, %v6789_v50  ;;  %v7836_v29 = vld [vmem:[#allocation100_spill] sm:$0xff]  ;;  %s4991_s2 = scalar_lea.vmem %s4990_s0, 4096  ;;  %p4992_p7 = scmp.lt.s32.totalorder %s7235_s14, %s4990_s0 }
 0x3ea   : > { %v2985_v30 = vadd.f32 %v2953_v51, %v2921_v35  ;;  %v2987_v14 = vadd.f32 %v2955_v62, %v2923_v31  ;;  %v2926_v50 = vmul.f32 %v7836_v29, %v6818_v63  ;;  %p4993_p9 = scmp.lt.s32.totalorder %s4991_s2, %s4985_s20 }
 0x3eb   : > { %v4054_v58 = vpack.c.bf16 %v3012_v27, %v3011_v61  ;;  %v2982_v36 = vadd.f32 %v2950_v9, %v2918_v52  ;;  %v2850_v54 = vpop.permute.xlu1 %2849 }
 0x3ec   : > { %v2888_v3 = vsel %vm6004_vm0, %v7830_v7, %v2850_v54  ;;  %v3017_v12 = vmul.f32 0.088388346, %v2985_v30  ;;  %v3019_v61 = vmul.f32 0.088388346, %v2987_v14  ;;  %p4994_p10 = por %p4993_p9, %p4992_p7 }
 0x3ed   : > { %4121 = vst [vmem:[%s6056_s13 + $0xd0] sm:$0xff] %v4054_v58   ;;  %v3014_v40 = vmul.f32 0.088388346, %v2982_v36  ;;  %v2952_v42 = vmul.f32 %v2888_v3, %v6735_v24  ;;  %v7834_v24 = vld [vmem:[#allocation98_spill] sm:$0xff] }
 0x3ee   : > { %p4995_p1 = pnand %p4994_p10, %p4988_p3 }
 0x3ef   : > { %v4059_v33 = vpack.c.bf16 %v3014_v40, %v3013_v20  ;;  %v2984_v46 = vadd.f32 %v2952_v42, %v2920_v4  ;;  %v2854_v19 = vpop.permute.xlu1 %2853 }
 0x3f0   : > { %v2890_v6 = vsel %vm6004_vm0, %v7833_v28, %v2854_v19 }
 0x3f1   : > { %2859 = vrot.lane.b32.xlu0 %v7834_v24, %s5152_s12  ;;  %4122 = vst [vmem:[%s6056_s13 + $0xd8] sm:$0xff] %v4059_v33   ;;  %v3016_v1 = vmul.f32 0.088388346, %v2984_v46  ;;  %v2954_v38 = vmul.f32 %v2890_v6, %v6761_v16  ;;  %s7839_s12 = sld [smem:[#allocation151_spill]] }
 0x3f3   : > { %v4064_v32 = vpack.c.bf16 %v3016_v1, %v3015_v41  ;;  %v2986_v48 = vadd.f32 %v2954_v38, %v2922_v18  ;;  %v2858_v39 = vpop.permute.xlu1 %2857 }
 0x3f4   : > { %v2892_v43 = vsel %vm6004_vm0, %v6974_v53, %v2858_v39 }
 0x3f5   : > { %4123 = vst [vmem:[%s6056_s13 + $0xe0] sm:$0xff] %v4064_v32   ;;  %v3018_v52 = vmul.f32 0.088388346, %v2986_v48  ;;  %v2956_v16 = vmul.f32 %v2892_v43, %v6795_v17 }
 0x3f7   : > { %v4069_v11 = vpack.c.bf16 %v3018_v52, %v3017_v12  ;;  %v2988_v23 = vadd.f32 %v2956_v16, %v2924_v5  ;;  %v2862_v45 = vpop.permute.xlu1 %2861  ;;  %s7240_s6 = scalar_lea.hbm %s7839_s12, %s3839_s26 }
 0x3f8   : > { %v2894_v15 = vsel %vm6004_vm0, %v6989_v8, %v2862_v45 }
 0x3f9   : > { %4124 = vst [vmem:[%s6056_s13 + $0xe8] sm:$0xff] %v4069_v11   ;;  %v3020_v53 = vmul.f32 0.088388346, %v2988_v23  ;;  %v2958_v27 = vmul.f32 %v2894_v15, %v7837_v56 }
 0x3fb   : > { %v4074_v9 = vpack.c.bf16 %v3020_v53, %v3019_v61  ;;  %v7204_v60 = vadd.f32 %v2958_v27, %v2926_v50 }
 0x3fd   : > { %4125 = vst [vmem:[%s6056_s13 + $0xf0] sm:$0xff] %v4074_v9  }
 0x40c   : > { %v4532_v17 = vpop.trf.xlu0 }
 0x40d   : > { %v4536_v21 = vunpack.i.h.bf16 %v4532_v17  ;;  %v4533_v57 = vunpack.i.l.bf16 %v4532_v17 }
 0x40f   : > { %v3726_v44 = vpack.c.bf16 %v4536_v21, %v4533_v57 }
 0x410   : > { %v4537_v37 = vpop.trf.xlu0 }
 0x411   : > { %2111 = vst [vmem:[%s7209_s24] sm:$0xff] %v3726_v44  ;;  %v4541_v63 = vunpack.i.h.bf16 %v4537_v37  ;;  %v4538_v8 = vunpack.i.l.bf16 %v4537_v37 }
 0x413   : > { %v3727_v55 = vpack.c.bf16 %v4541_v63, %v4538_v8 }
 0x414   : > { %v4542_v58 = vpop.trf.xlu0 }
 0x415   : > { %2112 = vst [vmem:[%s7209_s24 + $0x8] sm:$0xff] %v3727_v55  ;;  %v4546_v36 = vunpack.i.h.bf16 %v4542_v58  ;;  %v4543_v54 = vunpack.i.l.bf16 %v4542_v58 }
 0x417   : > { %v3728_v49 = vpack.c.bf16 %v4546_v36, %v4543_v54 }
 0x418   : > { %v4547_v4 = vpop.trf.xlu0 }
 0x419   : > { %2113 = vst [vmem:[%s7209_s24 + $0x10] sm:$0xff] %v3728_v49  ;;  %v4551_v22 = vunpack.i.h.bf16 %v4547_v4  ;;  %v4548_v7 = vunpack.i.l.bf16 %v4547_v4 }
 0x41b   : > { %v3729_v3 = vpack.c.bf16 %v4551_v22, %v4548_v7 }
 0x41c   : > { %v4552_v20 = vpop.trf.xlu0 }
 0x41d   : > { %2114 = vst [vmem:[%s7209_s24 + $0x18] sm:$0xff] %v3729_v3  ;;  %v4556_v2 = vunpack.i.h.bf16 %v4552_v20  ;;  %v4553_v51 = vunpack.i.l.bf16 %v4552_v20 }
 0x41f   : > { %v3730_v40 = vpack.c.bf16 %v4556_v2, %v4553_v51 }
 0x420   : > { %v4557_v42 = vpop.trf.xlu0 }
 0x421   : > { %2115 = vst [vmem:[%s7209_s24 + $0x20] sm:$0xff] %v3730_v40  ;;  %v4561_v13 = vunpack.i.h.bf16 %v4557_v42  ;;  %v4558_v47 = vunpack.i.l.bf16 %v4557_v42 }
 0x423   : > { %v3731_v34 = vpack.c.bf16 %v4561_v13, %v4558_v47 }
 0x424   : > { %v4562_v10 = vpop.trf.xlu0 }
 0x425   : > { %2116 = vst [vmem:[%s7209_s24 + $0x28] sm:$0xff] %v3731_v34  ;;  %v4566_v35 = vunpack.i.h.bf16 %v4562_v10  ;;  %v4563_v33 = vunpack.i.l.bf16 %v4562_v10 }
 0x427   : > { %v3732_v46 = vpack.c.bf16 %v4566_v35, %v4563_v33 }
 0x428   : > { %v4567_v19 = vpop.trf.xlu0 }
 0x429   : > { %2117 = vst [vmem:[%s7209_s24 + $0x30] sm:$0xff] %v3732_v46  ;;  %v4571_v18 = vunpack.i.h.bf16 %v4567_v19  ;;  %v4568_v41 = vunpack.i.l.bf16 %v4567_v19 }
 0x42b   : > { %v3733_v28 = vpack.c.bf16 %v4571_v18, %v4568_v41 }
 0x42c   : > { %v4572_v6 = vpop.trf.xlu0 }
 0x42d   : > { %2118 = vst [vmem:[%s7209_s24 + $0x38] sm:$0xff] %v3733_v28  ;;  %v4576_v30 = vunpack.i.h.bf16 %v4572_v6  ;;  %v4573_v25 = vunpack.i.l.bf16 %v4572_v6 }
 0x42f   : > { %v3734_v62 = vpack.c.bf16 %v4576_v30, %v4573_v25 }
 0x430   : > { %v4577_v1 = vpop.trf.xlu0 }
 0x431   : > { %2119 = vst [vmem:[%s7209_s24 + $0x40] sm:$0xff] %v3734_v62  ;;  %v4581_v38 = vunpack.i.h.bf16 %v4577_v1  ;;  %v4578_v0 = vunpack.i.l.bf16 %v4577_v1 }
 0x433   : > { %v3735_v59 = vpack.c.bf16 %v4581_v38, %v4578_v0 }
 0x434   : > { %v4582_v31 = vpop.trf.xlu0 }
 0x435   : > { %2120 = vst [vmem:[%s7209_s24 + $0x48] sm:$0xff] %v3735_v59  ;;  %v4586_v32 = vunpack.i.h.bf16 %v4582_v31  ;;  %v4583_v48 = vunpack.i.l.bf16 %v4582_v31 }
 0x437   : > { %v3736_v39 = vpack.c.bf16 %v4586_v32, %v4583_v48 }
 0x438   : > { %v4587_v5 = vpop.trf.xlu0 }
 0x439   : > { %2121 = vst [vmem:[%s7209_s24 + $0x50] sm:$0xff] %v3736_v39  ;;  %v4591_v43 = vunpack.i.h.bf16 %v4587_v5  ;;  %v4588_v12 = vunpack.i.l.bf16 %v4587_v5 }
 0x43b   : > { %v3737_v14 = vpack.c.bf16 %v4591_v43, %v4588_v12 }
 0x43c   : > { %v4592_v52 = vpop.trf.xlu0 }
 0x43d   : > { %2122 = vst [vmem:[%s7209_s24 + $0x58] sm:$0xff] %v3737_v14  ;;  %v4596_v16 = vunpack.i.h.bf16 %v4592_v52  ;;  %v4593_v11 = vunpack.i.l.bf16 %v4592_v52 }
 0x43f   : > { %v3738_v23 = vpack.c.bf16 %v4596_v16, %v4593_v11 }
 0x440   : > { %v4597_v45 = vpop.trf.xlu0 }
 0x441   : > { %2123 = vst [vmem:[%s7209_s24 + $0x60] sm:$0xff] %v3738_v23  ;;  %v4601_v15 = vunpack.i.h.bf16 %v4597_v45  ;;  %v4598_v29 = vunpack.i.l.bf16 %v4597_v45 }
 0x443   : > { %v3739_v50 = vpack.c.bf16 %v4601_v15, %v4598_v29 }
 0x444   : > { %v4602_v61 = vpop.trf.xlu0 }
 0x445   : > { %2124 = vst [vmem:[%s7209_s24 + $0x68] sm:$0xff] %v3739_v50  ;;  %v4606_v53 = vunpack.i.h.bf16 %v4602_v61  ;;  %v4603_v56 = vunpack.i.l.bf16 %v4602_v61 }
 0x447   : > { %v3740_v27 = vpack.c.bf16 %v4606_v53, %v4603_v56 }
 0x448   : > { %v4607_v9 = vpop.trf.xlu0 }
 0x449   : > { %2125 = vst [vmem:[%s7209_s24 + $0x70] sm:$0xff] %v3740_v27  ;;  %v4611_v17 = vunpack.i.h.bf16 %v4607_v9  ;;  %v4608_v21 = vunpack.i.l.bf16 %v4607_v9 }
 0x44b   : > { %v3741_v57 = vpack.c.bf16 %v4611_v17, %v4608_v21 }
 0x44d   : > { %2126 = vst [vmem:[%s7209_s24 + $0x78] sm:$0xff] %v3741_v57 }
 0x44e   : > { %4998 = shalt.err (!%p4995_p1)
}
 0x44f   : > { %s4999_s24 = scalar_lea.hbm %s7231_s8, 2048  ;;  %s5003_s11 = scalar_lea.hbm %s7838_s18, 4096 }
 0x450   : > { %p5000_p13 = scmp.ne.s32.totalorder %s7231_s8, %s4999_s24  ;;  %p5004_p5 = scmp.lt.u32.totalorder %s7231_s8, %s7838_s18 }
 0x451   : > { %p5005_p11 = scmp.lt.u32.totalorder %s5003_s11, %s4999_s24  ;;  %p5007_p6 = scmp.lt.u32.totalorder %s4999_s24, %s7231_s8 }
 0x452   : > { %p5001_p2 = pnand %p5000_p13, %p7840_p0 }
 0x453   : > { %p5006_p12 = por %p5005_p11, %p5004_p5 }
 0x454   : > { %p5002_p4 = pneg %p5001_p2 }
 0x455   : > { %p5008_p8 = por %p5007_p6, %p5006_p12 }
 0x457   : > { %p5009_p3 = pnand %p5008_p8, %p5002_p4 }
 0x459   : > { %5012 = shalt.err (!%p5009_p3)
}
 0x45a   : > { %s5154_s2 = smov 128   ;;  %s5155_s20 = smov 8  }
 0x45b   : > { %4390 = dma.vmem_to_hbm [thread:$0]  (%p7840_p0), %s7235_s14, 2048, %s7231_s8, %s7245_s7, %s5154_s2, %s5154_s2, %s5155_s20  }
 0x45c   : > { %s5013_s15 = scalar_lea.vmem %s7242_s16, 2048  ;;  %s5156_s24 = smov [#allocation16]  }
 0x45d   : > { %p5014_p7 = scmp.ne.s32.totalorder %s7242_s16, %s5013_s15  ;;  %s5017_s21 = sshll.u32 %s5156_s24, 4  ;;  %s5018_s21 = int_to_ptr.vmem [resolvable:$false] %s5017_s21 }
 0x45e   : > { %s5019_s26 = scalar_lea.vmem %s5018_s21, 4096  ;;  %p5020_p1 = scmp.lt.s32.totalorder %s7242_s16, %s5018_s21 }
 0x45f   : > { %p5015_p9 = pnand %p5014_p7, %p7840_p0  ;;  %p5021_p13 = scmp.lt.s32.totalorder %s5019_s26, %s5013_s15 }
 0x461   : > { %p5016_p10 = pneg %p5015_p9  ;;  %p5022_p2 = por %p5021_p13, %p5020_p1 }
 0x463   : > { %p5023_p4 = pnand %p5022_p2, %p5016_p10 }
 0x465   : > { %5026 = shalt.err (!%p5023_p4)
}
 0x466   : > { %s5027_s14 = scalar_lea.hbm %s7240_s6, 2048  ;;  %s5031_s1 = scalar_lea.hbm %s7839_s12, 4096 }
 0x467   : > { %p5028_p5 = scmp.ne.s32.totalorder %s7240_s6, %s5027_s14  ;;  %p5032_p6 = scmp.lt.u32.totalorder %s7240_s6, %s7839_s12 }
 0x468   : > { %p5033_p8 = scmp.lt.u32.totalorder %s5031_s1, %s5027_s14  ;;  %p5035_p7 = scmp.lt.u32.totalorder %s5027_s14, %s7240_s6 }
 0x469   : > { %p5029_p11 = pnand %p5028_p5, %p7840_p0 }
 0x46a   : > { %p5034_p3 = por %p5033_p8, %p5032_p6 }
 0x46b   : > { %p5030_p12 = pneg %p5029_p11 }
 0x46c   : > { %p5036_p9 = por %p5035_p7, %p5034_p3 }
 0x46e   : > { %p5037_p10 = pnand %p5036_p9, %p5030_p12 }
 0x470   : > { %5040 = shalt.err (!%p5037_p10)
}
 0x471   : > { %s5157_s20 = smov 64   ;;  %s5158_s15 = smov 4   ;;  %v2860_v44 = vpop.permute.xlu0 %2859  ;;  %v7841_v37 = vld [vmem:[#allocation108_spill] sm:$0xff]  ;;  %v4813_v8 = vld [vmem:[#allocation10 + $0xf0] sm:$0xff]  ;;  %v3022_v49 = vmul.f32 0.088388346, %v7204_v60 }
 0x472   : > { %4391 = dma.vmem_to_hbm [thread:$0]  (%p7840_p0), %s7242_s16, 2048, %s7240_s6, %s7245_s7, %s5157_s20, %s5157_s20, %s5158_s15   ;;  %v2893_v63 = vsel %vm6004_vm0, %v7841_v37, %v2860_v44  ;;  %v2925_v55 = vmul.f32 %v4813_v8, %v7834_v24  ;;  %v4814_v58 = vld [vmem:[#allocation11 + $0xf0] sm:$0xff] }
 0x473   : > { %v2957_v36 = vmul.f32 %v4814_v58, %v2893_v63  ;;  %s3838_s24 = sshll.u32 %s5131_s30, 12  ;;  %s3210_s21 = sshll.u32 %s6056_s13, 4  ;;  %s7306_s21 = int_to_ptr.vmem [resolvable:$true] %s3210_s21 }
 0x474   : > { %s7842_s7 = sld [smem:[#allocation149_spill]]  ;;  %s3185_s14 = scalar_lea.sflag [#allocation4], %s5445_s17 }
 0x475   : > { %v2989_v54 = vadd.f32 %v2957_v36, %v2925_v55  ;;  %s5041_s8 = scalar_lea.vmem %s7306_s21, 4096  ;;  %s5159_s30 = smov [#allocation13]  }
 0x476   : > { %p5042_p1 = scmp.ne.s32.totalorder %s7306_s21, %s5041_s8  ;;  %s5045_s11 = sshll.u32 %s5159_s30, 4  ;;  %s5046_s11 = int_to_ptr.vmem [resolvable:$false] %s5045_s11 }
 0x477   : > { %v3021_v4 = vmul.f32 0.088388346, %v2989_v54  ;;  %s5047_s1 = scalar_lea.vmem %s5046_s11, 8192  ;;  %p5048_p4 = scmp.lt.s32.totalorder %s7306_s21, %s5046_s11 }
 0x478   : > { %p5043_p13 = pnand %p5042_p1, %p7840_p0  ;;  %p5049_p5 = scmp.lt.s32.totalorder %s5047_s1, %s5041_s8 }
 0x479   : > { %v4079_v22 = vpack.c.bf16 %v3022_v49, %v3021_v4 }
 0x47a   : > { %s7304_s26 = scalar_lea.hbm %s7842_s7, %s3838_s24  ;;  %p5044_p2 = pneg %p5043_p13 }
 0x47b   : > { %4126 = vst [vmem:[%s6056_s13 + $0xf8] sm:$0xff] %v4079_v22   ;;  %p5050_p11 = por %p5049_p5, %p5048_p4 }
 0x47d   : > { %p5051_p12 = pnand %p5050_p11, %p5044_p2 }
 0x47f   : > { %5054 = shalt.err (!%p5051_p12)
}
 0x480   : > { %s5055_s13 = scalar_lea.hbm %s7304_s26, 4096  ;;  %s5059_s24 = scalar_lea.hbm %s7842_s7, 8192 }
 0x481   : > { %p5056_p6 = scmp.ne.s32.totalorder %s7304_s26, %s5055_s13  ;;  %p5060_p7 = scmp.lt.u32.totalorder %s7304_s26, %s7842_s7 }
 0x482   : > { %p5061_p9 = scmp.lt.u32.totalorder %s5059_s24, %s5055_s13  ;;  %p5063_p1 = scmp.lt.u32.totalorder %s5055_s13, %s7304_s26 }
 0x483   : > { %p5057_p8 = pnand %p5056_p6, %p7840_p0 }
 0x484   : > { %p5062_p10 = por %p5061_p9, %p5060_p7 }
 0x485   : > { %p5058_p3 = pneg %p5057_p8 }
 0x486   : > { %p5064_p13 = por %p5063_p1, %p5062_p10 }
 0x488   : > { %p5065_p2 = pnand %p5064_p13, %p5058_p3 }
 0x48a   : > { %5068 = shalt.err (!%p5065_p2)
}
 0x48b   : > { %4389 = dma.vmem_to_hbm [thread:$0]  (%p7840_p0), %s7306_s21, 4096, %s7304_s26, %s3185_s14, %s5157_s20, %s5157_s20, %s5158_s15  }
 0x48c PF: > { %s3261_s8 = sand.u32 1, %s5119_s27   ;;  %p7843_p4 = scmp.ne.s32.totalorder %s7505_s25, 0 }
 0x48d   : > { %p7844_p5 = scmp.ge.s32.totalorder %s5139_s10, 2  ;;  %s3262_s30 = scalar_lea.sflag [#allocation4], %s3261_s8 }
 0x48f   : > { %p4416_p11 = pnand %p7844_p5, %p7843_p4 }
 0x491   : > { %5110 = dma.done.wait (!%p4416_p11), %s3262_s30, 4096  }
 0x492   : > { %5112 = vsyncadd (!%p4416_p11), %s3262_s30, 4294963200  ;;  %s7845_s19 = sadd.s32 4294967294, %s5139_s10  }
 0x493   : > { %s3270_s11 = sand.u32 1, %s7845_s19  }
 0x494   : > { %s3271_s1 = scalar_lea.sflag [#allocation15], %s3270_s11 }
 0x495   : > { %5114 = dma.done.wait (!%p4416_p11), %s3271_s1, 4096  }
 0x496   : > { %5116 = vsyncadd (!%p4416_p11), %s3271_s1, 4294963200  ;;  %s31_s10 = sadd.s32 1, %s5139_s10   ;;  %s7846_s27 = smov %s5123_s28 }
 0x497   : > { %p28_p0 = scmp.ge.s32.totalorder %s31_s10, 4   ;;  %s7847_s28 = smov %s5127_s29 }
 0x498   : > { %s7848_s29 = smov %s5390_s22  ;;  %s7849_s30 = smov %s5135_s9 }
 0x499   : > { %s7850_s9 = smov %s7852_s23  ;;  %30 = sbr.rel (!%p28_p0) target bundleno = 18 (0x12), region = 144 }
 0x4a0   :  { %3285 = vsyncpa [#allocation3], 1 }
 0x4a1   :  { %3287 = vsyncpa [#allocation3 + $0x1], 1 }
 0x4a2   :  { %3288 = vsyncpa [#allocation6], 1 }
 0x4a3   :  { %3289 = vsyncpa [#allocation9], 1 }
 0x4a4   :  { %3290 = vsyncpa [#allocation12], 1 }
 0x4a5   :  { %3291 = vsyncpa [#allocation4], 1 }
 0x4a6   :  { %3293 = vsyncpa [#allocation4 + $0x1], 1 }
 0x4a7   :  { %3294 = vsyncpa [#allocation15], 1 }
 0x4a8   :  { %3296 = vsyncpa [#allocation15 + $0x1], 1 }

</bundles_post_ra>
